<compile_context>
chip_gen: v7x
topology: tpu7x:2x2x1
jax: 0.10.0
libtpu: 0.0.40
codegen_flags: <defaults>
</compile_context>

<pallas_src>
import numpy as np
import jax
import jax.numpy as jnp
from jax.experimental import pallas as pl
from jax.experimental.pallas import tpu as pltpu

CP = 128  # lane-padded width for the edge_out hidden channels (48 -> 128)


def _interp_matrix(out_size, in_size):
    """Row interpolation matrix for bilinear resize with align_corners=True."""
    A = np.zeros((out_size, in_size), dtype=np.float32)
    if out_size == 1:
        coords = np.zeros((1,), dtype=np.float64)
    else:
        coords = np.arange(out_size, dtype=np.float64) * (in_size - 1) / (out_size - 1)
    i0 = np.clip(np.floor(coords).astype(np.int64), 0, in_size - 1)
    i1 = np.minimum(i0 + 1, in_size - 1)
    frac = (coords - i0).astype(np.float32)
    for i in range(out_size):
        A[i, i0[i]] += 1.0 - frac[i]
        A[i, i1[i]] += frac[i]
    return A


def _row_taps(A):
    """Static (source_row, weight) taps per output row (<=2 for bilinear)."""
    taps = []
    for i in range(A.shape[0]):
        nz = np.nonzero(A[i])[0]
        taps.append(tuple((int(p), float(A[i, p])) for p in nz))
    return taps


def edge_head_forward(seg_edge, low_fea, params):
    N, Hs, Ws, Cin = seg_edge.shape
    _, Hl, Wl, Clow = low_fea.shape
    w_bot, w_fuse, w3 = params["w_bot"], params["w_fuse"], params["w3"]
    bn_scale, bn_bias, w_out = params["bn_scale"], params["bn_bias"], params["w_out"]
    Cmid = w_fuse.shape[1]
    Cbot = w_bot.shape[1]
    Chid = w3.shape[3]
    M = Hl * Wl
    assert Chid <= 64 and 64 + Chid <= CP, "dx0/dx2 lane packing assumes Chid <= 64"

    # Separable bilinear-upsample operators (align_corners=True).
    h_taps = _row_taps(_interp_matrix(Hl, Hs))                      # static Python taps
    aw_bf = jnp.asarray(_interp_matrix(Wl, Ws), jnp.bfloat16)       # (Wl, Ws)

    # bf16 MXU operands (accumulation stays f32 inside the kernel).
    seg_bf = seg_edge.astype(jnp.bfloat16)
    low_bf = low_fea.astype(jnp.bfloat16)
    wbot_bf = w_bot.astype(jnp.bfloat16)
    wfa_bf = w_fuse[:Cin].astype(jnp.bfloat16)    # rows acting on (upsampled) seg_edge
    wfb_bf = w_fuse[Cin:].astype(jnp.bfloat16)    # rows acting on bot_fine(low_fea)

    # 3x3 conv weights: fold eval-mode BN scale, pack dx taps into two 128-lane
    # groups:  group A = [dx0 @ lanes 0:Chid, dx2 @ lanes 64:64+Chid],
    #          group B = [dx1 @ lanes 0:Chid].          -> (3, Cmid, 2*CP)
    w3f = w3 * bn_scale.reshape(1, 1, 1, Chid)
    zA = jnp.zeros((3, Cmid, 64 - Chid), w3.dtype)
    zB = jnp.zeros((3, Cmid, CP - 64 - Chid), w3.dtype)
    gA = jnp.concatenate([w3f[:, 0], zA, w3f[:, 2], zB], axis=-1)          # (3,Cmid,CP)
    gB = jnp.pad(w3f[:, 1], ((0, 0), (0, 0), (0, CP - Chid)))              # (3,Cmid,CP)
    w3s_bf = jnp.concatenate([gA, gB], axis=-1).astype(jnp.bfloat16)       # (3,Cmid,2CP)

    # Padded lanes MUST stay zero in bnb/wout so junk in padding lanes of the
    # accumulator is killed by the final projection.
    bnb = jnp.pad(bn_bias.reshape(-1), (0, CP - Chid)).reshape(1, CP)
    wout = jnp.pad(w_out[:, 0], (0, CP - Chid)).reshape(1, CP)

    def kernel(seg_ref, low_ref, aw_ref, wbot_ref, wfa_ref, wfb_ref, w3s_ref,
               bnb_ref, wout_ref, edge_ref, fused_ref, xh_ref, acc_ref):
        # ---- edge_fusion (seg half) BEFORE upsampling (1x1 commutes with resize) ----
        seg2 = seg_ref[0].reshape(Hs * Ws, Cin)                            # bf16
        segf = jnp.dot(seg2, wfa_ref[...],
                       preferred_element_type=jnp.float32)                 # (Hs*Ws,Cmid)
        segf3 = segf.astype(jnp.bfloat16).reshape(Hs, Ws, Cmid)

        # ---- W-interp on the MXU (batched over source rows) ------------------------
        awb = jnp.broadcast_to(aw_ref[...][None], (Hs, Wl, Ws))            # bf16
        y = jnp.einsum("pjq,pqc->pjc", awb, segf3,
                       preferred_element_type=jnp.float32)                 # (Hs,Wl,Cmid)

        # ---- bot_fine 1x1 + edge_fusion (low half) ---------------------------------
        low2 = low_ref[0].reshape(M, Clow)                                 # bf16
        low48 = jnp.dot(low2, wbot_ref[...], preferred_element_type=jnp.float32)
        lowp = jnp.dot(low48.astype(jnp.bfloat16), wfb_ref[...],
                       preferred_element_type=jnp.float32)                 # (M, Cmid)
        lowp3 = lowp.reshape(Hl, Wl, Cmid)

        # ---- H-interp (static <=2-tap per row) + single bf16 write of fused --------
        xh_ref[0] = jnp.zeros((Wl, Cmid), jnp.bfloat16)                    # top halo
        xh_ref[Hl + 1] = jnp.zeros((Wl, Cmid), jnp.bfloat16)               # bottom halo
        for i in range(Hl):
            (p0, f0), *rest = h_taps[i]
            row = f0 * y[p0]
            for (p1, f1) in rest:
                row = row + f1 * y[p1]
            row_bf = (row + lowp3[i]).astype(jnp.bfloat16)                 # (Wl, Cmid)
            fused_ref[0, i] = row_bf                                       # seg_edge out
            xh_ref[1 + i] = row_bf                                         # conv input

        # ---- 3x3 conv: per dy one wide matmul; W halo via static-offset adds -------
        for dy in range(3):
            x2 = xh_ref[dy:dy + Hl].reshape(M, Cmid)                       # bf16 rows
            r = jnp.dot(x2, w3s_ref[dy], preferred_element_type=jnp.float32)
            r3 = r.reshape(Hl, Wl, 2 * CP)
            rA = r3[:, :, 0:CP]          # dx=0 @ lanes 0:Chid, dx=2 @ lanes 64:64+Chid
            rB = r3[:, :, CP:2 * CP]     # dx=1 @ lanes 0:Chid
            rA2 = pltpu.roll(rA, 64, axis=2)       # dx=2 taps -> lanes 0:Chid (XLU)
            if dy == 0:
                acc_ref[...] = rB
            else:
                acc_ref[...] = acc_ref[...] + rB
            # dx=0: out[h, w] += rA[h, w-1]  (w >= 1)
            acc_ref[:, 1:, :] = acc_ref[:, 1:, :] + rA[:, :Wl - 1, :]
            # dx=2: out[h, w] += rA2[h, w+1] (w <= Wl-2)
            acc_ref[:, :Wl - 1, :] = acc_ref[:, :Wl - 1, :] + rA2[:, 1:, :]

        # ---- BN bias (scale folded) + ReLU + 1x1 projection (lane reduce) ----------
        h = jnp.maximum(acc_ref[...].reshape(M, CP) + bnb_ref[...], 0.0)   # (M, CP)
        edge_ref[0, 0] = jnp.sum(h * wout_ref[...], axis=-1)               # lane-dense

    edge_flat, fused_bf = pl.pallas_call(
        kernel,
        out_shape=(jax.ShapeDtypeStruct((N, 1, M), jnp.float32),
                   jax.ShapeDtypeStruct((N, Hl, Wl, Cmid), jnp.bfloat16)),
        grid_spec=pltpu.PrefetchScalarGridSpec(
            num_scalar_prefetch=0,
            grid=(N,),
            in_specs=[
                pl.BlockSpec((1, Hs, Ws, Cin), lambda n: (n, 0, 0, 0)),
                pl.BlockSpec((1, Hl, Wl, Clow), lambda n: (n, 0, 0, 0)),
                pl.BlockSpec((Wl, Ws), lambda n: (0, 0)),
                pl.BlockSpec((Clow, Cbot), lambda n: (0, 0)),
                pl.BlockSpec((Cin, Cmid), lambda n: (0, 0)),
                pl.BlockSpec((Cbot, Cmid), lambda n: (0, 0)),
                pl.BlockSpec((3, Cmid, 2 * CP), lambda n: (0, 0, 0)),
                pl.BlockSpec((1, CP), lambda n: (0, 0)),
                pl.BlockSpec((1, CP), lambda n: (0, 0)),
            ],
            out_specs=(
                pl.BlockSpec((1, 1, M), lambda n: (n, 0, 0)),
                pl.BlockSpec((1, Hl, Wl, Cmid), lambda n: (n, 0, 0, 0)),
            ),
            scratch_shapes=[pltpu.VMEM((Hl + 2, Wl, Cmid), jnp.bfloat16),
                            pltpu.VMEM((Hl, Wl, CP), jnp.float32)],
        ),
        compiler_params=pltpu.CompilerParams(dimension_semantics=("parallel",)),
    )(seg_bf, low_bf, aw_bf, wbot_bf, wfa_bf, wfb_bf, w3s_bf, bnb, wout)

    edge_out = edge_flat.reshape(N, Hl, Wl, 1)
    fused = fused_bf.astype(jnp.float32)
    # PyTorch returns (seg_edge_out, seg_edge)
    return edge_out, fused


def edge_head_reference(seg_edge, low_fea, params):
    """Pure-JAX f32 reference (same NHWC layout); precision scoped explicitly."""
    prec = jax.lax.Precision.HIGHEST
    N, Hs, Ws, Cin = seg_edge.shape
    _, Hl, Wl, _ = low_fea.shape
    Ah = jnp.asarray(_interp_matrix(Hl, Hs))
    Aw = jnp.asarray(_interp_matrix(Wl, Ws))
    up = jnp.einsum("ip,npqc->niqc", Ah, seg_edge, precision=prec)
    up = jnp.einsum("jq,niqc->nijc", Aw, up, precision=prec)
    low48 = jnp.einsum("nhwc,co->nhwo", low_fea, params["w_bot"], precision=prec)
    fused_in = jnp.concatenate([up, low48], axis=-1)
    fused = jnp.einsum("nhwc,cd->nhwd", fused_in, params["w_fuse"], precision=prec)
    conv = jax.lax.conv_general_dilated(
        fused, params["w3"], window_strides=(1, 1), padding="SAME",
        dimension_numbers=("NHWC", "HWIO", "NHWC"), precision=prec)
    h = jnp.maximum(conv * params["bn_scale"].reshape(1, 1, 1, -1)
                    + params["bn_bias"].reshape(1, 1, 1, -1), 0.0)
    out = jnp.einsum("nhwc,co->nhwo", h, params["w_out"], precision=prec)
    return out, fused


if __name__ == "__main__":
    IN_CH = 360   # hrnet48 seg_edge channels (module __init__)
    LOW_CH = 96   # low_fea channels
    BOT_CH = 48
    N, Hs, Ws = 2, 8, 8      # small spatial sizes
    Hl, Wl = 16, 16

    key = jax.random.PRNGKey(0)
    k = jax.random.split(key, 10)
    seg_edge = jax.random.normal(k[0], (N, Hs, Ws, IN_CH), jnp.float32)
    low_fea = jax.random.normal(k[1], (N, Hl, Wl, LOW_CH), jnp.float32)

    # Deterministic synthetic parameters (shapes from EdgeHead.__init__).
    w_bot = 0.05 * jax.random.normal(k[2], (LOW_CH, BOT_CH), jnp.float32)            # bot_fine 1x1
    w_fuse = 0.02 * jax.random.normal(k[3], (IN_CH + BOT_CH, IN_CH), jnp.float32)    # edge_fusion 1x1
    w3 = 0.02 * jax.random.normal(k[4], (3, 3, IN_CH, BOT_CH), jnp.float32)          # edge_out conv3x3 (HWIO)
    gamma = 1.0 + 0.1 * jax.random.normal(k[5], (BOT_CH,), jnp.float32)
    beta = 0.1 * jax.random.normal(k[6], (BOT_CH,), jnp.float32)
    run_mean = 0.1 * jax.random.normal(k[7], (BOT_CH,), jnp.float32)
    run_var = 1.0 + 0.1 * jnp.abs(jax.random.normal(k[8], (BOT_CH,), jnp.float32))
    w_out = 0.1 * jax.random.normal(k[9], (BOT_CH, 1), jnp.float32)                  # edge_out conv1x1

    eps = 1e-5
    bn_scale = (gamma / jnp.sqrt(run_var + eps)).reshape(1, BOT_CH)
    bn_bias = (beta - run_mean * (gamma / jnp.sqrt(run_var + eps))).reshape(1, BOT_CH)

    params = dict(w_bot=w_bot, w_fuse=w_fuse, w3=w3,
                  bn_scale=bn_scale, bn_bias=bn_bias, w_out=w_out)

    out_edge, out_fused = jax.jit(edge_head_forward)(seg_edge, low_fea, params)
    jax.block_until_ready((out_edge, out_fused))

    ref_edge, ref_fused = edge_head_reference(seg_edge, low_fea, params)
    assert out_edge.shape == (N, Hl, Wl, 1)
    assert out_fused.shape == (N, Hl, Wl, IN_CH)
    # bf16 MXU operands with f32 accumulation (and bf16-stored fused) -> loose tol.
    np.testing.assert_allclose(np.asarray(out_fused), np.asarray(ref_fused),
                               rtol=2e-2, atol=2e-2)
    np.testing.assert_allclose(np.asarray(out_edge), np.asarray(ref_edge),
                               rtol=2e-2, atol=2e-2)
    print("KERNEL_OK")
</pallas_src>

<mosaic_0001>
module attributes {stable_mosaic.version = 11 : i64} {
  func.func @kernel(%arg0: i32, %arg1: memref<1x8x8x360xbf16, #tpu.memory_space<vmem>>, %arg2: memref<1x16x16x96xbf16, #tpu.memory_space<vmem>>, %arg3: memref<16x8xbf16, #tpu.memory_space<vmem>>, %arg4: memref<96x48xbf16, #tpu.memory_space<vmem>>, %arg5: memref<360x360xbf16, #tpu.memory_space<vmem>>, %arg6: memref<48x360xbf16, #tpu.memory_space<vmem>>, %arg7: memref<3x360x256xbf16, #tpu.memory_space<vmem>>, %arg8: memref<1x128xf32, #tpu.memory_space<vmem>>, %arg9: memref<1x128xf32, #tpu.memory_space<vmem>>, %arg10: memref<1x1x256xf32, #tpu.memory_space<vmem>>, %arg11: memref<1x16x16x360xbf16, #tpu.memory_space<vmem>>, %arg12: memref<18x16x360xbf16, #tpu.memory_space<vmem>>, %arg13: memref<16x16x128xf32, #tpu.memory_space<vmem>>) attributes {dimension_semantics = [#tpu.dimension_semantics<parallel>], iteration_bounds = array<i64: 2>, scalar_prefetch = 0 : i64, scratch_operands = 2 : i64, tpu.core_type = #tpu.core_type<tc>, window_params = [{transform_indices = @transform_0, window_bounds = array<i64: 1, 8, 8, 360>}, {transform_indices = @transform_1, window_bounds = array<i64: 1, 16, 16, 96>}, {pipeline_mode = #tpu.pipeline_mode<synchronous>, transform_indices = @transform_2, window_bounds = array<i64: 16, 8>}, {pipeline_mode = #tpu.pipeline_mode<synchronous>, transform_indices = @transform_3, window_bounds = array<i64: 96, 48>}, {pipeline_mode = #tpu.pipeline_mode<synchronous>, transform_indices = @transform_4, window_bounds = array<i64: 360, 360>}, {pipeline_mode = #tpu.pipeline_mode<synchronous>, transform_indices = @transform_5, window_bounds = array<i64: 48, 360>}, {pipeline_mode = #tpu.pipeline_mode<synchronous>, transform_indices = @transform_6, window_bounds = array<i64: 3, 360, 256>}, {pipeline_mode = #tpu.pipeline_mode<synchronous>, transform_indices = @transform_7, window_bounds = array<i64: 1, 128>}, {pipeline_mode = #tpu.pipeline_mode<synchronous>, transform_indices = @transform_8, window_bounds = array<i64: 1, 128>}, {transform_indices = @transform_9, window_bounds = array<i64: 1, 1, 256>}, {transform_indices = @transform_10, window_bounds = array<i64: 1, 16, 16, 360>}]} {
    %c0 = arith.constant 0 : index
    %c0_0 = arith.constant 0 : index
    %c0_1 = arith.constant 0 : index
    %c0_2 = arith.constant 0 : index
    %0 = vector.load %arg1[%c0, %c0_0, %c0_1, %c0_2] : memref<1x8x8x360xbf16, #tpu.memory_space<vmem>>, vector<1x8x8x360xbf16>
    %1 = vector.shape_cast %0 : vector<1x8x8x360xbf16> to vector<8x8x360xbf16>
    %2 = vector.shape_cast %1 : vector<8x8x360xbf16> to vector<64x360xbf16>
    %c0_3 = arith.constant 0 : index
    %c0_4 = arith.constant 0 : index
    %3 = vector.load %arg5[%c0_3, %c0_4] : memref<360x360xbf16, #tpu.memory_space<vmem>>, vector<360x360xbf16>
    %cst = arith.constant dense<0.000000e+00> : vector<64x360xf32>
    %4 = tpu.matmul %2, %3, %cst {dimension_numbers = #tpu.dot_dimension_numbers<[1], [0], [0], [1], [0, 0, 1, 1], [], []>} : vector<64x360xbf16>, vector<360x360xbf16>, vector<64x360xf32> -> vector<64x360xf32>
    %5 = arith.truncf %4 : vector<64x360xf32> to vector<64x360xbf16>
    %6 = vector.shape_cast %5 : vector<64x360xbf16> to vector<8x8x360xbf16>
    %c0_5 = arith.constant 0 : index
    %c0_6 = arith.constant 0 : index
    %7 = vector.load %arg3[%c0_5, %c0_6] : memref<16x8xbf16, #tpu.memory_space<vmem>>, vector<16x8xbf16>
    %8 = vector.shape_cast %7 : vector<16x8xbf16> to vector<1x16x8xbf16>
    %9 = vector.shape_cast %8 : vector<1x16x8xbf16> to vector<1x16x8xbf16>
    %10 = vector.broadcast %9 : vector<1x16x8xbf16> to vector<8x16x8xbf16>
    "tpu.trace_start"() <{level = 10 : i32, message = "pjq,pqc->pjc"}> : () -> ()
    %cst_7 = arith.constant dense<0.000000e+00> : vector<8x16x360xf32>
    %11 = tpu.matmul %10, %6, %cst_7 {dimension_numbers = #tpu.dot_dimension_numbers<[2], [1], [1], [2], [0, 0, 0, 1, 1, 2], [0], [0]>} : vector<8x16x8xbf16>, vector<8x8x360xbf16>, vector<8x16x360xf32> -> vector<8x16x360xf32>
    "tpu.trace_stop"() : () -> ()
    %c0_8 = arith.constant 0 : index
    %c0_9 = arith.constant 0 : index
    %c0_10 = arith.constant 0 : index
    %c0_11 = arith.constant 0 : index
    %12 = vector.load %arg2[%c0_8, %c0_9, %c0_10, %c0_11] : memref<1x16x16x96xbf16, #tpu.memory_space<vmem>>, vector<1x16x16x96xbf16>
    %13 = vector.shape_cast %12 : vector<1x16x16x96xbf16> to vector<16x16x96xbf16>
    %14 = vector.shape_cast %13 : vector<16x16x96xbf16> to vector<256x96xbf16>
    %c0_12 = arith.constant 0 : index
    %c0_13 = arith.constant 0 : index
    %15 = vector.load %arg4[%c0_12, %c0_13] : memref<96x48xbf16, #tpu.memory_space<vmem>>, vector<96x48xbf16>
    %cst_14 = arith.constant dense<0.000000e+00> : vector<256x48xf32>
    %16 = tpu.matmul %14, %15, %cst_14 {dimension_numbers = #tpu.dot_dimension_numbers<[1], [0], [0], [1], [0, 0, 1, 1], [], []>} : vector<256x96xbf16>, vector<96x48xbf16>, vector<256x48xf32> -> vector<256x48xf32>
    %17 = arith.truncf %16 : vector<256x48xf32> to vector<256x48xbf16>
    %c0_15 = arith.constant 0 : index
    %c0_16 = arith.constant 0 : index
    %18 = vector.load %arg6[%c0_15, %c0_16] : memref<48x360xbf16, #tpu.memory_space<vmem>>, vector<48x360xbf16>
    %cst_17 = arith.constant dense<0.000000e+00> : vector<256x360xf32>
    %19 = tpu.matmul %17, %18, %cst_17 {dimension_numbers = #tpu.dot_dimension_numbers<[1], [0], [0], [1], [0, 0, 1, 1], [], []>} : vector<256x48xbf16>, vector<48x360xbf16>, vector<256x360xf32> -> vector<256x360xf32>
    %20 = vector.shape_cast %19 : vector<256x360xf32> to vector<16x16x360xf32>
    %cst_18 = arith.constant 0.000000e+00 : bf16
    %21 = vector.broadcast %cst_18 : bf16 to vector<16x360xbf16>
    %c0_19 = arith.constant 0 : index
    %c0_20 = arith.constant 0 : index
    %c0_21 = arith.constant 0 : index
    %22 = vector.load %arg12[%c0_19, %c0_20, %c0_21] : memref<18x16x360xbf16, #tpu.memory_space<vmem>>, vector<1x16x360xbf16>
    %23 = vector.shape_cast %22 : vector<1x16x360xbf16> to vector<16x360xbf16>
    %24 = vector.shape_cast %21 : vector<16x360xbf16> to vector<1x16x360xbf16>
    tpu.vector_store %arg12[%c0_19, %c0_20, %c0_21], %24 {strides = array<i32>} : memref<18x16x360xbf16, #tpu.memory_space<vmem>>, vector<1x16x360xbf16>,
    %cst_22 = arith.constant 0.000000e+00 : bf16
    %25 = vector.broadcast %cst_22 : bf16 to vector<16x360xbf16>
    %c17 = arith.constant 17 : index
    %c0_23 = arith.constant 0 : index
    %c0_24 = arith.constant 0 : index
    %26 = vector.load %arg12[%c17, %c0_23, %c0_24] : memref<18x16x360xbf16, #tpu.memory_space<vmem>>, vector<1x16x360xbf16>
    %27 = vector.shape_cast %26 : vector<1x16x360xbf16> to vector<16x360xbf16>
    %28 = vector.shape_cast %25 : vector<16x360xbf16> to vector<1x16x360xbf16>
    tpu.vector_store %arg12[%c17, %c0_23, %c0_24], %28 {strides = array<i32>} : memref<18x16x360xbf16, #tpu.memory_space<vmem>>, vector<1x16x360xbf16>,
    %29 = vector.extract_strided_slice %11 {offsets = [0, 0, 0], sizes = [1, 16, 360], strides = [1, 1, 1]} : vector<8x16x360xf32> to vector<1x16x360xf32>
    %30 = vector.shape_cast %29 : vector<1x16x360xf32> to vector<16x360xf32>
    %cst_25 = arith.constant 1.000000e+00 : f32
    %31 = vector.broadcast %cst_25 : f32 to vector<16x360xf32>
    %32 = arith.mulf %31, %30 : vector<16x360xf32>
    %33 = vector.extract_strided_slice %20 {offsets = [0, 0, 0], sizes = [1, 16, 360], strides = [1, 1, 1]} : vector<16x16x360xf32> to vector<1x16x360xf32>
    %34 = vector.shape_cast %33 : vector<1x16x360xf32> to vector<16x360xf32>
    %35 = arith.addf %32, %34 : vector<16x360xf32>
    %36 = arith.truncf %35 : vector<16x360xf32> to vector<16x360xbf16>
    %c0_26 = arith.constant 0 : index
    %c0_27 = arith.constant 0 : index
    %c0_28 = arith.constant 0 : index
    %c0_29 = arith.constant 0 : index
    %37 = vector.load %arg11[%c0_26, %c0_27, %c0_28, %c0_29] : memref<1x16x16x360xbf16, #tpu.memory_space<vmem>>, vector<1x1x16x360xbf16>
    %38 = vector.shape_cast %37 : vector<1x1x16x360xbf16> to vector<16x360xbf16>
    %39 = vector.shape_cast %36 : vector<16x360xbf16> to vector<1x1x16x360xbf16>
    tpu.vector_store %arg11[%c0_26, %c0_27, %c0_28, %c0_29], %39 {strides = array<i32>} : memref<1x16x16x360xbf16, #tpu.memory_space<vmem>>, vector<1x1x16x360xbf16>,
    %c1 = arith.constant 1 : index
    %c0_30 = arith.constant 0 : index
    %c0_31 = arith.constant 0 : index
    %40 = vector.load %arg12[%c1, %c0_30, %c0_31] : memref<18x16x360xbf16, #tpu.memory_space<vmem>>, vector<1x16x360xbf16>
    %41 = vector.shape_cast %40 : vector<1x16x360xbf16> to vector<16x360xbf16>
    %42 = vector.shape_cast %36 : vector<16x360xbf16> to vector<1x16x360xbf16>
    tpu.vector_store %arg12[%c1, %c0_30, %c0_31], %42 {strides = array<i32>} : memref<18x16x360xbf16, #tpu.memory_space<vmem>>, vector<1x16x360xbf16>,
    %43 = vector.extract_strided_slice %11 {offsets = [0, 0, 0], sizes = [1, 16, 360], strides = [1, 1, 1]} : vector<8x16x360xf32> to vector<1x16x360xf32>
    %44 = vector.shape_cast %43 : vector<1x16x360xf32> to vector<16x360xf32>
    %cst_32 = arith.constant 0.533333302 : f32
    %45 = vector.broadcast %cst_32 : f32 to vector<16x360xf32>
    %46 = arith.mulf %45, %44 : vector<16x360xf32>
    %47 = vector.extract_strided_slice %11 {offsets = [1, 0, 0], sizes = [1, 16, 360], strides = [1, 1, 1]} : vector<8x16x360xf32> to vector<1x16x360xf32>
    %48 = vector.shape_cast %47 : vector<1x16x360xf32> to vector<16x360xf32>
    %cst_33 = arith.constant 0.466666669 : f32
    %49 = vector.broadcast %cst_33 : f32 to vector<16x360xf32>
    %50 = arith.mulf %49, %48 : vector<16x360xf32>
    %51 = arith.addf %46, %50 : vector<16x360xf32>
    %52 = vector.extract_strided_slice %20 {offsets = [1, 0, 0], sizes = [1, 16, 360], strides = [1, 1, 1]} : vector<16x16x360xf32> to vector<1x16x360xf32>
    %53 = vector.shape_cast %52 : vector<1x16x360xf32> to vector<16x360xf32>
    %54 = arith.addf %51, %53 : vector<16x360xf32>
    %55 = arith.truncf %54 : vector<16x360xf32> to vector<16x360xbf16>
    %c0_34 = arith.constant 0 : index
    %c1_35 = arith.constant 1 : index
    %c0_36 = arith.constant 0 : index
    %c0_37 = arith.constant 0 : index
    %56 = vector.load %arg11[%c0_34, %c1_35, %c0_36, %c0_37] : memref<1x16x16x360xbf16, #tpu.memory_space<vmem>>, vector<1x1x16x360xbf16>
    %57 = vector.shape_cast %56 : vector<1x1x16x360xbf16> to vector<16x360xbf16>
    %58 = vector.shape_cast %55 : vector<16x360xbf16> to vector<1x1x16x360xbf16>
    tpu.vector_store %arg11[%c0_34, %c1_35, %c0_36, %c0_37], %58 {strides = array<i32>} : memref<1x16x16x360xbf16, #tpu.memory_space<vmem>>, vector<1x1x16x360xbf16>,
    %c2 = arith.constant 2 : index
    %c0_38 = arith.constant 0 : index
    %c0_39 = arith.constant 0 : index
    %59 = vector.load %arg12[%c2, %c0_38, %c0_39] : memref<18x16x360xbf16, #tpu.memory_space<vmem>>, vector<1x16x360xbf16>
    %60 = vector.shape_cast %59 : vector<1x16x360xbf16> to vector<16x360xbf16>
    %61 = vector.shape_cast %55 : vector<16x360xbf16> to vector<1x16x360xbf16>
    tpu.vector_store %arg12[%c2, %c0_38, %c0_39], %61 {strides = array<i32>} : memref<18x16x360xbf16, #tpu.memory_space<vmem>>, vector<1x16x360xbf16>,
    %62 = vector.extract_strided_slice %11 {offsets = [0, 0, 0], sizes = [1, 16, 360], strides = [1, 1, 1]} : vector<8x16x360xf32> to vector<1x16x360xf32>
    %63 = vector.shape_cast %62 : vector<1x16x360xf32> to vector<16x360xf32>
    %cst_40 = arith.constant 0.0666666627 : f32
    %64 = vector.broadcast %cst_40 : f32 to vector<16x360xf32>
    %65 = arith.mulf %64, %63 : vector<16x360xf32>
    %66 = vector.extract_strided_slice %11 {offsets = [1, 0, 0], sizes = [1, 16, 360], strides = [1, 1, 1]} : vector<8x16x360xf32> to vector<1x16x360xf32>
    %67 = vector.shape_cast %66 : vector<1x16x360xf32> to vector<16x360xf32>
    %cst_41 = arith.constant 0.933333337 : f32
    %68 = vector.broadcast %cst_41 : f32 to vector<16x360xf32>
    %69 = arith.mulf %68, %67 : vector<16x360xf32>
    %70 = arith.addf %65, %69 : vector<16x360xf32>
    %71 = vector.extract_strided_slice %20 {offsets = [2, 0, 0], sizes = [1, 16, 360], strides = [1, 1, 1]} : vector<16x16x360xf32> to vector<1x16x360xf32>
    %72 = vector.shape_cast %71 : vector<1x16x360xf32> to vector<16x360xf32>
    %73 = arith.addf %70, %72 : vector<16x360xf32>
    %74 = arith.truncf %73 : vector<16x360xf32> to vector<16x360xbf16>
    %c0_42 = arith.constant 0 : index
    %c2_43 = arith.constant 2 : index
    %c0_44 = arith.constant 0 : index
    %c0_45 = arith.constant 0 : index
    %75 = vector.load %arg11[%c0_42, %c2_43, %c0_44, %c0_45] : memref<1x16x16x360xbf16, #tpu.memory_space<vmem>>, vector<1x1x16x360xbf16>
    %76 = vector.shape_cast %75 : vector<1x1x16x360xbf16> to vector<16x360xbf16>
    %77 = vector.shape_cast %74 : vector<16x360xbf16> to vector<1x1x16x360xbf16>
    tpu.vector_store %arg11[%c0_42, %c2_43, %c0_44, %c0_45], %77 {strides = array<i32>} : memref<1x16x16x360xbf16, #tpu.memory_space<vmem>>, vector<1x1x16x360xbf16>,
    %c3 = arith.constant 3 : index
    %c0_46 = arith.constant 0 : index
    %c0_47 = arith.constant 0 : index
    %78 = vector.load %arg12[%c3, %c0_46, %c0_47] : memref<18x16x360xbf16, #tpu.memory_space<vmem>>, vector<1x16x360xbf16>
    %79 = vector.shape_cast %78 : vector<1x16x360xbf16> to vector<16x360xbf16>
    %80 = vector.shape_cast %74 : vector<16x360xbf16> to vector<1x16x360xbf16>
    tpu.vector_store %arg12[%c3, %c0_46, %c0_47], %80 {strides = array<i32>} : memref<18x16x360xbf16, #tpu.memory_space<vmem>>, vector<1x16x360xbf16>,
    %81 = vector.extract_strided_slice %11 {offsets = [1, 0, 0], sizes = [1, 16, 360], strides = [1, 1, 1]} : vector<8x16x360xf32> to vector<1x16x360xf32>
    %82 = vector.shape_cast %81 : vector<1x16x360xf32> to vector<16x360xf32>
    %cst_48 = arith.constant 6.000000e-01 : f32
    %83 = vector.broadcast %cst_48 : f32 to vector<16x360xf32>
    %84 = arith.mulf %83, %82 : vector<16x360xf32>
    %85 = vector.extract_strided_slice %11 {offsets = [2, 0, 0], sizes = [1, 16, 360], strides = [1, 1, 1]} : vector<8x16x360xf32> to vector<1x16x360xf32>
    %86 = vector.shape_cast %85 : vector<1x16x360xf32> to vector<16x360xf32>
    %cst_49 = arith.constant 4.000000e-01 : f32
    %87 = vector.broadcast %cst_49 : f32 to vector<16x360xf32>
    %88 = arith.mulf %87, %86 : vector<16x360xf32>
    %89 = arith.addf %84, %88 : vector<16x360xf32>
    %90 = vector.extract_strided_slice %20 {offsets = [3, 0, 0], sizes = [1, 16, 360], strides = [1, 1, 1]} : vector<16x16x360xf32> to vector<1x16x360xf32>
    %91 = vector.shape_cast %90 : vector<1x16x360xf32> to vector<16x360xf32>
    %92 = arith.addf %89, %91 : vector<16x360xf32>
    %93 = arith.truncf %92 : vector<16x360xf32> to vector<16x360xbf16>
    %c0_50 = arith.constant 0 : index
    %c3_51 = arith.constant 3 : index
    %c0_52 = arith.constant 0 : index
    %c0_53 = arith.constant 0 : index
    %94 = vector.load %arg11[%c0_50, %c3_51, %c0_52, %c0_53] : memref<1x16x16x360xbf16, #tpu.memory_space<vmem>>, vector<1x1x16x360xbf16>
    %95 = vector.shape_cast %94 : vector<1x1x16x360xbf16> to vector<16x360xbf16>
    %96 = vector.shape_cast %93 : vector<16x360xbf16> to vector<1x1x16x360xbf16>
    tpu.vector_store %arg11[%c0_50, %c3_51, %c0_52, %c0_53], %96 {strides = array<i32>} : memref<1x16x16x360xbf16, #tpu.memory_space<vmem>>, vector<1x1x16x360xbf16>,
    %c4 = arith.constant 4 : index
    %c0_54 = arith.constant 0 : index
    %c0_55 = arith.constant 0 : index
    %97 = vector.load %arg12[%c4, %c0_54, %c0_55] : memref<18x16x360xbf16, #tpu.memory_space<vmem>>, vector<1x16x360xbf16>
    %98 = vector.shape_cast %97 : vector<1x16x360xbf16> to vector<16x360xbf16>
    %99 = vector.shape_cast %93 : vector<16x360xbf16> to vector<1x16x360xbf16>
    tpu.vector_store %arg12[%c4, %c0_54, %c0_55], %99 {strides = array<i32>} : memref<18x16x360xbf16, #tpu.memory_space<vmem>>, vector<1x16x360xbf16>,
    %100 = vector.extract_strided_slice %11 {offsets = [1, 0, 0], sizes = [1, 16, 360], strides = [1, 1, 1]} : vector<8x16x360xf32> to vector<1x16x360xf32>
    %101 = vector.shape_cast %100 : vector<1x16x360xf32> to vector<16x360xf32>
    %cst_56 = arith.constant 0.133333325 : f32
    %102 = vector.broadcast %cst_56 : f32 to vector<16x360xf32>
    %103 = arith.mulf %102, %101 : vector<16x360xf32>
    %104 = vector.extract_strided_slice %11 {offsets = [2, 0, 0], sizes = [1, 16, 360], strides = [1, 1, 1]} : vector<8x16x360xf32> to vector<1x16x360xf32>
    %105 = vector.shape_cast %104 : vector<1x16x360xf32> to vector<16x360xf32>
    %cst_57 = arith.constant 0.866666674 : f32
    %106 = vector.broadcast %cst_57 : f32 to vector<16x360xf32>
    %107 = arith.mulf %106, %105 : vector<16x360xf32>
    %108 = arith.addf %103, %107 : vector<16x360xf32>
    %109 = vector.extract_strided_slice %20 {offsets = [4, 0, 0], sizes = [1, 16, 360], strides = [1, 1, 1]} : vector<16x16x360xf32> to vector<1x16x360xf32>
    %110 = vector.shape_cast %109 : vector<1x16x360xf32> to vector<16x360xf32>
    %111 = arith.addf %108, %110 : vector<16x360xf32>
    %112 = arith.truncf %111 : vector<16x360xf32> to vector<16x360xbf16>
    %c0_58 = arith.constant 0 : index
    %c4_59 = arith.constant 4 : index
    %c0_60 = arith.constant 0 : index
    %c0_61 = arith.constant 0 : index
    %113 = vector.load %arg11[%c0_58, %c4_59, %c0_60, %c0_61] : memref<1x16x16x360xbf16, #tpu.memory_space<vmem>>, vector<1x1x16x360xbf16>
    %114 = vector.shape_cast %113 : vector<1x1x16x360xbf16> to vector<16x360xbf16>
    %115 = vector.shape_cast %112 : vector<16x360xbf16> to vector<1x1x16x360xbf16>
    tpu.vector_store %arg11[%c0_58, %c4_59, %c0_60, %c0_61], %115 {strides = array<i32>} : memref<1x16x16x360xbf16, #tpu.memory_space<vmem>>, vector<1x1x16x360xbf16>,
    %c5 = arith.constant 5 : index
    %c0_62 = arith.constant 0 : index
    %c0_63 = arith.constant 0 : index
    %116 = vector.load %arg12[%c5, %c0_62, %c0_63] : memref<18x16x360xbf16, #tpu.memory_space<vmem>>, vector<1x16x360xbf16>
    %117 = vector.shape_cast %116 : vector<1x16x360xbf16> to vector<16x360xbf16>
    %118 = vector.shape_cast %112 : vector<16x360xbf16> to vector<1x16x360xbf16>
    tpu.vector_store %arg12[%c5, %c0_62, %c0_63], %118 {strides = array<i32>} : memref<18x16x360xbf16, #tpu.memory_space<vmem>>, vector<1x16x360xbf16>,
    %119 = vector.extract_strided_slice %11 {offsets = [2, 0, 0], sizes = [1, 16, 360], strides = [1, 1, 1]} : vector<8x16x360xf32> to vector<1x16x360xf32>
    %120 = vector.shape_cast %119 : vector<1x16x360xf32> to vector<16x360xf32>
    %cst_64 = arith.constant 0.666666627 : f32
    %121 = vector.broadcast %cst_64 : f32 to vector<16x360xf32>
    %122 = arith.mulf %121, %120 : vector<16x360xf32>
    %123 = vector.extract_strided_slice %11 {offsets = [3, 0, 0], sizes = [1, 16, 360], strides = [1, 1, 1]} : vector<8x16x360xf32> to vector<1x16x360xf32>
    %124 = vector.shape_cast %123 : vector<1x16x360xf32> to vector<16x360xf32>
    %cst_65 = arith.constant 0.333333343 : f32
    %125 = vector.broadcast %cst_65 : f32 to vector<16x360xf32>
    %126 = arith.mulf %125, %124 : vector<16x360xf32>
    %127 = arith.addf %122, %126 : vector<16x360xf32>
    %128 = vector.extract_strided_slice %20 {offsets = [5, 0, 0], sizes = [1, 16, 360], strides = [1, 1, 1]} : vector<16x16x360xf32> to vector<1x16x360xf32>
    %129 = vector.shape_cast %128 : vector<1x16x360xf32> to vector<16x360xf32>
    %130 = arith.addf %127, %129 : vector<16x360xf32>
    %131 = arith.truncf %130 : vector<16x360xf32> to vector<16x360xbf16>
    %c0_66 = arith.constant 0 : index
    %c5_67 = arith.constant 5 : index
    %c0_68 = arith.constant 0 : index
    %c0_69 = arith.constant 0 : index
    %132 = vector.load %arg11[%c0_66, %c5_67, %c0_68, %c0_69] : memref<1x16x16x360xbf16, #tpu.memory_space<vmem>>, vector<1x1x16x360xbf16>
    %133 = vector.shape_cast %132 : vector<1x1x16x360xbf16> to vector<16x360xbf16>
    %134 = vector.shape_cast %131 : vector<16x360xbf16> to vector<1x1x16x360xbf16>
    tpu.vector_store %arg11[%c0_66, %c5_67, %c0_68, %c0_69], %134 {strides = array<i32>} : memref<1x16x16x360xbf16, #tpu.memory_space<vmem>>, vector<1x1x16x360xbf16>,
    %c6 = arith.constant 6 : index
    %c0_70 = arith.constant 0 : index
    %c0_71 = arith.constant 0 : index
    %135 = vector.load %arg12[%c6, %c0_70, %c0_71] : memref<18x16x360xbf16, #tpu.memory_space<vmem>>, vector<1x16x360xbf16>
    %136 = vector.shape_cast %135 : vector<1x16x360xbf16> to vector<16x360xbf16>
    %137 = vector.shape_cast %131 : vector<16x360xbf16> to vector<1x16x360xbf16>
    tpu.vector_store %arg12[%c6, %c0_70, %c0_71], %137 {strides = array<i32>} : memref<18x16x360xbf16, #tpu.memory_space<vmem>>, vector<1x16x360xbf16>,
    %138 = vector.extract_strided_slice %11 {offsets = [2, 0, 0], sizes = [1, 16, 360], strides = [1, 1, 1]} : vector<8x16x360xf32> to vector<1x16x360xf32>
    %139 = vector.shape_cast %138 : vector<1x16x360xf32> to vector<16x360xf32>
    %cst_72 = arith.constant 0.199999988 : f32
    %140 = vector.broadcast %cst_72 : f32 to vector<16x360xf32>
    %141 = arith.mulf %140, %139 : vector<16x360xf32>
    %142 = vector.extract_strided_slice %11 {offsets = [3, 0, 0], sizes = [1, 16, 360], strides = [1, 1, 1]} : vector<8x16x360xf32> to vector<1x16x360xf32>
    %143 = vector.shape_cast %142 : vector<1x16x360xf32> to vector<16x360xf32>
    %cst_73 = arith.constant 8.000000e-01 : f32
    %144 = vector.broadcast %cst_73 : f32 to vector<16x360xf32>
    %145 = arith.mulf %144, %143 : vector<16x360xf32>
    %146 = arith.addf %141, %145 : vector<16x360xf32>
    %147 = vector.extract_strided_slice %20 {offsets = [6, 0, 0], sizes = [1, 16, 360], strides = [1, 1, 1]} : vector<16x16x360xf32> to vector<1x16x360xf32>
    %148 = vector.shape_cast %147 : vector<1x16x360xf32> to vector<16x360xf32>
    %149 = arith.addf %146, %148 : vector<16x360xf32>
    %150 = arith.truncf %149 : vector<16x360xf32> to vector<16x360xbf16>
    %c0_74 = arith.constant 0 : index
    %c6_75 = arith.constant 6 : index
    %c0_76 = arith.constant 0 : index
    %c0_77 = arith.constant 0 : index
    %151 = vector.load %arg11[%c0_74, %c6_75, %c0_76, %c0_77] : memref<1x16x16x360xbf16, #tpu.memory_space<vmem>>, vector<1x1x16x360xbf16>
    %152 = vector.shape_cast %151 : vector<1x1x16x360xbf16> to vector<16x360xbf16>
    %153 = vector.shape_cast %150 : vector<16x360xbf16> to vector<1x1x16x360xbf16>
    tpu.vector_store %arg11[%c0_74, %c6_75, %c0_76, %c0_77], %153 {strides = array<i32>} : memref<1x16x16x360xbf16, #tpu.memory_space<vmem>>, vector<1x1x16x360xbf16>,
    %c7 = arith.constant 7 : index
    %c0_78 = arith.constant 0 : index
    %c0_79 = arith.constant 0 : index
    %154 = vector.load %arg12[%c7, %c0_78, %c0_79] : memref<18x16x360xbf16, #tpu.memory_space<vmem>>, vector<1x16x360xbf16>
    %155 = vector.shape_cast %154 : vector<1x16x360xbf16> to vector<16x360xbf16>
    %156 = vector.shape_cast %150 : vector<16x360xbf16> to vector<1x16x360xbf16>
    tpu.vector_store %arg12[%c7, %c0_78, %c0_79], %156 {strides = array<i32>} : memref<18x16x360xbf16, #tpu.memory_space<vmem>>, vector<1x16x360xbf16>,
    %157 = vector.extract_strided_slice %11 {offsets = [3, 0, 0], sizes = [1, 16, 360], strides = [1, 1, 1]} : vector<8x16x360xf32> to vector<1x16x360xf32>
    %158 = vector.shape_cast %157 : vector<1x16x360xf32> to vector<16x360xf32>
    %cst_80 = arith.constant 0.733333349 : f32
    %159 = vector.broadcast %cst_80 : f32 to vector<16x360xf32>
    %160 = arith.mulf %159, %158 : vector<16x360xf32>
    %161 = vector.extract_strided_slice %11 {offsets = [4, 0, 0], sizes = [1, 16, 360], strides = [1, 1, 1]} : vector<8x16x360xf32> to vector<1x16x360xf32>
    %162 = vector.shape_cast %161 : vector<1x16x360xf32> to vector<16x360xf32>
    %cst_81 = arith.constant 0.266666681 : f32
    %163 = vector.broadcast %cst_81 : f32 to vector<16x360xf32>
    %164 = arith.mulf %163, %162 : vector<16x360xf32>
    %165 = arith.addf %160, %164 : vector<16x360xf32>
    %166 = vector.extract_strided_slice %20 {offsets = [7, 0, 0], sizes = [1, 16, 360], strides = [1, 1, 1]} : vector<16x16x360xf32> to vector<1x16x360xf32>
    %167 = vector.shape_cast %166 : vector<1x16x360xf32> to vector<16x360xf32>
    %168 = arith.addf %165, %167 : vector<16x360xf32>
    %169 = arith.truncf %168 : vector<16x360xf32> to vector<16x360xbf16>
    %c0_82 = arith.constant 0 : index
    %c7_83 = arith.constant 7 : index
    %c0_84 = arith.constant 0 : index
    %c0_85 = arith.constant 0 : index
    %170 = vector.load %arg11[%c0_82, %c7_83, %c0_84, %c0_85] : memref<1x16x16x360xbf16, #tpu.memory_space<vmem>>, vector<1x1x16x360xbf16>
    %171 = vector.shape_cast %170 : vector<1x1x16x360xbf16> to vector<16x360xbf16>
    %172 = vector.shape_cast %169 : vector<16x360xbf16> to vector<1x1x16x360xbf16>
    tpu.vector_store %arg11[%c0_82, %c7_83, %c0_84, %c0_85], %172 {strides = array<i32>} : memref<1x16x16x360xbf16, #tpu.memory_space<vmem>>, vector<1x1x16x360xbf16>,
    %c8 = arith.constant 8 : index
    %c0_86 = arith.constant 0 : index
    %c0_87 = arith.constant 0 : index
    %173 = vector.load %arg12[%c8, %c0_86, %c0_87] : memref<18x16x360xbf16, #tpu.memory_space<vmem>>, vector<1x16x360xbf16>
    %174 = vector.shape_cast %173 : vector<1x16x360xbf16> to vector<16x360xbf16>
    %175 = vector.shape_cast %169 : vector<16x360xbf16> to vector<1x16x360xbf16>
    tpu.vector_store %arg12[%c8, %c0_86, %c0_87], %175 {strides = array<i32>} : memref<18x16x360xbf16, #tpu.memory_space<vmem>>, vector<1x16x360xbf16>,
    %176 = vector.extract_strided_slice %11 {offsets = [3, 0, 0], sizes = [1, 16, 360], strides = [1, 1, 1]} : vector<8x16x360xf32> to vector<1x16x360xf32>
    %177 = vector.shape_cast %176 : vector<1x16x360xf32> to vector<16x360xf32>
    %cst_88 = arith.constant 0.266666651 : f32
    %178 = vector.broadcast %cst_88 : f32 to vector<16x360xf32>
    %179 = arith.mulf %178, %177 : vector<16x360xf32>
    %180 = vector.extract_strided_slice %11 {offsets = [4, 0, 0], sizes = [1, 16, 360], strides = [1, 1, 1]} : vector<8x16x360xf32> to vector<1x16x360xf32>
    %181 = vector.shape_cast %180 : vector<1x16x360xf32> to vector<16x360xf32>
    %cst_89 = arith.constant 0.733333349 : f32
    %182 = vector.broadcast %cst_89 : f32 to vector<16x360xf32>
    %183 = arith.mulf %182, %181 : vector<16x360xf32>
    %184 = arith.addf %179, %183 : vector<16x360xf32>
    %185 = vector.extract_strided_slice %20 {offsets = [8, 0, 0], sizes = [1, 16, 360], strides = [1, 1, 1]} : vector<16x16x360xf32> to vector<1x16x360xf32>
    %186 = vector.shape_cast %185 : vector<1x16x360xf32> to vector<16x360xf32>
    %187 = arith.addf %184, %186 : vector<16x360xf32>
    %188 = arith.truncf %187 : vector<16x360xf32> to vector<16x360xbf16>
    %c0_90 = arith.constant 0 : index
    %c8_91 = arith.constant 8 : index
    %c0_92 = arith.constant 0 : index
    %c0_93 = arith.constant 0 : index
    %189 = vector.load %arg11[%c0_90, %c8_91, %c0_92, %c0_93] : memref<1x16x16x360xbf16, #tpu.memory_space<vmem>>, vector<1x1x16x360xbf16>
    %190 = vector.shape_cast %189 : vector<1x1x16x360xbf16> to vector<16x360xbf16>
    %191 = vector.shape_cast %188 : vector<16x360xbf16> to vector<1x1x16x360xbf16>
    tpu.vector_store %arg11[%c0_90, %c8_91, %c0_92, %c0_93], %191 {strides = array<i32>} : memref<1x16x16x360xbf16, #tpu.memory_space<vmem>>, vector<1x1x16x360xbf16>,
    %c9 = arith.constant 9 : index
    %c0_94 = arith.constant 0 : index
    %c0_95 = arith.constant 0 : index
    %192 = vector.load %arg12[%c9, %c0_94, %c0_95] : memref<18x16x360xbf16, #tpu.memory_space<vmem>>, vector<1x16x360xbf16>
    %193 = vector.shape_cast %192 : vector<1x16x360xbf16> to vector<16x360xbf16>
    %194 = vector.shape_cast %188 : vector<16x360xbf16> to vector<1x16x360xbf16>
    tpu.vector_store %arg12[%c9, %c0_94, %c0_95], %194 {strides = array<i32>} : memref<18x16x360xbf16, #tpu.memory_space<vmem>>, vector<1x16x360xbf16>,
    %195 = vector.extract_strided_slice %11 {offsets = [4, 0, 0], sizes = [1, 16, 360], strides = [1, 1, 1]} : vector<8x16x360xf32> to vector<1x16x360xf32>
    %196 = vector.shape_cast %195 : vector<1x16x360xf32> to vector<16x360xf32>
    %cst_96 = arith.constant 8.000000e-01 : f32
    %197 = vector.broadcast %cst_96 : f32 to vector<16x360xf32>
    %198 = arith.mulf %197, %196 : vector<16x360xf32>
    %199 = vector.extract_strided_slice %11 {offsets = [5, 0, 0], sizes = [1, 16, 360], strides = [1, 1, 1]} : vector<8x16x360xf32> to vector<1x16x360xf32>
    %200 = vector.shape_cast %199 : vector<1x16x360xf32> to vector<16x360xf32>
    %cst_97 = arith.constant 2.000000e-01 : f32
    %201 = vector.broadcast %cst_97 : f32 to vector<16x360xf32>
    %202 = arith.mulf %201, %200 : vector<16x360xf32>
    %203 = arith.addf %198, %202 : vector<16x360xf32>
    %204 = vector.extract_strided_slice %20 {offsets = [9, 0, 0], sizes = [1, 16, 360], strides = [1, 1, 1]} : vector<16x16x360xf32> to vector<1x16x360xf32>
    %205 = vector.shape_cast %204 : vector<1x16x360xf32> to vector<16x360xf32>
    %206 = arith.addf %203, %205 : vector<16x360xf32>
    %207 = arith.truncf %206 : vector<16x360xf32> to vector<16x360xbf16>
    %c0_98 = arith.constant 0 : index
    %c9_99 = arith.constant 9 : index
    %c0_100 = arith.constant 0 : index
    %c0_101 = arith.constant 0 : index
    %208 = vector.load %arg11[%c0_98, %c9_99, %c0_100, %c0_101] : memref<1x16x16x360xbf16, #tpu.memory_space<vmem>>, vector<1x1x16x360xbf16>
    %209 = vector.shape_cast %208 : vector<1x1x16x360xbf16> to vector<16x360xbf16>
    %210 = vector.shape_cast %207 : vector<16x360xbf16> to vector<1x1x16x360xbf16>
    tpu.vector_store %arg11[%c0_98, %c9_99, %c0_100, %c0_101], %210 {strides = array<i32>} : memref<1x16x16x360xbf16, #tpu.memory_space<vmem>>, vector<1x1x16x360xbf16>,
    %c10 = arith.constant 10 : index
    %c0_102 = arith.constant 0 : index
    %c0_103 = arith.constant 0 : index
    %211 = vector.load %arg12[%c10, %c0_102, %c0_103] : memref<18x16x360xbf16, #tpu.memory_space<vmem>>, vector<1x16x360xbf16>
    %212 = vector.shape_cast %211 : vector<1x16x360xbf16> to vector<16x360xbf16>
    %213 = vector.shape_cast %207 : vector<16x360xbf16> to vector<1x16x360xbf16>
    tpu.vector_store %arg12[%c10, %c0_102, %c0_103], %213 {strides = array<i32>} : memref<18x16x360xbf16, #tpu.memory_space<vmem>>, vector<1x16x360xbf16>,
    %214 = vector.extract_strided_slice %11 {offsets = [4, 0, 0], sizes = [1, 16, 360], strides = [1, 1, 1]} : vector<8x16x360xf32> to vector<1x16x360xf32>
    %215 = vector.shape_cast %214 : vector<1x16x360xf32> to vector<16x360xf32>
    %cst_104 = arith.constant 0.333333313 : f32
    %216 = vector.broadcast %cst_104 : f32 to vector<16x360xf32>
    %217 = arith.mulf %216, %215 : vector<16x360xf32>
    %218 = vector.extract_strided_slice %11 {offsets = [5, 0, 0], sizes = [1, 16, 360], strides = [1, 1, 1]} : vector<8x16x360xf32> to vector<1x16x360xf32>
    %219 = vector.shape_cast %218 : vector<1x16x360xf32> to vector<16x360xf32>
    %cst_105 = arith.constant 0.666666686 : f32
    %220 = vector.broadcast %cst_105 : f32 to vector<16x360xf32>
    %221 = arith.mulf %220, %219 : vector<16x360xf32>
    %222 = arith.addf %217, %221 : vector<16x360xf32>
    %223 = vector.extract_strided_slice %20 {offsets = [10, 0, 0], sizes = [1, 16, 360], strides = [1, 1, 1]} : vector<16x16x360xf32> to vector<1x16x360xf32>
    %224 = vector.shape_cast %223 : vector<1x16x360xf32> to vector<16x360xf32>
    %225 = arith.addf %222, %224 : vector<16x360xf32>
    %226 = arith.truncf %225 : vector<16x360xf32> to vector<16x360xbf16>
    %c0_106 = arith.constant 0 : index
    %c10_107 = arith.constant 10 : index
    %c0_108 = arith.constant 0 : index
    %c0_109 = arith.constant 0 : index
    %227 = vector.load %arg11[%c0_106, %c10_107, %c0_108, %c0_109] : memref<1x16x16x360xbf16, #tpu.memory_space<vmem>>, vector<1x1x16x360xbf16>
    %228 = vector.shape_cast %227 : vector<1x1x16x360xbf16> to vector<16x360xbf16>
    %229 = vector.shape_cast %226 : vector<16x360xbf16> to vector<1x1x16x360xbf16>
    tpu.vector_store %arg11[%c0_106, %c10_107, %c0_108, %c0_109], %229 {strides = array<i32>} : memref<1x16x16x360xbf16, #tpu.memory_space<vmem>>, vector<1x1x16x360xbf16>,
    %c11 = arith.constant 11 : index
    %c0_110 = arith.constant 0 : index
    %c0_111 = arith.constant 0 : index
    %230 = vector.load %arg12[%c11, %c0_110, %c0_111] : memref<18x16x360xbf16, #tpu.memory_space<vmem>>, vector<1x16x360xbf16>
    %231 = vector.shape_cast %230 : vector<1x16x360xbf16> to vector<16x360xbf16>
    %232 = vector.shape_cast %226 : vector<16x360xbf16> to vector<1x16x360xbf16>
    tpu.vector_store %arg12[%c11, %c0_110, %c0_111], %232 {strides = array<i32>} : memref<18x16x360xbf16, #tpu.memory_space<vmem>>, vector<1x16x360xbf16>,
    %233 = vector.extract_strided_slice %11 {offsets = [5, 0, 0], sizes = [1, 16, 360], strides = [1, 1, 1]} : vector<8x16x360xf32> to vector<1x16x360xf32>
    %234 = vector.shape_cast %233 : vector<1x16x360xf32> to vector<16x360xf32>
    %cst_112 = arith.constant 0.866666674 : f32
    %235 = vector.broadcast %cst_112 : f32 to vector<16x360xf32>
    %236 = arith.mulf %235, %234 : vector<16x360xf32>
    %237 = vector.extract_strided_slice %11 {offsets = [6, 0, 0], sizes = [1, 16, 360], strides = [1, 1, 1]} : vector<8x16x360xf32> to vector<1x16x360xf32>
    %238 = vector.shape_cast %237 : vector<1x16x360xf32> to vector<16x360xf32>
    %cst_113 = arith.constant 0.13333334 : f32
    %239 = vector.broadcast %cst_113 : f32 to vector<16x360xf32>
    %240 = arith.mulf %239, %238 : vector<16x360xf32>
    %241 = arith.addf %236, %240 : vector<16x360xf32>
    %242 = vector.extract_strided_slice %20 {offsets = [11, 0, 0], sizes = [1, 16, 360], strides = [1, 1, 1]} : vector<16x16x360xf32> to vector<1x16x360xf32>
    %243 = vector.shape_cast %242 : vector<1x16x360xf32> to vector<16x360xf32>
    %244 = arith.addf %241, %243 : vector<16x360xf32>
    %245 = arith.truncf %244 : vector<16x360xf32> to vector<16x360xbf16>
    %c0_114 = arith.constant 0 : index
    %c11_115 = arith.constant 11 : index
    %c0_116 = arith.constant 0 : index
    %c0_117 = arith.constant 0 : index
    %246 = vector.load %arg11[%c0_114, %c11_115, %c0_116, %c0_117] : memref<1x16x16x360xbf16, #tpu.memory_space<vmem>>, vector<1x1x16x360xbf16>
    %247 = vector.shape_cast %246 : vector<1x1x16x360xbf16> to vector<16x360xbf16>
    %248 = vector.shape_cast %245 : vector<16x360xbf16> to vector<1x1x16x360xbf16>
    tpu.vector_store %arg11[%c0_114, %c11_115, %c0_116, %c0_117], %248 {strides = array<i32>} : memref<1x16x16x360xbf16, #tpu.memory_space<vmem>>, vector<1x1x16x360xbf16>,
    %c12 = arith.constant 12 : index
    %c0_118 = arith.constant 0 : index
    %c0_119 = arith.constant 0 : index
    %249 = vector.load %arg12[%c12, %c0_118, %c0_119] : memref<18x16x360xbf16, #tpu.memory_space<vmem>>, vector<1x16x360xbf16>
    %250 = vector.shape_cast %249 : vector<1x16x360xbf16> to vector<16x360xbf16>
    %251 = vector.shape_cast %245 : vector<16x360xbf16> to vector<1x16x360xbf16>
    tpu.vector_store %arg12[%c12, %c0_118, %c0_119], %251 {strides = array<i32>} : memref<18x16x360xbf16, #tpu.memory_space<vmem>>, vector<1x16x360xbf16>,
    %252 = vector.extract_strided_slice %11 {offsets = [5, 0, 0], sizes = [1, 16, 360], strides = [1, 1, 1]} : vector<8x16x360xf32> to vector<1x16x360xf32>
    %253 = vector.shape_cast %252 : vector<1x16x360xf32> to vector<16x360xf32>
    %cst_120 = arith.constant 0.399999976 : f32
    %254 = vector.broadcast %cst_120 : f32 to vector<16x360xf32>
    %255 = arith.mulf %254, %253 : vector<16x360xf32>
    %256 = vector.extract_strided_slice %11 {offsets = [6, 0, 0], sizes = [1, 16, 360], strides = [1, 1, 1]} : vector<8x16x360xf32> to vector<1x16x360xf32>
    %257 = vector.shape_cast %256 : vector<1x16x360xf32> to vector<16x360xf32>
    %cst_121 = arith.constant 6.000000e-01 : f32
    %258 = vector.broadcast %cst_121 : f32 to vector<16x360xf32>
    %259 = arith.mulf %258, %257 : vector<16x360xf32>
    %260 = arith.addf %255, %259 : vector<16x360xf32>
    %261 = vector.extract_strided_slice %20 {offsets = [12, 0, 0], sizes = [1, 16, 360], strides = [1, 1, 1]} : vector<16x16x360xf32> to vector<1x16x360xf32>
    %262 = vector.shape_cast %261 : vector<1x16x360xf32> to vector<16x360xf32>
    %263 = arith.addf %260, %262 : vector<16x360xf32>
    %264 = arith.truncf %263 : vector<16x360xf32> to vector<16x360xbf16>
    %c0_122 = arith.constant 0 : index
    %c12_123 = arith.constant 12 : index
    %c0_124 = arith.constant 0 : index
    %c0_125 = arith.constant 0 : index
    %265 = vector.load %arg11[%c0_122, %c12_123, %c0_124, %c0_125] : memref<1x16x16x360xbf16, #tpu.memory_space<vmem>>, vector<1x1x16x360xbf16>
    %266 = vector.shape_cast %265 : vector<1x1x16x360xbf16> to vector<16x360xbf16>
    %267 = vector.shape_cast %264 : vector<16x360xbf16> to vector<1x1x16x360xbf16>
    tpu.vector_store %arg11[%c0_122, %c12_123, %c0_124, %c0_125], %267 {strides = array<i32>} : memref<1x16x16x360xbf16, #tpu.memory_space<vmem>>, vector<1x1x16x360xbf16>,
    %c13 = arith.constant 13 : index
    %c0_126 = arith.constant 0 : index
    %c0_127 = arith.constant 0 : index
    %268 = vector.load %arg12[%c13, %c0_126, %c0_127] : memref<18x16x360xbf16, #tpu.memory_space<vmem>>, vector<1x16x360xbf16>
    %269 = vector.shape_cast %268 : vector<1x16x360xbf16> to vector<16x360xbf16>
    %270 = vector.shape_cast %264 : vector<16x360xbf16> to vector<1x16x360xbf16>
    tpu.vector_store %arg12[%c13, %c0_126, %c0_127], %270 {strides = array<i32>} : memref<18x16x360xbf16, #tpu.memory_space<vmem>>, vector<1x16x360xbf16>,
    %271 = vector.extract_strided_slice %11 {offsets = [6, 0, 0], sizes = [1, 16, 360], strides = [1, 1, 1]} : vector<8x16x360xf32> to vector<1x16x360xf32>
    %272 = vector.shape_cast %271 : vector<1x16x360xf32> to vector<16x360xf32>
    %cst_128 = arith.constant 0.933333337 : f32
    %273 = vector.broadcast %cst_128 : f32 to vector<16x360xf32>
    %274 = arith.mulf %273, %272 : vector<16x360xf32>
    %275 = vector.extract_strided_slice %11 {offsets = [7, 0, 0], sizes = [1, 16, 360], strides = [1, 1, 1]} : vector<8x16x360xf32> to vector<1x16x360xf32>
    %276 = vector.shape_cast %275 : vector<1x16x360xf32> to vector<16x360xf32>
    %cst_129 = arith.constant 0.0666666701 : f32
    %277 = vector.broadcast %cst_129 : f32 to vector<16x360xf32>
    %278 = arith.mulf %277, %276 : vector<16x360xf32>
    %279 = arith.addf %274, %278 : vector<16x360xf32>
    %280 = vector.extract_strided_slice %20 {offsets = [13, 0, 0], sizes = [1, 16, 360], strides = [1, 1, 1]} : vector<16x16x360xf32> to vector<1x16x360xf32>
    %281 = vector.shape_cast %280 : vector<1x16x360xf32> to vector<16x360xf32>
    %282 = arith.addf %279, %281 : vector<16x360xf32>
    %283 = arith.truncf %282 : vector<16x360xf32> to vector<16x360xbf16>
    %c0_130 = arith.constant 0 : index
    %c13_131 = arith.constant 13 : index
    %c0_132 = arith.constant 0 : index
    %c0_133 = arith.constant 0 : index
    %284 = vector.load %arg11[%c0_130, %c13_131, %c0_132, %c0_133] : memref<1x16x16x360xbf16, #tpu.memory_space<vmem>>, vector<1x1x16x360xbf16>
    %285 = vector.shape_cast %284 : vector<1x1x16x360xbf16> to vector<16x360xbf16>
    %286 = vector.shape_cast %283 : vector<16x360xbf16> to vector<1x1x16x360xbf16>
    tpu.vector_store %arg11[%c0_130, %c13_131, %c0_132, %c0_133], %286 {strides = array<i32>} : memref<1x16x16x360xbf16, #tpu.memory_space<vmem>>, vector<1x1x16x360xbf16>,
    %c14 = arith.constant 14 : index
    %c0_134 = arith.constant 0 : index
    %c0_135 = arith.constant 0 : index
    %287 = vector.load %arg12[%c14, %c0_134, %c0_135] : memref<18x16x360xbf16, #tpu.memory_space<vmem>>, vector<1x16x360xbf16>
    %288 = vector.shape_cast %287 : vector<1x16x360xbf16> to vector<16x360xbf16>
    %289 = vector.shape_cast %283 : vector<16x360xbf16> to vector<1x16x360xbf16>
    tpu.vector_store %arg12[%c14, %c0_134, %c0_135], %289 {strides = array<i32>} : memref<18x16x360xbf16, #tpu.memory_space<vmem>>, vector<1x16x360xbf16>,
    %290 = vector.extract_strided_slice %11 {offsets = [6, 0, 0], sizes = [1, 16, 360], strides = [1, 1, 1]} : vector<8x16x360xf32> to vector<1x16x360xf32>
    %291 = vector.shape_cast %290 : vector<1x16x360xf32> to vector<16x360xf32>
    %cst_136 = arith.constant 0.466666639 : f32
    %292 = vector.broadcast %cst_136 : f32 to vector<16x360xf32>
    %293 = arith.mulf %292, %291 : vector<16x360xf32>
    %294 = vector.extract_strided_slice %11 {offsets = [7, 0, 0], sizes = [1, 16, 360], strides = [1, 1, 1]} : vector<8x16x360xf32> to vector<1x16x360xf32>
    %295 = vector.shape_cast %294 : vector<1x16x360xf32> to vector<16x360xf32>
    %cst_137 = arith.constant 0.533333361 : f32
    %296 = vector.broadcast %cst_137 : f32 to vector<16x360xf32>
    %297 = arith.mulf %296, %295 : vector<16x360xf32>
    %298 = arith.addf %293, %297 : vector<16x360xf32>
    %299 = vector.extract_strided_slice %20 {offsets = [14, 0, 0], sizes = [1, 16, 360], strides = [1, 1, 1]} : vector<16x16x360xf32> to vector<1x16x360xf32>
    %300 = vector.shape_cast %299 : vector<1x16x360xf32> to vector<16x360xf32>
    %301 = arith.addf %298, %300 : vector<16x360xf32>
    %302 = arith.truncf %301 : vector<16x360xf32> to vector<16x360xbf16>
    %c0_138 = arith.constant 0 : index
    %c14_139 = arith.constant 14 : index
    %c0_140 = arith.constant 0 : index
    %c0_141 = arith.constant 0 : index
    %303 = vector.load %arg11[%c0_138, %c14_139, %c0_140, %c0_141] : memref<1x16x16x360xbf16, #tpu.memory_space<vmem>>, vector<1x1x16x360xbf16>
    %304 = vector.shape_cast %303 : vector<1x1x16x360xbf16> to vector<16x360xbf16>
    %305 = vector.shape_cast %302 : vector<16x360xbf16> to vector<1x1x16x360xbf16>
    tpu.vector_store %arg11[%c0_138, %c14_139, %c0_140, %c0_141], %305 {strides = array<i32>} : memref<1x16x16x360xbf16, #tpu.memory_space<vmem>>, vector<1x1x16x360xbf16>,
    %c15 = arith.constant 15 : index
    %c0_142 = arith.constant 0 : index
    %c0_143 = arith.constant 0 : index
    %306 = vector.load %arg12[%c15, %c0_142, %c0_143] : memref<18x16x360xbf16, #tpu.memory_space<vmem>>, vector<1x16x360xbf16>
    %307 = vector.shape_cast %306 : vector<1x16x360xbf16> to vector<16x360xbf16>
    %308 = vector.shape_cast %302 : vector<16x360xbf16> to vector<1x16x360xbf16>
    tpu.vector_store %arg12[%c15, %c0_142, %c0_143], %308 {strides = array<i32>} : memref<18x16x360xbf16, #tpu.memory_space<vmem>>, vector<1x16x360xbf16>,
    %309 = vector.extract_strided_slice %11 {offsets = [7, 0, 0], sizes = [1, 16, 360], strides = [1, 1, 1]} : vector<8x16x360xf32> to vector<1x16x360xf32>
    %310 = vector.shape_cast %309 : vector<1x16x360xf32> to vector<16x360xf32>
    %cst_144 = arith.constant 1.000000e+00 : f32
    %311 = vector.broadcast %cst_144 : f32 to vector<16x360xf32>
    %312 = arith.mulf %311, %310 : vector<16x360xf32>
    %313 = vector.extract_strided_slice %20 {offsets = [15, 0, 0], sizes = [1, 16, 360], strides = [1, 1, 1]} : vector<16x16x360xf32> to vector<1x16x360xf32>
    %314 = vector.shape_cast %313 : vector<1x16x360xf32> to vector<16x360xf32>
    %315 = arith.addf %312, %314 : vector<16x360xf32>
    %316 = arith.truncf %315 : vector<16x360xf32> to vector<16x360xbf16>
    %c0_145 = arith.constant 0 : index
    %c15_146 = arith.constant 15 : index
    %c0_147 = arith.constant 0 : index
    %c0_148 = arith.constant 0 : index
    %317 = vector.load %arg11[%c0_145, %c15_146, %c0_147, %c0_148] : memref<1x16x16x360xbf16, #tpu.memory_space<vmem>>, vector<1x1x16x360xbf16>
    %318 = vector.shape_cast %317 : vector<1x1x16x360xbf16> to vector<16x360xbf16>
    %319 = vector.shape_cast %316 : vector<16x360xbf16> to vector<1x1x16x360xbf16>
    tpu.vector_store %arg11[%c0_145, %c15_146, %c0_147, %c0_148], %319 {strides = array<i32>} : memref<1x16x16x360xbf16, #tpu.memory_space<vmem>>, vector<1x1x16x360xbf16>,
    %c16 = arith.constant 16 : index
    %c0_149 = arith.constant 0 : index
    %c0_150 = arith.constant 0 : index
    %320 = vector.load %arg12[%c16, %c0_149, %c0_150] : memref<18x16x360xbf16, #tpu.memory_space<vmem>>, vector<1x16x360xbf16>
    %321 = vector.shape_cast %320 : vector<1x16x360xbf16> to vector<16x360xbf16>
    %322 = vector.shape_cast %316 : vector<16x360xbf16> to vector<1x16x360xbf16>
    tpu.vector_store %arg12[%c16, %c0_149, %c0_150], %322 {strides = array<i32>} : memref<18x16x360xbf16, #tpu.memory_space<vmem>>, vector<1x16x360xbf16>,
    %c0_151 = arith.constant 0 : index
    %c0_152 = arith.constant 0 : index
    %c0_153 = arith.constant 0 : index
    %323 = vector.load %arg12[%c0_151, %c0_152, %c0_153] : memref<18x16x360xbf16, #tpu.memory_space<vmem>>, vector<16x16x360xbf16>
    %324 = vector.shape_cast %323 : vector<16x16x360xbf16> to vector<256x360xbf16>
    %c0_154 = arith.constant 0 : index
    %c0_155 = arith.constant 0 : index
    %c0_156 = arith.constant 0 : index
    %325 = vector.load %arg7[%c0_154, %c0_155, %c0_156] : memref<3x360x256xbf16, #tpu.memory_space<vmem>>, vector<1x360x256xbf16>
    %326 = vector.shape_cast %325 : vector<1x360x256xbf16> to vector<360x256xbf16>
    %cst_157 = arith.constant dense<0.000000e+00> : vector<256x256xf32>
    %327 = tpu.matmul %324, %326, %cst_157 {dimension_numbers = #tpu.dot_dimension_numbers<[1], [0], [0], [1], [0, 0, 1, 1], [], []>} : vector<256x360xbf16>, vector<360x256xbf16>, vector<256x256xf32> -> vector<256x256xf32>
    %328 = vector.shape_cast %327 : vector<256x256xf32> to vector<16x16x256xf32>
    %329 = vector.extract_strided_slice %328 {offsets = [0, 0, 0], sizes = [16, 16, 128], strides = [1, 1, 1]} : vector<16x16x256xf32> to vector<16x16x128xf32>
    %330 = vector.extract_strided_slice %328 {offsets = [0, 0, 128], sizes = [16, 16, 128], strides = [1, 1, 1]} : vector<16x16x256xf32> to vector<16x16x128xf32>
    %c64_i32 = arith.constant 64 : i32
    %331 = tpu.dynamic_rotate %329 by %c64_i32 dim 2 : vector<16x16x128xf32>, i32 -> vector<16x16x128xf32>
    %c0_158 = arith.constant 0 : index
    %c0_159 = arith.constant 0 : index
    %c0_160 = arith.constant 0 : index
    %332 = vector.load %arg13[%c0_158, %c0_159, %c0_160] : memref<16x16x128xf32, #tpu.memory_space<vmem>>, vector<16x16x128xf32>
    tpu.vector_store %arg13[%c0_158, %c0_159, %c0_160], %330 {strides = array<i32>} : memref<16x16x128xf32, #tpu.memory_space<vmem>>, vector<16x16x128xf32>,
    %c0_161 = arith.constant 0 : index
    %c1_162 = arith.constant 1 : index
    %c0_163 = arith.constant 0 : index
    %333 = vector.load %arg13[%c0_161, %c1_162, %c0_163] : memref<16x16x128xf32, #tpu.memory_space<vmem>>, vector<16x15x128xf32>
    %334 = vector.extract_strided_slice %329 {offsets = [0, 0, 0], sizes = [16, 15, 128], strides = [1, 1, 1]} : vector<16x16x128xf32> to vector<16x15x128xf32>
    %335 = arith.addf %333, %334 : vector<16x15x128xf32>
    %c0_164 = arith.constant 0 : index
    %c1_165 = arith.constant 1 : index
    %c0_166 = arith.constant 0 : index
    %336 = vector.load %arg13[%c0_164, %c1_165, %c0_166] : memref<16x16x128xf32, #tpu.memory_space<vmem>>, vector<16x15x128xf32>
    tpu.vector_store %arg13[%c0_164, %c1_165, %c0_166], %335 {strides = array<i32>} : memref<16x16x128xf32, #tpu.memory_space<vmem>>, vector<16x15x128xf32>,
    %c0_167 = arith.constant 0 : index
    %c0_168 = arith.constant 0 : index
    %c0_169 = arith.constant 0 : index
    %337 = vector.load %arg13[%c0_167, %c0_168, %c0_169] : memref<16x16x128xf32, #tpu.memory_space<vmem>>, vector<16x15x128xf32>
    %338 = vector.extract_strided_slice %331 {offsets = [0, 1, 0], sizes = [16, 15, 128], strides = [1, 1, 1]} : vector<16x16x128xf32> to vector<16x15x128xf32>
    %339 = arith.addf %337, %338 : vector<16x15x128xf32>
    %c0_170 = arith.constant 0 : index
    %c0_171 = arith.constant 0 : index
    %c0_172 = arith.constant 0 : index
    %340 = vector.load %arg13[%c0_170, %c0_171, %c0_172] : memref<16x16x128xf32, #tpu.memory_space<vmem>>, vector<16x15x128xf32>
    tpu.vector_store %arg13[%c0_170, %c0_171, %c0_172], %339 {strides = array<i32>} : memref<16x16x128xf32, #tpu.memory_space<vmem>>, vector<16x15x128xf32>,
    %c1_173 = arith.constant 1 : index
    %c0_174 = arith.constant 0 : index
    %c0_175 = arith.constant 0 : index
    %341 = vector.load %arg12[%c1_173, %c0_174, %c0_175] : memref<18x16x360xbf16, #tpu.memory_space<vmem>>, vector<16x16x360xbf16>
    %342 = vector.shape_cast %341 : vector<16x16x360xbf16> to vector<256x360xbf16>
    %c1_176 = arith.constant 1 : index
    %c0_177 = arith.constant 0 : index
    %c0_178 = arith.constant 0 : index
    %343 = vector.load %arg7[%c1_176, %c0_177, %c0_178] : memref<3x360x256xbf16, #tpu.memory_space<vmem>>, vector<1x360x256xbf16>
    %344 = vector.shape_cast %343 : vector<1x360x256xbf16> to vector<360x256xbf16>
    %cst_179 = arith.constant dense<0.000000e+00> : vector<256x256xf32>
    %345 = tpu.matmul %342, %344, %cst_179 {dimension_numbers = #tpu.dot_dimension_numbers<[1], [0], [0], [1], [0, 0, 1, 1], [], []>} : vector<256x360xbf16>, vector<360x256xbf16>, vector<256x256xf32> -> vector<256x256xf32>
    %346 = vector.shape_cast %345 : vector<256x256xf32> to vector<16x16x256xf32>
    %347 = vector.extract_strided_slice %346 {offsets = [0, 0, 0], sizes = [16, 16, 128], strides = [1, 1, 1]} : vector<16x16x256xf32> to vector<16x16x128xf32>
    %348 = vector.extract_strided_slice %346 {offsets = [0, 0, 128], sizes = [16, 16, 128], strides = [1, 1, 1]} : vector<16x16x256xf32> to vector<16x16x128xf32>
    %c64_i32_180 = arith.constant 64 : i32
    %349 = tpu.dynamic_rotate %347 by %c64_i32_180 dim 2 : vector<16x16x128xf32>, i32 -> vector<16x16x128xf32>
    %c0_181 = arith.constant 0 : index
    %c0_182 = arith.constant 0 : index
    %c0_183 = arith.constant 0 : index
    %350 = vector.load %arg13[%c0_181, %c0_182, %c0_183] : memref<16x16x128xf32, #tpu.memory_space<vmem>>, vector<16x16x128xf32>
    %351 = arith.addf %350, %348 : vector<16x16x128xf32>
    %c0_184 = arith.constant 0 : index
    %c0_185 = arith.constant 0 : index
    %c0_186 = arith.constant 0 : index
    %352 = vector.load %arg13[%c0_184, %c0_185, %c0_186] : memref<16x16x128xf32, #tpu.memory_space<vmem>>, vector<16x16x128xf32>
    tpu.vector_store %arg13[%c0_184, %c0_185, %c0_186], %351 {strides = array<i32>} : memref<16x16x128xf32, #tpu.memory_space<vmem>>, vector<16x16x128xf32>,
    %c0_187 = arith.constant 0 : index
    %c1_188 = arith.constant 1 : index
    %c0_189 = arith.constant 0 : index
    %353 = vector.load %arg13[%c0_187, %c1_188, %c0_189] : memref<16x16x128xf32, #tpu.memory_space<vmem>>, vector<16x15x128xf32>
    %354 = vector.extract_strided_slice %347 {offsets = [0, 0, 0], sizes = [16, 15, 128], strides = [1, 1, 1]} : vector<16x16x128xf32> to vector<16x15x128xf32>
    %355 = arith.addf %353, %354 : vector<16x15x128xf32>
    %c0_190 = arith.constant 0 : index
    %c1_191 = arith.constant 1 : index
    %c0_192 = arith.constant 0 : index
    %356 = vector.load %arg13[%c0_190, %c1_191, %c0_192] : memref<16x16x128xf32, #tpu.memory_space<vmem>>, vector<16x15x128xf32>
    tpu.vector_store %arg13[%c0_190, %c1_191, %c0_192], %355 {strides = array<i32>} : memref<16x16x128xf32, #tpu.memory_space<vmem>>, vector<16x15x128xf32>,
    %c0_193 = arith.constant 0 : index
    %c0_194 = arith.constant 0 : index
    %c0_195 = arith.constant 0 : index
    %357 = vector.load %arg13[%c0_193, %c0_194, %c0_195] : memref<16x16x128xf32, #tpu.memory_space<vmem>>, vector<16x15x128xf32>
    %358 = vector.extract_strided_slice %349 {offsets = [0, 1, 0], sizes = [16, 15, 128], strides = [1, 1, 1]} : vector<16x16x128xf32> to vector<16x15x128xf32>
    %359 = arith.addf %357, %358 : vector<16x15x128xf32>
    %c0_196 = arith.constant 0 : index
    %c0_197 = arith.constant 0 : index
    %c0_198 = arith.constant 0 : index
    %360 = vector.load %arg13[%c0_196, %c0_197, %c0_198] : memref<16x16x128xf32, #tpu.memory_space<vmem>>, vector<16x15x128xf32>
    tpu.vector_store %arg13[%c0_196, %c0_197, %c0_198], %359 {strides = array<i32>} : memref<16x16x128xf32, #tpu.memory_space<vmem>>, vector<16x15x128xf32>,
    %c2_199 = arith.constant 2 : index
    %c0_200 = arith.constant 0 : index
    %c0_201 = arith.constant 0 : index
    %361 = vector.load %arg12[%c2_199, %c0_200, %c0_201] : memref<18x16x360xbf16, #tpu.memory_space<vmem>>, vector<16x16x360xbf16>
    %362 = vector.shape_cast %361 : vector<16x16x360xbf16> to vector<256x360xbf16>
    %c2_202 = arith.constant 2 : index
    %c0_203 = arith.constant 0 : index
    %c0_204 = arith.constant 0 : index
    %363 = vector.load %arg7[%c2_202, %c0_203, %c0_204] : memref<3x360x256xbf16, #tpu.memory_space<vmem>>, vector<1x360x256xbf16>
    %364 = vector.shape_cast %363 : vector<1x360x256xbf16> to vector<360x256xbf16>
    %cst_205 = arith.constant dense<0.000000e+00> : vector<256x256xf32>
    %365 = tpu.matmul %362, %364, %cst_205 {dimension_numbers = #tpu.dot_dimension_numbers<[1], [0], [0], [1], [0, 0, 1, 1], [], []>} : vector<256x360xbf16>, vector<360x256xbf16>, vector<256x256xf32> -> vector<256x256xf32>
    %366 = vector.shape_cast %365 : vector<256x256xf32> to vector<16x16x256xf32>
    %367 = vector.extract_strided_slice %366 {offsets = [0, 0, 0], sizes = [16, 16, 128], strides = [1, 1, 1]} : vector<16x16x256xf32> to vector<16x16x128xf32>
    %368 = vector.extract_strided_slice %366 {offsets = [0, 0, 128], sizes = [16, 16, 128], strides = [1, 1, 1]} : vector<16x16x256xf32> to vector<16x16x128xf32>
    %c64_i32_206 = arith.constant 64 : i32
    %369 = tpu.dynamic_rotate %367 by %c64_i32_206 dim 2 : vector<16x16x128xf32>, i32 -> vector<16x16x128xf32>
    %c0_207 = arith.constant 0 : index
    %c0_208 = arith.constant 0 : index
    %c0_209 = arith.constant 0 : index
    %370 = vector.load %arg13[%c0_207, %c0_208, %c0_209] : memref<16x16x128xf32, #tpu.memory_space<vmem>>, vector<16x16x128xf32>
    %371 = arith.addf %370, %368 : vector<16x16x128xf32>
    %c0_210 = arith.constant 0 : index
    %c0_211 = arith.constant 0 : index
    %c0_212 = arith.constant 0 : index
    %372 = vector.load %arg13[%c0_210, %c0_211, %c0_212] : memref<16x16x128xf32, #tpu.memory_space<vmem>>, vector<16x16x128xf32>
    tpu.vector_store %arg13[%c0_210, %c0_211, %c0_212], %371 {strides = array<i32>} : memref<16x16x128xf32, #tpu.memory_space<vmem>>, vector<16x16x128xf32>,
    %c0_213 = arith.constant 0 : index
    %c1_214 = arith.constant 1 : index
    %c0_215 = arith.constant 0 : index
    %373 = vector.load %arg13[%c0_213, %c1_214, %c0_215] : memref<16x16x128xf32, #tpu.memory_space<vmem>>, vector<16x15x128xf32>
    %374 = vector.extract_strided_slice %367 {offsets = [0, 0, 0], sizes = [16, 15, 128], strides = [1, 1, 1]} : vector<16x16x128xf32> to vector<16x15x128xf32>
    %375 = arith.addf %373, %374 : vector<16x15x128xf32>
    %c0_216 = arith.constant 0 : index
    %c1_217 = arith.constant 1 : index
    %c0_218 = arith.constant 0 : index
    %376 = vector.load %arg13[%c0_216, %c1_217, %c0_218] : memref<16x16x128xf32, #tpu.memory_space<vmem>>, vector<16x15x128xf32>
    tpu.vector_store %arg13[%c0_216, %c1_217, %c0_218], %375 {strides = array<i32>} : memref<16x16x128xf32, #tpu.memory_space<vmem>>, vector<16x15x128xf32>,
    %c0_219 = arith.constant 0 : index
    %c0_220 = arith.constant 0 : index
    %c0_221 = arith.constant 0 : index
    %377 = vector.load %arg13[%c0_219, %c0_220, %c0_221] : memref<16x16x128xf32, #tpu.memory_space<vmem>>, vector<16x15x128xf32>
    %378 = vector.extract_strided_slice %369 {offsets = [0, 1, 0], sizes = [16, 15, 128], strides = [1, 1, 1]} : vector<16x16x128xf32> to vector<16x15x128xf32>
    %379 = arith.addf %377, %378 : vector<16x15x128xf32>
    %c0_222 = arith.constant 0 : index
    %c0_223 = arith.constant 0 : index
    %c0_224 = arith.constant 0 : index
    %380 = vector.load %arg13[%c0_222, %c0_223, %c0_224] : memref<16x16x128xf32, #tpu.memory_space<vmem>>, vector<16x15x128xf32>
    tpu.vector_store %arg13[%c0_222, %c0_223, %c0_224], %379 {strides = array<i32>} : memref<16x16x128xf32, #tpu.memory_space<vmem>>, vector<16x15x128xf32>,
    %c0_225 = arith.constant 0 : index
    %c0_226 = arith.constant 0 : index
    %c0_227 = arith.constant 0 : index
    %381 = vector.load %arg13[%c0_225, %c0_226, %c0_227] : memref<16x16x128xf32, #tpu.memory_space<vmem>>, vector<16x16x128xf32>
    %382 = vector.shape_cast %381 : vector<16x16x128xf32> to vector<256x128xf32>
    %c0_228 = arith.constant 0 : index
    %c0_229 = arith.constant 0 : index
    %383 = vector.load %arg8[%c0_228, %c0_229] : memref<1x128xf32, #tpu.memory_space<vmem>>, vector<1x128xf32>
    %384 = vector.broadcast %383 : vector<1x128xf32> to vector<256x128xf32>
    %385 = arith.addf %382, %384 : vector<256x128xf32>
    %cst_230 = arith.constant 0.000000e+00 : f32
    %386 = vector.broadcast %cst_230 : f32 to vector<256x128xf32>
    %387 = arith.maximumf %385, %386 : vector<256x128xf32>
    %c0_231 = arith.constant 0 : index
    %c0_232 = arith.constant 0 : index
    %388 = vector.load %arg9[%c0_231, %c0_232] : memref<1x128xf32, #tpu.memory_space<vmem>>, vector<1x128xf32>
    %389 = vector.broadcast %388 : vector<1x128xf32> to vector<256x128xf32>
    %390 = arith.mulf %387, %389 : vector<256x128xf32>
    %cst_233 = arith.constant dense<0.000000e+00> : vector<256xf32>
    %391 = vector.multi_reduction <add>, %390, %cst_233 [1] : vector<256x128xf32> to vector<256xf32>
    %c0_234 = arith.constant 0 : index
    %c0_235 = arith.constant 0 : index
    %c0_236 = arith.constant 0 : index
    %392 = vector.load %arg10[%c0_234, %c0_235, %c0_236] : memref<1x1x256xf32, #tpu.memory_space<vmem>>, vector<1x1x256xf32>
    %393 = vector.shape_cast %392 : vector<1x1x256xf32> to vector<256xf32>
    %394 = vector.shape_cast %391 : vector<256xf32> to vector<1x1x256xf32>
    tpu.vector_store %arg10[%c0_234, %c0_235, %c0_236], %394 {strides = array<i32>} : memref<1x1x256xf32, #tpu.memory_space<vmem>>, vector<1x1x256xf32>,
    return
  }
  func.func @transform_0(%arg0: i32) -> (i32, i32, i32, i32) {
    %c0_i32 = arith.constant 0 : i32
    %c0_i32_0 = arith.constant 0 : i32
    %c0_i32_1 = arith.constant 0 : i32
    %c0_i32_2 = arith.constant 0 : i32
    return %arg0, %c0_i32, %c0_i32_0, %c0_i32_1 : i32, i32, i32, i32
  }
  func.func @transform_1(%arg0: i32) -> (i32, i32, i32, i32) {
    %c0_i32 = arith.constant 0 : i32
    %c0_i32_0 = arith.constant 0 : i32
    %c0_i32_1 = arith.constant 0 : i32
    %c0_i32_2 = arith.constant 0 : i32
    return %arg0, %c0_i32, %c0_i32_0, %c0_i32_1 : i32, i32, i32, i32
  }
  func.func @transform_2(%arg0: i32) -> (i32, i32) {
    %c0_i32 = arith.constant 0 : i32
    %c0_i32_0 = arith.constant 0 : i32
    %c0_i32_1 = arith.constant 0 : i32
    return %c0_i32, %c0_i32_0 : i32, i32
  }
  func.func @transform_3(%arg0: i32) -> (i32, i32) {
    %c0_i32 = arith.constant 0 : i32
    %c0_i32_0 = arith.constant 0 : i32
    %c0_i32_1 = arith.constant 0 : i32
    return %c0_i32, %c0_i32_0 : i32, i32
  }
  func.func @transform_4(%arg0: i32) -> (i32, i32) {
    %c0_i32 = arith.constant 0 : i32
    %c0_i32_0 = arith.constant 0 : i32
    %c0_i32_1 = arith.constant 0 : i32
    return %c0_i32, %c0_i32_0 : i32, i32
  }
  func.func @transform_5(%arg0: i32) -> (i32, i32) {
    %c0_i32 = arith.constant 0 : i32
    %c0_i32_0 = arith.constant 0 : i32
    %c0_i32_1 = arith.constant 0 : i32
    return %c0_i32, %c0_i32_0 : i32, i32
  }
  func.func @transform_6(%arg0: i32) -> (i32, i32, i32) {
    %c0_i32 = arith.constant 0 : i32
    %c0_i32_0 = arith.constant 0 : i32
    %c0_i32_1 = arith.constant 0 : i32
    %c0_i32_2 = arith.constant 0 : i32
    return %c0_i32, %c0_i32_0, %c0_i32_1 : i32, i32, i32
  }
  func.func @transform_7(%arg0: i32) -> (i32, i32) {
    %c0_i32 = arith.constant 0 : i32
    %c0_i32_0 = arith.constant 0 : i32
    %c0_i32_1 = arith.constant 0 : i32
    return %c0_i32, %c0_i32_0 : i32, i32
  }
  func.func @transform_8(%arg0: i32) -> (i32, i32) {
    %c0_i32 = arith.constant 0 : i32
    %c0_i32_0 = arith.constant 0 : i32
    %c0_i32_1 = arith.constant 0 : i32
    return %c0_i32, %c0_i32_0 : i32, i32
  }
  func.func @transform_9(%arg0: i32) -> (i32, i32, i32) {
    %c0_i32 = arith.constant 0 : i32
    %c0_i32_0 = arith.constant 0 : i32
    %c0_i32_1 = arith.constant 0 : i32
    return %arg0, %c0_i32, %c0_i32_0 : i32, i32, i32
  }
  func.func @transform_10(%arg0: i32) -> (i32, i32, i32, i32) {
    %c0_i32 = arith.constant 0 : i32
    %c0_i32_0 = arith.constant 0 : i32
    %c0_i32_1 = arith.constant 0 : i32
    %c0_i32_2 = arith.constant 0 : i32
    return %arg0, %c0_i32, %c0_i32_0, %c0_i32_1 : i32, i32, i32, i32
  }
}

</mosaic_0001>

<bundles_post_ra>
// kernel: edge_head_forward.1
= control target key start
LH: loop header
LB: loop body
LE: loop exit
PB: predicated region body
PF: predicated region fallthrough
CT: control target
= control target key end

     0   :  { %s12193_s13 = smov 0   ;;  %s15553_s0 = inlined_call_operand.vmem [shape: bf16[2,8,8,360], index: 0, kind: input, shape index: {}]   ;;  %s15554_s1 = inlined_call_operand.vmem [shape: bf16[2,16,16,96], index: 1, kind: input, shape index: {}]   ;;  %s15555_s2 = inlined_call_operand.vmem [shape: bf16[16,8], index: 2, kind: input, shape index: {}]   ;;  %s15556_s3 = inlined_call_operand.vmem [shape: bf16[96,48], index: 3, kind: input, shape index: {}]   ;;  %s15557_s4 = inlined_call_operand.vmem [shape: bf16[360,360], index: 4, kind: input, shape index: {}]   ;;  %s15558_s5 = inlined_call_operand.vmem [shape: bf16[48,360], index: 5, kind: input, shape index: {}]   ;;  %s15559_s6 = inlined_call_operand.vmem [shape: bf16[3,360,256], index: 6, kind: input, shape index: {}]   ;;  %s15560_s7 = inlined_call_operand.vmem [shape: f32[1,128], index: 7, kind: input, shape index: {}]   ;;  %s15561_s8 = inlined_call_operand.vmem [shape: f32[1,128], index: 8, kind: input, shape index: {}]   ;;  %s15562_s9 = inlined_call_operand.vmem [shape: f32[2,1,256], index: 9, kind: output, shape index: {0}]   ;;  %s15563_s10 = inlined_call_operand.vmem [shape: bf16[2,16,16,360], index: 10, kind: output, shape index: {1}]  }
   0x1 LB: > { %s10552_s14 = sadd.s32 4294967295, %s12131_s13   ;;  %p10556_p0 = scmp.ge.s32.totalorder %s12131_s13, 1  ;;  %s12131_s13 = sphi %s12193_s13, %s21_s13  }
   0x2   : > { %p325_p1 = scmp.lt.s32.totalorder %s12131_s13, 3 }
   0x4   : > { %p326_p2 = pnand %p10556_p0, %p325_p1 }
   0x6   : > { %329 = sbr.rel (%p326_p2) target bundleno = 1911 (0x777), region = 56 }
   0xd   : > { %v11776_v0 = vld [vmem:[%s15557_s4 + $0x4] ss:$12 sps:$4 sm:$0xff]   ;;  %v11778_v1 = vld [vmem:[%s15557_s4] ss:$12 sps:$4 sm:$0xff]   ;;  %vm918_vm0 = vcmask 850944   ;;  %v12133_v3 = vmov 0  }
   0xe   : > { %941 = vmatprep.subr.bf16.mxu0 %v11776_v0  ;;  %v11779_v2 = vld [vmem:[%s15557_s4 + $0x1c] ss:$12 sps:$4 sm:$0xff]   ;;  %2893 = vst [vmem:[#allocation2] sm:$0xff] %v12133_v3  ;;  %2895 = vst.msk [vmem:[#allocation2 + $0x10] sm:$0xff] %vm918_vm0, %v12133_v3  ;;  %11775 = vset.pattern.permute.xlu1 %v12133_v3  ;;  %v11781_v4 = vld [vmem:[%s15557_s4 + $0x18] ss:$12 sps:$4 sm:$0xff]  }
   0xf   : > { %2899 = vst.msk [vmem:[#allocation2 + $0x1a8] sm:$0xff] %vm918_vm0, %v12133_v3  ;;  %942 = vmatpush1.bf16.msra.mxu0 %v11778_v1  ;;  %11774 = vset.pattern.permute.xlu0 %v12133_v3  ;;  %v11782_v5 = vld [vmem:[%s15557_s4 + $0x34] ss:$12 sps:$4 sm:$0xff]   ;;  %v11784_v6 = vld [vmem:[%s15557_s4 + $0x30] ss:$12 sps:$4 sm:$0xff]   ;;  %p372_p3 = scmp.lt.s32.totalorder %s10552_s14, 1 }
  0x10   : > { %943 = vmatprep.subr.bf16.mxu0 %v11779_v2  ;;  %v11785_v7 = vld [vmem:[%s15557_s4 + $0x4c] ss:$12 sps:$4 sm:$0xff]   ;;  %v11787_v8 = vld [vmem:[%s15557_s4 + $0x48] ss:$12 sps:$4 sm:$0xff]   ;;  %v11788_v9 = vld [vmem:[%s15557_s4 + $0x64] ss:$12 sps:$4 sm:$0xff]  }
  0x11   : > { %v11803_v10 = vld [vmem:[%s15557_s4 + $0xc8] ss:$12 sps:$4 sm:$0xff]   ;;  %v11790_v12 = vld [vmem:[%s15557_s4 + $0x60] ss:$12 sps:$4 sm:$0xff]   ;;  %v11793_v16 = vld [vmem:[%s15557_s4 + $0x78] ss:$12 sps:$4 sm:$0xff]  }
  0x12   : > { %v11804_v11 = vld [vmem:[%s15557_s4 + $0x8] ss:$12 sps:$4 sm:$0xff]   ;;  %11276 = vmatprep.subr.bf16.mxu1 %v11803_v10  ;;  %v11808_v14 = vld [vmem:[%s15557_s4 + $0xe0] ss:$12 sps:$4 sm:$0xff]   ;;  %v11813_v18 = vld [vmem:[%s15557_s4 + $0xf8] ss:$12 sps:$4 sm:$0xff]  }
  0x13   : > { %944 = vmatpush1.bf16.msra.mxu0 %v11781_v4  ;;  %v11791_v13 = vld [vmem:[%s15557_s4 + $0x7c] ss:$12 sps:$4 sm:$0xff]   ;;  %11277 = vmatpush3.bf16.msra.mxu1 %v11804_v11  ;;  %v11809_v15 = vld [vmem:[%s15557_s4 + $0x20] ss:$12 sps:$4 sm:$0xff]   ;;  %v11814_v19 = vld [vmem:[%s15557_s4 + $0x38] ss:$12 sps:$4 sm:$0xff]  }
  0x14   : > { %945 = vmatprep.subr.bf16.mxu0 %v11782_v5  ;;  %v11794_v17 = vld [vmem:[%s15557_s4 + $0x94] ss:$12 sps:$4 sm:$0xff]   ;;  %11278 = vmatprep.subr.bf16.mxu1 %v11808_v14  ;;  %v11796_v20 = vld [vmem:[%s15557_s4 + $0x90] ss:$12 sps:$4 sm:$0xff]   ;;  %v11797_v23 = vld [vmem:[%s15557_s4 + $0xac] ss:$12 sps:$4 sm:$0xff]  }
  0x15   : > { %v11818_v21 = vld [vmem:[%s15557_s4 + $0x110] ss:$12 sps:$4 sm:$0xff]   ;;  %s15745_s14 = smov (!%p372_p3, %s10552_s14), 1  ;;  %v11799_v24 = vld [vmem:[%s15557_s4 + $0xa8] ss:$12 sps:$4 sm:$0xff]   ;;  %vm931_vm1 = vcmask 1043456  }
  0x16   : > { %v11819_v22 = vld [vmem:[%s15557_s4 + $0x50] ss:$12 sps:$4 sm:$0xff]   ;;  %v11823_v25 = vld [vmem:[%s15557_s4 + $0x128] ss:$12 sps:$4 sm:$0xff]   ;;  %v11828_v28 = vld [vmem:[%s15557_s4 + $0x140] ss:$12 sps:$4 sm:$0xff]  }
  0x17   : > { %946 = vmatpush1.bf16.msra.mxu0 %v11784_v6  ;;  %11279 = vmatpush3.bf16.msra.mxu1 %v11809_v15  ;;  %v11824_v26 = vld [vmem:[%s15557_s4 + $0x68] ss:$12 sps:$4 sm:$0xff]   ;;  %v11800_v27 = vld [vmem:[%s15557_s4 + $0xc4] ss:$12 sps:$4 sm:$0xff]   ;;  %v11802_v29 = vld [vmem:[%s15557_s4 + $0xc0] ss:$12 sps:$4 sm:$0xff]  }
  0x18   : > { %947 = vmatprep.subr.bf16.mxu0 %v11785_v7  ;;  %11280 = vmatprep.subr.bf16.mxu1 %v11813_v18  ;;  %s11759_s19 = smul.u32 96, %s15745_s14  ;;  %v11805_v30 = vld [vmem:[%s15557_s4 + $0xdc] ss:$12 sps:$4 sm:$0xff]   ;;  %v11829_v31 = vld [vmem:[%s15557_s4 + $0x80] ss:$12 sps:$4 sm:$0xff]   ;;  %vm1275_vm2 = vcmask 64512  }
  0x19   : > { %v11833_v32 = vld [vmem:[%s15557_s4 + $0x158] ss:$12 sps:$4 sm:$0xff]   ;;  %v11810_v34 = vld [vmem:[%s15557_s4 + $0xf4] ss:$12 sps:$4 sm:$0xff]   ;;  %v11838_v36 = vld [vmem:[%s15557_s4 + $0x170] ss:$12 sps:$4 sm:$0xff]  }
  0x1a   : > { %v11807_v33 = vld [vmem:[%s15557_s4 + $0xd8] ss:$12 sps:$4 sm:$0xff]   ;;  %s12320_s12 = scalar_lea.vmem %s15553_s0, %s11759_s19  ;;  %v11812_v38 = vld [vmem:[%s15557_s4 + $0xf0] ss:$12 sps:$4 sm:$0xff]   ;;  %v11846_v41 = vld [vmem:[%s15557_s4 + $0x188] ss:$12 sps:$4 sm:$0xff]  }
  0x1b   : > { %948 = vmatpush1.bf16.msra.mxu0 %v11787_v8  ;;  %11281 = vmatpush3.bf16.msra.mxu1 %v11814_v19  ;;  %v11834_v35 = vld [vmem:[%s15557_s4 + $0x98] ss:$12 sps:$4 sm:$0xff]   ;;  %v11842_v40 = vld [vmem:[%s15557_s4 + $0xb0] ss:$12 sps:$4 sm:$0xff]   ;;  %v11817_v42 = vld [vmem:[%s15557_s4 + $0x108] ss:$12 sps:$4 sm:$0xff]  }
  0x1c   : > { %949 = vmatprep.subr.bf16.mxu0 %v11788_v9  ;;  %11282 = vmatprep.subr.bf16.mxu1 %v11818_v21  ;;  %v11841_v37 = vld [vmem:[%s12320_s12 + $0x4] ss:$12 sps:$4 sm:$0xff]   ;;  %v11815_v39 = vld [vmem:[%s15557_s4 + $0x10c] ss:$12 sps:$4 sm:$0xff]   ;;  %v11847_v47 = vld [vmem:[%s12320_s12 + $0x1c] ss:$12 sps:$4 sm:$0xff]  }
  0x1d   : > { %973 = vmatprep.mubr.bf16.mxu0 %v11841_v37  ;;  %1119 = vmatprep.mubr.bf16.mxu1 %v11841_v37  ;;  %v11820_v43 = vld [vmem:[%s15557_s4 + $0x124] ss:$12 sps:$4 sm:$0xff]   ;;  %v11839_v44 = vld [vmem:[%s12320_s12] ss:$12 sps:$4 sm:$0xff]   ;;  %v11825_v48 = vld [vmem:[%s15557_s4 + $0x13c] ss:$12 sps:$4 sm:$0xff]  }
  0x1e   : > { %v11822_v45 = vld [vmem:[%s15557_s4 + $0x120] ss:$12 sps:$4 sm:$0xff]   ;;  %v11857_v49 = vld [vmem:[%s15557_s4 + $0x1b8] ss:$12 sps:$4 sm:$0xff]   ;;  %v11864_v53 = vld [vmem:[%s15557_s4 + $0x1d0] ss:$12 sps:$4 sm:$0xff]  }
  0x1f   : > { %950 = vmatpush1.bf16.msra.mxu0 %v11790_v12  ;;  %11283 = vmatpush3.bf16.msra.mxu1 %v11819_v22  ;;  %v11853_v46 = vld [vmem:[%s15557_s4 + $0x1a0] ss:$12 sps:$4 sm:$0xff]   ;;  %v11827_v50 = vld [vmem:[%s15557_s4 + $0x138] ss:$12 sps:$4 sm:$0xff]   ;;  %v11832_v55 = vld [vmem:[%s15557_s4 + $0x150] ss:$12 sps:$4 sm:$0xff]  }
  0x20   : > { %951 = vmatprep.subr.bf16.mxu0 %v11791_v13  ;;  %11284 = vmatprep.subr.bf16.mxu1 %v11823_v25  ;;  %v11830_v51 = vld [vmem:[%s15557_s4 + $0x154] ss:$12 sps:$4 sm:$0xff]   ;;  %v11849_v52 = vld [vmem:[%s12320_s12 + $0x18] ss:$12 sps:$4 sm:$0xff]   ;;  %v11860_v60 = vld [vmem:[%s12320_s12 + $0x30] ss:$12 sps:$4 sm:$0xff]  }
  0x21   : > { %v11858_v54 = vld [vmem:[%s12320_s12 + $0x34] ss:$12 sps:$4 sm:$0xff]   ;;  %v11835_v56 = vld [vmem:[%s15557_s4 + $0x16c] ss:$12 sps:$4 sm:$0xff]   ;;  %v11845_v59 = vld [vmem:[%s15557_s4 + $0x184] ss:$12 sps:$4 sm:$0xff]  }
  0x22   : > { %v11868_v57 = vld [vmem:[%s15557_s4 + $0x1e8] ss:$12 sps:$4 sm:$0xff]   ;;  %v11869_v61 = vld [vmem:[%s12320_s12 + $0x4c] ss:$12 sps:$4 sm:$0xff]   ;;  %v11854_v7 = vld [vmem:[%s15557_s4 + $0x1b0] ss:$12 sps:$4 sm:$0xff]  }
  0x23   : > { %952 = vmatpush1.bf16.msra.mxu0 %v11793_v16  ;;  %11285 = vmatpush3.bf16.msra.mxu1 %v11824_v26  ;;  %v11837_v58 = vld [vmem:[%s15557_s4 + $0x168] ss:$12 sps:$4 sm:$0xff]   ;;  %v11843_v62 = vld [vmem:[%s15557_s4 + $0x180] ss:$12 sps:$4 sm:$0xff]   ;;  %v11878_v1 = vld [vmem:[%s15557_s4 + $0x218] ss:$0 sps:$4 sm:$0xff]  }
  0x24   : > { %953 = vmatprep.subr.bf16.mxu0 %v11794_v17  ;;  %11286 = vmatprep.subr.bf16.mxu1 %v11828_v28  ;;  %v11875_v63 = vld [vmem:[%s15557_s4 + $0x200] ss:$12 sps:$4 sm:$0xff]   ;;  %v11852_v0 = vld [vmem:[%s15557_s4 + $0x19c] ss:$12 sps:$4 sm:$0xff]   ;;  %v11850_v2 = vld [vmem:[%s15557_s4 + $0x198] ss:$12 sps:$4 sm:$0xff]  }
  0x25   : > { %v11879_v4 = vld [vmem:[%s12320_s12 + $0x8] ss:$12 sps:$4 sm:$0xff]   ;;  %v939_v8 = vsel %vm931_vm1, %v11878_v1, 0  ;;  %v11863_v9 = vld [vmem:[%s15557_s4 + $0x1cc] ss:$12 sps:$4 sm:$0xff]   ;;  %vm12135_vm3 = vmmov 0  }
  0x26   : > { %v11856_v5 = vld [vmem:[%s15557_s4 + $0x1b4] ss:$12 sps:$4 sm:$0xff]   ;;  %v11867_v12 = vld [vmem:[%s15557_s4 + $0x1e4] ss:$12 sps:$4 sm:$0xff]   ;;  %v11874_v15 = vld [vmem:[%s15557_s4 + $0x1fc] ss:$12 sps:$4 sm:$0xff]  }
  0x27   : > { %954 = vmatpush1.bf16.msra.mxu0 %v11796_v20  ;;  %11287 = vmatpush3.bf16.msra.mxu1 %v11829_v31  ;;  %v11871_v6 = vld [vmem:[%s12320_s12 + $0x48] ss:$12 sps:$4 sm:$0xff]   ;;  %v11880_v10 = vld [vmem:[%s12320_s12 + $0x20] ss:$12 sps:$4 sm:$0xff]   ;;  %v11881_v13 = vld [vmem:[%s12320_s12 + $0x38] ss:$12 sps:$4 sm:$0xff]  }
  0x28   : > { %955 = vmatprep.subr.bf16.mxu0 %v11797_v23  ;;  %11288 = vmatprep.subr.bf16.mxu1 %v11833_v32  ;;  %v11861_v11 = vld [vmem:[%s15557_s4 + $0x1c8] ss:$12 sps:$4 sm:$0xff]   ;;  %v11865_v14 = vld [vmem:[%s15557_s4 + $0x1e0] ss:$12 sps:$4 sm:$0xff]   ;;  %v11872_v17 = vld [vmem:[%s15557_s4 + $0x1f8] ss:$12 sps:$4 sm:$0xff]  }
  0x29   : > { %v496_v16 = vld [vmem:[%s15557_s4 + $0x210] sm:$0xff]  ;;  %vm2204_vm4 = vcmask 785408   ;;  %vm2490_vm5 = vcmask 392192   ;;  %s11760_s19 = smul.u32 384, %s15745_s14  ;;  %vm2927_vm6 = vcmask 846848   ;;  %s12136_s21 = smov 64  }
  0x2a   : > { %v11882_v18 = vld [vmem:[%s12320_s12 + $0x50] ss:$12 sps:$4 sm:$0xff]   ;;  %v10641_v19 = vcombine.high %v496_v16, %v496_v16  ;;  %v10640_v20 = vcombine.low %v496_v16, %v496_v16  ;;  %s11187_s12 = sshll.u32 %s15745_s14, 7  ;;  %vm4726_vm7 = vcmask 1046528   ;;  %vm10254_vm8 = vcmask 130112   ;;  %s10560_s24 = sshll.u32 %s15745_s14, 1 }
  0x2b   : > { %956 = vmatpush1.bf16.msra.mxu0 %v11799_v24  ;;  %11289 = vmatpush3.bf16.msra.mxu1 %v11834_v35  ;;  %s12458_s17 = scalar_lea.vmem %s15554_s1, %s11187_s12  ;;  %s13389_s29 = scalar_lea.vmem %s15563_s10, %s11760_s19  ;;  %vm10261_vm9 = vcmask 195712   ;;  %vm10268_vm10 = vcmask 261312   ;;  %vm10275_vm11 = vcmask 326912   ;;  %vm10282_vm12 = vcmask 392512  }
  0x2c   : > { %957 = vmatprep.subr.bf16.mxu0 %v11800_v27  ;;  %11290 = vmatprep.subr.bf16.mxu1 %v11838_v36  ;;  %v933_v21 = vsel %vm931_vm1, %v10640_v20, 0  ;;  %vm10289_vm13 = vcmask 458112   ;;  %vm10296_vm14 = vcmask 523712   ;;  %vm10303_vm15 = vcmask 589312   ;;  %s385_s27 = scalar_lea.vmem %s15562_s9, %s10560_s24 }
  0x2f   : > { %958 = vmatpush1.bf16.msra.mxu0 %v11802_v29  ;;  %11291 = vmatpush3.bf16.msra.mxu1 %v11842_v40 }
  0x30   : > { %959 = vmatprep.subr.bf16.mxu0 %v11805_v30  ;;  %11384 = vmatprep.subr.bf16.mxu1 %v11846_v41 }
  0x32   : > { %1120 = vmatmul.mubr.bf16.vlgmr.msra.gmra.mrb[0].mxu1 %v11839_v44 }
  0x33   : > { %960 = vmatpush1.bf16.msra.mxu0 %v11807_v33  ;;  %11385 = vmatpush3.bf16.msra.mxu1 %v11846_v41 }
  0x34   : > { %961 = vmatprep.subr.bf16.mxu0 %v11810_v34  ;;  %1127 = vmatprep.mubr.bf16.mxu1 %v11847_v47 }
  0x35   : > { %11386 = vmatprep.subr.bf16.mxu1 %v11853_v46 }
  0x37   : > { %962 = vmatpush1.bf16.msra.mxu0 %v11812_v38  ;;  %11387 = vmatpush3.bf16.msra.mxu1 %v11853_v46 }
  0x38   : > { %963 = vmatprep.subr.bf16.mxu0 %v11815_v39  ;;  %11388 = vmatprep.subr.bf16.mxu1 %v11857_v49 }
  0x3a   : > { %1128 = vmatmul.mubr.bf16.gmra.mrb[4].mxu1 %v11849_v52 }
  0x3b   : > { %964 = vmatpush1.bf16.msra.mxu0 %v11817_v42  ;;  %11389 = vmatpush3.bf16.msra.mxu1 %v11857_v49 }
  0x3c   : > { %965 = vmatprep.subr.bf16.mxu0 %v11820_v43  ;;  %1135 = vmatprep.mubr.bf16.mxu1 %v11858_v54 }
  0x3d   : > { %11390 = vmatprep.subr.bf16.mxu1 %v11864_v53 }
  0x3f   : > { %966 = vmatpush1.bf16.msra.mxu0 %v11822_v45  ;;  %11391 = vmatpush3.bf16.msra.mxu1 %v11864_v53 }
  0x40   : > { %967 = vmatprep.subr.bf16.mxu0 %v11825_v48  ;;  %11392 = vmatprep.subr.bf16.mxu1 %v11868_v57 }
  0x42   : > { %1136 = vmatmul.mubr.bf16.gmra.mrb[8].mxu1 %v11860_v60 }
  0x43   : > { %968 = vmatpush1.bf16.msra.mxu0 %v11827_v50  ;;  %11393 = vmatpush3.bf16.msra.mxu1 %v11868_v57 }
  0x44   : > { %969 = vmatprep.subr.bf16.mxu0 %v11830_v51  ;;  %1143 = vmatprep.mubr.bf16.mxu1 %v11869_v61 }
  0x45   : > { %11394 = vmatprep.subr.bf16.mxu1 %v11875_v63 }
  0x47   : > { %970 = vmatpush1.bf16.msra.mxu0 %v11832_v55  ;;  %11395 = vmatpush3.bf16.msra.mxu1 %v11875_v63 }
  0x48   : > { %971 = vmatprep.subr.bf16.mxu0 %v11835_v56  ;;  %11758 = vmatprep.subr.msk.bf16.mxu1 %vm931_vm1, %v11878_v1 }
  0x4a   : > { %1144 = vmatmul.mubr.bf16.gmra.mrb[12].mxu1 %v11871_v6 }
  0x4b   : > { %972 = vmatpush1.bf16.msra.mxu0 %v11837_v58  ;;  %11398 = vmatprep.mubr.msk.bf16.mxu1 %vm918_vm0, %v11879_v4 }
  0x4c   : > { %1014 = vmatprep.subr.bf16.mxu0 %v11845_v59  ;;  %11397 = vmatpush3.bf16.msra.mxu1 %v939_v8 }
  0x4e   : > { %974 = vmatmul.mubr.bf16.vlgmr.msra.gmra.mrb[0].mxu0 %v11839_v44 }
  0x4f   : > { %1015 = vmatpush1.bf16.msra.mxu0 %v11843_v62  ;;  %983 = vmatprep.mubr.bf16.mxu0 %v11847_v47 }
  0x50   : > { %1016 = vmatprep.subr.bf16.mxu0 %v11852_v0  ;;  %v12471_v0 = vld [vmem:[%s15555_s2] sm:$0xff]  }
  0x52   : > { %11399 = vmatmul.mubr.msk.bf16.vlgmr.msra.gmra.mrb[16].mxu1 %vm918_vm0, %v11880_v10 }
  0x53   : > { %1017 = vmatpush1.bf16.msra.mxu0 %v11850_v2  ;;  %11402 = vmatprep.mubr.msk.bf16.mxu1 %vm918_vm0, %v11881_v13 }
  0x54   : > { %1018 = vmatprep.subr.bf16.mxu0 %v11856_v5 }
  0x56   : > { %984 = vmatmul.mubr.bf16.gmra.mrb[4].mxu0 %v11849_v52 }
  0x57   : > { %1019 = vmatpush1.bf16.msra.mxu0 %v11854_v7  ;;  %993 = vmatprep.mubr.bf16.mxu0 %v11858_v54  ;;  %v12134_v7 = vmov 0.0  }
  0x58   : > { %1020 = vmatprep.subr.bf16.mxu0 %v11863_v9 }
  0x5a   : > { %11403 = vmatmul.mubr.msk.bf16.gmra.mrb[20].mxu1 %vm918_vm0, %v11882_v18 }
  0x5b   : > { %1021 = vmatpush1.bf16.msra.mxu0 %v11861_v11  ;;  %1320 = vmatprep.mubr.bf16.mxu1 %v12133_v3 }
  0x5c   : > { %1022 = vmatprep.subr.bf16.mxu0 %v11867_v12 }
  0x5e   : > { %994 = vmatmul.mubr.bf16.gmra.mrb[8].mxu0 %v11860_v60 }
  0x5f   : > { %1023 = vmatpush1.bf16.msra.mxu0 %v11865_v14  ;;  %1003 = vmatprep.mubr.bf16.mxu0 %v11869_v61 }
  0x60   : > { %1024 = vmatprep.subr.bf16.mxu0 %v11874_v15 }
  0x63   : > { %1025 = vmatpush1.bf16.msra.mxu0 %v11872_v17 }
  0x64   : > { %10643 = vmatprep.subr.msk.bf16.mxu0 %vm931_vm1, %v10641_v19 }
  0x66   : > { %1004 = vmatmul.mubr.bf16.gmra.mrb[12].mxu0 %v11871_v6 }
  0x67   : > { %1027 = vmatpush1.bf16.msra.mxu0 %v933_v21  ;;  %1046 = vmatprep.mubr.bf16.mxu0 %v12133_v3 }
  0x6e   : > { %10644 = vmatmul.mubr.msk.bf16.vlgmr.msra.gmra.mrb[0].mxu0 %vm918_vm0, %v11879_v4 }
  0x6f   : > { %1056 = vmatprep.mubr.bf16.mxu0 %v12133_v3 }
  0x76   : > { %10645 = vmatmul.mubr.msk.bf16.gmra.mrb[4].mxu0 %vm918_vm0, %v11880_v10 }
  0x77   : > { %1066 = vmatprep.mubr.bf16.mxu0 %v12133_v3 }
  0x7e   : > { %10646 = vmatmul.mubr.msk.bf16.gmra.mrb[8].mxu0 %vm918_vm0, %v11881_v13 }
  0x7f   : > { %1076 = vmatprep.mubr.bf16.mxu0 %v12133_v3 }
  0x86   : > { %10647 = vmatmul.mubr.msk.bf16.gmra.mrb[12].mxu0 %vm918_vm0, %v11882_v18 }
  0x87   : > { %1608 = vmatprep.mubr.bf16.mxu0 %v12133_v3 }
 0x105   : > { %v11292_v22 = vpop.f32.mrb[0].mxu1 }
 0x106   : > { %v11293_v23 = vpop.f32.mrb[1].mxu1 }
 0x107   : > { %v11295_v24 = vpop.f32.mrb[2].mxu1  ;;  %v11294_v25 = vadd.f32 %v11293_v23, %v11292_v22  ;;  %v12491_v22 = vld [vmem:[#allocation2] sm:$0xff] }
 0x108   : > { %v11296_v26 = vpop.f32.mrb[3].mxu1 }
 0x109   : > { %v11297_v27 = vadd.f32 %v11296_v26, %v11295_v24 }
 0x10d   : > { %v11298_v28 = vpop.f32.mrb[4].mxu1 }
 0x10e   : > { %v11299_v29 = vpop.f32.mrb[5].mxu1 }
 0x10f   : > { %v11300_v30 = vadd.f32 %v11299_v29, %v11298_v28  ;;  %v11301_v31 = vpop.f32.mrb[6].mxu1 }
 0x110   : > { %v11302_v32 = vpop.f32.mrb[7].mxu1 }
 0x111   : > { %v11303_v33 = vadd.f32 %v11302_v32, %v11301_v31 }
 0x115   : > { %v11304_v34 = vpop.f32.mrb[8].mxu1 }
 0x116   : > { %v11305_v3 = vpop.f32.mrb[9].mxu1 }
 0x117   : > { %v11306_v35 = vadd.f32 %v11305_v3, %v11304_v34  ;;  %v11307_v36 = vpop.f32.mrb[10].mxu1 }
 0x118   : > { %v11308_v37 = vpop.f32.mrb[11].mxu1 }
 0x119   : > { %v11309_v38 = vadd.f32 %v11308_v37, %v11307_v36 }
 0x11d   : > { %v11310_v39 = vpop.f32.mrb[12].mxu1 }
 0x11e   : > { %v11311_v40 = vpop.f32.mrb[13].mxu1 }
 0x11f   : > { %v11312_v41 = vadd.f32 %v11311_v40, %v11310_v39  ;;  %v11313_v42 = vpop.f32.mrb[14].mxu1 }
 0x120   : > { %v11314_v43 = vpop.f32.mrb[15].mxu1 }
 0x121   : > { %v11315_v44 = vadd.f32 %v11314_v43, %v11313_v42 }
 0x125   : > { %v11400_v45 = vpop.f32.mrb[16].mxu1 }
 0x126   : > { %v12460_v46 = vadd.f32 %v11400_v45, %v11300_v30  ;;  %v1186_v47 = vpop.f32.mrb[17].mxu1  ;;  %v11884_v45 = vld [vmem:[%s15556_s3] sm:$0xff]  }
 0x127   : > { %v1187_v48 = vadd.f32 %v11294_v25, %v1186_v47  ;;  %v11401_v49 = vpop.f32.mrb[18].mxu1 }
 0x128   : > { %v12462_v50 = vadd.f32 %v11401_v49, %v11303_v33  ;;  %v1189_v51 = vpop.f32.mrb[19].mxu1  ;;  %v11196_v40 = vpack.c.bf16 %v12460_v46, %v12460_v46  ;;  %v11890_v49 = vld [vmem:[%s12458_s17] sm:$0xff]  }
 0x129   : > { %v1190_v52 = vadd.f32 %v11297_v27, %v1189_v51  ;;  %v11190_v58 = vpack.c.bf16 %v1187_v48, %v1187_v48  ;;  %v11885_v51 = vld [vmem:[%s15556_s3 + $0x8] sm:$0xff]  }
 0x12a   : > { %v1478_v43 = vsel %vm931_vm1, %v11196_v40, 0  ;;  %v11199_v46 = vpack.c.bf16 %v12462_v50, %v12462_v50 }
 0x12b   : > { %v1286_v6 = vsel %vm931_vm1, %v11190_v58, 0  ;;  %v11193_v25 = vpack.c.bf16 %v1190_v52, %v1190_v52  ;;  %v11886_v52 = vld [vmem:[%s15556_s3 + $0x10] sm:$0xff]   ;;  %v11889_v58 = vld [vmem:[%s15556_s3 + $0x28] sm:$0xff]  }
 0x12c   : > { %v1574_v48 = vsel %vm931_vm1, %v11199_v46, 0 }
 0x12d   : > { %v11404_v59 = vpop.f32.mrb[20].mxu1  ;;  %v1382_v30 = vsel %vm931_vm1, %v11193_v25, 0 }
 0x12e   : > { %v12465_v62 = vadd.f32 %v11404_v59, %v11312_v41  ;;  %v1202_v63 = vpop.f32.mrb[21].mxu1 }
 0x12f   : > { %v12473_v1 = vadd.f32 %v11306_v35, %v1202_v63  ;;  %v11405_v2 = vpop.f32.mrb[22].mxu1  ;;  %v11892_v63 = vld [vmem:[%s12458_s17 + $0x10] sm:$0xff]  }
 0x130   : > { %v12475_v4 = vadd.f32 %v11405_v2, %v11315_v44  ;;  %v1205_v5 = vpop.f32.mrb[23].mxu1  ;;  %v11208_v59 = vpack.c.bf16 %v12465_v62, %v12465_v62 }
 0x131   : > { %v12479_v8 = vadd.f32 %v11309_v38, %v1205_v5  ;;  %v11202_v50 = vpack.c.bf16 %v12473_v1, %v12473_v1  ;;  %v11893_v1 = vld [vmem:[%s12458_s17 + $0x18] sm:$0xff]   ;;  %v11894_v5 = vld [vmem:[%s12458_s17 + $0x20] sm:$0xff]  }
 0x132   : > { %v11211_v62 = vpack.c.bf16 %v12475_v4, %v12475_v4  ;;  %v11895_v4 = vld [vmem:[%s12458_s17 + $0x28] sm:$0xff]  }
 0x134   : > { %v1958_v2 = vsel %vm931_vm1, %v11211_v62, 0 }
 0x141   : > { %v1048_v53 = vpop.f32.mrb[0].mxu0 }
 0x142   : > { %v11188_v54 = vpack.c.bf16 %v1048_v53, %v1048_v53  ;;  %v1050_v55 = vpop.f32.mrb[1].mxu0  ;;  %v1670_v53 = vsel %vm931_vm1, %v11202_v50, 0 }
 0x143   : > { %v11189_v56 = vpack.c.bf16 %v1050_v55, %v1050_v55  ;;  %v1052_v57 = vpop.f32.mrb[2].mxu0  ;;  %v11205_v55 = vpack.c.bf16 %v12479_v8, %v12479_v8  ;;  %v11898_v8 = vld [vmem:[%s12458_s17 + $0x40] sm:$0xff]  }
 0x144   : > { %v1280_v60 = vsel %vm931_vm1, %v11188_v54, 0  ;;  %v1054_v61 = vpop.f32.mrb[3].mxu0  ;;  %v11191_v15 = vpack.c.bf16 %v1052_v57, %v1052_v57  ;;  %v11887_v54 = vld [vmem:[%s15556_s3 + $0x18] sm:$0xff]  }
 0x145   : > { %10656 = vmatprep.subr.msk.bf16.mxu1 %vm931_vm1, %v11189_v56  ;;  %v11192_v9 = vpack.c.bf16 %v1054_v61, %v1054_v61  ;;  %v11888_v56 = vld [vmem:[%s15556_s3 + $0x20] sm:$0xff]   ;;  %v1766_v57 = vsel %vm931_vm1, %v11205_v55, 0  ;;  %v1862_v61 = vsel %vm931_vm1, %v11208_v59, 0 }
 0x146   : > { %1289 = vmatpush1.bf16.msra.mxu1 %v1280_v60  ;;  %v1376_v18 = vsel %vm931_vm1, %v11191_v15, 0  ;;  %v11891_v60 = vld [vmem:[%s12458_s17 + $0x8] sm:$0xff]  }
 0x147   : > { %11406 = vmatprep.subr.bf16.mxu1 %v12134_v7  ;;  %v11906_v15 = vld [vmem:[%s15558_s5] ss:$12 sps:$4 sm:$0xff]  }
 0x149   : > { %v1058_v10 = vpop.f32.mrb[4].mxu0  ;;  %10657 = vmatmul.mubr.msk.bf16.vlgmr.msra.gmra.mrb[24].mxu1 %vm1275_vm2, %v12471_v0 }
 0x14a   : > { %v1060_v11 = vpop.f32.mrb[5].mxu0  ;;  %11407 = vmatpush3.bf16.msra.mxu1 %v1286_v6  ;;  %11408 = vmatprep.mubr.msk.bf16.mxu1 %vm12135_vm3, %v12134_v7  ;;  %v11194_v37 = vpack.c.bf16 %v1058_v10, %v1058_v10  ;;  %v11896_v6 = vld [vmem:[%s12458_s17 + $0x30] sm:$0xff]  }
 0x14b   : > { %v1062_v12 = vpop.f32.mrb[6].mxu0  ;;  %10662 = vmatprep.subr.msk.bf16.mxu1 %vm931_vm1, %v11192_v9  ;;  %v11195_v31 = vpack.c.bf16 %v1060_v11, %v1060_v11  ;;  %v11899_v9 = vld [vmem:[%s12458_s17 + $0x48] sm:$0xff]   ;;  %v11900_v10 = vld [vmem:[%s12458_s17 + $0x50] sm:$0xff]   ;;  %v11902_v11 = vld [vmem:[%s12458_s17 + $0x60] sm:$0xff]  }
 0x14c   : > { %v11197_v13 = vpack.c.bf16 %v1062_v12, %v1062_v12  ;;  %v1064_v14 = vpop.f32.mrb[7].mxu0  ;;  %v1472_v39 = vsel %vm931_vm1, %v11194_v37, 0  ;;  %v11903_v12 = vld [vmem:[%s12458_s17 + $0x68] sm:$0xff]  }
 0x14d   : > { %v11198_v16 = vpack.c.bf16 %v1064_v14, %v1064_v14  ;;  %v11905_v14 = vld [vmem:[%s12458_s17 + $0x78] sm:$0xff]  }
 0x14e   : > { %v1568_v17 = vsel %vm931_vm1, %v11197_v13, 0  ;;  %v11904_v13 = vld [vmem:[%s12458_s17 + $0x70] sm:$0xff]  }
 0x14f   : > { %10674 = vmatprep.subr.msk.bf16.mxu0 %vm931_vm1, %v11198_v16  ;;  %v11908_v16 = vld [vmem:[%s15558_s5 + $0x4] ss:$12 sps:$4 sm:$0xff]  }
 0x150   : > { %1577 = vmatpush1.bf16.msra.mxu0 %v1568_v17  ;;  %v11909_v17 = vld [vmem:[%s15558_s5 + $0x8] ss:$12 sps:$4 sm:$0xff]  }
 0x151   : > { %v1068_v19 = vpop.f32.mrb[8].mxu0  ;;  %11409 = vmatmul.mubr.msk.bf16.vlgmr.msra.gmra.mrb[28].mxu1 %vm1275_vm2, %v12471_v0 }
 0x152   : > { %v11200_v20 = vpack.c.bf16 %v1068_v19, %v1068_v19  ;;  %1385 = vmatpush1.bf16.msra.mxu1 %v1376_v18  ;;  %v1070_v21 = vpop.f32.mrb[9].mxu0  ;;  %1416 = vmatprep.mubr.bf16.mxu1 %v12491_v22  ;;  %v11910_v18 = vld [vmem:[%s15558_s5 + $0x18] ss:$12 sps:$4 sm:$0xff]   ;;  %v11912_v19 = vld [vmem:[%s15558_s5 + $0x1c] ss:$12 sps:$4 sm:$0xff]  }
 0x153   : > { %v11201_v23 = vpack.c.bf16 %v1070_v21, %v1070_v21  ;;  %v1072_v24 = vpop.f32.mrb[10].mxu0  ;;  %10675 = vmatmul.mubr.msk.bf16.vlgmr.msra.gmra.mrb[16].mxu0 %vm1275_vm2, %v12471_v0  ;;  %11412 = vmatprep.subr.bf16.mxu1 %v12134_v7  ;;  %v11916_v21 = vld [vmem:[%s15558_s5 + $0x34] ss:$12 sps:$4 sm:$0xff]  }
 0x154   : > { %v1664_v26 = vsel %vm931_vm1, %v11200_v20, 0  ;;  %v1074_v27 = vpop.f32.mrb[11].mxu0  ;;  %1704 = vmatprep.mubr.bf16.mxu0 %v12491_v22  ;;  %v11203_v29 = vpack.c.bf16 %v1072_v24, %v1072_v24  ;;  %v11913_v20 = vld [vmem:[%s15558_s5 + $0x20] ss:$12 sps:$4 sm:$0xff]   ;;  %v11917_v24 = vld [vmem:[%s15558_s5 + $0x38] ss:$12 sps:$4 sm:$0xff]  }
 0x155   : > { %v11204_v28 = vpack.c.bf16 %v1074_v27, %v1074_v27  ;;  %10680 = vmatprep.subr.msk.bf16.mxu0 %vm931_vm1, %v11201_v23  ;;  %v11914_v23 = vld [vmem:[%s15558_s5 + $0x30] ss:$12 sps:$4 sm:$0xff]  }
 0x156   : > { %1673 = vmatpush1.bf16.msra.mxu0 %v1664_v26  ;;  %v1760_v34 = vsel %vm931_vm1, %v11203_v29, 0 }
 0x157   : > { %10686 = vmatprep.subr.msk.bf16.mxu0 %vm931_vm1, %v11204_v28 }
 0x159   : > { %v1078_v32 = vpop.f32.mrb[12].mxu0  ;;  %10663 = vmatmul.mubr.msk.bf16.vlgmr.msra.gmra.mrb[32].mxu1 %vm1275_vm2, %v12471_v0 }
 0x15a   : > { %11413 = vmatpush3.bf16.msra.mxu1 %v1382_v30  ;;  %v1080_v33 = vpop.f32.mrb[13].mxu0  ;;  %11414 = vmatprep.mubr.msk.bf16.mxu1 %vm12135_vm3, %v12134_v7  ;;  %v11206_v38 = vpack.c.bf16 %v1078_v32, %v1078_v32 }
 0x15b   : > { %v11207_v3 = vpack.c.bf16 %v1080_v33, %v1080_v33  ;;  %10668 = vmatprep.subr.msk.bf16.mxu1 %vm931_vm1, %v11195_v31  ;;  %v1082_v35 = vpop.f32.mrb[14].mxu0  ;;  %10681 = vmatmul.mubr.msk.bf16.vlgmr.msra.gmra.mrb[20].mxu0 %vm1275_vm2, %v12471_v0 }
 0x15c   : > { %1769 = vmatpush1.bf16.msra.mxu0 %v1760_v34  ;;  %v1084_v36 = vpop.f32.mrb[15].mxu0  ;;  %1800 = vmatprep.mubr.bf16.mxu0 %v12491_v22  ;;  %v1856_v41 = vsel %vm931_vm1, %v11206_v38, 0  ;;  %v11209_v44 = vpack.c.bf16 %v1082_v35, %v1082_v35 }
 0x15d   : > { %10692 = vmatprep.subr.msk.bf16.mxu0 %vm931_vm1, %v11207_v3  ;;  %v11210_v42 = vpack.c.bf16 %v1084_v36, %v1084_v36 }
 0x15e   : > { %v1952_v47 = vsel %vm931_vm1, %v11209_v44, 0 }
 0x161   : > { %11415 = vmatmul.mubr.msk.bf16.vlgmr.msra.gmra.mrb[36].mxu1 %vm1275_vm2, %v12471_v0 }
 0x162   : > { %1481 = vmatpush1.bf16.msra.mxu1 %v1472_v39  ;;  %1512 = vmatprep.mubr.bf16.mxu1 %v12491_v22 }
 0x163   : > { %10687 = vmatmul.mubr.msk.bf16.vlgmr.msra.gmra.mrb[24].mxu0 %vm1275_vm2, %v12471_v0  ;;  %11418 = vmatprep.subr.bf16.mxu1 %v12134_v7 }
 0x164   : > { %1865 = vmatpush1.bf16.msra.mxu0 %v1856_v41  ;;  %1896 = vmatprep.mubr.bf16.mxu0 %v12491_v22 }
 0x165   : > { %10698 = vmatprep.subr.msk.bf16.mxu0 %vm931_vm1, %v11210_v42 }
 0x169   : > { %10669 = vmatmul.mubr.msk.bf16.vlgmr.msra.gmra.mrb[40].mxu1 %vm1275_vm2, %v12471_v0 }
 0x16a   : > { %11419 = vmatpush3.bf16.msra.mxu1 %v1478_v43  ;;  %11420 = vmatprep.mubr.msk.bf16.mxu1 %vm12135_vm3, %v12134_v7 }
 0x16b   : > { %10693 = vmatmul.mubr.msk.bf16.vlgmr.msra.gmra.mrb[28].mxu0 %vm1275_vm2, %v12471_v0  ;;  %11424 = vmatprep.subr.bf16.mxu1 %v12134_v7 }
 0x16c   : > { %1961 = vmatpush1.bf16.msra.mxu0 %v1952_v47  ;;  %1992 = vmatprep.mubr.bf16.mxu0 %v12491_v22 }
 0x16d   : > { %11454 = vmatprep.subr.bf16.mxu0 %v11884_v45 }
 0x171   : > { %11421 = vmatmul.mubr.msk.bf16.vlgmr.msra.gmra.mrb[44].mxu1 %vm1275_vm2, %v12471_v0 }
 0x172   : > { %11425 = vmatpush3.bf16.msra.mxu1 %v1574_v48  ;;  %11426 = vmatprep.mubr.msk.bf16.mxu1 %vm12135_vm3, %v12134_v7 }
 0x173   : > { %10699 = vmatmul.mubr.msk.bf16.vlgmr.msra.gmra.mrb[32].mxu0 %vm1275_vm2, %v12471_v0  ;;  %11430 = vmatprep.subr.bf16.mxu1 %v12134_v7 }
 0x174   : > { %11455 = vmatpush3.bf16.msra.mxu0 %v11884_v45  ;;  %11466 = vmatprep.mubr.msk.bf16.mxu0 %vm2204_vm4, %v11890_v49 }
 0x175   : > { %11456 = vmatprep.subr.bf16.mxu0 %v11885_v51 }
 0x178   : > { %11457 = vmatpush3.bf16.msra.mxu0 %v11885_v51 }
 0x179   : > { %11458 = vmatprep.subr.bf16.mxu0 %v11886_v52  ;;  %11427 = vmatmul.mubr.msk.bf16.vlgmr.msra.gmra.mrb[48].mxu1 %vm1275_vm2, %v12471_v0 }
 0x17a   : > { %11431 = vmatpush3.bf16.msra.mxu1 %v1670_v53  ;;  %11432 = vmatprep.mubr.msk.bf16.mxu1 %vm12135_vm3, %v12134_v7 }
 0x17b   : > { %11436 = vmatprep.subr.bf16.mxu1 %v12134_v7 }
 0x17c   : > { %11459 = vmatpush3.bf16.msra.mxu0 %v11886_v52 }
 0x17d   : > { %11460 = vmatprep.subr.bf16.mxu0 %v11887_v54 }
 0x180   : > { %11461 = vmatpush3.bf16.msra.mxu0 %v11887_v54 }
 0x181   : > { %11462 = vmatprep.subr.bf16.mxu0 %v11888_v56  ;;  %11433 = vmatmul.mubr.msk.bf16.vlgmr.msra.gmra.mrb[52].mxu1 %vm1275_vm2, %v12471_v0 }
 0x182   : > { %11437 = vmatpush3.bf16.msra.mxu1 %v1766_v57  ;;  %11438 = vmatprep.mubr.msk.bf16.mxu1 %vm12135_vm3, %v12134_v7 }
 0x183   : > { %11442 = vmatprep.subr.bf16.mxu1 %v12134_v7 }
 0x184   : > { %11463 = vmatpush3.bf16.msra.mxu0 %v11888_v56 }
 0x185   : > { %11464 = vmatprep.subr.bf16.mxu0 %v11889_v58 }
 0x188   : > { %11465 = vmatpush3.bf16.msra.mxu0 %v11889_v58 }
 0x189   : > { %11439 = vmatmul.mubr.msk.bf16.vlgmr.msra.gmra.mrb[56].mxu1 %vm1275_vm2, %v12471_v0  ;;  %11498 = vmatprep.subr.bf16.mxu0 %v11909_v17 }
 0x18a   : > { %11443 = vmatpush3.bf16.msra.mxu1 %v1862_v61  ;;  %11444 = vmatprep.mubr.msk.bf16.mxu1 %vm12135_vm3, %v12134_v7 }
 0x18b   : > { %11467 = vmatmul.mubr.msk.bf16.vlgmr.msra.gmra.mrb[36].mxu0 %vm2204_vm4, %v11891_v60  ;;  %11448 = vmatprep.subr.bf16.mxu1 %v12134_v7 }
 0x18c   : > { %11470 = vmatprep.mubr.msk.bf16.mxu0 %vm2204_vm4, %v11892_v63  ;;  %11499 = vmatpush3.bf16.msra.mxu0 %v11909_v17 }
 0x18d   : > { %11500 = vmatprep.subr.bf16.mxu0 %v11913_v20 }
 0x190   : > { %11501 = vmatpush3.bf16.msra.mxu0 %v11913_v20 }
 0x191   : > { %11445 = vmatmul.mubr.msk.bf16.vlgmr.msra.gmra.mrb[60].mxu1 %vm1275_vm2, %v12471_v0  ;;  %11502 = vmatprep.subr.bf16.mxu0 %v11917_v24 }
 0x192   : > { %11449 = vmatpush3.bf16.msra.mxu1 %v1958_v2  ;;  %11450 = vmatprep.mubr.msk.bf16.mxu1 %vm12135_vm3, %v12134_v7  ;;  %v11897_v7 = vld [vmem:[%s12458_s17 + $0x38] sm:$0xff]   ;;  %vm10331_vm3 = vcmask 851712  }
 0x193   : > { %11471 = vmatmul.mubr.msk.bf16.gmra.mrb[40].mxu0 %vm2204_vm4, %v11893_v1  ;;  %2539 = vmatprep.subr.bf16.mxu1 %v11908_v16 }
 0x194   : > { %11474 = vmatprep.mubr.msk.bf16.mxu0 %vm2204_vm4, %v11894_v5  ;;  %11503 = vmatpush3.bf16.msra.mxu0 %v11917_v24 }
 0x199   : > { %11451 = vmatmul.mubr.msk.bf16.vlgmr.msra.gmra.mrb[64].mxu1 %vm1275_vm2, %v12471_v0  ;;  %v11901_v0 = vld [vmem:[%s12458_s17 + $0x58] sm:$0xff]   ;;  %vm10324_vm2 = vcmask 786112  }
 0x19a   : > { %2571 = vmatprep.mubr.bf16.mxu1 %v12491_v22  ;;  %2540 = vmatpush1.bf16.msra.mxu1 %v11906_v15 }
 0x19b   : > { %11475 = vmatmul.mubr.msk.bf16.gmra.mrb[44].mxu0 %vm2204_vm4, %v11895_v4  ;;  %2541 = vmatprep.subr.bf16.mxu1 %v11912_v19 }
 0x19c   : > { %11478 = vmatprep.mubr.msk.bf16.mxu0 %vm2204_vm4, %v11896_v6 }
 0x19e   : > { %2542 = vmatpush1.bf16.msra.mxu1 %v11910_v18 }
 0x19f   : > { %2543 = vmatprep.subr.bf16.mxu1 %v11916_v21 }
 0x1a2   : > { %2544 = vmatpush1.bf16.msra.mxu1 %v11914_v23 }
 0x1a3   : > { %11479 = vmatmul.mubr.msk.bf16.gmra.mrb[48].mxu0 %vm2204_vm4, %v11897_v7 }
 0x1a4   : > { %11482 = vmatprep.mubr.msk.bf16.mxu0 %vm2204_vm4, %v11898_v8 }
 0x1ab   : > { %11483 = vmatmul.mubr.msk.bf16.gmra.mrb[52].mxu0 %vm2204_vm4, %v11899_v9 }
 0x1ac   : > { %11486 = vmatprep.mubr.msk.bf16.mxu0 %vm2204_vm4, %v11900_v10 }
 0x1b3   : > { %11487 = vmatmul.mubr.msk.bf16.gmra.mrb[56].mxu0 %vm2204_vm4, %v11901_v0 }
 0x1b4   : > { %11490 = vmatprep.mubr.msk.bf16.mxu0 %vm2204_vm4, %v11902_v11 }
 0x1bb   : > { %11491 = vmatmul.mubr.msk.bf16.gmra.mrb[60].mxu0 %vm2204_vm4, %v11903_v12 }
 0x1bc   : > { %11494 = vmatprep.mubr.msk.bf16.mxu0 %vm2204_vm4, %v11904_v13 }
 0x1c3   : > { %11495 = vmatmul.mubr.msk.bf16.gmra.mrb[64].mxu0 %vm2204_vm4, %v11905_v14  ;;  %vm10338_vm4 = vcmask 917312  }
 0x21c   : > { %v12655_v25 = vpop.f32.mrb[24].mxu1 }
 0x21d   : > { %v12657_v26 = vpop.f32.mrb[25].mxu1 }
 0x21e   : > { %v12659_v27 = vpop.f32.mrb[26].mxu1 }
 0x21f   : > { %v12661_v28 = vpop.f32.mrb[27].mxu1 }
 0x224   : > { %v12663_v29 = vpop.f32.mrb[28].mxu1 }
 0x225   : > { %v11410_v30 = vpop.f32.mrb[29].mxu1 }
 0x226   : > { %v12665_v31 = vpop.f32.mrb[30].mxu1  ;;  %v1610_v32 = vpop.f32.mrb[16].mxu0 }
 0x227   : > { %v11411_v33 = vpop.f32.mrb[31].mxu1  ;;  %v1612_v34 = vpop.f32.mrb[17].mxu0  ;;  %v12667_v35 = vmul.f32 0.33333334, %v1610_v32  ;;  %v12673_v39 = vmul.f32 0.8, %v1610_v32 }
 0x228   : > { %v1614_v3 = vpop.f32.mrb[18].mxu0  ;;  %v12669_v36 = vmul.f32 0.33333334, %v1612_v34  ;;  %v12677_v41 = vmul.f32 0.8, %v1612_v34 }
 0x229   : > { %v1616_v37 = vpop.f32.mrb[19].mxu0  ;;  %v12671_v38 = vmul.f32 0.33333334, %v1614_v3  ;;  %v12679_v42 = vmul.f32 0.8, %v1614_v3 }
 0x22a   : > { %v12675_v40 = vmul.f32 0.33333334, %v1616_v37  ;;  %v12681_v43 = vmul.f32 0.8, %v1616_v37  ;;  %v3253_v44 = vmul.f32 0.73333335, %v1610_v32 }
 0x22b   : > { %v3254_v45 = vmul.f32 0.73333335, %v1612_v34  ;;  %v3256_v47 = vmul.f32 0.73333335, %v1614_v3  ;;  %v3257_v48 = vmul.f32 0.73333335, %v1616_v37 }
 0x22c   : > { %v12683_v46 = vpop.f32.mrb[32].mxu1  ;;  %v3306_v51 = vmul.f32 0.26666665, %v1610_v32  ;;  %v3307_v50 = vmul.f32 0.26666665, %v1612_v34 }
 0x22d   : > { %v12685_v49 = vpop.f32.mrb[33].mxu1  ;;  %v3309_v54 = vmul.f32 0.26666665, %v1614_v3  ;;  %v3310_v55 = vmul.f32 0.26666665, %v1616_v37 }
 0x22e   : > { %v12687_v52 = vpop.f32.mrb[34].mxu1  ;;  %v1706_v53 = vpop.f32.mrb[20].mxu0 }
 0x22f   : > { %v12689_v56 = vpop.f32.mrb[35].mxu1  ;;  %v1708_v57 = vpop.f32.mrb[21].mxu0  ;;  %v3259_v58 = vmul.f32 0.26666668, %v1706_v53  ;;  %v3312_v59 = vmul.f32 0.73333335, %v1706_v53 }
 0x230   : > { %v1710_v60 = vpop.f32.mrb[22].mxu0  ;;  %v3260_v61 = vmul.f32 0.26666668, %v1708_v57  ;;  %v3313_v63 = vmul.f32 0.73333335, %v1708_v57 }
 0x231   : > { %v1712_v62 = vpop.f32.mrb[23].mxu0  ;;  %v12691_v1 = vadd.f32 %v3259_v58, %v3253_v44  ;;  %v3262_v2 = vmul.f32 0.26666668, %v1710_v60  ;;  %v12693_v5 = vadd.f32 %v3312_v59, %v3306_v51  ;;  %v3315_v4 = vmul.f32 0.73333335, %v1710_v60 }
 0x232   : > { %v12695_v6 = vadd.f32 %v3260_v61, %v3254_v45  ;;  %v3263_v7 = vmul.f32 0.26666668, %v1712_v62  ;;  %v12697_v8 = vadd.f32 %v3313_v63, %v3307_v50  ;;  %v3316_v9 = vmul.f32 0.73333335, %v1712_v62 }
 0x233   : > { %15584 = vst [vmem:[#allocation4_spill] sm:$0xff] %v12691_v1  ;;  %15585 = vst [vmem:[#allocation5_spill] sm:$0xff] %v12693_v5  ;;  %v12699_v10 = vadd.f32 %v3262_v2, %v3256_v47  ;;  %v12701_v0 = vadd.f32 %v3315_v4, %v3309_v54  ;;  %v3359_v11 = vmul.f32 0.8, %v1706_v53  ;;  %v3360_v12 = vmul.f32 0.8, %v1708_v57 }
 0x234   : > { %15586 = vst [vmem:[#allocation6_spill] sm:$0xff] %v12695_v6  ;;  %15587 = vst [vmem:[#allocation7_spill] sm:$0xff] %v12697_v8  ;;  %v12703_v13 = vpop.f32.mrb[36].mxu1  ;;  %v12705_v14 = vadd.f32 %v3263_v7, %v3257_v48  ;;  %v12707_v15 = vadd.f32 %v3316_v9, %v3310_v55  ;;  %v3362_v16 = vmul.f32 0.8, %v1710_v60 }
 0x235   : > { %15588 = vst [vmem:[#allocation8_spill] sm:$0xff] %v12699_v10  ;;  %15589 = vst [vmem:[#allocation9_spill] sm:$0xff] %v12701_v0  ;;  %v3363_v17 = vmul.f32 0.8, %v1712_v62  ;;  %v11416_v18 = vpop.f32.mrb[37].mxu1 }
 0x236   : > { %15590 = vst [vmem:[#allocation10_spill] sm:$0xff] %v12705_v14  ;;  %15591 = vst [vmem:[#allocation11_spill] sm:$0xff] %v12707_v15  ;;  %v3412_v19 = vmul.f32 0.3333333, %v1706_v53  ;;  %v3413_v20 = vmul.f32 0.3333333, %v1708_v57 }
 0x237   : > { %v12709_v21 = vpop.f32.mrb[38].mxu1  ;;  %v1802_v23 = vpop.f32.mrb[24].mxu0  ;;  %v3415_v24 = vmul.f32 0.3333333, %v1710_v60  ;;  %v3416_v30 = vmul.f32 0.3333333, %v1712_v62 }
 0x238   : > { %v11417_v32 = vpop.f32.mrb[39].mxu1  ;;  %v1804_v33 = vpop.f32.mrb[25].mxu0  ;;  %v3365_v34 = vmul.f32 0.2, %v1802_v23  ;;  %v3418_v3 = vmul.f32 0.6666667, %v1802_v23 }
 0x239   : > { %v1806_v37 = vpop.f32.mrb[26].mxu0  ;;  %v3366_v44 = vmul.f32 0.2, %v1804_v33  ;;  %v3419_v45 = vmul.f32 0.6666667, %v1804_v33 }
 0x23a   : > { %v1808_v47 = vpop.f32.mrb[27].mxu0  ;;  %v12711_v48 = vadd.f32 %v3365_v34, %v3359_v11  ;;  %v3368_v51 = vmul.f32 0.2, %v1806_v37  ;;  %v12713_v50 = vadd.f32 %v3418_v3, %v3412_v19  ;;  %v3421_v53 = vmul.f32 0.6666667, %v1806_v37 }
 0x23b   : > { %v12715_v54 = vadd.f32 %v3366_v44, %v3360_v12  ;;  %v3369_v55 = vmul.f32 0.2, %v1808_v47  ;;  %v12717_v57 = vadd.f32 %v3419_v45, %v3413_v20  ;;  %v3422_v58 = vmul.f32 0.6666667, %v1808_v47  ;;  %v11935_v8 = vld [vmem:[%s15559_s6 + $0x54] ss:$8 sps:$4 sm:$0xff]  }
 0x23c   : > { %15592 = vst [vmem:[#allocation12_spill] sm:$0xff] %v12711_v48  ;;  %15593 = vst [vmem:[#allocation13_spill] sm:$0xff] %v12713_v50  ;;  %v12719_v59 = vadd.f32 %v3368_v51, %v3362_v16  ;;  %v12721_v60 = vadd.f32 %v3421_v53, %v3415_v24  ;;  %v3465_v61 = vmul.f32 0.8666667, %v1802_v23  ;;  %v3466_v63 = vmul.f32 0.8666667, %v1804_v33 }
 0x23d   : > { %15594 = vst [vmem:[#allocation14_spill] sm:$0xff] %v12715_v54  ;;  %15595 = vst [vmem:[#allocation15_spill] sm:$0xff] %v12717_v57  ;;  %v12723_v62 = vpop.f32.mrb[40].mxu1  ;;  %v12725_v2 = vadd.f32 %v3369_v55, %v3363_v17  ;;  %v12727_v4 = vadd.f32 %v3422_v58, %v3416_v30  ;;  %v3468_v7 = vmul.f32 0.8666667, %v1806_v37 }
 0x23e   : > { %15596 = vst [vmem:[#allocation16_spill] sm:$0xff] %v12719_v59  ;;  %15597 = vst [vmem:[#allocation17_spill] sm:$0xff] %v12721_v60  ;;  %v3469_v9 = vmul.f32 0.8666667, %v1808_v47  ;;  %v12729_v11 = vpop.f32.mrb[41].mxu1  ;;  %v1898_v19 = vpop.f32.mrb[28].mxu0 }
 0x23f   : > { %15598 = vst [vmem:[#allocation18_spill] sm:$0xff] %v12725_v2  ;;  %15599 = vst [vmem:[#allocation19_spill] sm:$0xff] %v12727_v4  ;;  %v3147_v12 = vmul.f32 0.6666666, %v12723_v62  ;;  %v3200_v18 = vmul.f32 0.19999999, %v12723_v62 }
 0x240   : > { %v12733_v16 = vpop.f32.mrb[42].mxu1  ;;  %v3148_v20 = vmul.f32 0.6666666, %v12729_v11  ;;  %v3201_v24 = vmul.f32 0.19999999, %v12729_v11  ;;  %v1900_v17 = vpop.f32.mrb[29].mxu0 }
 0x241   : > { %v12737_v32 = vpop.f32.mrb[43].mxu1  ;;  %v12740_v30 = vadd.f32 %v12667_v35, %v3147_v12  ;;  %v3150_v34 = vmul.f32 0.6666666, %v12733_v16  ;;  %v12744_v3 = vadd.f32 %v12673_v39, %v3200_v18  ;;  %v3203_v44 = vmul.f32 0.19999999, %v12733_v16  ;;  %v1902_v45 = vpop.f32.mrb[30].mxu0 }
 0x242   : > { %v12748_v51 = vadd.f32 %v12669_v36, %v3148_v20  ;;  %v3151_v53 = vmul.f32 0.6666666, %v12737_v32  ;;  %v12752_v55 = vadd.f32 %v12677_v41, %v3201_v24  ;;  %v3204_v58 = vmul.f32 0.19999999, %v12737_v32  ;;  %v1904_v35 = vpop.f32.mrb[31].mxu0 }
 0x243   : > { %15600 = vst [vmem:[#allocation20_spill] sm:$0xff] %v12740_v30  ;;  %15601 = vst [vmem:[#allocation21_spill] sm:$0xff] %v12744_v3  ;;  %v12756_v12 = vadd.f32 %v12671_v38, %v3150_v34  ;;  %v12759_v39 = vadd.f32 %v12679_v42, %v3203_v44  ;;  %v3471_v18 = vmul.f32 0.13333334, %v1898_v19  ;;  %v3472_v4 = vmul.f32 0.13333334, %v1900_v17 }
 0x244   : > { %15602 = vst [vmem:[#allocation22_spill] sm:$0xff] %v12748_v51  ;;  %15603 = vst [vmem:[#allocation23_spill] sm:$0xff] %v12752_v55  ;;  %v12762_v60 = vadd.f32 %v12675_v40, %v3151_v53  ;;  %v12765_v36 = vadd.f32 %v12681_v43, %v3204_v58  ;;  %v3474_v20 = vmul.f32 0.13333334, %v1902_v45  ;;  %v3475_v41 = vmul.f32 0.13333334, %v1904_v35 }
 0x245   : > { %15604 = vst [vmem:[#allocation24_spill] sm:$0xff] %v12756_v12  ;;  %15605 = vst [vmem:[#allocation25_spill] sm:$0xff] %v12759_v39  ;;  %v12767_v24 = vadd.f32 %v3471_v18, %v3465_v61  ;;  %v12769_v57 = vadd.f32 %v3472_v4, %v3466_v63  ;;  %v3518_v50 = vmul.f32 0.39999998, %v1802_v23  ;;  %v3524_v38 = vmul.f32 0.6, %v1898_v19 }
 0x246   : > { %15606 = vst [vmem:[#allocation26_spill] sm:$0xff] %v12762_v60  ;;  %15607 = vst [vmem:[#allocation27_spill] sm:$0xff] %v12765_v36  ;;  %v12771_v34 = vadd.f32 %v3474_v20, %v3468_v7  ;;  %v12773_v42 = vadd.f32 %v3475_v41, %v3469_v9  ;;  %v3519_v44 = vmul.f32 0.39999998, %v1804_v33  ;;  %v3525_v2 = vmul.f32 0.6, %v1900_v17 }
 0x247   : > { %15608 = vst [vmem:[#allocation28_spill] sm:$0xff] %v12767_v24  ;;  %15609 = vst [vmem:[#allocation29_spill] sm:$0xff] %v12769_v57  ;;  %v12775_v59 = vadd.f32 %v3524_v38, %v3518_v50  ;;  %v3521_v40 = vmul.f32 0.39999998, %v1806_v37  ;;  %v3527_v53 = vmul.f32 0.6, %v1902_v45 }
 0x248   : > { %15610 = vst [vmem:[#allocation30_spill] sm:$0xff] %v12771_v34  ;;  %15611 = vst [vmem:[#allocation31_spill] sm:$0xff] %v12773_v42  ;;  %v3522_v43 = vmul.f32 0.39999998, %v1808_v47  ;;  %v12777_v58 = vpop.f32.mrb[32].mxu0  ;;  %v12779_v54 = vadd.f32 %v3525_v2, %v3519_v44 }
 0x249   : > { %15612 = vst [vmem:[#allocation32_spill] sm:$0xff] %v12775_v59  ;;  %15613 = vst [vmem:[#allocation33_spill] sm:$0xff] %v12777_v58  ;;  %v3528_v61 = vmul.f32 0.6, %v1904_v35  ;;  %v3571_v63 = vmul.f32 0.93333334, %v1898_v19  ;;  %v12785_v9 = vadd.f32 %v3527_v53, %v3521_v40 }
 0x24a   : > { %15614 = vst [vmem:[#allocation34_spill] sm:$0xff] %v12779_v54  ;;  %v3577_v23 = vmul.f32 0.06666667, %v12777_v58  ;;  %v3630_v4 = vmul.f32 0.53333336, %v12777_v58  ;;  %v12783_v7 = vpop.f32.mrb[33].mxu0 }
 0x24b   : > { %15615 = vst [vmem:[#allocation35_spill] sm:$0xff] %v12783_v7  ;;  %15616 = vst [vmem:[#allocation36_spill] sm:$0xff] %v12785_v9  ;;  %v3578_v33 = vmul.f32 0.06666667, %v12783_v7  ;;  %v3631_v37 = vmul.f32 0.53333336, %v12783_v7  ;;  %v12791_v47 = vadd.f32 %v3528_v61, %v3522_v43 }
 0x24c   : > { %v12789_v50 = vpop.f32.mrb[34].mxu0  ;;  %v12797_v41 = vadd.f32 %v3577_v23, %v3571_v63  ;;  %v3572_v40 = vmul.f32 0.93333334, %v1900_v17  ;;  %v3574_v53 = vmul.f32 0.93333334, %v1902_v45 }
 0x24d   : > { %15617 = vst [vmem:[#allocation37_spill] sm:$0xff] %v12789_v50  ;;  %15618 = vst [vmem:[#allocation38_spill] sm:$0xff] %v12791_v47  ;;  %v3580_v2 = vmul.f32 0.06666667, %v12789_v50  ;;  %v3633_v18 = vmul.f32 0.53333336, %v12789_v50 }
 0x24e   : > { %v12795_v20 = vpop.f32.mrb[35].mxu0  ;;  %15620 = vst [vmem:[#allocation40_spill] sm:$0xff] %v12797_v41  ;;  %v3575_v58 = vmul.f32 0.93333334, %v1904_v35  ;;  %v3624_v7 = vmul.f32 0.46666664, %v1898_v19  ;;  %v12801_v9 = vadd.f32 %v3578_v33, %v3572_v40 }
 0x24f   : > { %15619 = vst [vmem:[#allocation39_spill] sm:$0xff] %v12795_v20  ;;  %v3581_v38 = vmul.f32 0.06666667, %v12795_v20  ;;  %v3634_v44 = vmul.f32 0.53333336, %v12795_v20  ;;  %v12803_v54 = vadd.f32 %v3580_v2, %v3574_v53 }
 0x250   : > { %15621 = vst [vmem:[#allocation41_spill] sm:$0xff] %v12801_v9  ;;  %v3625_v43 = vmul.f32 0.46666664, %v1900_v17  ;;  %v3627_v61 = vmul.f32 0.46666664, %v1902_v45  ;;  %v12807_v59 = vadd.f32 %v3630_v4, %v3624_v7  ;;  %v12818_v17 = vpop.f32.mrb[44].mxu1 }
 0x251   : > { %v3628_v47 = vmul.f32 0.46666664, %v1904_v35  ;;  %15622 = vst [vmem:[#allocation42_spill] sm:$0xff] %v12803_v54  ;;  %v12805_v50 = vadd.f32 %v3581_v38, %v3575_v58  ;;  %v11920_v19 = vld [vmem:[%s15559_s6 + $0x4] ss:$8 sps:$4 sm:$0xff]   ;;  %v11422_v35 = vpop.f32.mrb[45].mxu1 }
 0x252   : > { %15624 = vst [vmem:[#allocation44_spill] sm:$0xff] %v12807_v59  ;;  %v12809_v63 = vadd.f32 %v3631_v37, %v3625_v43  ;;  %v12811_v23 = vadd.f32 %v3633_v18, %v3627_v61  ;;  %4084 = vmatprep.subr.bf16.mxu1 %v11920_v19  ;;  %v12820_v2 = vpop.f32.mrb[46].mxu1  ;;  %v11938_v37 = vld [vmem:[%s15559_s6 + $0x16c] ss:$8 sps:$4 sm:$0xff]   ;;  %v11918_v38 = vld [vmem:[%s15559_s6] ss:$8 sps:$4 sm:$0xff]  }
 0x253   : > { %15623 = vst [vmem:[#allocation43_spill] sm:$0xff] %v12805_v50  ;;  %v12813_v20 = vadd.f32 %v3634_v44, %v3628_v47  ;;  %v11423_v47 = vpop.f32.mrb[47].mxu1  ;;  %v11936_v44 = vld [vmem:[%s15559_s6 + $0x168] ss:$8 sps:$4 sm:$0xff]   ;;  %v11923_v40 = vld [vmem:[%s15559_s6 + $0x14] ss:$8 sps:$4 sm:$0xff]   ;;  %5244 = vmatprep.subr.bf16.mxu0 %v11938_v37 }
 0x254   : > { %15625 = vst [vmem:[#allocation45_spill] sm:$0xff] %v12809_v63  ;;  %15626 = vst [vmem:[#allocation46_spill] sm:$0xff] %v12811_v23  ;;  %v11944_v53 = vld [vmem:[%s15559_s6 + $0x17c] ss:$8 sps:$4 sm:$0xff]   ;;  %v12840_v43 = vmul.f32 0.5333333, %v12655_v25 }
 0x255   : > { %15627 = vst [vmem:[#allocation47_spill] sm:$0xff] %v12813_v20  ;;  %v12843_v61 = vmul.f32 0.06666666, %v12655_v25  ;;  %v12853_v35 = vpop.f32.mrb[48].mxu1  ;;  %v11947_v37 = vld [vmem:[%s15559_s6 + $0x18c] ss:$8 sps:$4 sm:$0xff]  }
 0x256   : > { %v11428_v47 = vpop.f32.mrb[49].mxu1  ;;  %v12873_v23 = vmul.f32 0.06666666, %v12659_v27  ;;  %v11924_v50 = vld [vmem:[%s15559_s6 + $0x20] ss:$8 sps:$4 sm:$0xff]  }
 0x257   : > { %v12867_v20 = vpop.f32.mrb[50].mxu1  ;;  %v11945_v54 = vld [vmem:[%s15559_s6 + $0x188] ss:$8 sps:$4 sm:$0xff]   ;;  %v11951_v41 = vld [vmem:[%s15559_s6 + $0x198] ss:$8 sps:$4 sm:$0xff]  }
 0x258   : > { %v11429_v59 = vpop.f32.mrb[51].mxu1  ;;  %v11932_v57 = vld [vmem:[%s15559_s6 + $0x44] ss:$8 sps:$4 sm:$0xff]   ;;  %v12924_v24 = vmul.f32 0.06666666, %v12665_v31 }
 0x259   : > { %v12883_v9 = vpop.f32.mrb[52].mxu1  ;;  %v11953_v59 = vld [vmem:[%s15559_s6 + $0x19c] ss:$8 sps:$4 sm:$0xff]   ;;  %v11954_v14 = vld [vmem:[%s15559_s6 + $0x1a8] ss:$8 sps:$4 sm:$0xff]  }
 0x25a   : > { %v2943_v6 = vmul.f32 0.46666667, %v12703_v13  ;;  %v3043_v1 = vmul.f32 0.6, %v12703_v13  ;;  %v3049_v36 = vmul.f32 0.4, %v12818_v17 }
 0x25b   : > { %v3046_v12 = vmul.f32 0.6, %v12709_v21  ;;  %v11963_v51 = vld [vmem:[%s15559_s6 + $0x1c8] ss:$8 sps:$4 sm:$0xff]   ;;  %v2994_v30 = vmul.f32 0.93333334, %v12683_v46 }
 0x25e   : > { %v11468_v33 = vpop.f32.mrb[36].mxu0 }
 0x25f   : > { %v2287_v45 = vpop.f32.mrb[37].mxu0 }
 0x260   : > { %v11469_v58 = vpop.f32.mrb[38].mxu0 }
 0x261   : > { %v2415_v4 = vpack.c.bf16 %v11469_v58, %v11468_v33  ;;  %v2290_v7 = vpop.f32.mrb[39].mxu0  ;;  %v11921_v33 = vld [vmem:[%s15559_s6 + $0x10] ss:$8 sps:$4 sm:$0xff]  }
 0x262   : > { %v2414_v18 = vpack.c.bf16 %v2290_v7, %v2287_v45  ;;  %v11942_v45 = vld [vmem:[%s15559_s6 + $0x178] ss:$8 sps:$4 sm:$0xff]   ;;  %v11926_v7 = vld [vmem:[%s15559_s6 + $0x24] ss:$8 sps:$4 sm:$0xff]  }
 0x264   : > { %10748 = vmatmul.mubr.msk.bf16.vlgmr.msra.gmra.mrb[68].mxu1 %vm2490_vm5, %v2414_v18  ;;  %11504 = vmatprep.mubr.msk.bf16.mxu0 %vm2490_vm5, %v2414_v18  ;;  %v12862_v18 = vmul.f32 0.5333333, %v12657_v26 }
 0x265   : > { %11505 = vmatmul.mubr.msk.bf16.vlgmr.msra.gmra.mrb[68].mxu0 %vm2490_vm5, %v2415_v4  ;;  %2581 = vmatprep.mubr.bf16.mxu1 %v12491_v22 }
 0x266   : > { %v11472_v19 = vpop.f32.mrb[40].mxu0  ;;  %4085 = vmatpush1.bf16.msra.mxu1 %v11918_v38  ;;  %5245 = vmatpush1.bf16.msra.mxu0 %v11936_v44  ;;  %v12865_v38 = vmul.f32 0.06666666, %v12657_v26 }
 0x267   : > { %v2303_v58 = vpop.f32.mrb[41].mxu0  ;;  %4086 = vmatprep.subr.bf16.mxu1 %v11923_v40  ;;  %5246 = vmatprep.subr.bf16.mxu0 %v11944_v53  ;;  %v12870_v40 = vmul.f32 0.5333333, %v12659_v27 }
 0x268   : > { %v11473_v44 = vpop.f32.mrb[42].mxu0 }
 0x269   : > { %v12875_v53 = vpack.c.bf16 %v11473_v44, %v11472_v19  ;;  %v2306_v63 = vpop.f32.mrb[43].mxu0  ;;  %v11929_v19 = vld [vmem:[%s15559_s6 + $0x34] ss:$8 sps:$4 sm:$0xff]  }
 0x26a   : > { %v2416_v47 = vpack.c.bf16 %v2306_v63, %v2303_v58  ;;  %4087 = vmatpush1.bf16.msra.mxu1 %v11921_v33  ;;  %5247 = vmatpush1.bf16.msra.mxu0 %v11942_v45  ;;  %v11434_v63 = vpop.f32.mrb[53].mxu1  ;;  %v12892_v33 = vmul.f32 0.5333333, %v12661_v28  ;;  %v12895_v45 = vmul.f32 0.06666666, %v12661_v28 }
 0x26b   : > { %4088 = vmatprep.subr.bf16.mxu1 %v11926_v7  ;;  %5248 = vmatprep.subr.bf16.mxu0 %v11947_v37  ;;  %v12899_v58 = vpop.f32.mrb[54].mxu1  ;;  %v2937_v7 = vmul.f32 0.5333333, %v12663_v29  ;;  %v12903_v37 = vmul.f32 0.06666666, %v12663_v29 }
 0x26c   : > { %10749 = vmatmul.mubr.msk.bf16.gmra.mrb[72].mxu1 %vm2490_vm5, %v2415_v4  ;;  %11508 = vmatprep.mubr.msk.bf16.mxu0 %vm2490_vm5, %v2416_v47  ;;  %v11435_v44 = vpop.f32.mrb[55].mxu1  ;;  %v11927_v4 = vld [vmem:[%s15559_s6 + $0x30] ss:$8 sps:$4 sm:$0xff]  }
 0x26d   : > { %11509 = vmatmul.mubr.msk.bf16.gmra.mrb[72].mxu0 %vm2490_vm5, %v12875_v53  ;;  %2591 = vmatprep.mubr.bf16.mxu1 %v12491_v22  ;;  %v12914_v42 = vpop.f32.mrb[56].mxu1 }
 0x26e   : > { %v11476_v63 = vpop.f32.mrb[44].mxu0  ;;  %4089 = vmatpush1.bf16.msra.mxu1 %v11924_v50  ;;  %5249 = vmatpush1.bf16.msra.mxu0 %v11945_v54  ;;  %v11956_v50 = vld [vmem:[%s15559_s6 + $0x1ac] ss:$8 sps:$4 sm:$0xff]   ;;  %v11440_v44 = vpop.f32.mrb[57].mxu1  ;;  %v2940_v54 = vmul.f32 0.5333333, %v12665_v31 }
 0x26f   : > { %v2319_v34 = vpop.f32.mrb[45].mxu0  ;;  %4090 = vmatprep.subr.bf16.mxu1 %v11929_v19  ;;  %5250 = vmatprep.subr.bf16.mxu0 %v11953_v59  ;;  %v12926_v15 = vpop.f32.mrb[58].mxu1  ;;  %v11930_v59 = vld [vmem:[%s15559_s6 + $0x40] ss:$8 sps:$4 sm:$0xff]  }
 0x270   : > { %v11477_v48 = vpop.f32.mrb[46].mxu0  ;;  %v11441_v44 = vpop.f32.mrb[59].mxu1 }
 0x271   : > { %v12928_v0 = vpack.c.bf16 %v11477_v48, %v11476_v63  ;;  %v2322_v19 = vpop.f32.mrb[47].mxu0  ;;  %v11962_v48 = vld [vmem:[%s15559_s6 + $0x1bc] ss:$8 sps:$4 sm:$0xff]   ;;  %v12944_v63 = vpop.f32.mrb[60].mxu1 }
 0x272   : > { %v12936_v5 = vpack.c.bf16 %v2322_v19, %v2319_v34  ;;  %4091 = vmatpush1.bf16.msra.mxu1 %v11927_v4  ;;  %5251 = vmatpush1.bf16.msra.mxu0 %v11951_v41  ;;  %v11446_v10 = vpop.f32.mrb[61].mxu1  ;;  %v2946_v34 = vmul.f32 0.46666667, %v12709_v21  ;;  %v11933_v41 = vld [vmem:[%s15559_s6 + $0x50] ss:$8 sps:$4 sm:$0xff]   ;;  %v12964_v19 = vadd.f32 %v2943_v6, %v2937_v7 }
 0x273   : > { %4092 = vmatprep.subr.bf16.mxu1 %v11932_v57  ;;  %5252 = vmatprep.subr.bf16.mxu0 %v11956_v50  ;;  %v11960_v4 = vld [vmem:[%s15559_s6 + $0x1b8] ss:$8 sps:$4 sm:$0xff]   ;;  %v12957_v57 = vpop.f32.mrb[62].mxu1  ;;  %v2941_v10 = vmul.f32 0.46666667, %v12683_v46 }
 0x274   : > { %10750 = vmatmul.mubr.msk.bf16.gmra.mrb[76].mxu1 %vm2490_vm5, %v2416_v47  ;;  %11512 = vmatprep.mubr.msk.bf16.mxu0 %vm2490_vm5, %v12936_v5  ;;  %v2942_v50 = vmul.f32 0.46666667, %v12685_v49  ;;  %v11447_v47 = vpop.f32.mrb[63].mxu1  ;;  %v12966_v44 = vadd.f32 %v2946_v34, %v2940_v54  ;;  %v2944_v6 = vmul.f32 0.46666667, %v12687_v52 }
 0x275   : > { %11513 = vmatmul.mubr.msk.bf16.gmra.mrb[76].mxu0 %vm2490_vm5, %v12928_v0  ;;  %2601 = vmatprep.mubr.bf16.mxu1 %v12491_v22  ;;  %v12970_v55 = vpop.f32.mrb[64].mxu1  ;;  %v12973_v3 = vadd.f32 %v2941_v10, %v12840_v43  ;;  %v2996_v7 = vmul.f32 0.93333334, %v12703_v13  ;;  %v11941_v34 = vld [vmem:[%s15559_s6 + $0x64] ss:$8 sps:$4 sm:$0xff]  }
 0x276   : > { %v11480_v39 = vpop.f32.mrb[48].mxu0  ;;  %4093 = vmatpush1.bf16.msra.mxu1 %v11930_v59  ;;  %5253 = vmatpush1.bf16.msra.mxu0 %v11954_v14  ;;  %v12976_v60 = vadd.f32 %v2942_v50, %v12862_v18  ;;  %v11965_v14 = vld [vmem:[%s15559_s6 + $0x1cc] ss:$8 sps:$4 sm:$0xff]   ;;  %v11452_v43 = vpop.f32.mrb[65].mxu1  ;;  %v12986_v59 = vadd.f32 %v3049_v36, %v3043_v1  ;;  %v11939_v10 = vld [vmem:[%s15559_s6 + $0x60] ss:$8 sps:$4 sm:$0xff]  }
 0x277   : > { %v2335_v54 = vpop.f32.mrb[49].mxu0  ;;  %4094 = vmatprep.subr.bf16.mxu1 %v11935_v8  ;;  %5254 = vmatprep.subr.bf16.mxu0 %v11962_v48  ;;  %v12991_v50 = vpop.f32.mrb[66].mxu1  ;;  %v12994_v8 = vadd.f32 %v2944_v6, %v12870_v40  ;;  %v12997_v47 = vadd.f32 %v2996_v7, %v12903_v37  ;;  %v2945_v48 = vmul.f32 0.46666667, %v12689_v56  ;;  %v11950_v36 = vld [vmem:[%s15559_s6 + $0x74] ss:$8 sps:$4 sm:$0xff]  }
 0x278   : > { %v11481_v18 = vpop.f32.mrb[50].mxu0  ;;  %v11453_v40 = vpop.f32.mrb[67].mxu1  ;;  %v11971_v37 = vld [vmem:[%s15559_s6 + $0x1dc] ss:$8 sps:$4 sm:$0xff]   ;;  %v3052_v7 = vmul.f32 0.4, %v12820_v2 }
 0x279   : > { %v13001_v43 = vpack.c.bf16 %v11481_v18, %v11480_v39  ;;  %v2338_v1 = vpop.f32.mrb[51].mxu0  ;;  %v13015_v39 = vadd.f32 %v2945_v48, %v12892_v33  ;;  %v2999_v18 = vmul.f32 0.93333334, %v12709_v21  ;;  %v11948_v33 = vld [vmem:[%s15559_s6 + $0x70] ss:$8 sps:$4 sm:$0xff]  }
 0x27a   : > { %v13009_v6 = vpack.c.bf16 %v2338_v1, %v2335_v54  ;;  %4095 = vmatpush1.bf16.msra.mxu1 %v11933_v41  ;;  %5255 = vmatpush1.bf16.msra.mxu0 %v11960_v4  ;;  %v2995_v54 = vmul.f32 0.93333334, %v12685_v49  ;;  %v2997_v41 = vmul.f32 0.93333334, %v12687_v52  ;;  %v13029_v4 = vadd.f32 %v3052_v7, %v3046_v12  ;;  %v11969_v12 = vld [vmem:[%s15559_s6 + $0x1d8] ss:$8 sps:$4 sm:$0xff]  }
 0x27b   : > { %15628 = vst [vmem:[#allocation48_spill] sm:$0xff] %v13015_v39  ;;  %4096 = vmatprep.subr.bf16.mxu1 %v11941_v34  ;;  %5256 = vmatprep.subr.bf16.mxu0 %v11965_v14  ;;  %v13032_v34 = vadd.f32 %v2999_v18, %v12924_v24  ;;  %v3096_v14 = vmul.f32 0.13333333, %v12703_v13  ;;  %v3102_v48 = vmul.f32 0.8666667, %v12818_v17  ;;  %v13049_v13 = vadd.f32 %v2994_v30, %v12843_v61 }
 0x27c   : > { %10751 = vmatmul.mubr.msk.bf16.gmra.mrb[80].mxu1 %vm2490_vm5, %v12875_v53  ;;  %11516 = vmatprep.mubr.msk.bf16.mxu0 %vm2490_vm5, %v13009_v6  ;;  %15629 = vst [vmem:[#allocation49_spill] sm:$0xff] %v13029_v4  ;;  %v11959_v53 = vld [vmem:[%s15559_s6 + $0x84] ss:$8 sps:$4 sm:$0xff]   ;;  %v13052_v1 = vadd.f32 %v2995_v54, %v12865_v38  ;;  %v2998_v40 = vmul.f32 0.93333334, %v12689_v56 }
 0x27d   : > { %15630 = vst [vmem:[#allocation50_spill] sm:$0xff] %v13032_v34  ;;  %11517 = vmatmul.mubr.msk.bf16.gmra.mrb[80].mxu0 %vm2490_vm5, %v13001_v43  ;;  %2611 = vmatprep.mubr.bf16.mxu1 %v12491_v22  ;;  %v11977_v24 = vld [vmem:[%s15559_s6 + $0x1ec] ss:$8 sps:$4 sm:$0xff]   ;;  %v13055_v22 = vadd.f32 %v2997_v41, %v12873_v23  ;;  %v13058_v18 = vadd.f32 %v3102_v48, %v3096_v14  ;;  %v3099_v34 = vmul.f32 0.13333333, %v12709_v21 }
 0x27e   : > { %v11484_v7 = vpop.f32.mrb[52].mxu0  ;;  %4097 = vmatpush1.bf16.msra.mxu1 %v11939_v10  ;;  %5257 = vmatpush1.bf16.msra.mxu0 %v11963_v51  ;;  %v3105_v4 = vmul.f32 0.8666667, %v12820_v2  ;;  %v13063_v30 = vadd.f32 %v2998_v40, %v12895_v45  ;;  %v3041_v23 = vmul.f32 0.6, %v12683_v46 }
 0x27f   : > { %v2351_v39 = vpop.f32.mrb[53].mxu0  ;;  %4098 = vmatprep.subr.bf16.mxu1 %v11950_v36  ;;  %5258 = vmatprep.subr.bf16.mxu0 %v11971_v37  ;;  %v3047_v61 = vmul.f32 0.4, %v12723_v62  ;;  %v11957_v51 = vld [vmem:[%s15559_s6 + $0x80] ss:$8 sps:$4 sm:$0xff]  }
 0x280   : > { %15631 = vst [vmem:[#allocation51_spill] sm:$0xff] %v13063_v30  ;;  %v11485_v38 = vpop.f32.mrb[54].mxu0  ;;  %v11975_v21 = vld [vmem:[%s15559_s6 + $0x1e8] ss:$8 sps:$4 sm:$0xff]   ;;  %v13073_v10 = vadd.f32 %v3105_v4, %v3099_v34  ;;  %v3042_v36 = vmul.f32 0.6, %v12685_v49 }
 0x281   : > { %v3048_v45 = vmul.f32 0.4, %v12729_v11  ;;  %v13077_v37 = vpack.c.bf16 %v11485_v38, %v11484_v7  ;;  %v2354_v54 = vpop.f32.mrb[55].mxu0  ;;  %v11968_v41 = vld [vmem:[%s15559_s6 + $0x94] ss:$8 sps:$4 sm:$0xff]   ;;  %v13082_v14 = vadd.f32 %v3047_v61, %v3041_v23 }
 0x282   : > { %v3044_v48 = vmul.f32 0.6, %v12687_v52  ;;  %v3050_v40 = vmul.f32 0.4, %v12733_v16  ;;  %v13086_v30 = vpack.c.bf16 %v2354_v54, %v2351_v39  ;;  %4099 = vmatpush1.bf16.msra.mxu1 %v11948_v33  ;;  %5259 = vmatpush1.bf16.msra.mxu0 %v11969_v12  ;;  %v11983_v4 = vld [vmem:[%s15559_s6 + $0x1fc] ss:$8 sps:$4 sm:$0xff]  }
 0x283   : > { %15632 = vst [vmem:[#allocation52_spill] sm:$0xff] %v13082_v14  ;;  %v13091_v34 = vadd.f32 %v3048_v45, %v3042_v36  ;;  %v3045_v7 = vmul.f32 0.6, %v12689_v56  ;;  %v3051_v38 = vmul.f32 0.4, %v12737_v32  ;;  %4100 = vmatprep.subr.bf16.mxu1 %v11959_v53  ;;  %5260 = vmatprep.subr.bf16.mxu0 %v11977_v24 }
 0x284   : > { %v13095_v23 = vadd.f32 %v3050_v40, %v3044_v48  ;;  %v3094_v61 = vmul.f32 0.13333333, %v12683_v46  ;;  %v3100_v39 = vmul.f32 0.8666667, %v12723_v62  ;;  %v3095_v33 = vmul.f32 0.13333333, %v12685_v49  ;;  %10752 = vmatmul.mubr.msk.bf16.gmra.mrb[84].mxu1 %vm2490_vm5, %v12936_v5  ;;  %11520 = vmatprep.mubr.msk.bf16.mxu0 %vm2490_vm5, %v13086_v30 }
 0x285   : > { %15633 = vst [vmem:[#allocation53_spill] sm:$0xff] %v13091_v34  ;;  %v11966_v12 = vld [vmem:[%s15559_s6 + $0x90] ss:$8 sps:$4 sm:$0xff]   ;;  %v13110_v24 = vadd.f32 %v3051_v38, %v3045_v7  ;;  %v3101_v46 = vmul.f32 0.8666667, %v12729_v11  ;;  %11521 = vmatmul.mubr.msk.bf16.gmra.mrb[84].mxu0 %vm2490_vm5, %v13077_v37  ;;  %v13117_v5 = vld [vmem:[#allocation2] sm:$0xff] }
 0x286   : > { %15634 = vst [vmem:[#allocation54_spill] sm:$0xff] %v13095_v23  ;;  %v11981_v53 = vld [vmem:[%s15559_s6 + $0x1f8] ss:$8 sps:$4 sm:$0xff]   ;;  %v3097_v49 = vmul.f32 0.13333333, %v12687_v52  ;;  %2621 = vmatprep.mubr.bf16.mxu1 %v13117_v5  ;;  %v13129_v54 = vadd.f32 %v3100_v39, %v3094_v61  ;;  %v11488_v48 = vpop.f32.mrb[56].mxu0  ;;  %4101 = vmatpush1.bf16.msra.mxu1 %v11957_v51 }
 0x287   : > { %15635 = vst [vmem:[#allocation55_spill] sm:$0xff] %v13110_v24  ;;  %v3103_v62 = vmul.f32 0.8666667, %v12733_v16  ;;  %v11974_v36 = vld [vmem:[%s15559_s6 + $0xa4] ss:$8 sps:$4 sm:$0xff]   ;;  %5261 = vmatpush1.bf16.msra.mxu0 %v11975_v21  ;;  %v13133_v38 = vadd.f32 %v3101_v46, %v3095_v33  ;;  %v2367_v23 = vpop.f32.mrb[57].mxu0  ;;  %4102 = vmatprep.subr.bf16.mxu1 %v11968_v41 }
 0x288   : > { %v11989_v45 = vld [vmem:[%s15559_s6 + $0x20c] ss:$8 sps:$4 sm:$0xff]   ;;  %v3149_v11 = vmul.f32 0.6666666, %v12818_v17  ;;  %v3155_v52 = vmul.f32 0.33333334, %v12853_v35  ;;  %5262 = vmatprep.subr.bf16.mxu0 %v11983_v4 }
 0x289   : > { %v3152_v16 = vmul.f32 0.6666666, %v12820_v2  ;;  %v3158_v40 = vmul.f32 0.33333334, %v12867_v20  ;;  %v3202_v7 = vmul.f32 0.19999999, %v12818_v17  ;;  %v13135_v24 = vadd.f32 %v3103_v62, %v3097_v49 }
 0x28a   : > { %v13137_v34 = vadd.f32 %v3155_v52, %v3149_v11  ;;  %v3208_v14 = vmul.f32 0.8, %v12853_v35  ;;  %v3205_v61 = vmul.f32 0.19999999, %v12820_v2  ;;  %v11489_v39 = vpop.f32.mrb[58].mxu0  ;;  %4103 = vmatpush1.bf16.msra.mxu1 %v11966_v12 }
 0x28b   : > { %v13141_v51 = vadd.f32 %v3158_v40, %v3152_v16  ;;  %v3211_v21 = vmul.f32 0.8, %v12867_v20  ;;  %v3098_v17 = vmul.f32 0.13333333, %v12689_v56  ;;  %v13145_v33 = vpack.c.bf16 %v11489_v39, %v11488_v48  ;;  %v2370_v46 = vpop.f32.mrb[59].mxu0  ;;  %5263 = vmatpush1.bf16.msra.mxu0 %v11981_v53  ;;  %4104 = vmatprep.subr.bf16.mxu1 %v11974_v36 }
 0x28c   : > { %v13147_v49 = vadd.f32 %v3208_v14, %v3202_v7  ;;  %v3104_v41 = vmul.f32 0.8666667, %v12737_v32  ;;  %v13150_v4 = vpack.c.bf16 %v2370_v46, %v2367_v23  ;;  %v11972_v2 = vld [vmem:[%s15559_s6 + $0xa0] ss:$8 sps:$4 sm:$0xff]   ;;  %v11980_v14 = vld [vmem:[%s15559_s6 + $0xb4] ss:$8 sps:$4 sm:$0xff]   ;;  %5264 = vmatprep.subr.bf16.mxu0 %v11989_v45  ;;  %10753 = vmatmul.mubr.msk.bf16.gmra.mrb[88].mxu1 %vm2490_vm5, %v12928_v0 }
 0x28d   : > { %v11987_v62 = vld [vmem:[%s15559_s6 + $0x208] ss:$8 sps:$4 sm:$0xff]   ;;  %v13158_v56 = vadd.f32 %v3211_v21, %v3205_v61  ;;  %v11995_v32 = vld [vmem:[%s15559_s6 + $0x21c] ss:$8 sps:$4 sm:$0xff]   ;;  %v11993_v53 = vld [vmem:[%s15559_s6 + $0x218] ss:$8 sps:$4 sm:$0xff]   ;;  %2631 = vmatprep.mubr.bf16.mxu1 %v13117_v5 }
 0x28e   : > { %v13166_v23 = vadd.f32 %v3104_v41, %v3098_v17  ;;  %11524 = vmatprep.mubr.msk.bf16.mxu0 %vm2490_vm5, %v13150_v4  ;;  %v11978_v12 = vld [vmem:[%s15559_s6 + $0xb0] ss:$8 sps:$4 sm:$0xff]   ;;  %v11986_v0 = vld [vmem:[%s15559_s6 + $0xc4] ss:$8 sps:$4 sm:$0xff]   ;;  %v3255_v36 = vmul.f32 0.73333335, %v12853_v35  ;;  %4105 = vmatpush1.bf16.msra.mxu1 %v11972_v2 }
 0x28f   : > { %11525 = vmatmul.mubr.msk.bf16.gmra.mrb[88].mxu0 %vm2490_vm5, %v13145_v33  ;;  %v3261_v45 = vmul.f32 0.26666668, %v12883_v9  ;;  %v3258_v11 = vmul.f32 0.73333335, %v12867_v20  ;;  %v11492_v52 = vpop.f32.mrb[60].mxu0  ;;  %4106 = vmatprep.subr.bf16.mxu1 %v11980_v14 }
 0x290   : > { %5265 = vmatpush1.bf16.msra.mxu0 %v11987_v62  ;;  %v3264_v16 = vmul.f32 0.26666668, %v12899_v58  ;;  %v3308_v48 = vmul.f32 0.26666665, %v12853_v35  ;;  %v2383_v40 = vpop.f32.mrb[61].mxu0 }
 0x291   : > { %5266 = vmatprep.subr.bf16.mxu0 %v11995_v32  ;;  %v13189_v7 = vadd.f32 %v3261_v45, %v3255_v36  ;;  %v3314_v61 = vmul.f32 0.73333335, %v12883_v9  ;;  %v3311_v39 = vmul.f32 0.26666665, %v12867_v20  ;;  %v11493_v21 = vpop.f32.mrb[62].mxu0 }
 0x292   : > { %v13193_v17 = vadd.f32 %v3264_v16, %v3258_v11  ;;  %v3317_v46 = vmul.f32 0.73333335, %v12899_v58  ;;  %v13196_v41 = vpack.c.bf16 %v11493_v21, %v11492_v52  ;;  %v2386_v2 = vpop.f32.mrb[63].mxu0  ;;  %4107 = vmatpush1.bf16.msra.mxu1 %v11978_v12  ;;  %v11984_v14 = vld [vmem:[%s15559_s6 + $0xc0] ss:$8 sps:$4 sm:$0xff]  }
 0x293   : > { %v13198_v62 = vadd.f32 %v3314_v61, %v3308_v48  ;;  %v13200_v35 = vpack.c.bf16 %v2386_v2, %v2383_v40  ;;  %4108 = vmatprep.subr.bf16.mxu1 %v11986_v0  ;;  %v11992_v20 = vld [vmem:[%s15559_s6 + $0xd4] ss:$8 sps:$4 sm:$0xff]   ;;  %v11990_v12 = vld [vmem:[%s15559_s6 + $0xd0] ss:$8 sps:$4 sm:$0xff]   ;;  %v3367_v0 = vmul.f32 0.2, %v12914_v42 }
 0x294   : > { %5267 = vmatpush1.bf16.msra.mxu0 %v11993_v53  ;;  %v13205_v32 = vadd.f32 %v3317_v46, %v3311_v39  ;;  %10754 = vmatmul.mubr.msk.bf16.gmra.mrb[92].mxu1 %vm2490_vm5, %v13009_v6  ;;  %v3361_v53 = vmul.f32 0.8, %v12883_v9  ;;  %v3364_v36 = vmul.f32 0.8, %v12899_v58  ;;  %v3370_v6 = vmul.f32 0.2, %v12926_v15 }
 0x295   : > { %11528 = vmatprep.mubr.msk.bf16.mxu0 %vm2490_vm5, %v13200_v35  ;;  %2641 = vmatprep.mubr.bf16.mxu1 %v13117_v5  ;;  %v3414_v11 = vmul.f32 0.3333333, %v12883_v9  ;;  %v3420_v48 = vmul.f32 0.6666667, %v12914_v42  ;;  %v3417_v40 = vmul.f32 0.3333333, %v12899_v58 }
 0x296   : > { %15636 = vst [vmem:[#allocation56_spill] sm:$0xff] %v13205_v32  ;;  %v11496_v45 = vpop.f32.mrb[64].mxu0  ;;  %4109 = vmatpush1.bf16.msra.mxu1 %v11984_v14  ;;  %v13225_v16 = vadd.f32 %v3367_v0, %v3361_v53  ;;  %v13229_v39 = vadd.f32 %v3370_v6, %v3364_v36  ;;  %v3423_v21 = vmul.f32 0.6666667, %v12926_v15  ;;  %v3467_v58 = vmul.f32 0.8666667, %v12914_v42 }
 0x297   : > { %11529 = vmatmul.mubr.msk.bf16.gmra.mrb[92].mxu0 %vm2490_vm5, %v13196_v41  ;;  %v2399_v52 = vpop.f32.mrb[65].mxu0  ;;  %4110 = vmatprep.subr.bf16.mxu1 %v11992_v20  ;;  %v13234_v14 = vadd.f32 %v3420_v48, %v3414_v11  ;;  %v3473_v20 = vmul.f32 0.13333334, %v12944_v63  ;;  %v3470_v53 = vmul.f32 0.8666667, %v12926_v15 }
 0x298   : > { %v11497_v61 = vpop.f32.mrb[66].mxu0  ;;  %v13238_v9 = vadd.f32 %v3423_v21, %v3417_v40  ;;  %v3520_v0 = vmul.f32 0.39999998, %v12914_v42  ;;  %v3529_v6 = vmul.f32 0.6, %v12957_v57 }
 0x299   : > { %v13232_v46 = vpack.c.bf16 %v11497_v61, %v11496_v45  ;;  %v2402_v2 = vpop.f32.mrb[67].mxu0  ;;  %v13253_v36 = vadd.f32 %v3473_v20, %v3467_v58  ;;  %v3523_v45 = vmul.f32 0.39999998, %v12926_v15  ;;  %v3579_v40 = vmul.f32 0.06666667, %v12970_v55 }
 0x29a   : > { %v13236_v32 = vpack.c.bf16 %v2402_v2, %v2399_v52  ;;  %4111 = vmatpush1.bf16.msra.mxu1 %v11990_v12  ;;  %v3476_v12 = vmul.f32 0.13333334, %v12957_v57  ;;  %v3582_v42 = vmul.f32 0.06666667, %v12991_v50  ;;  %v3632_v61 = vmul.f32 0.53333336, %v12970_v55 }
 0x29b   : > { %v13261_v48 = vadd.f32 %v3529_v6, %v3523_v45  ;;  %v3635_v15 = vmul.f32 0.53333336, %v12991_v50  ;;  %v3573_v21 = vmul.f32 0.93333334, %v12944_v63  ;;  %v3576_v2 = vmul.f32 0.93333334, %v12957_v57 }
 0x29c   : > { %10755 = vmatmul.mubr.msk.bf16.gmra.mrb[96].mxu1 %vm2490_vm5, %v13001_v43  ;;  %11532 = vmatprep.mubr.msk.bf16.mxu0 %vm2490_vm5, %v13236_v32  ;;  %v3526_v43 = vmul.f32 0.6, %v12944_v63  ;;  %v13257_v11 = vadd.f32 %v3476_v12, %v3470_v53  ;;  %v3629_v53 = vmul.f32 0.46666664, %v12957_v57  ;;  %v12001_v45 = vld [vmem:[%s15559_s6 + $0x22c] ss:$8 sps:$4 sm:$0xff]  }
 0x29d   : > { %2651 = vmatprep.mubr.bf16.mxu1 %v13117_v5  ;;  %v13272_v58 = vadd.f32 %v3579_v40, %v3573_v21  ;;  %v13274_v20 = vadd.f32 %v3582_v42, %v3576_v2  ;;  %v11999_v57 = vld [vmem:[%s15559_s6 + $0x228] ss:$8 sps:$4 sm:$0xff]   ;;  %5268 = vmatprep.subr.bf16.mxu0 %v12001_v45  ;;  %v12007_v6 = vld [vmem:[%s15559_s6 + $0x23c] ss:$8 sps:$4 sm:$0xff]   ;;  %v12005_v42 = vld [vmem:[%s15559_s6 + $0x238] ss:$8 sps:$4 sm:$0xff]  }
 0x29e   : > { %v13259_v52 = vadd.f32 %v3526_v43, %v3520_v0  ;;  %v13280_v0 = vadd.f32 %v3635_v15, %v3629_v53  ;;  %v11998_v43 = vld [vmem:[%s15559_s6 + $0xe4] ss:$8 sps:$4 sm:$0xff]   ;;  %5269 = vmatpush1.bf16.msra.mxu0 %v11999_v57  ;;  %v12002_v40 = vld [vmem:[%s15559_s6 + $0xf0] ss:$8 sps:$4 sm:$0xff]   ;;  %v12034_v53 = vld [vmem:[%s15559_s6 + $0x134] ss:$8 sps:$4 sm:$0xff]  }
 0x29f   : > { %11533 = vmatmul.mubr.msk.bf16.gmra.mrb[96].mxu0 %vm2490_vm5, %v13232_v46  ;;  %4112 = vmatprep.subr.bf16.mxu1 %v11998_v43  ;;  %v12008_v15 = vld [vmem:[%s15559_s6 + $0x248] ss:$8 sps:$4 sm:$0xff]   ;;  %v12011_v21 = vld [vmem:[%s15559_s6 + $0x258] ss:$8 sps:$4 sm:$0xff]   ;;  %v12028_v2 = vld [vmem:[%s15559_s6 + $0x124] ss:$8 sps:$4 sm:$0xff]  }
 0x2a0   : > { %5270 = vmatprep.subr.bf16.mxu0 %v12007_v6  ;;  %v12038_v43 = vld [vmem:[%s15559_s6 + $0x140] ss:$8 sps:$4 sm:$0xff]   ;;  %v12040_v45 = vld [vmem:[%s15559_s6 + $0x144] ss:$8 sps:$4 sm:$0xff]   ;;  %v12044_v57 = vld [vmem:[%s15559_s6 + $0x150] ss:$8 sps:$4 sm:$0xff]  }
 0x2a1   : > { %v3804_v6 = vld [vmem:[%s15559_s6 + $0x160] sm:$0xff] }
 0x2a2   : > { %5271 = vmatpush1.bf16.msra.mxu0 %v12005_v42 }
 0x2a4   : > { %10756 = vmatmul.mubr.msk.bf16.gmra.mrb[100].mxu1 %vm2490_vm5, %v13086_v30  ;;  %v3626_v30 = vmul.f32 0.46666664, %v12944_v63  ;;  %v11996_v63 = vld [vmem:[%s15559_s6 + $0xe0] ss:$8 sps:$4 sm:$0xff]  }
 0x2a5   : > { %2661 = vmatprep.mubr.bf16.mxu1 %v13117_v5  ;;  %4113 = vmatpush1.bf16.msra.mxu1 %v11996_v63 }
 0x2a6   : > { %v13278_v12 = vadd.f32 %v3632_v61, %v3626_v30  ;;  %v12010_v61 = vld [vmem:[%s15559_s6 + $0x24c] ss:$8 sps:$4 sm:$0xff]   ;;  %v12032_v30 = vld [vmem:[%s15559_s6 + $0x130] ss:$8 sps:$4 sm:$0xff]  }
 0x2a7   : > { %5272 = vmatprep.subr.bf16.mxu0 %v12010_v61 }
 0x2a8   : > { %5273 = vmatpush1.bf16.msra.mxu0 %v12008_v15  ;;  %v10949_v15 = vcombine.high %v3804_v6, %v3804_v6 }
 0x2ac   : > { %10757 = vmatmul.mubr.msk.bf16.gmra.mrb[104].mxu1 %vm2490_vm5, %v13077_v37  ;;  %v12004_v37 = vld [vmem:[%s15559_s6 + $0xf4] ss:$8 sps:$4 sm:$0xff]  }
 0x2ad   : > { %2671 = vmatprep.mubr.bf16.mxu1 %v13117_v5  ;;  %4114 = vmatprep.subr.bf16.mxu1 %v12004_v37  ;;  %v12046_v37 = vld [vmem:[%s15559_s6 + $0x154] ss:$8 sps:$4 sm:$0xff]  }
 0x2ae   : > { %4115 = vmatpush1.bf16.msra.mxu1 %v12002_v40 }
 0x2b4   : > { %10758 = vmatmul.mubr.msk.bf16.gmra.mrb[108].mxu1 %vm2490_vm5, %v13150_v4  ;;  %v12013_v4 = vld [vmem:[%s15559_s6 + $0x25c] ss:$8 sps:$4 sm:$0xff]  }
 0x2b5   : > { %2681 = vmatprep.mubr.bf16.mxu1 %v13117_v5  ;;  %5274 = vmatprep.subr.bf16.mxu0 %v12013_v4  ;;  %v10948_v4 = vcombine.low %v3804_v6, %v3804_v6 }
 0x2b6   : > { %5275 = vmatpush1.bf16.msra.mxu0 %v12011_v21 }
 0x2bc   : > { %10759 = vmatmul.mubr.msk.bf16.gmra.mrb[112].mxu1 %vm2490_vm5, %v13145_v33  ;;  %v12016_v33 = vld [vmem:[%s15559_s6 + $0x104] ss:$8 sps:$4 sm:$0xff]  }
 0x2bd   : > { %2691 = vmatprep.mubr.bf16.mxu1 %v13117_v5  ;;  %4277 = vmatprep.subr.bf16.mxu1 %v12016_v33 }
 0x2c4   : > { %10760 = vmatmul.mubr.msk.bf16.gmra.mrb[116].mxu1 %vm2490_vm5, %v13200_v35  ;;  %v12019_v35 = vld [vmem:[%s15559_s6 + $0x26c] ss:$8 sps:$4 sm:$0xff]  }
 0x2c5   : > { %2701 = vmatprep.mubr.bf16.mxu1 %v13117_v5  ;;  %5437 = vmatprep.subr.bf16.mxu0 %v12019_v35 }
 0x2cc   : > { %10761 = vmatmul.mubr.msk.bf16.gmra.mrb[120].mxu1 %vm2490_vm5, %v13196_v41  ;;  %v12014_v41 = vld [vmem:[%s15559_s6 + $0x100] ss:$8 sps:$4 sm:$0xff]  }
 0x2cd   : > { %2711 = vmatprep.mubr.bf16.mxu1 %v13117_v5 }
 0x2d4   : > { %10762 = vmatmul.mubr.msk.bf16.gmra.mrb[124].mxu1 %vm2490_vm5, %v13236_v32  ;;  %v12020_v32 = vld [vmem:[%s15559_s6 + $0x110] ss:$8 sps:$4 sm:$0xff]  }
 0x2d5   : > { %2721 = vmatprep.mubr.bf16.mxu1 %v13117_v5 }
 0x2dc   : > { %10763 = vmatmul.mubr.msk.bf16.gmra.mrb[128].mxu1 %vm2490_vm5, %v13232_v46  ;;  %v12022_v46 = vld [vmem:[%s15559_s6 + $0x114] ss:$8 sps:$4 sm:$0xff]   ;;  %vm10345_vm5 = vcmask 982912  }
 0x2dd   : > { %4116 = vmatprep.mubr.bf16.mxu1 %v13117_v5 }
 0x2e4   : > { %4117 = vmatmul.mubr.bf16.vlgmr.msra.gmra.mrb[132].mxu1 %v13117_v5  ;;  %v12026_v5 = vld [vmem:[%s15559_s6 + $0x120] ss:$8 sps:$4 sm:$0xff]  }
 0x2e5   : > { %4278 = vmatpush1.bf16.msra.mxu1 %v12014_v41 }
 0x2e6   : > { %4279 = vmatprep.subr.bf16.mxu1 %v12022_v46 }
 0x2e9   : > { %4280 = vmatpush1.bf16.msra.mxu1 %v12020_v32 }
 0x2ea   : > { %4281 = vmatprep.subr.bf16.mxu1 %v12028_v2 }
 0x2ed   : > { %4282 = vmatpush1.bf16.msra.mxu1 %v12026_v5 }
 0x2ee   : > { %4283 = vmatprep.subr.bf16.mxu1 %v12034_v53 }
 0x2f1   : > { %4284 = vmatpush1.bf16.msra.mxu1 %v12032_v30 }
 0x2f2   : > { %4285 = vmatprep.subr.bf16.mxu1 %v12040_v45 }
 0x2f5   : > { %4286 = vmatpush1.bf16.msra.mxu1 %v12038_v43 }
 0x2f6   : > { %4287 = vmatprep.subr.bf16.mxu1 %v12046_v37 }
 0x2f9   : > { %4288 = vmatpush1.bf16.msra.mxu1 %v12044_v57 }
 0x2fa   : > { %10950 = vmatprep.subr.msk.bf16.mxu1 %vm931_vm1, %v10949_v15 }
 0x337   : > { %v2573_v63 = vpop.f32.mrb[68].mxu1 }
 0x338   : > { %v2900_v40 = vadd.f32 %v2573_v63, %v12655_v25  ;;  %v2575_v42 = vpop.f32.mrb[69].mxu1  ;;  %v11506_v61 = vpop.f32.mrb[68].mxu0 }
 0x339   : > { %v2901_v21 = vadd.f32 %v2575_v42, %v12657_v26  ;;  %v2955_v33 = vadd.f32 %v11506_v61, %v12964_v19  ;;  %v2577_v41 = vpop.f32.mrb[70].mxu1  ;;  %v2766_v35 = vpop.f32.mrb[69].mxu0  ;;  %v4079_v26 = vsel %vm931_vm1, %v10948_v4, 0 }
 0x33a   : > { %v2903_v25 = vadd.f32 %v2577_v41, %v12659_v27  ;;  %v2902_v32 = vadd.f32 %v2766_v35, %v12663_v29  ;;  %v2579_v46 = vpop.f32.mrb[71].mxu1  ;;  %v11507_v5 = vpop.f32.mrb[70].mxu0  ;;  %4290 = vmatpush1.bf16.msra.mxu1 %v4079_v26 }
 0x33b   : > { %v11212_v19 = vpack.c.bf16 %v2901_v21, %v2900_v40  ;;  %v11217_v2 = vpack.c.bf16 %v2955_v33, %v2955_v33  ;;  %v2904_v30 = vadd.f32 %v2579_v46, %v12661_v28  ;;  %v2958_v53 = vadd.f32 %v11507_v5, %v12966_v44  ;;  %v2769_v43 = vpop.f32.mrb[71].mxu0  ;;  %v12017_v28 = vld [vmem:[%s15559_s6 + $0x268] ss:$8 sps:$4 sm:$0xff]  }
 0x33c   : > { %v2906_v27 = vpack.c.bf16 %v2903_v25, %v2900_v40  ;;  %v11213_v45 = vpack.c.bf16 %v2902_v32, %v2902_v32  ;;  %v2905_v29 = vadd.f32 %v2769_v43, %v12665_v31  ;;  %v12025_v31 = vld [vmem:[%s15559_s6 + $0x27c] ss:$8 sps:$4 sm:$0xff]  }
 0x33d   : > { %2926 = vst [vmem:[%s13389_s29] sm:$0xff] %v11212_v19  ;;  %10789 = vst.msk [vmem:[%s13389_s29 + $0x20] sm:$0xf] %vm2927_vm6, %v11217_v2  ;;  %v2907_v63 = vpack.c.bf16 %v2904_v30, %v2901_v21  ;;  %v11214_v57 = vpack.c.bf16 %v2904_v30, %v2903_v25  ;;  %v2961_v37 = vpack.c.bf16 %v2958_v53, %v2955_v33  ;;  %v12023_v25 = vld [vmem:[%s15559_s6 + $0x278] ss:$8 sps:$4 sm:$0xff]   ;;  %v15637_v19 = vld [vmem:[#allocation48_spill] sm:$0xff] }
 0x33e   : > { %v11219_v6 = vpack.c.bf16 %v2958_v53, %v2958_v53  ;;  %2928 = vst.msk [vmem:[%s13389_s29 + $0x8] sm:$0xf] %vm2927_vm6, %v11213_v45  ;;  %v2908_v44 = vpack.c.bf16 %v2905_v29, %v2902_v32  ;;  %v11215_v40 = vpack.c.bf16 %v2905_v29, %v2905_v29  ;;  %v15638_v30 = vld [vmem:[#allocation49_spill] sm:$0xff] }
 0x33f   : > { %2929 = vst [vmem:[%s13389_s29 + $0xc] sm:$0xff] %v11214_v57  ;;  %2987 = vst.msk [vmem:[#allocation2 + $0x40] sm:$0xff] %vm918_vm0, %v2961_v37  ;;  %v2583_v42 = vpop.f32.mrb[72].mxu1  ;;  %4126 = vmatprep.mubr.bf16.mxu1 %v2907_v63  ;;  %5276 = vmatprep.mubr.bf16.mxu0 %v2907_v63 }
 0x340   : > { %10791 = vst.msk [vmem:[%s13389_s29 + $0x2c] sm:$0xf] %vm2927_vm6, %v11219_v6  ;;  %2930 = vst.msk [vmem:[%s13389_s29 + $0x14] sm:$0xf] %vm2927_vm6, %v11215_v40  ;;  %v2953_v61 = vadd.f32 %v12973_v3, %v2583_v42  ;;  %v2585_v15 = vpop.f32.mrb[73].mxu1  ;;  %v11510_v4 = vpop.f32.mrb[72].mxu0  ;;  %4127 = vmatmul.mubr.bf16.gmra.mrb[136].mxu1 %v2906_v27  ;;  %5277 = vmatmul.mubr.bf16.vlgmr.msra.gmra.mrb[100].mxu0 %v2906_v27 }
 0x341   : > { %2934 = vst.msk [vmem:[#allocation2 + $0x28] sm:$0xff] %vm918_vm0, %v2908_v44  ;;  %v2954_v21 = vadd.f32 %v12976_v60, %v2585_v15  ;;  %v3061_v33 = vadd.f32 %v11510_v4, %v12986_v59  ;;  %v2587_v41 = vpop.f32.mrb[74].mxu1  ;;  %v2782_v35 = vpop.f32.mrb[73].mxu0  ;;  %5438 = vmatpush1.bf16.msra.mxu0 %v12017_v28  ;;  %v12031_v60 = vld [vmem:[%s15559_s6 + $0x28c] ss:$8 sps:$4 sm:$0xff]  }
 0x342   : > { %v2956_v32 = vadd.f32 %v12994_v8, %v2587_v41  ;;  %v3008_v3 = vadd.f32 %v12997_v47, %v2782_v35  ;;  %v2589_v46 = vpop.f32.mrb[75].mxu1  ;;  %v11511_v5 = vpop.f32.mrb[74].mxu0  ;;  %5439 = vmatprep.subr.bf16.mxu0 %v12025_v31  ;;  %v15639_v8 = vld [vmem:[#allocation50_spill] sm:$0xff]  ;;  %v12029_v6 = vld [vmem:[%s15559_s6 + $0x288] ss:$8 sps:$4 sm:$0xff]  }
 0x343   : > { %v11216_v59 = vpack.c.bf16 %v2954_v21, %v2953_v61  ;;  %v11225_v26 = vpack.c.bf16 %v3061_v33, %v3061_v33  ;;  %v2957_v2 = vadd.f32 %v15637_v19, %v2589_v46  ;;  %v3064_v53 = vadd.f32 %v11511_v5, %v15638_v30  ;;  %v2785_v43 = vpop.f32.mrb[75].mxu0  ;;  %v12037_v40 = vld [vmem:[%s15559_s6 + $0x29c] ss:$8 sps:$4 sm:$0xff]   ;;  %v12035_v35 = vld [vmem:[%s15559_s6 + $0x298] ss:$8 sps:$4 sm:$0xff]   ;;  %v15640_v5 = vld [vmem:[#allocation51_spill] sm:$0xff] }
 0x344   : > { %v2959_v27 = vpack.c.bf16 %v2956_v32, %v2953_v61  ;;  %v11221_v45 = vpack.c.bf16 %v3008_v3, %v3008_v3  ;;  %v3011_v47 = vadd.f32 %v15639_v8, %v2785_v43  ;;  %v11011_v8 = vld [vmem:[%s15559_s6 + $0x2c8] sm:$0xff] }
 0x345   : > { %10788 = vst [vmem:[%s13389_s29 + $0x18] sm:$0xff] %v11216_v59  ;;  %10805 = vst.msk [vmem:[%s13389_s29 + $0x50] sm:$0xf] %vm2927_vm6, %v11225_v26  ;;  %v2960_v29 = vpack.c.bf16 %v2957_v2, %v2954_v21  ;;  %v11218_v63 = vpack.c.bf16 %v2957_v2, %v2956_v32  ;;  %v3067_v57 = vpack.c.bf16 %v3064_v53, %v3061_v33  ;;  %5440 = vmatpush1.bf16.msra.mxu0 %v12023_v25 }
 0x346   : > { %v11227_v37 = vpack.c.bf16 %v3064_v53, %v3064_v53  ;;  %2985 = vst [vmem:[#allocation2 + $0x30] sm:$0xff] %v2959_v27  ;;  %10797 = vst.msk [vmem:[%s13389_s29 + $0x38] sm:$0xf] %vm2927_vm6, %v11221_v45  ;;  %v3014_v28 = vpack.c.bf16 %v3011_v47, %v3008_v3  ;;  %v11223_v44 = vpack.c.bf16 %v3011_v47, %v3011_v47  ;;  %5441 = vmatprep.subr.bf16.mxu0 %v12031_v60  ;;  %v12051_v45 = vld [vmem:[%s15559_s6 + $0x2bc] ss:$8 sps:$4 sm:$0xff]  }
 0x347   : > { %10790 = vst [vmem:[%s13389_s29 + $0x24] sm:$0xff] %v11218_v63  ;;  %2986 = vst [vmem:[#allocation2 + $0x38] sm:$0xff] %v2960_v29  ;;  %v2593_v31 = vpop.f32.mrb[76].mxu1  ;;  %4136 = vmatprep.mubr.bf16.mxu1 %v2960_v29  ;;  %5286 = vmatprep.mubr.bf16.mxu0 %v2960_v29  ;;  %v15641_v29 = vld [vmem:[#allocation52_spill] sm:$0xff] }
 0x348   : > { %10807 = vst.msk [vmem:[%s13389_s29 + $0x5c] sm:$0xf] %vm2927_vm6, %v11227_v37  ;;  %10799 = vst.msk [vmem:[%s13389_s29 + $0x44] sm:$0xf] %vm2927_vm6, %v11223_v44  ;;  %v3006_v42 = vadd.f32 %v13049_v13, %v2593_v31  ;;  %v2595_v61 = vpop.f32.mrb[77].mxu1  ;;  %v11514_v15 = vpop.f32.mrb[76].mxu0  ;;  %4137 = vmatmul.mubr.bf16.gmra.mrb[140].mxu1 %v2959_v27  ;;  %5287 = vmatmul.mubr.bf16.gmra.mrb[104].mxu0 %v2959_v27 }
 0x349   : > { %3093 = vst.msk [vmem:[#allocation2 + $0x70] sm:$0xff] %vm918_vm0, %v3067_v57  ;;  %3040 = vst.msk [vmem:[#allocation2 + $0x58] sm:$0xff] %vm918_vm0, %v3014_v28  ;;  %v3007_v4 = vadd.f32 %v13052_v1, %v2595_v61  ;;  %v3167_v21 = vadd.f32 %v11514_v15, %v13137_v34  ;;  %v2597_v33 = vpop.f32.mrb[78].mxu1  ;;  %v2798_v41 = vpop.f32.mrb[77].mxu0  ;;  %5442 = vmatpush1.bf16.msra.mxu0 %v12029_v6  ;;  %v12043_v1 = vld [vmem:[%s15559_s6 + $0x2ac] ss:$8 sps:$4 sm:$0xff]   ;;  %v11057_v15 = vcombine.high %v11011_v8, %v11011_v8 }
 0x34a   : > { %v3009_v25 = vadd.f32 %v13055_v22, %v2597_v33  ;;  %v3114_v13 = vadd.f32 %v13058_v18, %v2798_v41  ;;  %v2599_v32 = vpop.f32.mrb[79].mxu1  ;;  %v11515_v3 = vpop.f32.mrb[78].mxu0  ;;  %5443 = vmatprep.subr.bf16.mxu0 %v12037_v40  ;;  %v12056_v6 = vld [vmem:[%s15559_s6 + $0x2d4] ss:$8 sps:$4 sm:$0xff]   ;;  %v12049_v61 = vld [vmem:[%s15559_s6 + $0x2b8] ss:$8 sps:$4 sm:$0xff]  }
 0x34b   : > { %v11220_v34 = vpack.c.bf16 %v3007_v4, %v3006_v42  ;;  %v11233_v46 = vpack.c.bf16 %v3167_v21, %v3167_v21  ;;  %v3010_v60 = vadd.f32 %v15640_v5, %v2599_v32  ;;  %v3170_v59 = vadd.f32 %v11515_v3, %v13141_v51  ;;  %v2801_v26 = vpop.f32.mrb[79].mxu0  ;;  %v12041_v51 = vld [vmem:[%s15559_s6 + $0x2a8] ss:$8 sps:$4 sm:$0xff]   ;;  %v15642_v28 = vld [vmem:[#allocation53_spill] sm:$0xff]  ;;  %6467 = vmatprep.subr.bf16.mxu1 %v12056_v6 }
 0x34c   : > { %v3012_v19 = vpack.c.bf16 %v3009_v25, %v3006_v42  ;;  %v11229_v2 = vpack.c.bf16 %v3114_v13, %v3114_v13  ;;  %v3117_v22 = vadd.f32 %v13073_v10, %v2801_v26  ;;  %v15644_v32 = vld [vmem:[#allocation55_spill] sm:$0xff] }
 0x34d   : > { %10796 = vst [vmem:[%s13389_s29 + $0x30] sm:$0xff] %v11220_v34  ;;  %10821 = vst.msk [vmem:[%s13389_s29 + $0x80] sm:$0xf] %vm2927_vm6, %v11233_v46  ;;  %v3013_v18 = vpack.c.bf16 %v3010_v60, %v3007_v4  ;;  %v11222_v30 = vpack.c.bf16 %v3010_v60, %v3009_v25  ;;  %v3173_v53 = vpack.c.bf16 %v3170_v59, %v3167_v21  ;;  %5444 = vmatpush1.bf16.msra.mxu0 %v12035_v35  ;;  %v15643_v4 = vld [vmem:[#allocation54_spill] sm:$0xff] }
 0x34e   : > { %v11235_v43 = vpack.c.bf16 %v3170_v59, %v3170_v59  ;;  %3038 = vst [vmem:[#allocation2 + $0x48] sm:$0xff] %v3012_v19  ;;  %10813 = vst.msk [vmem:[%s13389_s29 + $0x68] sm:$0xf] %vm2927_vm6, %v11229_v2  ;;  %v3120_v27 = vpack.c.bf16 %v3117_v22, %v3114_v13  ;;  %v11231_v10 = vpack.c.bf16 %v3117_v22, %v3117_v22  ;;  %5445 = vmatprep.subr.bf16.mxu0 %v12043_v1 }
 0x34f   : > { %10798 = vst [vmem:[%s13389_s29 + $0x3c] sm:$0xff] %v11222_v30  ;;  %3039 = vst [vmem:[#allocation2 + $0x50] sm:$0xff] %v3013_v18  ;;  %v2603_v47 = vpop.f32.mrb[80].mxu1  ;;  %4146 = vmatprep.mubr.bf16.mxu1 %v3013_v18  ;;  %5296 = vmatprep.mubr.bf16.mxu0 %v3013_v18  ;;  %v11056_v25 = vcombine.low %v11011_v8, %v11011_v8 }
 0x350   : > { %10823 = vst.msk [vmem:[%s13389_s29 + $0x8c] sm:$0xf] %vm2927_vm6, %v11235_v43  ;;  %10815 = vst.msk [vmem:[%s13389_s29 + $0x74] sm:$0xf] %vm2927_vm6, %v11231_v10  ;;  %v3059_v63 = vadd.f32 %v15641_v29, %v2603_v47  ;;  %v2605_v57 = vpop.f32.mrb[81].mxu1  ;;  %v11518_v37 = vpop.f32.mrb[80].mxu0  ;;  %4147 = vmatmul.mubr.bf16.gmra.mrb[144].mxu1 %v3012_v19  ;;  %5297 = vmatmul.mubr.bf16.gmra.mrb[108].mxu0 %v3012_v19 }
 0x351   : > { %3199 = vst.msk [vmem:[#allocation2 + $0xa0] sm:$0xff] %vm918_vm0, %v3173_v53  ;;  %3146 = vst.msk [vmem:[#allocation2 + $0x88] sm:$0xff] %vm918_vm0, %v3120_v27  ;;  %v3060_v44 = vadd.f32 %v15642_v28, %v2605_v57  ;;  %v3273_v40 = vadd.f32 %v11518_v37, %v13189_v7  ;;  %v2607_v31 = vpop.f32.mrb[82].mxu1  ;;  %v2814_v42 = vpop.f32.mrb[81].mxu0  ;;  %5446 = vmatpush1.bf16.msra.mxu0 %v12041_v51  ;;  %v5239_v22 = vsel %vm931_vm1, %v11056_v25, 0 }
 0x352   : > { %v3062_v21 = vadd.f32 %v15643_v4, %v2607_v31  ;;  %v3220_v33 = vadd.f32 %v13147_v49, %v2814_v42  ;;  %v2609_v41 = vpop.f32.mrb[83].mxu1  ;;  %v11519_v35 = vpop.f32.mrb[82].mxu0  ;;  %5447 = vmatprep.subr.bf16.mxu0 %v12051_v45  ;;  %v13517_v45 = vld [vmem:[%s15559_s6 + $0x3d4] ss:$8 sps:$4 sm:$0xff]  }
 0x353   : > { %v11224_v7 = vpack.c.bf16 %v3060_v44, %v3059_v63  ;;  %v11241_v13 = vpack.c.bf16 %v3273_v40, %v3273_v40  ;;  %v3063_v3 = vadd.f32 %v15644_v32, %v2609_v41  ;;  %v3276_v1 = vadd.f32 %v11519_v35, %v13193_v17  ;;  %v2817_v34 = vpop.f32.mrb[83].mxu0  ;;  %v15647_v41 = vld [vmem:[#allocation22_spill] sm:$0xff]  ;;  %v15648_v32 = vld [vmem:[#allocation24_spill] sm:$0xff] }
 0x354   : > { %v3065_v46 = vpack.c.bf16 %v3062_v21, %v3059_v63  ;;  %v11237_v5 = vpack.c.bf16 %v3220_v33, %v3220_v33  ;;  %v3223_v60 = vadd.f32 %v13158_v56, %v2817_v34 }
 0x355   : > { %10804 = vst [vmem:[%s13389_s29 + $0x48] sm:$0xff] %v11224_v7  ;;  %10837 = vst.msk [vmem:[%s13389_s29 + $0xb0] sm:$0xf] %vm2927_vm6, %v11241_v13  ;;  %v3066_v49 = vpack.c.bf16 %v3063_v3, %v3060_v44  ;;  %v11226_v59 = vpack.c.bf16 %v3063_v3, %v3062_v21  ;;  %v3279_v26 = vpack.c.bf16 %v3276_v1, %v3273_v40  ;;  %5448 = vmatpush1.bf16.msra.mxu0 %v12049_v61  ;;  %v15645_v44 = vld [vmem:[#allocation56_spill] sm:$0xff] }
 0x356   : > { %v11243_v19 = vpack.c.bf16 %v3276_v1, %v3276_v1  ;;  %3091 = vst [vmem:[#allocation2 + $0x60] sm:$0xff] %v3065_v46  ;;  %10829 = vst.msk [vmem:[%s13389_s29 + $0x98] sm:$0xf] %vm2927_vm6, %v11237_v5  ;;  %v3226_v17 = vpack.c.bf16 %v3223_v60, %v3220_v33  ;;  %v11239_v2 = vpack.c.bf16 %v3223_v60, %v3223_v60  ;;  %11058 = vmatprep.subr.msk.bf16.mxu0 %vm931_vm1, %v11057_v15  ;;  %v15646_v15 = vld [vmem:[#allocation20_spill] sm:$0xff] }
 0x357   : > { %10806 = vst [vmem:[%s13389_s29 + $0x54] sm:$0xff] %v11226_v59  ;;  %3092 = vst [vmem:[#allocation2 + $0x68] sm:$0xff] %v3066_v49  ;;  %v2613_v56 = vpop.f32.mrb[84].mxu1  ;;  %4156 = vmatprep.mubr.bf16.mxu1 %v3066_v49  ;;  %5306 = vmatprep.mubr.bf16.mxu0 %v3066_v49  ;;  %v15649_v49 = vld [vmem:[#allocation26_spill] sm:$0xff] }
 0x358   : > { %10839 = vst.msk [vmem:[%s13389_s29 + $0xbc] sm:$0xf] %vm2927_vm6, %v11243_v19  ;;  %10831 = vst.msk [vmem:[%s13389_s29 + $0xa4] sm:$0xf] %vm2927_vm6, %v11239_v2  ;;  %v3112_v18 = vadd.f32 %v13129_v54, %v2613_v56  ;;  %v2615_v30 = vpop.f32.mrb[85].mxu1  ;;  %v11522_v53 = vpop.f32.mrb[84].mxu0  ;;  %4157 = vmatmul.mubr.bf16.gmra.mrb[148].mxu1 %v3065_v46  ;;  %5307 = vmatmul.mubr.bf16.gmra.mrb[112].mxu0 %v3065_v46 }
 0x359   : > { %3305 = vst.msk [vmem:[#allocation2 + $0xd0] sm:$0xff] %vm918_vm0, %v3279_v26  ;;  %3252 = vst.msk [vmem:[#allocation2 + $0xb8] sm:$0xff] %vm918_vm0, %v3226_v17  ;;  %v3113_v43 = vadd.f32 %v13133_v38, %v2615_v30  ;;  %v3379_v51 = vadd.f32 %v11522_v53, %v13225_v16  ;;  %v2617_v27 = vpop.f32.mrb[86].mxu1  ;;  %v2830_v10 = vpop.f32.mrb[85].mxu0  ;;  %5450 = vmatpush1.bf16.msra.mxu0 %v5239_v22 }
 0x35a   : > { %v3115_v54 = vadd.f32 %v13135_v24, %v2617_v27  ;;  %v3326_v8 = vadd.f32 %v13198_v62, %v2830_v10  ;;  %v2619_v47 = vpop.f32.mrb[87].mxu1  ;;  %v11523_v29 = vpop.f32.mrb[86].mxu0  ;;  %6660 = vmatprep.subr.bf16.mxu0 %v13517_v45  ;;  %v15651_v10 = vld [vmem:[#allocation23_spill] sm:$0xff] }
 0x35b   : > { %v11228_v63 = vpack.c.bf16 %v3113_v43, %v3112_v18  ;;  %v11249_v38 = vpack.c.bf16 %v3379_v51, %v3379_v51  ;;  %v3116_v16 = vadd.f32 %v13166_v23, %v2619_v47  ;;  %v3382_v57 = vadd.f32 %v11523_v29, %v13229_v39  ;;  %v2833_v37 = vpop.f32.mrb[87].mxu0 }
 0x35c   : > { %v3118_v6 = vpack.c.bf16 %v3115_v54, %v3112_v18  ;;  %v11245_v28 = vpack.c.bf16 %v3326_v8, %v3326_v8  ;;  %v3329_v24 = vadd.f32 %v15645_v44, %v2833_v37  ;;  %v15653_v44 = vld [vmem:[#allocation27_spill] sm:$0xff] }
 0x35d   : > { %10812 = vst [vmem:[%s13389_s29 + $0x60] sm:$0xff] %v11228_v63  ;;  %10853 = vst.msk [vmem:[%s13389_s29 + $0xe0] sm:$0xf] %vm2927_vm6, %v11249_v38  ;;  %v3119_v62 = vpack.c.bf16 %v3116_v16, %v3113_v43  ;;  %v11230_v40 = vpack.c.bf16 %v3116_v16, %v3115_v54  ;;  %v3385_v31 = vpack.c.bf16 %v3382_v57, %v3379_v51  ;;  %v15652_v63 = vld [vmem:[#allocation25_spill] sm:$0xff] }
 0x35e   : > { %v11251_v42 = vpack.c.bf16 %v3382_v57, %v3382_v57  ;;  %3144 = vst [vmem:[#allocation2 + $0x78] sm:$0xff] %v3118_v6  ;;  %10845 = vst.msk [vmem:[%s13389_s29 + $0xc8] sm:$0xf] %vm2927_vm6, %v11245_v28  ;;  %v3332_v23 = vpack.c.bf16 %v3329_v24, %v3326_v8  ;;  %v11247_v39 = vpack.c.bf16 %v3329_v24, %v3329_v24 }
 0x35f   : > { %10814 = vst [vmem:[%s13389_s29 + $0x6c] sm:$0xff] %v11230_v40  ;;  %3145 = vst [vmem:[#allocation2 + $0x80] sm:$0xff] %v3119_v62  ;;  %v2623_v61 = vpop.f32.mrb[88].mxu1  ;;  %4166 = vmatprep.mubr.bf16.mxu1 %v3119_v62  ;;  %5316 = vmatprep.mubr.bf16.mxu0 %v3119_v62 }
 0x360   : > { %10855 = vst.msk [vmem:[%s13389_s29 + $0xec] sm:$0xf] %vm2927_vm6, %v11251_v42  ;;  %10847 = vst.msk [vmem:[%s13389_s29 + $0xd4] sm:$0xf] %vm2927_vm6, %v11247_v39  ;;  %v3165_v4 = vadd.f32 %v15646_v15, %v2623_v61  ;;  %v2625_v21 = vpop.f32.mrb[89].mxu1  ;;  %4167 = vmatmul.mubr.bf16.gmra.mrb[152].mxu1 %v3118_v6  ;;  %5317 = vmatmul.mubr.bf16.gmra.mrb[116].mxu0 %v3118_v6 }
 0x361   : > { %3411 = vst.msk [vmem:[#allocation2 + $0x100] sm:$0xff] %vm918_vm0, %v3385_v31  ;;  %3358 = vst.msk [vmem:[#allocation2 + $0xe8] sm:$0xff] %vm918_vm0, %v3332_v23  ;;  %v3166_v35 = vadd.f32 %v15647_v41, %v2625_v21  ;;  %v2627_v7 = vpop.f32.mrb[90].mxu1 }
 0x362   : > { %v11526_v33 = vpop.f32.mrb[88].mxu0  ;;  %v3168_v3 = vadd.f32 %v15648_v32, %v2627_v7  ;;  %v2629_v34 = vpop.f32.mrb[91].mxu1 }
 0x363   : > { %v3485_v25 = vadd.f32 %v11526_v33, %v13253_v36  ;;  %v2846_v13 = vpop.f32.mrb[89].mxu0  ;;  %v11232_v5 = vpack.c.bf16 %v3166_v35, %v3165_v4  ;;  %v3169_v59 = vadd.f32 %v15649_v49, %v2629_v34 }
 0x364   : > { %v3432_v1 = vadd.f32 %v13234_v14, %v2846_v13  ;;  %v11527_v46 = vpop.f32.mrb[90].mxu0  ;;  %v3171_v36 = vpack.c.bf16 %v3168_v3, %v3165_v4 }
 0x365   : > { %v11257_v60 = vpack.c.bf16 %v3485_v25, %v3485_v25  ;;  %v3488_v26 = vadd.f32 %v11527_v46, %v13257_v11  ;;  %v2849_v19 = vpop.f32.mrb[91].mxu0  ;;  %10820 = vst [vmem:[%s13389_s29 + $0x78] sm:$0xff] %v11232_v5  ;;  %v3172_v14 = vpack.c.bf16 %v3169_v59, %v3166_v35  ;;  %v11234_v22 = vpack.c.bf16 %v3169_v59, %v3168_v3  ;;  %v15650_v11 = vld [vmem:[#allocation21_spill] sm:$0xff]  ;;  %v15655_v35 = vld [vmem:[#allocation6_spill] sm:$0xff]  ;;  %v15656_v3 = vld [vmem:[#allocation8_spill] sm:$0xff] }
 0x366   : > { %v11253_v17 = vpack.c.bf16 %v3432_v1, %v3432_v1  ;;  %v3435_v2 = vadd.f32 %v13238_v9, %v2849_v19  ;;  %3197 = vst [vmem:[#allocation2 + $0x90] sm:$0xff] %v3171_v36  ;;  %v15657_v59 = vld [vmem:[#allocation10_spill] sm:$0xff] }
 0x367   : > { %10869 = vst.msk [vmem:[%s13389_s29 + $0x110] sm:$0xf] %vm2927_vm6, %v11257_v60  ;;  %v3491_v56 = vpack.c.bf16 %v3488_v26, %v3485_v25  ;;  %v11259_v18 = vpack.c.bf16 %v3488_v26, %v3488_v26  ;;  %10822 = vst [vmem:[%s13389_s29 + $0x84] sm:$0xff] %v11234_v22  ;;  %v2633_v9 = vpop.f32.mrb[92].mxu1  ;;  %4176 = vmatprep.mubr.bf16.mxu1 %v3172_v14  ;;  %5326 = vmatprep.mubr.bf16.mxu0 %v3172_v14 }
 0x368   : > { %10861 = vst.msk [vmem:[%s13389_s29 + $0xf8] sm:$0xf] %vm2927_vm6, %v11253_v17  ;;  %v3438_v30 = vpack.c.bf16 %v3435_v2, %v3432_v1  ;;  %v11255_v53 = vpack.c.bf16 %v3435_v2, %v3435_v2  ;;  %3198 = vst [vmem:[#allocation2 + $0x98] sm:$0xff] %v3172_v14  ;;  %v3218_v43 = vadd.f32 %v15650_v11, %v2633_v9  ;;  %v2635_v51 = vpop.f32.mrb[93].mxu1  ;;  %4177 = vmatmul.mubr.bf16.gmra.mrb[156].mxu1 %v3171_v36  ;;  %v15659_v11 = vld [vmem:[#allocation7_spill] sm:$0xff] }
 0x369   : > { %10871 = vst.msk [vmem:[%s13389_s29 + $0x11c] sm:$0xf] %vm2927_vm6, %v11259_v18  ;;  %5327 = vmatmul.mubr.bf16.gmra.mrb[120].mxu0 %v3171_v36  ;;  %v3219_v54 = vadd.f32 %v15651_v10, %v2635_v51  ;;  %v2637_v47 = vpop.f32.mrb[94].mxu1 }
 0x36a   : > { %3517 = vst.msk [vmem:[#allocation2 + $0x130] sm:$0xff] %vm918_vm0, %v3491_v56  ;;  %3464 = vst.msk [vmem:[#allocation2 + $0x118] sm:$0xff] %vm918_vm0, %v3438_v30  ;;  %v11530_v27 = vpop.f32.mrb[92].mxu0  ;;  %v3221_v38 = vadd.f32 %v15652_v63, %v2637_v47  ;;  %v2639_v57 = vpop.f32.mrb[95].mxu1  ;;  %v15661_v47 = vld [vmem:[#allocation11_spill] sm:$0xff] }
 0x36b   : > { %10863 = vst.msk [vmem:[%s13389_s29 + $0x104] sm:$0xf] %vm2927_vm6, %v11255_v53  ;;  %v3591_v8 = vadd.f32 %v11530_v27, %v13272_v58  ;;  %v2862_v29 = vpop.f32.mrb[93].mxu0  ;;  %v11236_v6 = vpack.c.bf16 %v3219_v54, %v3218_v43  ;;  %v3222_v24 = vadd.f32 %v15653_v44, %v2639_v57  ;;  %v15660_v27 = vld [vmem:[#allocation9_spill] sm:$0xff]  ;;  %v15663_v44 = vld [vmem:[#allocation14_spill] sm:$0xff] }
 0x36c   : > { %v3538_v16 = vadd.f32 %v13259_v52, %v2862_v29  ;;  %v11531_v37 = vpop.f32.mrb[94].mxu0  ;;  %v3224_v58 = vpack.c.bf16 %v3221_v38, %v3218_v43 }
 0x36d   : > { %v11265_v28 = vpack.c.bf16 %v3591_v8, %v3591_v8  ;;  %v3594_v62 = vadd.f32 %v11531_v37, %v13274_v20  ;;  %v2865_v40 = vpop.f32.mrb[95].mxu0  ;;  %10828 = vst [vmem:[%s13389_s29 + $0x90] sm:$0xff] %v11236_v6  ;;  %v3225_v52 = vpack.c.bf16 %v3222_v24, %v3219_v54  ;;  %v11238_v23 = vpack.c.bf16 %v3222_v24, %v3221_v38  ;;  %v15654_v20 = vld [vmem:[#allocation4_spill] sm:$0xff] }
 0x36e   : > { %v11261_v31 = vpack.c.bf16 %v3538_v16, %v3538_v16  ;;  %v3541_v42 = vadd.f32 %v13261_v48, %v2865_v40  ;;  %3250 = vst [vmem:[#allocation2 + $0xa8] sm:$0xff] %v3224_v58  ;;  %v15662_v37 = vld [vmem:[#allocation12_spill] sm:$0xff] }
 0x36f   : > { %10885 = vst.msk [vmem:[%s13389_s29 + $0x140] sm:$0xf] %vm2927_vm6, %v11265_v28  ;;  %v3597_v39 = vpack.c.bf16 %v3594_v62, %v3591_v8  ;;  %v11267_v61 = vpack.c.bf16 %v3594_v62, %v3594_v62  ;;  %10830 = vst [vmem:[%s13389_s29 + $0x9c] sm:$0xff] %v11238_v23  ;;  %v2643_v48 = vpop.f32.mrb[96].mxu1  ;;  %4186 = vmatprep.mubr.bf16.mxu1 %v3225_v52  ;;  %5336 = vmatprep.mubr.bf16.mxu0 %v3225_v52  ;;  %v15664_v40 = vld [vmem:[#allocation16_spill] sm:$0xff] }
 0x370   : > { %10877 = vst.msk [vmem:[%s13389_s29 + $0x128] sm:$0xf] %vm2927_vm6, %v11261_v31  ;;  %v3544_v15 = vpack.c.bf16 %v3541_v42, %v3538_v16  ;;  %v11263_v4 = vpack.c.bf16 %v3541_v42, %v3541_v42  ;;  %3251 = vst [vmem:[#allocation2 + $0xb0] sm:$0xff] %v3225_v52  ;;  %v3271_v21 = vadd.f32 %v15654_v20, %v2643_v48  ;;  %v2645_v33 = vpop.f32.mrb[97].mxu1  ;;  %4187 = vmatmul.mubr.bf16.gmra.mrb[160].mxu1 %v3224_v58  ;;  %v15665_v52 = vld [vmem:[#allocation18_spill] sm:$0xff]  ;;  %v15666_v48 = vld [vmem:[#allocation13_spill] sm:$0xff] }
 0x371   : > { %10887 = vst.msk [vmem:[%s13389_s29 + $0x14c] sm:$0xf] %vm2927_vm6, %v11267_v61  ;;  %5337 = vmatmul.mubr.bf16.gmra.mrb[124].mxu0 %v3224_v58  ;;  %v3272_v25 = vadd.f32 %v15655_v35, %v2645_v33  ;;  %v2647_v13 = vpop.f32.mrb[98].mxu1  ;;  %v15667_v33 = vld [vmem:[#allocation15_spill] sm:$0xff] }
 0x372   : > { %3623 = vst.msk [vmem:[#allocation2 + $0x160] sm:$0xff] %vm918_vm0, %v3597_v39  ;;  %3570 = vst.msk [vmem:[#allocation2 + $0x148] sm:$0xff] %vm918_vm0, %v3544_v15  ;;  %v11534_v41 = vpop.f32.mrb[96].mxu0  ;;  %v3274_v1 = vadd.f32 %v15656_v3, %v2647_v13  ;;  %v2649_v46 = vpop.f32.mrb[99].mxu1  ;;  %v15669_v3 = vld [vmem:[#allocation19_spill] sm:$0xff] }
 0x373   : > { %10879 = vst.msk [vmem:[%s13389_s29 + $0x134] sm:$0xf] %vm2927_vm6, %v11263_v4  ;;  %v3679_v7 = vadd.f32 %v11534_v41, %v12970_v55  ;;  %v2878_v32 = vpop.f32.mrb[97].mxu0  ;;  %v11240_v60 = vpack.c.bf16 %v3272_v25, %v3271_v21  ;;  %v3275_v26 = vadd.f32 %v15657_v59, %v2649_v46 }
 0x374   : > { %v3644_v34 = vadd.f32 %v13278_v12, %v2878_v32  ;;  %v11535_v5 = vpop.f32.mrb[98].mxu0  ;;  %v3277_v55 = vpack.c.bf16 %v3274_v1, %v3271_v21 }
 0x375   : > { %v11273_v49 = vpack.c.bf16 %v3679_v7, %v3679_v7  ;;  %v3682_v19 = vadd.f32 %v11535_v5, %v12991_v50  ;;  %v2881_v36 = vpop.f32.mrb[99].mxu0  ;;  %10836 = vst [vmem:[%s13389_s29 + $0xa8] sm:$0xff] %v11240_v60  ;;  %v3278_v12 = vpack.c.bf16 %v3275_v26, %v3272_v25  ;;  %v11242_v14 = vpack.c.bf16 %v3275_v26, %v3274_v1  ;;  %v15668_v25 = vld [vmem:[#allocation17_spill] sm:$0xff] }
 0x376   : > { %v11269_v17 = vpack.c.bf16 %v3644_v34, %v3644_v34  ;;  %v3647_v2 = vadd.f32 %v13280_v0, %v2881_v36  ;;  %3303 = vst [vmem:[#allocation2 + $0xc0] sm:$0xff] %v3277_v55  ;;  %v15658_v0 = vld [vmem:[#allocation5_spill] sm:$0xff] }
 0x377   : > { %10901 = vst.msk [vmem:[%s13389_s29 + $0x170] sm:$0xf] %vm2927_vm6, %v11273_v49  ;;  %v3685_v22 = vpack.c.bf16 %v3682_v19, %v3679_v7  ;;  %v11275_v56 = vpack.c.bf16 %v3682_v19, %v3682_v19  ;;  %10838 = vst [vmem:[%s13389_s29 + $0xb4] sm:$0xff] %v11242_v14  ;;  %v2653_v50 = vpop.f32.mrb[100].mxu1  ;;  %4196 = vmatprep.mubr.bf16.mxu1 %v3278_v12  ;;  %5346 = vmatprep.mubr.bf16.mxu0 %v3278_v12  ;;  %v15670_v49 = vld [vmem:[#allocation28_spill] sm:$0xff]  ;;  %v15671_v19 = vld [vmem:[#allocation29_spill] sm:$0xff] }
 0x378   : > { %10893 = vst.msk [vmem:[%s13389_s29 + $0x158] sm:$0xf] %vm2927_vm6, %v11269_v17  ;;  %v3650_v18 = vpack.c.bf16 %v3647_v2, %v3644_v34  ;;  %v11271_v30 = vpack.c.bf16 %v3647_v2, %v3647_v2  ;;  %3304 = vst [vmem:[#allocation2 + $0xc8] sm:$0xff] %v3278_v12  ;;  %v3324_v53 = vadd.f32 %v15658_v0, %v2653_v50  ;;  %v2655_v9 = vpop.f32.mrb[101].mxu1  ;;  %4197 = vmatmul.mubr.bf16.gmra.mrb[164].mxu1 %v3277_v55  ;;  %v15672_v17 = vld [vmem:[#allocation30_spill] sm:$0xff] }
 0x379   : > { %10903 = vst.msk [vmem:[%s13389_s29 + $0x17c] sm:$0xf] %vm2927_vm6, %v11275_v56  ;;  %5347 = vmatmul.mubr.bf16.gmra.mrb[128].mxu0 %v3277_v55  ;;  %v3325_v43 = vadd.f32 %v15659_v11, %v2655_v9  ;;  %v2657_v51 = vpop.f32.mrb[102].mxu1 }
 0x37a   : > { %3711 = vst.msk [vmem:[#allocation2 + $0x190] sm:$0xff] %vm918_vm0, %v3685_v22  ;;  %3676 = vst.msk [vmem:[#allocation2 + $0x178] sm:$0xff] %vm918_vm0, %v3650_v18  ;;  %v3327_v10 = vadd.f32 %v15660_v27, %v2657_v51  ;;  %v2659_v54 = vpop.f32.mrb[103].mxu1  ;;  %v15673_v22 = vld [vmem:[#allocation31_spill] sm:$0xff] }
 0x37b   : > { %10895 = vst.msk [vmem:[%s13389_s29 + $0x164] sm:$0xf] %vm2927_vm6, %v11271_v30  ;;  %v11244_v8 = vpack.c.bf16 %v3325_v43, %v3324_v53  ;;  %v3328_v29 = vadd.f32 %v15661_v47, %v2659_v54  ;;  %vm10352_vm6 = vcmask 1048512  }
 0x37c   : > { %v3330_v63 = vpack.c.bf16 %v3327_v10, %v3324_v53  ;;  %v15674_v53 = vld [vmem:[#allocation32_spill] sm:$0xff] }
 0x37d   : > { %10844 = vst [vmem:[%s13389_s29 + $0xc0] sm:$0xff] %v11244_v8  ;;  %v3331_v38 = vpack.c.bf16 %v3328_v29, %v3325_v43  ;;  %v11246_v16 = vpack.c.bf16 %v3328_v29, %v3327_v10  ;;  %v15675_v43 = vld [vmem:[#allocation34_spill] sm:$0xff]  ;;  %v15676_v10 = vld [vmem:[#allocation36_spill] sm:$0xff] }
 0x37e   : > { %3356 = vst [vmem:[#allocation2 + $0xd8] sm:$0xff] %v3330_v63  ;;  %v15677_v29 = vld [vmem:[#allocation38_spill] sm:$0xff] }
 0x37f   : > { %10846 = vst [vmem:[%s13389_s29 + $0xcc] sm:$0xff] %v11246_v16  ;;  %3357 = vst [vmem:[#allocation2 + $0xe0] sm:$0xff] %v3331_v38  ;;  %v2663_v57 = vpop.f32.mrb[104].mxu1  ;;  %4206 = vmatprep.mubr.bf16.mxu1 %v3331_v38  ;;  %5356 = vmatprep.mubr.bf16.mxu0 %v3331_v38 }
 0x380   : > { %v3377_v6 = vadd.f32 %v15662_v37, %v2663_v57  ;;  %v2665_v28 = vpop.f32.mrb[105].mxu1  ;;  %4207 = vmatmul.mubr.bf16.gmra.mrb[168].mxu1 %v3330_v63 }
 0x381   : > { %5357 = vmatmul.mubr.bf16.gmra.mrb[132].mxu0 %v3330_v63  ;;  %v3378_v24 = vadd.f32 %v15663_v44, %v2665_v28  ;;  %v2667_v62 = vpop.f32.mrb[106].mxu1 }
 0x382   : > { %v3380_v58 = vadd.f32 %v15664_v40, %v2667_v62  ;;  %v2669_v31 = vpop.f32.mrb[107].mxu1 }
 0x383   : > { %v11248_v42 = vpack.c.bf16 %v3378_v24, %v3377_v6  ;;  %v3381_v23 = vadd.f32 %v15665_v52, %v2669_v31 }
 0x384   : > { %v3383_v39 = vpack.c.bf16 %v3380_v58, %v3377_v6  ;;  %v15678_v6 = vld [vmem:[#allocation40_spill] sm:$0xff] }
 0x385   : > { %10852 = vst [vmem:[%s13389_s29 + $0xd8] sm:$0xff] %v11248_v42  ;;  %v3384_v61 = vpack.c.bf16 %v3381_v23, %v3378_v24  ;;  %v11250_v15 = vpack.c.bf16 %v3381_v23, %v3380_v58  ;;  %v15679_v24 = vld [vmem:[#allocation41_spill] sm:$0xff]  ;;  %v15680_v58 = vld [vmem:[#allocation42_spill] sm:$0xff]  ;;  %v15681_v23 = vld [vmem:[#allocation43_spill] sm:$0xff] }
 0x386   : > { %3409 = vst [vmem:[#allocation2 + $0xf0] sm:$0xff] %v3383_v39 }
 0x387   : > { %10854 = vst [vmem:[%s13389_s29 + $0xe4] sm:$0xff] %v11250_v15  ;;  %3410 = vst [vmem:[#allocation2 + $0xf8] sm:$0xff] %v3384_v61  ;;  %v2673_v4 = vpop.f32.mrb[108].mxu1  ;;  %4216 = vmatprep.mubr.bf16.mxu1 %v3384_v61  ;;  %5366 = vmatprep.mubr.bf16.mxu0 %v3384_v61 }
 0x388   : > { %v3430_v20 = vadd.f32 %v15666_v48, %v2673_v4  ;;  %v2675_v21 = vpop.f32.mrb[109].mxu1  ;;  %4217 = vmatmul.mubr.bf16.gmra.mrb[172].mxu1 %v3383_v39 }
 0x389   : > { %5367 = vmatmul.mubr.bf16.gmra.mrb[136].mxu0 %v3383_v39  ;;  %v3431_v41 = vadd.f32 %v15667_v33, %v2675_v21  ;;  %v2677_v35 = vpop.f32.mrb[110].mxu1 }
 0x38a   : > { %v3433_v7 = vadd.f32 %v15668_v25, %v2677_v35  ;;  %v2679_v13 = vpop.f32.mrb[111].mxu1 }
 0x38b   : > { %v11252_v32 = vpack.c.bf16 %v3431_v41, %v3430_v20  ;;  %v3434_v1 = vadd.f32 %v15669_v3, %v2679_v13 }
 0x38c   : > { %v3436_v34 = vpack.c.bf16 %v3433_v7, %v3430_v20  ;;  %v15682_v20 = vld [vmem:[#allocation44_spill] sm:$0xff] }
 0x38d   : > { %10860 = vst [vmem:[%s13389_s29 + $0xf0] sm:$0xff] %v11252_v32  ;;  %v3437_v46 = vpack.c.bf16 %v3434_v1, %v3431_v41  ;;  %v11254_v5 = vpack.c.bf16 %v3434_v1, %v3433_v7  ;;  %v15683_v41 = vld [vmem:[#allocation45_spill] sm:$0xff]  ;;  %v15684_v7 = vld [vmem:[#allocation46_spill] sm:$0xff]  ;;  %v15685_v1 = vld [vmem:[#allocation47_spill] sm:$0xff] }
 0x38e   : > { %3462 = vst [vmem:[#allocation2 + $0x108] sm:$0xff] %v3436_v34 }
 0x38f   : > { %10862 = vst [vmem:[%s13389_s29 + $0xfc] sm:$0xff] %v11254_v5  ;;  %3463 = vst [vmem:[#allocation2 + $0x110] sm:$0xff] %v3437_v46  ;;  %v2683_v60 = vpop.f32.mrb[112].mxu1  ;;  %4226 = vmatprep.mubr.bf16.mxu1 %v3437_v46  ;;  %5376 = vmatprep.mubr.bf16.mxu0 %v3437_v46 }
 0x390   : > { %v3483_v59 = vadd.f32 %v15670_v49, %v2683_v60  ;;  %v2685_v26 = vpop.f32.mrb[113].mxu1  ;;  %4227 = vmatmul.mubr.bf16.gmra.mrb[176].mxu1 %v3436_v34 }
 0x391   : > { %5377 = vmatmul.mubr.bf16.gmra.mrb[140].mxu0 %v3436_v34  ;;  %v3484_v36 = vadd.f32 %v15671_v19, %v2685_v26  ;;  %v2687_v55 = vpop.f32.mrb[114].mxu1 }
 0x392   : > { %v3486_v2 = vadd.f32 %v15672_v17, %v2687_v55  ;;  %v2689_v12 = vpop.f32.mrb[115].mxu1 }
 0x393   : > { %v11256_v14 = vpack.c.bf16 %v3484_v36, %v3483_v59  ;;  %v3487_v56 = vadd.f32 %v15673_v22, %v2689_v12  ;;  %v15688_v12 = vld [vmem:[#allocation37_spill] sm:$0xff] }
 0x394   : > { %v13619_v18 = vpack.c.bf16 %v3486_v2, %v3483_v59  ;;  %v15686_v59 = vld [vmem:[#allocation33_spill] sm:$0xff] }
 0x395   : > { %10868 = vst [vmem:[%s13389_s29 + $0x108] sm:$0xff] %v11256_v14  ;;  %v13622_v30 = vpack.c.bf16 %v3487_v56, %v3484_v36  ;;  %v11258_v50 = vpack.c.bf16 %v3487_v56, %v3486_v2  ;;  %v15687_v36 = vld [vmem:[#allocation35_spill] sm:$0xff]  ;;  %v13673_v2 = vld [vmem:[#allocation2] sm:$0xff] }
 0x397   : > { %10870 = vst [vmem:[%s13389_s29 + $0x114] sm:$0xff] %v11258_v50  ;;  %v2693_v0 = vpop.f32.mrb[116].mxu1  ;;  %4236 = vmatprep.mubr.bf16.mxu1 %v13622_v30  ;;  %5386 = vmatprep.mubr.bf16.mxu0 %v13622_v30  ;;  %v15689_v50 = vld [vmem:[#allocation39_spill] sm:$0xff] }
 0x398   : > { %v3536_v9 = vadd.f32 %v15674_v53, %v2693_v0  ;;  %v2695_v11 = vpop.f32.mrb[117].mxu1  ;;  %4237 = vmatmul.mubr.bf16.gmra.mrb[180].mxu1 %v13619_v18 }
 0x399   : > { %5387 = vmatmul.mubr.bf16.gmra.mrb[144].mxu0 %v13619_v18  ;;  %v3537_v51 = vadd.f32 %v15675_v43, %v2695_v11  ;;  %v2697_v27 = vpop.f32.mrb[118].mxu1  ;;  %v3714_v43 = vld [vmem:[#allocation2 + $0x10] sm:$0xff] }
 0x39a   : > { %v3539_v54 = vadd.f32 %v15676_v10, %v2697_v27  ;;  %v2699_v8 = vpop.f32.mrb[119].mxu1  ;;  %v12059_v27 = vld [vmem:[%s15559_s6 + $0x2e4] ss:$8 sps:$4 sm:$0xff]   ;;  %v12057_v10 = vld [vmem:[%s15559_s6 + $0x2e0] ss:$8 sps:$4 sm:$0xff]  }
 0x39b   : > { %v11260_v47 = vpack.c.bf16 %v3537_v51, %v3536_v9  ;;  %v3540_v63 = vadd.f32 %v15677_v29, %v2699_v8  ;;  %v13704_v8 = vld [vmem:[%s15559_s6 + $0x3d0] ss:$8 sps:$4 sm:$0xff]   ;;  %v3717_v29 = vld [vmem:[#allocation2 + $0x28] sm:$0xff] }
 0x39c   : > { %v13633_v38 = vpack.c.bf16 %v3539_v54, %v3536_v9 }
 0x39d   : > { %10876 = vst [vmem:[%s13389_s29 + $0x120] sm:$0xff] %v11260_v47  ;;  %v13636_v16 = vpack.c.bf16 %v3540_v63, %v3537_v51  ;;  %v11262_v57 = vpack.c.bf16 %v3540_v63, %v3539_v54  ;;  %v12054_v51 = vld [vmem:[%s15559_s6 + $0x2d0] ss:$8 sps:$4 sm:$0xff]   ;;  %v12065_v54 = vld [vmem:[%s15559_s6 + $0x2f4] ss:$8 sps:$4 sm:$0xff]  }
 0x39e   : > { %v12063_v47 = vld [vmem:[%s15559_s6 + $0x2f0] ss:$8 sps:$4 sm:$0xff]   ;;  %v12068_v63 = vld [vmem:[%s15559_s6 + $0x304] ss:$8 sps:$4 sm:$0xff]  }
 0x39f   : > { %10878 = vst [vmem:[%s13389_s29 + $0x12c] sm:$0xff] %v11262_v57  ;;  %v2703_v37 = vpop.f32.mrb[120].mxu1  ;;  %4246 = vmatprep.mubr.bf16.mxu1 %v13636_v16  ;;  %5396 = vmatprep.mubr.bf16.mxu0 %v13636_v16  ;;  %v13715_v57 = vld [vmem:[%s15559_s6 + $0x3e4] ss:$8 sps:$4 sm:$0xff]  }
 0x3a0   : > { %v3589_v28 = vadd.f32 %v15678_v6, %v2703_v37  ;;  %v2705_v44 = vpop.f32.mrb[121].mxu1  ;;  %4247 = vmatmul.mubr.bf16.gmra.mrb[184].mxu1 %v13633_v38  ;;  %v12066_v37 = vld [vmem:[%s15559_s6 + $0x300] ss:$8 sps:$4 sm:$0xff]  }
 0x3a1   : > { %5397 = vmatmul.mubr.bf16.gmra.mrb[148].mxu0 %v13633_v38  ;;  %v3590_v62 = vadd.f32 %v15679_v24, %v2705_v44  ;;  %v2707_v40 = vpop.f32.mrb[122].mxu1  ;;  %v13728_v6 = vld [vmem:[%s15559_s6 + $0x3e0] ss:$8 sps:$4 sm:$0xff]   ;;  %v13737_v44 = vld [vmem:[%s15559_s6 + $0x3f4] ss:$8 sps:$4 sm:$0xff]  }
 0x3a2   : > { %v3592_v31 = vadd.f32 %v15680_v58, %v2707_v40  ;;  %v2709_v42 = vpop.f32.mrb[123].mxu1  ;;  %v12072_v24 = vld [vmem:[%s15559_s6 + $0x310] ss:$8 sps:$4 sm:$0xff]   ;;  %v13748_v40 = vld [vmem:[#allocation2 + $0x40] sm:$0xff] }
 0x3a3   : > { %v11264_v52 = vpack.c.bf16 %v3590_v62, %v3589_v28  ;;  %v3593_v39 = vadd.f32 %v15681_v23, %v2709_v42  ;;  %v12077_v58 = vld [vmem:[%s15559_s6 + $0x324] ss:$8 sps:$4 sm:$0xff]   ;;  %v12075_v42 = vld [vmem:[%s15559_s6 + $0x320] ss:$8 sps:$4 sm:$0xff]   ;;  %v12080_v23 = vld [vmem:[%s15559_s6 + $0x334] ss:$8 sps:$4 sm:$0xff]  }
 0x3a4   : > { %v13647_v61 = vpack.c.bf16 %v3592_v31, %v3589_v28  ;;  %v12074_v28 = vld [vmem:[%s15559_s6 + $0x314] ss:$8 sps:$4 sm:$0xff]  }
 0x3a5   : > { %10884 = vst [vmem:[%s13389_s29 + $0x138] sm:$0xff] %v11264_v52  ;;  %v13650_v15 = vpack.c.bf16 %v3593_v39, %v3590_v62  ;;  %v11266_v4 = vpack.c.bf16 %v3593_v39, %v3592_v31  ;;  %v13746_v62 = vld [vmem:[%s15559_s6 + $0x3f0] ss:$8 sps:$4 sm:$0xff]   ;;  %v13757_v31 = vld [vmem:[%s15559_s6 + $0x404] ss:$8 sps:$4 sm:$0xff]  }
 0x3a6   : > { %v13772_v52 = vld [vmem:[%s15559_s6 + $0x400] ss:$8 sps:$4 sm:$0xff]   ;;  %v13781_v39 = vld [vmem:[%s15559_s6 + $0x414] ss:$8 sps:$4 sm:$0xff]  }
 0x3a7   : > { %10886 = vst [vmem:[%s13389_s29 + $0x144] sm:$0xff] %v11266_v4  ;;  %v2713_v48 = vpop.f32.mrb[124].mxu1  ;;  %4256 = vmatprep.mubr.bf16.mxu1 %v13650_v15  ;;  %5406 = vmatprep.mubr.bf16.mxu0 %v13650_v15  ;;  %v12078_v4 = vld [vmem:[%s15559_s6 + $0x330] ss:$8 sps:$4 sm:$0xff]  }
 0x3a8   : > { %v3642_v21 = vadd.f32 %v15682_v20, %v2713_v48  ;;  %v2715_v33 = vpop.f32.mrb[125].mxu1  ;;  %4257 = vmatmul.mubr.bf16.gmra.mrb[188].mxu1 %v13647_v61  ;;  %v13790_v48 = vld [vmem:[%s15559_s6 + $0x410] ss:$8 sps:$4 sm:$0xff]  }
 0x3a9   : > { %5407 = vmatmul.mubr.bf16.gmra.mrb[152].mxu0 %v13647_v61  ;;  %v3643_v35 = vadd.f32 %v15683_v41, %v2715_v33  ;;  %v2717_v25 = vpop.f32.mrb[126].mxu1  ;;  %v13792_v20 = vld [vmem:[#allocation2 + $0x58] sm:$0xff]  ;;  %v13801_v33 = vld [vmem:[%s15559_s6 + $0x424] ss:$8 sps:$4 sm:$0xff]   ;;  %v11119_v41 = vld [vmem:[%s15559_s6 + $0x430] sm:$0xff] }
 0x3aa   : > { %v3645_v13 = vadd.f32 %v15684_v7, %v2717_v25  ;;  %v2719_v32 = vpop.f32.mrb[127].mxu1  ;;  %v13819_v25 = vld [vmem:[%s15559_s6 + $0x420] ss:$8 sps:$4 sm:$0xff]   ;;  %v12089_v7 = vld [vmem:[%s15559_s6 + $0x354] ss:$8 sps:$4 sm:$0xff]  }
 0x3ab   : > { %v11268_v3 = vpack.c.bf16 %v3643_v35, %v3642_v21  ;;  %v3646_v34 = vadd.f32 %v15685_v1, %v2719_v32  ;;  %v11164_v32 = vcombine.low %v11119_v41, %v11119_v41  ;;  %v13831_v1 = vld [vmem:[#allocation2 + $0x70] sm:$0xff] }
 0x3ac   : > { %v13661_v46 = vpack.c.bf16 %v3645_v13, %v3642_v21  ;;  %v12086_v21 = vld [vmem:[%s15559_s6 + $0x344] ss:$8 sps:$4 sm:$0xff]  }
 0x3ad   : > { %10892 = vst [vmem:[%s13389_s29 + $0x150] sm:$0xff] %v11268_v3  ;;  %v13664_v5 = vpack.c.bf16 %v3646_v34, %v3643_v35  ;;  %v11270_v60 = vpack.c.bf16 %v3646_v34, %v3645_v13  ;;  %v12084_v35 = vld [vmem:[%s15559_s6 + $0x340] ss:$8 sps:$4 sm:$0xff]   ;;  %v13825_v13 = vcombine.high %v11119_v41, %v11119_v41  ;;  %v12087_v3 = vld [vmem:[%s15559_s6 + $0x350] ss:$8 sps:$4 sm:$0xff]  }
 0x3ae   : > { %v12095_v34 = vld [vmem:[%s15559_s6 + $0x364] ss:$8 sps:$4 sm:$0xff]   ;;  %v6122_v41 = vld [vmem:[#allocation2 + $0x110] sm:$0xff] }
 0x3af   : > { %10894 = vst [vmem:[%s13389_s29 + $0x15c] sm:$0xff] %v11270_v60  ;;  %v2723_v49 = vpop.f32.mrb[128].mxu1  ;;  %4266 = vmatprep.mubr.bf16.mxu1 %v13664_v5  ;;  %5416 = vmatprep.mubr.bf16.mxu0 %v13664_v5  ;;  %v13839_v60 = vsel %vm931_vm1, %v11164_v32, 0 }
 0x3b0   : > { %v3677_v26 = vadd.f32 %v2723_v49, %v15686_v59  ;;  %v2725_v19 = vpop.f32.mrb[129].mxu1  ;;  %4267 = vmatmul.mubr.bf16.gmra.mrb[192].mxu1 %v13661_v46  ;;  %v12093_v49 = vld [vmem:[%s15559_s6 + $0x360] ss:$8 sps:$4 sm:$0xff]   ;;  %v12098_v59 = vld [vmem:[%s15559_s6 + $0x374] ss:$8 sps:$4 sm:$0xff]  }
 0x3b1   : > { %5417 = vmatmul.mubr.bf16.gmra.mrb[156].mxu0 %v13661_v46  ;;  %v3678_v55 = vadd.f32 %v2725_v19, %v15687_v36  ;;  %v2727_v17 = vpop.f32.mrb[130].mxu1  ;;  %4309 = vmatprep.mubr.bf16.mxu1 %v13673_v2  ;;  %v13857_v19 = vld [vmem:[#allocation2 + $0x88] sm:$0xff] }
 0x3b2   : > { %v3680_v14 = vadd.f32 %v2727_v17, %v15688_v12  ;;  %v2729_v22 = vpop.f32.mrb[131].mxu1  ;;  %v12101_v36 = vld [vmem:[%s15559_s6 + $0x384] ss:$8 sps:$4 sm:$0xff]   ;;  %v12104_v17 = vld [vmem:[%s15559_s6 + $0x394] ss:$8 sps:$4 sm:$0xff]  }
 0x3b3   : > { %v11272_v56 = vpack.c.bf16 %v3678_v55, %v3677_v26  ;;  %v3681_v0 = vadd.f32 %v2729_v22, %v15689_v50  ;;  %v12102_v12 = vld [vmem:[%s15559_s6 + $0x390] ss:$8 sps:$4 sm:$0xff]   ;;  %v12110_v22 = vld [vmem:[%s15559_s6 + $0x3a4] ss:$8 sps:$4 sm:$0xff]   ;;  %v12113_v50 = vld [vmem:[%s15559_s6 + $0x3b4] ss:$8 sps:$4 sm:$0xff]  }
 0x3b4   : > { %v13678_v53 = vpack.c.bf16 %v3680_v14, %v3677_v26  ;;  %v12096_v26 = vld [vmem:[%s15559_s6 + $0x370] ss:$8 sps:$4 sm:$0xff]  }
 0x3b5   : > { %10900 = vst [vmem:[%s13389_s29 + $0x168] sm:$0xff] %v11272_v56  ;;  %v13681_v9 = vpack.c.bf16 %v3681_v0, %v3678_v55  ;;  %v11274_v11 = vpack.c.bf16 %v3681_v0, %v3680_v14  ;;  %v12099_v55 = vld [vmem:[%s15559_s6 + $0x380] ss:$8 sps:$4 sm:$0xff]   ;;  %v12111_v0 = vld [vmem:[%s15559_s6 + $0x3b0] ss:$8 sps:$4 sm:$0xff]  }
 0x3b6   : > { %v13877_v14 = vld [vmem:[#allocation2 + $0xa0] sm:$0xff] }
 0x3b7   : > { %10902 = vst [vmem:[%s13389_s29 + $0x174] sm:$0xff] %v11274_v11  ;;  %5426 = vmatprep.mubr.bf16.mxu0 %v13681_v9  ;;  %v12108_v56 = vld [vmem:[%s15559_s6 + $0x3a0] ss:$8 sps:$4 sm:$0xff]   ;;  %v13897_v11 = vld [vmem:[#allocation2 + $0xb8] sm:$0xff] }
 0x3b8   : > { %10951 = vmatmul.mubr.msk.bf16.vlgmr.msra.gmra.mrb[132].mxu1 %vm918_vm0, %v3714_v43  ;;  %v12116_v43 = vld [vmem:[%s15559_s6 + $0x3c4] ss:$8 sps:$4 sm:$0xff]  }
 0x3b9   : > { %5427 = vmatmul.mubr.bf16.gmra.mrb[160].mxu0 %v13678_v53  ;;  %4319 = vmatprep.mubr.bf16.mxu1 %v13673_v2 }
 0x3ba   : > { %5469 = vmatprep.mubr.bf16.mxu0 %v13673_v2  ;;  %6468 = vmatpush1.bf16.msra.mxu1 %v12054_v51  ;;  %v12114_v51 = vld [vmem:[%s15559_s6 + $0x3c0] ss:$8 sps:$4 sm:$0xff]  }
 0x3bb   : > { %6469 = vmatprep.subr.bf16.mxu1 %v12059_v27  ;;  %v13911_v27 = vld [vmem:[#allocation2 + $0xd0] sm:$0xff] }
 0x3be   : > { %6470 = vmatpush1.bf16.msra.mxu1 %v12057_v10  ;;  %v13920_v10 = vld [vmem:[#allocation2 + $0xe8] sm:$0xff] }
 0x3bf   : > { %6471 = vmatprep.subr.bf16.mxu1 %v12065_v54  ;;  %v13936_v54 = vld [vmem:[#allocation2 + $0x118] sm:$0xff] }
 0x3c0   : > { %10952 = vmatmul.mubr.msk.bf16.gmra.mrb[136].mxu1 %vm918_vm0, %v3717_v29 }
 0x3c1   : > { %11059 = vmatmul.mubr.msk.bf16.vlgmr.msra.gmra.mrb[100].mxu0 %vm918_vm0, %v3717_v29  ;;  %4329 = vmatprep.mubr.bf16.mxu1 %v13673_v2  ;;  %v13952_v29 = vld [vmem:[#allocation2 + $0x148] sm:$0xff] }
 0x3c2   : > { %5479 = vmatprep.mubr.bf16.mxu0 %v13673_v2  ;;  %6661 = vmatpush1.bf16.msra.mxu0 %v13704_v8 }
 0x3c3   : > { %6472 = vmatpush1.bf16.msra.mxu1 %v12063_v47  ;;  %6662 = vmatprep.subr.bf16.mxu0 %v13715_v57  ;;  %v13944_v47 = vld [vmem:[#allocation2 + $0x130] sm:$0xff] }
 0x3c4   : > { %6473 = vmatprep.subr.bf16.mxu1 %v12068_v63  ;;  %v13960_v63 = vld [vmem:[#allocation2 + $0x160] sm:$0xff] }
 0x3c6   : > { %6663 = vmatpush1.bf16.msra.mxu0 %v13728_v6 }
 0x3c7   : > { %6474 = vmatpush1.bf16.msra.mxu1 %v12066_v37  ;;  %6664 = vmatprep.subr.bf16.mxu0 %v13737_v44  ;;  %v13968_v37 = vld [vmem:[#allocation2 + $0x178] sm:$0xff] }
 0x3c8   : > { %6475 = vmatprep.subr.bf16.mxu1 %v12074_v28  ;;  %10953 = vmatmul.mubr.msk.bf16.gmra.mrb[140].mxu1 %vm918_vm0, %v13748_v40  ;;  %v6095_v28 = vld [vmem:[#allocation2 + $0x38] sm:$0xff] }
 0x3c9   : > { %11060 = vmatmul.mubr.msk.bf16.gmra.mrb[104].mxu0 %vm918_vm0, %v13748_v40  ;;  %4339 = vmatprep.mubr.bf16.mxu1 %v13673_v2 }
 0x3ca   : > { %5489 = vmatprep.mubr.bf16.mxu0 %v13673_v2  ;;  %6665 = vmatpush1.bf16.msra.mxu0 %v13746_v62 }
 0x3cb   : > { %6476 = vmatpush1.bf16.msra.mxu1 %v12072_v24  ;;  %6666 = vmatprep.subr.bf16.mxu0 %v13757_v31  ;;  %v13975_v24 = vld [vmem:[#allocation2 + $0x190] sm:$0xff] }
 0x3cc   : > { %6477 = vmatprep.subr.bf16.mxu1 %v12077_v58  ;;  %v6094_v58 = vld [vmem:[#allocation2 + $0x30] sm:$0xff] }
 0x3ce   : > { %6667 = vmatpush1.bf16.msra.mxu0 %v13772_v52 }
 0x3cf   : > { %6478 = vmatpush1.bf16.msra.mxu1 %v12075_v42  ;;  %6668 = vmatprep.subr.bf16.mxu0 %v13781_v39  ;;  %v6098_v42 = vld [vmem:[#allocation2 + $0x50] sm:$0xff] }
 0x3d0   : > { %6479 = vmatprep.subr.bf16.mxu1 %v12080_v23  ;;  %10954 = vmatmul.mubr.msk.bf16.gmra.mrb[144].mxu1 %vm918_vm0, %v13792_v20  ;;  %v6097_v23 = vld [vmem:[#allocation2 + $0x48] sm:$0xff] }
 0x3d1   : > { %11061 = vmatmul.mubr.msk.bf16.gmra.mrb[108].mxu0 %vm918_vm0, %v13792_v20  ;;  %4349 = vmatprep.mubr.bf16.mxu1 %v13673_v2 }
 0x3d2   : > { %5499 = vmatprep.mubr.bf16.mxu0 %v13673_v2  ;;  %6669 = vmatpush1.bf16.msra.mxu0 %v13790_v48 }
 0x3d3   : > { %6480 = vmatpush1.bf16.msra.mxu1 %v12078_v4  ;;  %6670 = vmatprep.subr.bf16.mxu0 %v13801_v33  ;;  %v6101_v4 = vld [vmem:[#allocation2 + $0x68] sm:$0xff] }
 0x3d4   : > { %6481 = vmatprep.subr.bf16.mxu1 %v12086_v21  ;;  %v6119_v21 = vld [vmem:[#allocation2 + $0xf8] sm:$0xff] }
 0x3d6   : > { %6671 = vmatpush1.bf16.msra.mxu0 %v13819_v25 }
 0x3d7   : > { %6482 = vmatpush1.bf16.msra.mxu1 %v12084_v35  ;;  %11166 = vmatprep.subr.msk.bf16.mxu0 %vm931_vm1, %v13825_v13  ;;  %v6121_v35 = vld [vmem:[#allocation2 + $0x108] sm:$0xff] }
 0x3d8   : > { %6483 = vmatprep.subr.bf16.mxu1 %v12089_v7  ;;  %10955 = vmatmul.mubr.msk.bf16.gmra.mrb[148].mxu1 %vm918_vm0, %v13831_v1 }
 0x3d9   : > { %11062 = vmatmul.mubr.msk.bf16.gmra.mrb[112].mxu0 %vm918_vm0, %v13831_v1  ;;  %4359 = vmatprep.mubr.bf16.mxu1 %v13673_v2 }
 0x3da   : > { %5509 = vmatprep.mubr.bf16.mxu0 %v13673_v2  ;;  %6673 = vmatpush1.bf16.msra.mxu0 %v13839_v60 }
 0x3db   : > { %6484 = vmatpush1.bf16.msra.mxu1 %v12087_v3 }
 0x3dc   : > { %6485 = vmatprep.subr.bf16.mxu1 %v12095_v34 }
 0x3df   : > { %6486 = vmatpush1.bf16.msra.mxu1 %v12093_v49 }
 0x3e0   : > { %6487 = vmatprep.subr.bf16.mxu1 %v12098_v59  ;;  %10956 = vmatmul.mubr.msk.bf16.gmra.mrb[152].mxu1 %vm918_vm0, %v13857_v19 }
 0x3e1   : > { %11063 = vmatmul.mubr.msk.bf16.gmra.mrb[116].mxu0 %vm918_vm0, %v13857_v19  ;;  %4369 = vmatprep.mubr.bf16.mxu1 %v13673_v2 }
 0x3e2   : > { %5519 = vmatprep.mubr.bf16.mxu0 %v13673_v2 }
 0x3e3   : > { %6488 = vmatpush1.bf16.msra.mxu1 %v12096_v26 }
 0x3e4   : > { %6489 = vmatprep.subr.bf16.mxu1 %v12101_v36 }
 0x3e7   : > { %6490 = vmatpush1.bf16.msra.mxu1 %v12099_v55 }
 0x3e8   : > { %6491 = vmatprep.subr.bf16.mxu1 %v12104_v17  ;;  %10957 = vmatmul.mubr.msk.bf16.gmra.mrb[156].mxu1 %vm918_vm0, %v13877_v14 }
 0x3e9   : > { %11064 = vmatmul.mubr.msk.bf16.gmra.mrb[120].mxu0 %vm918_vm0, %v13877_v14  ;;  %4379 = vmatprep.mubr.bf16.mxu1 %v13673_v2 }
 0x3ea   : > { %5529 = vmatprep.mubr.bf16.mxu0 %v13673_v2 }
 0x3eb   : > { %6492 = vmatpush1.bf16.msra.mxu1 %v12102_v12 }
 0x3ec   : > { %6493 = vmatprep.subr.bf16.mxu1 %v12110_v22 }
 0x3ef   : > { %6494 = vmatpush1.bf16.msra.mxu1 %v12108_v56 }
 0x3f0   : > { %6495 = vmatprep.subr.bf16.mxu1 %v12113_v50  ;;  %10958 = vmatmul.mubr.msk.bf16.gmra.mrb[160].mxu1 %vm918_vm0, %v13897_v11 }
 0x3f1   : > { %11065 = vmatmul.mubr.msk.bf16.gmra.mrb[124].mxu0 %vm918_vm0, %v13897_v11  ;;  %4389 = vmatprep.mubr.bf16.mxu1 %v13673_v2 }
 0x3f2   : > { %5539 = vmatprep.mubr.bf16.mxu0 %v13673_v2 }
 0x3f3   : > { %6496 = vmatpush1.bf16.msra.mxu1 %v12111_v0 }
 0x3f4   : > { %6497 = vmatprep.subr.bf16.mxu1 %v12116_v43 }
 0x3f7   : > { %6498 = vmatpush1.bf16.msra.mxu1 %v12114_v51 }
 0x3f8   : > { %11536 = vmatprep.subr.bf16.mxu1 %v13517_v45  ;;  %10959 = vmatmul.mubr.msk.bf16.gmra.mrb[164].mxu1 %vm918_vm0, %v13911_v27  ;;  %v13928_v45 = vld [vmem:[#allocation2 + $0x100] sm:$0xff] }
 0x3f9   : > { %11066 = vmatmul.mubr.msk.bf16.gmra.mrb[128].mxu0 %vm918_vm0, %v13911_v27  ;;  %4399 = vmatprep.mubr.bf16.mxu1 %v13673_v2 }
 0x3fa   : > { %5549 = vmatprep.mubr.bf16.mxu0 %v13673_v2 }
 0x400   : > { %10960 = vmatmul.mubr.msk.bf16.gmra.mrb[168].mxu1 %vm918_vm0, %v13920_v10 }
 0x401   : > { %11067 = vmatmul.mubr.msk.bf16.gmra.mrb[132].mxu0 %vm918_vm0, %v13920_v10  ;;  %4409 = vmatprep.mubr.bf16.mxu1 %v13673_v2 }
 0x402   : > { %5559 = vmatprep.mubr.bf16.mxu0 %v13673_v2 }
 0x408   : > { %10961 = vmatmul.mubr.msk.bf16.gmra.mrb[172].mxu1 %vm918_vm0, %v13928_v45 }
 0x409   : > { %11068 = vmatmul.mubr.msk.bf16.gmra.mrb[136].mxu0 %vm918_vm0, %v13928_v45  ;;  %4419 = vmatprep.mubr.bf16.mxu1 %v13673_v2 }
 0x40a   : > { %5569 = vmatprep.mubr.bf16.mxu0 %v13673_v2 }
 0x410   : > { %10962 = vmatmul.mubr.msk.bf16.gmra.mrb[176].mxu1 %vm918_vm0, %v13936_v54 }
 0x411   : > { %11069 = vmatmul.mubr.msk.bf16.gmra.mrb[140].mxu0 %vm918_vm0, %v13936_v54  ;;  %4429 = vmatprep.mubr.bf16.mxu1 %v13673_v2 }
 0x412   : > { %5579 = vmatprep.mubr.bf16.mxu0 %v13673_v2 }
 0x418   : > { %10963 = vmatmul.mubr.msk.bf16.gmra.mrb[180].mxu1 %vm918_vm0, %v13944_v47 }
 0x419   : > { %11070 = vmatmul.mubr.msk.bf16.gmra.mrb[144].mxu0 %vm918_vm0, %v13944_v47  ;;  %4439 = vmatprep.mubr.bf16.mxu1 %v13673_v2 }
 0x41a   : > { %5589 = vmatprep.mubr.bf16.mxu0 %v13673_v2 }
 0x420   : > { %10964 = vmatmul.mubr.msk.bf16.gmra.mrb[184].mxu1 %vm918_vm0, %v13952_v29 }
 0x421   : > { %11071 = vmatmul.mubr.msk.bf16.gmra.mrb[148].mxu0 %vm918_vm0, %v13952_v29  ;;  %4449 = vmatprep.mubr.bf16.mxu1 %v13673_v2 }
 0x422   : > { %5599 = vmatprep.mubr.bf16.mxu0 %v13673_v2 }
 0x428   : > { %10965 = vmatmul.mubr.msk.bf16.gmra.mrb[188].mxu1 %vm918_vm0, %v13960_v63 }
 0x429   : > { %11072 = vmatmul.mubr.msk.bf16.gmra.mrb[152].mxu0 %vm918_vm0, %v13960_v63  ;;  %4459 = vmatprep.mubr.bf16.mxu1 %v13673_v2 }
 0x42a   : > { %5609 = vmatprep.mubr.bf16.mxu0 %v13673_v2 }
 0x430   : > { %10966 = vmatmul.mubr.msk.bf16.gmra.mrb[192].mxu1 %vm918_vm0, %v13968_v37 }
 0x431   : > { %11073 = vmatmul.mubr.msk.bf16.gmra.mrb[156].mxu0 %vm918_vm0, %v13968_v37  ;;  %6499 = vmatprep.mubr.bf16.mxu1 %v6095_v28 }
 0x432   : > { %5619 = vmatprep.mubr.bf16.mxu0 %v13673_v2 }
 0x438   : > { %6500 = vmatmul.mubr.bf16.vlgmr.msra.gmra.mrb[196].mxu1 %v6094_v58 }
 0x439   : > { %11074 = vmatmul.mubr.msk.bf16.gmra.mrb[160].mxu0 %vm918_vm0, %v13975_v24  ;;  %6509 = vmatprep.mubr.bf16.mxu1 %v6098_v42 }
 0x43a   : > { %6692 = vmatprep.mubr.bf16.mxu0 %v13673_v2  ;;  %11543 = vmatpush1.bf16.msra.mxu1 %v13704_v8  ;;  %v6100_v8 = vld [vmem:[#allocation2 + $0x60] sm:$0xff] }
 0x43b   : > { %11537 = vmatprep.subr.bf16.mxu1 %v13715_v57  ;;  %v6104_v57 = vld [vmem:[#allocation2 + $0x80] sm:$0xff] }
 0x43e   : > { %11544 = vmatpush1.bf16.msra.mxu1 %v13728_v6  ;;  %v6103_v6 = vld [vmem:[#allocation2 + $0x78] sm:$0xff] }
 0x43f   : > { %11538 = vmatprep.subr.bf16.mxu1 %v13737_v44  ;;  %v6107_v44 = vld [vmem:[#allocation2 + $0x98] sm:$0xff] }
 0x440   : > { %6510 = vmatmul.mubr.bf16.gmra.mrb[200].mxu1 %v6097_v23 }
 0x441   : > { %11167 = vmatmul.mubr.msk.bf16.vlgmr.msra.gmra.mrb[164].mxu0 %vm918_vm0, %v13748_v40  ;;  %6519 = vmatprep.mubr.bf16.mxu1 %v6101_v4  ;;  %v6110_v40 = vld [vmem:[#allocation2 + $0xb0] sm:$0xff] }
 0x442   : > { %6702 = vmatprep.mubr.bf16.mxu0 %v13673_v2  ;;  %11545 = vmatpush1.bf16.msra.mxu1 %v13746_v62  ;;  %v6106_v62 = vld [vmem:[#allocation2 + $0x90] sm:$0xff] }
 0x443   : > { %11539 = vmatprep.subr.bf16.mxu1 %v13757_v31  ;;  %v6109_v31 = vld [vmem:[#allocation2 + $0xa8] sm:$0xff] }
 0x446   : > { %11546 = vmatpush1.bf16.msra.mxu1 %v13772_v52  ;;  %v6113_v52 = vld [vmem:[#allocation2 + $0xc8] sm:$0xff] }
 0x447   : > { %11540 = vmatprep.subr.bf16.mxu1 %v13781_v39  ;;  %v6112_v39 = vld [vmem:[#allocation2 + $0xc0] sm:$0xff] }
 0x448   : > { %6520 = vmatmul.mubr.bf16.gmra.mrb[204].mxu1 %v6100_v8 }
 0x449   : > { %11168 = vmatmul.mubr.msk.bf16.gmra.mrb[168].mxu0 %vm918_vm0, %v13792_v20  ;;  %6529 = vmatprep.mubr.bf16.mxu1 %v6104_v57  ;;  %v6115_v20 = vld [vmem:[#allocation2 + $0xd8] sm:$0xff] }
 0x44a   : > { %6712 = vmatprep.mubr.bf16.mxu0 %v13673_v2  ;;  %11547 = vmatpush1.bf16.msra.mxu1 %v13790_v48  ;;  %v6116_v48 = vld [vmem:[#allocation2 + $0xe0] sm:$0xff] }
 0x44b   : > { %11541 = vmatprep.subr.bf16.mxu1 %v13801_v33  ;;  %v6118_v33 = vld [vmem:[#allocation2 + $0xf0] sm:$0xff] }
 0x44e   : > { %11548 = vmatpush1.bf16.msra.mxu1 %v13819_v25 }
 0x44f   : > { %11542 = vmatprep.subr.msk.bf16.mxu1 %vm931_vm1, %v13825_v13  ;;  %vm10317_vm1 = vcmask 720512  }
 0x450   : > { %6530 = vmatmul.mubr.bf16.gmra.mrb[208].mxu1 %v6103_v6 }
 0x451   : > { %11169 = vmatmul.mubr.msk.bf16.gmra.mrb[172].mxu0 %vm918_vm0, %v13831_v1  ;;  %6539 = vmatprep.mubr.bf16.mxu1 %v6107_v44 }
 0x452   : > { %6722 = vmatprep.mubr.bf16.mxu0 %v13673_v2  ;;  %11549 = vmatpush1.bf16.msra.mxu1 %v13839_v60 }
 0x458   : > { %6540 = vmatmul.mubr.bf16.gmra.mrb[212].mxu1 %v6106_v62 }
 0x459   : > { %11170 = vmatmul.mubr.msk.bf16.gmra.mrb[176].mxu0 %vm918_vm0, %v13857_v19  ;;  %6549 = vmatprep.mubr.bf16.mxu1 %v6110_v40 }
 0x45a   : > { %6732 = vmatprep.mubr.bf16.mxu0 %v13673_v2 }
 0x460   : > { %6550 = vmatmul.mubr.bf16.gmra.mrb[216].mxu1 %v6109_v31 }
 0x461   : > { %11171 = vmatmul.mubr.msk.bf16.gmra.mrb[180].mxu0 %vm918_vm0, %v13877_v14  ;;  %6559 = vmatprep.mubr.bf16.mxu1 %v6113_v52 }
 0x462   : > { %6742 = vmatprep.mubr.bf16.mxu0 %v13673_v2 }
 0x468   : > { %6560 = vmatmul.mubr.bf16.gmra.mrb[220].mxu1 %v6112_v39 }
 0x469   : > { %11172 = vmatmul.mubr.msk.bf16.gmra.mrb[184].mxu0 %vm918_vm0, %v13897_v11  ;;  %6569 = vmatprep.mubr.bf16.mxu1 %v6116_v48 }
 0x46a   : > { %6752 = vmatprep.mubr.bf16.mxu0 %v13673_v2 }
 0x470   : > { %6570 = vmatmul.mubr.bf16.gmra.mrb[224].mxu1 %v6115_v20 }
 0x471   : > { %11173 = vmatmul.mubr.msk.bf16.gmra.mrb[188].mxu0 %vm918_vm0, %v13911_v27  ;;  %6579 = vmatprep.mubr.bf16.mxu1 %v6119_v21 }
 0x472   : > { %6762 = vmatprep.mubr.bf16.mxu0 %v13673_v2 }
 0x478   : > { %6580 = vmatmul.mubr.bf16.gmra.mrb[228].mxu1 %v6118_v33 }
 0x479   : > { %11174 = vmatmul.mubr.msk.bf16.gmra.mrb[192].mxu0 %vm918_vm0, %v13920_v10  ;;  %6589 = vmatprep.mubr.bf16.mxu1 %v6122_v41 }
 0x47a   : > { %6772 = vmatprep.mubr.bf16.mxu0 %v13673_v2 }
 0x480   : > { %6590 = vmatmul.mubr.bf16.gmra.mrb[232].mxu1 %v6121_v35 }
 0x481   : > { %11175 = vmatmul.mubr.msk.bf16.gmra.mrb[196].mxu0 %vm918_vm0, %v13928_v45  ;;  %6599 = vmatprep.mubr.bf16.mxu1 %v13622_v30 }
 0x482   : > { %6782 = vmatprep.mubr.bf16.mxu0 %v13673_v2 }
 0x488   : > { %6600 = vmatmul.mubr.bf16.gmra.mrb[236].mxu1 %v13619_v18 }
 0x489   : > { %11176 = vmatmul.mubr.msk.bf16.gmra.mrb[200].mxu0 %vm918_vm0, %v13936_v54  ;;  %6609 = vmatprep.mubr.bf16.mxu1 %v13636_v16 }
 0x48a   : > { %6792 = vmatprep.mubr.bf16.mxu0 %v13673_v2 }
 0x48b   : > { %v4311_v25 = vpop.f32.mrb[132].mxu1 }
 0x48c   : > { %4470 = vrot.lane.b32.xlu0 %v4311_v25, %s12136_s21  ;;  %v4313_v7 = vpop.f32.mrb[133].mxu1 }
 0x48d   : > { %4534 = vst [vmem:[#allocation3] sm:$0xff] %v4313_v7  ;;  %v4315_v13 = vpop.f32.mrb[134].mxu1 }
 0x48e   : > { %v4317_v32 = vpop.f32.mrb[135].mxu1 }
 0x48f   : > { %4535 = vst [vmem:[#allocation3 + $0x8] sm:$0xff] %v4317_v32 }
 0x490   : > { %6610 = vmatmul.mubr.bf16.gmra.mrb[240].mxu1 %v13633_v38  ;;  %4472 = vrot.lane.b32.xlu0 %v4315_v13, %s12136_s21 }
 0x491   : > { %11177 = vmatmul.mubr.msk.bf16.gmra.mrb[204].mxu0 %vm918_vm0, %v13944_v47  ;;  %6619 = vmatprep.mubr.bf16.mxu1 %v13650_v15 }
 0x492   : > { %6802 = vmatprep.mubr.bf16.mxu0 %v13673_v2 }
 0x493   : > { %v4321_v18 = vpop.f32.mrb[136].mxu1 }
 0x494   : > { %v14034_v30 = vpop.f32.mrb[100].mxu0  ;;  %4474 = vrot.lane.b32.xlu1 %v4321_v18, %s12136_s21  ;;  %v4323_v16 = vpop.f32.mrb[137].mxu1 }
 0x495   : > { %5630 = vrot.lane.b32.xlu0 %v14034_v30, %s12136_s21  ;;  %v14039_v3 = vpop.f32.mrb[101].mxu0  ;;  %4536 = vst [vmem:[#allocation3 + $0x10] sm:$0xff] %v4323_v16  ;;  %v4325_v38 = vpop.f32.mrb[138].mxu1 }
 0x496   : > { %v14041_v1 = vpop.f32.mrb[102].mxu0  ;;  %v4566_v34 = vld [vmem:[#allocation3 + $0x1] sm:$0xff]  ;;  %v4567_v60 = vld [vmem:[#allocation3 + $0x9] sm:$0x7f]  ;;  %v4327_v15 = vpop.f32.mrb[139].mxu1 }
 0x497   : > { %v14043_v49 = vpop.f32.mrb[103].mxu0  ;;  %v4598_v59 = vadd.f32 %v4566_v34, %v4311_v25  ;;  %v4599_v26 = vadd.f32 %v4567_v60, %v4315_v13  ;;  %4537 = vst [vmem:[#allocation3 + $0x18] sm:$0xff] %v4327_v15  ;;  %v6141_v25 = vld [vmem:[#allocation2 + $0x1a8] sm:$0xff] }
 0x498   : > { %6620 = vmatmul.mubr.bf16.gmra.mrb[244].mxu1 %v13647_v61  ;;  %4476 = vrot.lane.b32.xlu1 %v4325_v38, %s12136_s21 }
 0x499   : > { %4630 = vst [vmem:[#allocation3 + $0x1] sm:$0xff] %v4598_v59  ;;  %4631 = vst [vmem:[#allocation3 + $0x9] sm:$0x7f] %v4599_v26  ;;  %11178 = vmatmul.mubr.msk.bf16.gmra.mrb[208].mxu0 %vm918_vm0, %v13952_v29  ;;  %6629 = vmatprep.mubr.bf16.mxu1 %v13664_v5 }
 0x49a   : > { %6812 = vmatprep.mubr.bf16.mxu0 %v13673_v2 }
 0x49b   : > { %v4331_v19 = vpop.f32.mrb[140].mxu1 }
 0x49c   : > { %v14051_v36 = vpop.f32.mrb[104].mxu0  ;;  %v4333_v55 = vpop.f32.mrb[141].mxu1  ;;  %4478 = vrot.lane.b32.xlu0 %v4331_v19, %s12136_s21  ;;  %5632 = vrot.lane.b32.xlu1 %v14041_v1, %s12136_s21 }
 0x49d   : > { %v14056_v61 = vpop.f32.mrb[105].mxu0  ;;  %4538 = vst [vmem:[#allocation3 + $0x20] sm:$0xff] %v4333_v55  ;;  %v4335_v17 = vpop.f32.mrb[142].mxu1 }
 0x49e   : > { %v14058_v12 = vpop.f32.mrb[106].mxu0  ;;  %v4568_v14 = vld [vmem:[#allocation3 + $0x11] sm:$0xff]  ;;  %v4569_v22 = vld [vmem:[#allocation3 + $0x19] sm:$0x7f]  ;;  %v4337_v5 = vpop.f32.mrb[143].mxu1 }
 0x49f   : > { %v14060_v56 = vpop.f32.mrb[107].mxu0  ;;  %v4600_v50 = vadd.f32 %v4568_v14, %v4321_v18  ;;  %v4601_v0 = vadd.f32 %v4569_v22, %v4325_v38  ;;  %4539 = vst [vmem:[#allocation3 + $0x28] sm:$0xff] %v4337_v5 }
 0x4a0   : > { %6630 = vmatmul.mubr.bf16.gmra.mrb[248].mxu1 %v13661_v46  ;;  %4480 = vrot.lane.b32.xlu1 %v4335_v17, %s12136_s21 }
 0x4a1   : > { %4632 = vst [vmem:[#allocation3 + $0x11] sm:$0xff] %v4600_v50  ;;  %4633 = vst [vmem:[#allocation3 + $0x19] sm:$0x7f] %v4601_v0  ;;  %11179 = vmatmul.mubr.msk.bf16.gmra.mrb[212].mxu0 %vm918_vm0, %v13960_v63  ;;  %5634 = vrot.lane.b32.xlu0 %v14051_v36, %s12136_s21 }
 0x4a2   : > { %6639 = vmatprep.mubr.bf16.mxu1 %v13681_v9  ;;  %6822 = vmatprep.mubr.bf16.mxu0 %v13673_v2 }
 0x4a3   : > { %v4341_v11 = vpop.f32.mrb[144].mxu1 }
 0x4a4   : > { %v14070_v43 = vpop.f32.mrb[108].mxu0  ;;  %v4343_v51 = vpop.f32.mrb[145].mxu1  ;;  %5636 = vrot.lane.b32.xlu1 %v14058_v12, %s12136_s21 }
 0x4a5   : > { %v14074_v46 = vpop.f32.mrb[109].mxu0  ;;  %4540 = vst [vmem:[#allocation3 + $0x30] sm:$0xff] %v4343_v51  ;;  %4482 = vrot.lane.b32.xlu0 %v4341_v11, %s12136_s21  ;;  %v4345_v27 = vpop.f32.mrb[146].mxu1 }
 0x4a6   : > { %v14077_v10 = vpop.f32.mrb[110].mxu0  ;;  %v4570_v45 = vld [vmem:[#allocation3 + $0x21] sm:$0xff]  ;;  %v4571_v54 = vld [vmem:[#allocation3 + $0x29] sm:$0x7f]  ;;  %v4347_v9 = vpop.f32.mrb[147].mxu1 }
 0x4a7   : > { %v14079_v47 = vpop.f32.mrb[111].mxu0  ;;  %v4602_v29 = vadd.f32 %v4570_v45, %v4331_v19  ;;  %v4603_v63 = vadd.f32 %v4571_v54, %v4335_v17  ;;  %4541 = vst [vmem:[#allocation3 + $0x38] sm:$0xff] %v4347_v9 }
 0x4a8   : > { %6640 = vmatmul.mubr.bf16.gmra.mrb[252].mxu1 %v13678_v53  ;;  %4484 = vrot.lane.b32.xlu1 %v4345_v27, %s12136_s21 }
 0x4a9   : > { %4634 = vst [vmem:[#allocation3 + $0x21] sm:$0xff] %v4602_v29  ;;  %4635 = vst [vmem:[#allocation3 + $0x29] sm:$0x7f] %v4603_v63  ;;  %11180 = vmatmul.mubr.msk.bf16.gmra.mrb[216].mxu0 %vm918_vm0, %v13968_v37  ;;  %5638 = vrot.lane.b32.xlu0 %v14070_v43, %s12136_s21 }
 0x4aa   : > { %6649 = vmatprep.mubr.bf16.mxu1 %v13673_v2  ;;  %6832 = vmatprep.mubr.bf16.mxu0 %v13673_v2 }
 0x4ab   : > { %v4351_v28 = vpop.f32.mrb[148].mxu1 }
 0x4ac   : > { %v14089_v58 = vpop.f32.mrb[112].mxu0  ;;  %v4353_v42 = vpop.f32.mrb[149].mxu1  ;;  %5640 = vrot.lane.b32.xlu1 %v14077_v10, %s12136_s21 }
 0x4ad   : > { %v14093_v53 = vpop.f32.mrb[113].mxu0  ;;  %4542 = vst [vmem:[#allocation3 + $0x40] sm:$0xff] %v4353_v42  ;;  %4486 = vrot.lane.b32.xlu0 %v4351_v28, %s12136_s21  ;;  %v4355_v37 = vpop.f32.mrb[150].mxu1 }
 0x4ae   : > { %v14096_v23 = vpop.f32.mrb[114].mxu0  ;;  %v4572_v4 = vld [vmem:[#allocation3 + $0x31] sm:$0xff]  ;;  %v4573_v8 = vld [vmem:[#allocation3 + $0x39] sm:$0x7f]  ;;  %v4357_v57 = vpop.f32.mrb[151].mxu1 }
 0x4af   : > { %v14098_v6 = vpop.f32.mrb[115].mxu0  ;;  %v4604_v44 = vadd.f32 %v4572_v4, %v4341_v11  ;;  %v4605_v62 = vadd.f32 %v4573_v8, %v4345_v27  ;;  %4543 = vst [vmem:[#allocation3 + $0x48] sm:$0xff] %v4357_v57 }
 0x4b0   : > { %6650 = vmatmul.mubr.bf16.gmra.mrb[0].mxu1 %v13673_v2  ;;  %4488 = vrot.lane.b32.xlu1 %v4355_v37, %s12136_s21 }
 0x4b1   : > { %4636 = vst [vmem:[#allocation3 + $0x31] sm:$0xff] %v4604_v44  ;;  %4637 = vst [vmem:[#allocation3 + $0x39] sm:$0x7f] %v4605_v62  ;;  %11181 = vmatmul.mubr.msk.bf16.gmra.mrb[220].mxu0 %vm918_vm0, %v13975_v24  ;;  %5642 = vrot.lane.b32.xlu0 %v14089_v58, %s12136_s21 }
 0x4b2   : > { %6842 = vmatprep.mubr.bf16.mxu1 %v13673_v2 }
 0x4b3   : > { %v4361_v40 = vpop.f32.mrb[152].mxu1 }
 0x4b4   : > { %v14107_v31 = vpop.f32.mrb[116].mxu0  ;;  %v4363_v52 = vpop.f32.mrb[153].mxu1  ;;  %5644 = vrot.lane.b32.xlu1 %v14096_v23, %s12136_s21 }
 0x4b5   : > { %v14111_v39 = vpop.f32.mrb[117].mxu0  ;;  %4544 = vst [vmem:[#allocation3 + $0x50] sm:$0xff] %v4363_v52  ;;  %4490 = vrot.lane.b32.xlu0 %v4361_v40, %s12136_s21  ;;  %v4365_v48 = vpop.f32.mrb[154].mxu1 }
 0x4b6   : > { %v14114_v20 = vpop.f32.mrb[118].mxu0  ;;  %v4574_v24 = vld [vmem:[#allocation3 + $0x41] sm:$0xff]  ;;  %v4575_v21 = vld [vmem:[#allocation3 + $0x49] sm:$0x7f]  ;;  %v4367_v33 = vpop.f32.mrb[155].mxu1 }
 0x4b7   : > { %v14116_v41 = vpop.f32.mrb[119].mxu0  ;;  %v4606_v2 = vadd.f32 %v4574_v24, %v4351_v28  ;;  %v4607_v35 = vadd.f32 %v4575_v21, %v4355_v37  ;;  %4545 = vst [vmem:[#allocation3 + $0x58] sm:$0xff] %v4367_v33 }
 0x4b8   : > { %4492 = vrot.lane.b32.xlu1 %v4365_v48, %s12136_s21 }
 0x4b9   : > { %4638 = vst [vmem:[#allocation3 + $0x41] sm:$0xff] %v4606_v2  ;;  %4639 = vst [vmem:[#allocation3 + $0x49] sm:$0x7f] %v4607_v35  ;;  %5646 = vrot.lane.b32.xlu0 %v14107_v31, %s12136_s21 }
 0x4bb   : > { %v4371_v7 = vpop.f32.mrb[156].mxu1 }
 0x4bc   : > { %v14121_v13 = vpop.f32.mrb[120].mxu0  ;;  %v4373_v32 = vpop.f32.mrb[157].mxu1  ;;  %11182 = vmatmul.mubr.msk.bf16.vlgmr.msra.gmra.mrb[0].mxu1 %vm918_vm0, %v6141_v25  ;;  %5648 = vrot.lane.b32.xlu1 %v14114_v20, %s12136_s21  ;;  %vm10310_vm0 = vcmask 654912  }
 0x4bd   : > { %v14126_v18 = vpop.f32.mrb[121].mxu0  ;;  %4546 = vst [vmem:[#allocation3 + $0x60] sm:$0xff] %v4373_v32  ;;  %4494 = vrot.lane.b32.xlu0 %v4371_v7, %s12136_s21  ;;  %v4375_v16 = vpop.f32.mrb[158].mxu1 }
 0x4be   : > { %v14129_v38 = vpop.f32.mrb[122].mxu0  ;;  %v4576_v34 = vld [vmem:[#allocation3 + $0x51] sm:$0xff]  ;;  %v4577_v60 = vld [vmem:[#allocation3 + $0x59] sm:$0x7f]  ;;  %v4377_v15 = vpop.f32.mrb[159].mxu1 }
 0x4bf   : > { %v14131_v59 = vpop.f32.mrb[123].mxu0  ;;  %v4608_v26 = vadd.f32 %v4576_v34, %v4361_v40  ;;  %v4609_v19 = vadd.f32 %v4577_v60, %v4365_v48  ;;  %4547 = vst [vmem:[#allocation3 + $0x68] sm:$0xff] %v4377_v15 }
 0x4c0   : > { %4496 = vrot.lane.b32.xlu1 %v4375_v16, %s12136_s21 }
 0x4c1   : > { %4640 = vst [vmem:[#allocation3 + $0x51] sm:$0xff] %v4608_v26  ;;  %4641 = vst [vmem:[#allocation3 + $0x59] sm:$0x7f] %v4609_v19  ;;  %5650 = vrot.lane.b32.xlu0 %v14121_v13, %s12136_s21 }
 0x4c3   : > { %v4381_v55 = vpop.f32.mrb[160].mxu1 }
 0x4c4   : > { %v14136_v17 = vpop.f32.mrb[124].mxu0  ;;  %v4383_v14 = vpop.f32.mrb[161].mxu1  ;;  %5652 = vrot.lane.b32.xlu1 %v14129_v38, %s12136_s21 }
 0x4c5   : > { %v14140_v22 = vpop.f32.mrb[125].mxu0  ;;  %4548 = vst [vmem:[#allocation3 + $0x70] sm:$0xff] %v4383_v14  ;;  %4498 = vrot.lane.b32.xlu0 %v4381_v55, %s12136_s21  ;;  %v4385_v5 = vpop.f32.mrb[162].mxu1 }
 0x4c6   : > { %v14143_v50 = vpop.f32.mrb[126].mxu0  ;;  %v4578_v0 = vld [vmem:[#allocation3 + $0x61] sm:$0xff]  ;;  %v4579_v11 = vld [vmem:[#allocation3 + $0x69] sm:$0x7f]  ;;  %v4387_v51 = vpop.f32.mrb[163].mxu1 }
 0x4c7   : > { %v14145_v27 = vpop.f32.mrb[127].mxu0  ;;  %v4610_v45 = vadd.f32 %v4578_v0, %v4371_v7  ;;  %v4611_v54 = vadd.f32 %v4579_v11, %v4375_v16  ;;  %4549 = vst [vmem:[#allocation3 + $0x78] sm:$0xff] %v4387_v51 }
 0x4c8   : > { %4500 = vrot.lane.b32.xlu1 %v4385_v5, %s12136_s21 }
 0x4c9   : > { %4642 = vst [vmem:[#allocation3 + $0x61] sm:$0xff] %v4610_v45  ;;  %4643 = vst [vmem:[#allocation3 + $0x69] sm:$0x7f] %v4611_v54  ;;  %5654 = vrot.lane.b32.xlu0 %v14136_v17, %s12136_s21 }
 0x4cb   : > { %v4391_v9 = vpop.f32.mrb[164].mxu1 }
 0x4cc   : > { %v14150_v29 = vpop.f32.mrb[128].mxu0  ;;  %v4393_v63 = vpop.f32.mrb[165].mxu1  ;;  %5656 = vrot.lane.b32.xlu1 %v14143_v50, %s12136_s21 }
 0x4cd   : > { %v14154_v28 = vpop.f32.mrb[129].mxu0  ;;  %4550 = vst [vmem:[#allocation3 + $0x80] sm:$0xff] %v4393_v63  ;;  %4502 = vrot.lane.b32.xlu0 %v4391_v9, %s12136_s21  ;;  %v4395_v42 = vpop.f32.mrb[166].mxu1 }
 0x4ce   : > { %v14157_v37 = vpop.f32.mrb[130].mxu0  ;;  %v4580_v4 = vld [vmem:[#allocation3 + $0x71] sm:$0xff]  ;;  %v4581_v8 = vld [vmem:[#allocation3 + $0x79] sm:$0x7f]  ;;  %v4397_v57 = vpop.f32.mrb[167].mxu1 }
 0x4cf   : > { %v14159_v44 = vpop.f32.mrb[131].mxu0  ;;  %v4612_v62 = vadd.f32 %v4580_v4, %v4381_v55  ;;  %v4613_v40 = vadd.f32 %v4581_v8, %v4385_v5  ;;  %4551 = vst [vmem:[#allocation3 + $0x88] sm:$0xff] %v4397_v57 }
 0x4d0   : > { %4504 = vrot.lane.b32.xlu1 %v4395_v42, %s12136_s21 }
 0x4d1   : > { %4644 = vst [vmem:[#allocation3 + $0x71] sm:$0xff] %v4612_v62  ;;  %4645 = vst [vmem:[#allocation3 + $0x79] sm:$0x7f] %v4613_v40  ;;  %5658 = vrot.lane.b32.xlu0 %v14150_v29, %s12136_s21 }
 0x4d3   : > { %v4401_v52 = vpop.f32.mrb[168].mxu1 }
 0x4d4   : > { %v14164_v48 = vpop.f32.mrb[132].mxu0  ;;  %v4403_v24 = vpop.f32.mrb[169].mxu1  ;;  %5660 = vrot.lane.b32.xlu1 %v14157_v37, %s12136_s21 }
 0x4d5   : > { %15690 = vst [vmem:[#allocation48_spill] sm:$0xff] %v14164_v48  ;;  %v14168_v21 = vpop.f32.mrb[133].mxu0  ;;  %4552 = vst [vmem:[#allocation3 + $0x90] sm:$0xff] %v4403_v24  ;;  %4506 = vrot.lane.b32.xlu0 %v4401_v52, %s12136_s21  ;;  %v4405_v33 = vpop.f32.mrb[170].mxu1 }
 0x4d6   : > { %v14171_v2 = vpop.f32.mrb[134].mxu0  ;;  %v4582_v35 = vld [vmem:[#allocation3 + $0x81] sm:$0xff]  ;;  %v4583_v25 = vld [vmem:[#allocation3 + $0x89] sm:$0x7f]  ;;  %v4407_v7 = vpop.f32.mrb[171].mxu1 }
 0x4d7   : > { %15691 = vst [vmem:[#allocation49_spill] sm:$0xff] %v14171_v2  ;;  %v14173_v32 = vpop.f32.mrb[135].mxu0  ;;  %v4614_v16 = vadd.f32 %v4582_v35, %v4391_v9  ;;  %v4615_v34 = vadd.f32 %v4583_v25, %v4395_v42  ;;  %4553 = vst [vmem:[#allocation3 + $0x98] sm:$0xff] %v4407_v7 }
 0x4d8   : > { %4508 = vrot.lane.b32.xlu1 %v4405_v33, %s12136_s21 }
 0x4d9   : > { %4646 = vst [vmem:[#allocation3 + $0x81] sm:$0xff] %v4614_v16  ;;  %4647 = vst [vmem:[#allocation3 + $0x89] sm:$0x7f] %v4615_v34  ;;  %5662 = vrot.lane.b32.xlu0 %v14164_v48, %s12136_s21 }
 0x4db   : > { %v4411_v60 = vpop.f32.mrb[172].mxu1 }
 0x4dc   : > { %v14178_v15 = vpop.f32.mrb[136].mxu0  ;;  %v4413_v26 = vpop.f32.mrb[173].mxu1  ;;  %5664 = vrot.lane.b32.xlu1 %v14171_v2, %s12136_s21 }
 0x4dd   : > { %15692 = vst [vmem:[#allocation50_spill] sm:$0xff] %v14178_v15  ;;  %v14182_v19 = vpop.f32.mrb[137].mxu0  ;;  %4554 = vst [vmem:[#allocation3 + $0xa0] sm:$0xff] %v4413_v26  ;;  %4510 = vrot.lane.b32.xlu0 %v4411_v60, %s12136_s21  ;;  %v4415_v55 = vpop.f32.mrb[174].mxu1 }
 0x4de   : > { %v14185_v14 = vpop.f32.mrb[138].mxu0  ;;  %v4584_v5 = vld [vmem:[#allocation3 + $0x91] sm:$0xff]  ;;  %v4585_v0 = vld [vmem:[#allocation3 + $0x99] sm:$0x7f]  ;;  %v4417_v11 = vpop.f32.mrb[175].mxu1 }
 0x4df   : > { %15693 = vst [vmem:[#allocation51_spill] sm:$0xff] %v14185_v14  ;;  %v14187_v51 = vpop.f32.mrb[139].mxu0  ;;  %v4616_v45 = vadd.f32 %v4584_v5, %v4401_v52  ;;  %v4617_v54 = vadd.f32 %v4585_v0, %v4405_v33  ;;  %4555 = vst [vmem:[#allocation3 + $0xa8] sm:$0xff] %v4417_v11 }
 0x4e0   : > { %4512 = vrot.lane.b32.xlu1 %v4415_v55, %s12136_s21 }
 0x4e1   : > { %4648 = vst [vmem:[#allocation3 + $0x91] sm:$0xff] %v4616_v45  ;;  %4649 = vst [vmem:[#allocation3 + $0x99] sm:$0x7f] %v4617_v54  ;;  %5666 = vrot.lane.b32.xlu0 %v14178_v15, %s12136_s21 }
 0x4e3   : > { %v4421_v9 = vpop.f32.mrb[176].mxu1 }
 0x4e4   : > { %v14192_v63 = vpop.f32.mrb[140].mxu0  ;;  %v4423_v42 = vpop.f32.mrb[177].mxu1  ;;  %5668 = vrot.lane.b32.xlu1 %v14185_v14, %s12136_s21 }
 0x4e5   : > { %15694 = vst [vmem:[#allocation52_spill] sm:$0xff] %v14192_v63  ;;  %v14196_v4 = vpop.f32.mrb[141].mxu0  ;;  %4556 = vst [vmem:[#allocation3 + $0xb0] sm:$0xff] %v4423_v42  ;;  %4514 = vrot.lane.b32.xlu0 %v4421_v9, %s12136_s21  ;;  %v4425_v8 = vpop.f32.mrb[178].mxu1 }
 0x4e6   : > { %v14199_v57 = vpop.f32.mrb[142].mxu0  ;;  %v4586_v62 = vld [vmem:[#allocation3 + $0xa1] sm:$0xff]  ;;  %v4587_v40 = vld [vmem:[#allocation3 + $0xa9] sm:$0x7f]  ;;  %v4427_v52 = vpop.f32.mrb[179].mxu1 }
 0x4e7   : > { %15695 = vst [vmem:[#allocation53_spill] sm:$0xff] %v14199_v57  ;;  %v14201_v24 = vpop.f32.mrb[143].mxu0  ;;  %v4618_v33 = vadd.f32 %v4586_v62, %v4411_v60  ;;  %v4619_v35 = vadd.f32 %v4587_v40, %v4415_v55  ;;  %4557 = vst [vmem:[#allocation3 + $0xb8] sm:$0xff] %v4427_v52 }
 0x4e8   : > { %15696 = vst [vmem:[#allocation54_spill] sm:$0xff] %v14201_v24  ;;  %4516 = vrot.lane.b32.xlu1 %v4425_v8, %s12136_s21 }
 0x4e9   : > { %4650 = vst [vmem:[#allocation3 + $0xa1] sm:$0xff] %v4618_v33  ;;  %4651 = vst [vmem:[#allocation3 + $0xa9] sm:$0x7f] %v4619_v35  ;;  %5670 = vrot.lane.b32.xlu0 %v14192_v63, %s12136_s21  ;;  %v4663_v63 = vld [vmem:[#allocation3 + $0x8] sm:$0x7f] }
 0x4eb   : > { %v4431_v25 = vpop.f32.mrb[180].mxu1 }
 0x4ec   : > { %v14206_v7 = vpop.f32.mrb[144].mxu0  ;;  %v4433_v16 = vpop.f32.mrb[181].mxu1  ;;  %5672 = vrot.lane.b32.xlu1 %v14199_v57, %s12136_s21 }
 0x4ed   : > { %15697 = vst [vmem:[#allocation55_spill] sm:$0xff] %v14206_v7  ;;  %v14210_v34 = vpop.f32.mrb[145].mxu0  ;;  %4558 = vst [vmem:[#allocation3 + $0xc0] sm:$0xff] %v4433_v16  ;;  %4518 = vrot.lane.b32.xlu0 %v4431_v25, %s12136_s21  ;;  %v4435_v60 = vpop.f32.mrb[182].mxu1 }
 0x4ee   : > { %15698 = vst [vmem:[#allocation56_spill] sm:$0xff] %v14210_v34  ;;  %v14213_v26 = vpop.f32.mrb[146].mxu0  ;;  %v4588_v55 = vld [vmem:[#allocation3 + $0xb1] sm:$0xff]  ;;  %v4589_v5 = vld [vmem:[#allocation3 + $0xb9] sm:$0x7f]  ;;  %v4437_v0 = vpop.f32.mrb[183].mxu1 }
 0x4ef   : > { %15699 = vst [vmem:[#allocation20_spill] sm:$0xff] %v14213_v26  ;;  %v14215_v11 = vpop.f32.mrb[147].mxu0  ;;  %v4620_v45 = vadd.f32 %v4588_v55, %v4421_v9  ;;  %v4621_v54 = vadd.f32 %v4589_v5, %v4425_v8  ;;  %4559 = vst [vmem:[#allocation3 + $0xc8] sm:$0xff] %v4437_v0 }
 0x4f0   : > { %15700 = vst [vmem:[#allocation22_spill] sm:$0xff] %v14215_v11  ;;  %4520 = vrot.lane.b32.xlu1 %v4435_v60, %s12136_s21 }
 0x4f1   : > { %4652 = vst [vmem:[#allocation3 + $0xb1] sm:$0xff] %v4620_v45  ;;  %4653 = vst [vmem:[#allocation3 + $0xb9] sm:$0x7f] %v4621_v54  ;;  %5674 = vrot.lane.b32.xlu0 %v14206_v7, %s12136_s21 }
 0x4f3   : > { %v4441_v42 = vpop.f32.mrb[184].mxu1 }
 0x4f4   : > { %v14220_v62 = vpop.f32.mrb[148].mxu0  ;;  %v4443_v40 = vpop.f32.mrb[185].mxu1  ;;  %5676 = vrot.lane.b32.xlu1 %v14213_v26, %s12136_s21 }
 0x4f5   : > { %15701 = vst [vmem:[#allocation24_spill] sm:$0xff] %v14220_v62  ;;  %v14224_v52 = vpop.f32.mrb[149].mxu0  ;;  %4560 = vst [vmem:[#allocation3 + $0xd0] sm:$0xff] %v4443_v40  ;;  %4522 = vrot.lane.b32.xlu0 %v4441_v42, %s12136_s21  ;;  %v4445_v9 = vpop.f32.mrb[186].mxu1 }
 0x4f6   : > { %15702 = vst [vmem:[#allocation26_spill] sm:$0xff] %v14224_v52  ;;  %v14227_v8 = vpop.f32.mrb[150].mxu0  ;;  %v4590_v33 = vld [vmem:[#allocation3 + $0xc1] sm:$0xff]  ;;  %v4591_v35 = vld [vmem:[#allocation3 + $0xc9] sm:$0x7f]  ;;  %v4447_v16 = vpop.f32.mrb[187].mxu1 }
 0x4f7   : > { %15703 = vst [vmem:[#allocation21_spill] sm:$0xff] %v14227_v8  ;;  %v14229_v55 = vpop.f32.mrb[151].mxu0  ;;  %v4622_v5 = vadd.f32 %v4590_v33, %v4431_v25  ;;  %v4623_v0 = vadd.f32 %v4591_v35, %v4435_v60  ;;  %4561 = vst [vmem:[#allocation3 + $0xd8] sm:$0xff] %v4447_v16 }
 0x4f8   : > { %15704 = vst [vmem:[#allocation23_spill] sm:$0xff] %v14229_v55  ;;  %4524 = vrot.lane.b32.xlu1 %v4445_v9, %s12136_s21 }
 0x4f9   : > { %4654 = vst [vmem:[#allocation3 + $0xc1] sm:$0xff] %v4622_v5  ;;  %4655 = vst [vmem:[#allocation3 + $0xc9] sm:$0x7f] %v4623_v0  ;;  %5678 = vrot.lane.b32.xlu0 %v14220_v62, %s12136_s21 }
 0x4fb   : > { %v4451_v45 = vpop.f32.mrb[188].mxu1 }
 0x4fc   : > { %v14234_v54 = vpop.f32.mrb[152].mxu0  ;;  %v4453_v40 = vpop.f32.mrb[189].mxu1  ;;  %5680 = vrot.lane.b32.xlu1 %v14227_v8, %s12136_s21 }
 0x4fd   : > { %15705 = vst [vmem:[#allocation25_spill] sm:$0xff] %v14234_v54  ;;  %v14238_v26 = vpop.f32.mrb[153].mxu0  ;;  %4562 = vst [vmem:[#allocation3 + $0xe0] sm:$0xff] %v4453_v40  ;;  %4526 = vrot.lane.b32.xlu0 %v4451_v45, %s12136_s21  ;;  %v4455_v25 = vpop.f32.mrb[190].mxu1 }
 0x4fe   : > { %15706 = vst [vmem:[#allocation27_spill] sm:$0xff] %v14238_v26  ;;  %v14241_v60 = vpop.f32.mrb[154].mxu0  ;;  %v4592_v33 = vld [vmem:[#allocation3 + $0xd1] sm:$0xff]  ;;  %v4593_v35 = vld [vmem:[#allocation3 + $0xd9] sm:$0x7f]  ;;  %v4471_v16 = vpop.permute.xlu0 %4470 }
 0x4ff   : > { %15707 = vst [vmem:[#allocation4_spill] sm:$0xff] %v14241_v60  ;;  %v4457_v5 = vpop.f32.mrb[191].mxu1  ;;  %v4624_v0 = vadd.f32 %v4592_v33, %v4441_v42  ;;  %v4625_v62 = vadd.f32 %v4593_v35, %v4445_v9  ;;  %v14243_v7 = vpop.f32.mrb[155].mxu0  ;;  %v4727_v8 = vrot.slane %v4471_v16, 1  ;;  %v4662_v33 = vld [vmem:[#allocation3] sm:$0xff] }
 0x500   : > { %4563 = vst [vmem:[#allocation3 + $0xe8] sm:$0xff] %v4457_v5  ;;  %15708 = vst [vmem:[#allocation6_spill] sm:$0xff] %v14243_v7  ;;  %4528 = vrot.lane.b32.xlu1 %v4455_v25, %s12136_s21 }
 0x501   : > { %4656 = vst [vmem:[#allocation3 + $0xd1] sm:$0xff] %v4624_v0  ;;  %4657 = vst [vmem:[#allocation3 + $0xd9] sm:$0x7f] %v4625_v62  ;;  %5682 = vrot.lane.b32.xlu0 %v14234_v54, %s12136_s21 }
 0x502   : > { %v4473_v40 = vpop.permute.xlu0 %4472 }
 0x503   : > { %v4728_v26 = vrot.slane %v4473_v40, 1  ;;  %v4461_v55 = vpop.f32.mrb[192].mxu1 }
 0x504   : > { %v14248_v57 = vpop.f32.mrb[156].mxu0  ;;  %v4463_v42 = vpop.f32.mrb[193].mxu1  ;;  %5684 = vrot.lane.b32.xlu1 %v14241_v60, %s12136_s21 }
 0x505   : > { %15709 = vst [vmem:[#allocation8_spill] sm:$0xff] %v14248_v57  ;;  %v14252_v9 = vpop.f32.mrb[157].mxu0  ;;  %v4729_v62 = vsel %vm4726_vm7, %v4727_v8, %v4728_v26  ;;  %v4808_v35 = vadd.f32 %v4728_v26, %v4663_v63  ;;  %4564 = vst [vmem:[#allocation3 + $0xf0] sm:$0xff] %v4463_v42  ;;  %4530 = vrot.lane.b32.xlu0 %v4461_v55, %s12136_s21  ;;  %v4465_v5 = vpop.f32.mrb[194].mxu1 }
 0x506   : > { %15710 = vst [vmem:[#allocation10_spill] sm:$0xff] %v14252_v9  ;;  %v14256_v16 = vpop.f32.mrb[158].mxu0  ;;  %v4807_v54 = vadd.f32 %v4729_v62, %v4662_v33  ;;  %v4475_v7 = vpop.permute.xlu1 %4474  ;;  %v4665_v33 = vld [vmem:[#allocation3 + $0x18] sm:$0x7f] }
 0x507   : > { %15711 = vst [vmem:[#allocation5_spill] sm:$0xff] %v14256_v16  ;;  %v4594_v0 = vld [vmem:[#allocation3 + $0xe1] sm:$0xff]  ;;  %v4595_v40 = vld [vmem:[#allocation3 + $0xe9] sm:$0x7f]  ;;  %v4467_v52 = vpop.f32.mrb[195].mxu1  ;;  %v14258_v60 = vpop.f32.mrb[159].mxu0 }
 0x508   : > { %v4626_v11 = vadd.f32 %v4594_v0, %v4451_v45  ;;  %v4627_v14 = vadd.f32 %v4595_v40, %v4455_v25  ;;  %4840 = vst [vmem:[#allocation3 + $0x8] sm:$0x7f] %v4808_v35  ;;  %4565 = vst [vmem:[#allocation3 + $0xf8] sm:$0xff] %v4467_v52  ;;  %v5726_v8 = vadd.f32 %v14039_v3, %v4807_v54  ;;  %4532 = vrot.lane.b32.xlu1 %v4465_v5, %s12136_s21  ;;  %v14264_v63 = vpop.permute.xlu0 %5630 }
 0x509   : > { %15712 = vst [vmem:[#allocation7_spill] sm:$0xff] %v14258_v60  ;;  %5686 = vrot.lane.b32.xlu0 %v14248_v57, %s12136_s21  ;;  %v4730_v42 = vrot.slane %v4475_v7, 1 }
 0x50a   : > { %4658 = vst [vmem:[#allocation3 + $0xe1] sm:$0xff] %v4626_v11  ;;  %4659 = vst [vmem:[#allocation3 + $0xe9] sm:$0x7f] %v4627_v14  ;;  %v4477_v26 = vpop.permute.xlu1 %4476  ;;  %v4664_v14 = vld [vmem:[#allocation3 + $0x10] sm:$0xff] }
 0x50b   : > { %5758 = vst [vmem:[#allocation3] sm:$0xff] %v5726_v8  ;;  %v4731_v45 = vrot.slane %v4477_v26, 1  ;;  %v6501_v52 = vpop.f32.mrb[196].mxu1 }
 0x50c   : > { %v14266_v25 = vpop.f32.mrb[160].mxu0  ;;  %v6503_v62 = vpop.f32.mrb[197].mxu1  ;;  %5688 = vrot.lane.b32.xlu1 %v14256_v16, %s12136_s21 }
 0x50d   : > { %15713 = vst [vmem:[#allocation9_spill] sm:$0xff] %v14266_v25  ;;  %v14270_v3 = vpop.f32.mrb[161].mxu0  ;;  %v4732_v11 = vsel %vm4726_vm7, %v4730_v42, %v4731_v45  ;;  %v4810_v54 = vadd.f32 %v4731_v45, %v4665_v33  ;;  %5690 = vrot.lane.b32.xlu0 %v14266_v25, %s12136_s21  ;;  %v6505_v7 = vpop.f32.mrb[198].mxu1 }
 0x50e   : > { %15714 = vst [vmem:[#allocation11_spill] sm:$0xff] %v14270_v3  ;;  %v14275_v35 = vpop.f32.mrb[162].mxu0  ;;  %v4809_v26 = vadd.f32 %v4732_v11, %v4664_v14  ;;  %v6507_v57 = vpop.f32.mrb[199].mxu1 }
 0x50f   : > { %15715 = vst [vmem:[#allocation12_spill] sm:$0xff] %v14275_v35  ;;  %v5695_v0 = vld [vmem:[#allocation3 + $0x8] sm:$0xff]  ;;  %v4596_v40 = vld [vmem:[#allocation3 + $0xf1] sm:$0xff]  ;;  %v4597_v8 = vld [vmem:[#allocation3 + $0xf9] sm:$0x7f]  ;;  %v4479_v60 = vpop.permute.xlu0 %4478  ;;  %v14278_v15 = vpop.permute.xlu1 %5632 }
 0x510   : > { %v5727_v16 = vadd.f32 %v5695_v0, %v14043_v49  ;;  %v4628_v9 = vadd.f32 %v4596_v40, %v4461_v55  ;;  %v4629_v3 = vadd.f32 %v4597_v8, %v4465_v5  ;;  %4842 = vst [vmem:[#allocation3 + $0x18] sm:$0x7f] %v4810_v54  ;;  %v14280_v42 = vpop.f32.mrb[163].mxu0  ;;  %v5728_v45 = vadd.f32 %v14056_v61, %v4809_v26  ;;  %v4667_v54 = vld [vmem:[#allocation3 + $0x28] sm:$0x7f]  ;;  %v4666_v26 = vld [vmem:[#allocation3 + $0x20] sm:$0xff] }
 0x511   : > { %15716 = vst [vmem:[#allocation14_spill] sm:$0xff] %v14280_v42  ;;  %5692 = vrot.lane.b32.xlu1 %v14275_v35, %s12136_s21  ;;  %v4733_v49 = vrot.slane %v4479_v60, 1 }
 0x512   : > { %5759 = vst [vmem:[#allocation3 + $0x8] sm:$0xff] %v5727_v16  ;;  %4660 = vst [vmem:[#allocation3 + $0xf1] sm:$0xff] %v4628_v9 }
 0x513   : > { %4661 = vst [vmem:[#allocation3 + $0xf9] sm:$0x7f] %v4629_v3  ;;  %5760 = vst [vmem:[#allocation3 + $0x10] sm:$0xff] %v5728_v45  ;;  %v4481_v33 = vpop.permute.xlu1 %4480  ;;  %v14285_v14 = vpop.permute.xlu0 %5634 }
 0x514   : > { %v4734_v55 = vrot.slane %v4481_v33, 1  ;;  %v6511_v5 = vpop.f32.mrb[200].mxu1  ;;  %v6694_v11 = vpop.f32.mrb[164].mxu0 }
 0x515   : > { %v14287_v0 = vadd.f32 %v6694_v11, %v6501_v52  ;;  %v6513_v40 = vpop.f32.mrb[201].mxu1  ;;  %v6696_v8 = vpop.f32.mrb[165].mxu0 }
 0x516   : > { %v4735_v35 = vsel %vm4726_vm7, %v4733_v49, %v4734_v55  ;;  %v4812_v16 = vadd.f32 %v4734_v55, %v4667_v54  ;;  %v14290_v9 = vadd.f32 %v6696_v8, %v6503_v62  ;;  %v6515_v3 = vpop.f32.mrb[202].mxu1  ;;  %v6698_v45 = vpop.f32.mrb[166].mxu0 }
 0x517   : > { %v5697_v61 = vld [vmem:[#allocation3 + $0x18] sm:$0xff]  ;;  %v4811_v60 = vadd.f32 %v4735_v35, %v4666_v26  ;;  %v14293_v33 = vadd.f32 %v6698_v45, %v6505_v7  ;;  %v6517_v42 = vpop.f32.mrb[203].mxu1  ;;  %v4483_v34 = vpop.permute.xlu0 %4482  ;;  %6853 = vrot.lane.b32.xlu0 %v14287_v0, %s12136_s21 }
 0x518   : > { %v5729_v25 = vadd.f32 %v5697_v61, %v14060_v56  ;;  %4844 = vst [vmem:[#allocation3 + $0x28] sm:$0x7f] %v4812_v16  ;;  %v14297_v24 = vpop.permute.xlu1 %5636  ;;  %v6700_v49 = vpop.f32.mrb[167].mxu0  ;;  %v4736_v26 = vrot.slane %v4483_v34, 1  ;;  %v4669_v45 = vld [vmem:[#allocation3 + $0x38] sm:$0x7f] }
 0x519   : > { %v5790_v52 = vld [vmem:[#allocation3 + $0x1] sm:$0xff]  ;;  %v5791_v11 = vld [vmem:[#allocation3 + $0x9] sm:$0x7f]  ;;  %v5730_v56 = vadd.f32 %v14074_v46, %v4811_v60  ;;  %6855 = vrot.lane.b32.xlu1 %v14293_v33, %s12136_s21  ;;  %v14304_v35 = vadd.f32 %v6700_v49, %v6507_v57  ;;  %v5951_v46 = vrot.slane %v14278_v15, 1  ;;  %v4668_v49 = vld [vmem:[#allocation3 + $0x30] sm:$0xff] }
 0x51a   : > { %v5822_v62 = vadd.f32 %v5790_v52, %v14034_v30  ;;  %v5823_v55 = vadd.f32 %v5791_v11, %v14041_v1  ;;  %5761 = vst [vmem:[#allocation3 + $0x18] sm:$0xff] %v5729_v25 }
 0x51b   : > { %5762 = vst [vmem:[#allocation3 + $0x20] sm:$0xff] %v5730_v56  ;;  %v14306_v7 = vpop.permute.xlu0 %5638  ;;  %v6521_v54 = vpop.f32.mrb[204].mxu1 }
 0x51c   : > { %5854 = vst [vmem:[#allocation3 + $0x1] sm:$0xff] %v5822_v62  ;;  %5855 = vst [vmem:[#allocation3 + $0x9] sm:$0x7f] %v5823_v55  ;;  %v4485_v8 = vpop.permute.xlu1 %4484  ;;  %v6704_v61 = vpop.f32.mrb[168].mxu0 }
 0x51d   : > { %v4737_v30 = vrot.slane %v4485_v8, 1  ;;  %v14308_v16 = vadd.f32 %v6704_v61, %v6511_v5  ;;  %v6523_v1 = vpop.f32.mrb[205].mxu1  ;;  %v6706_v25 = vpop.f32.mrb[169].mxu0  ;;  %v5950_v5 = vrot.slane %v14264_v63, 1 }
 0x51e   : > { %v14311_v60 = vadd.f32 %v6706_v25, %v6513_v40  ;;  %v6525_v57 = vpop.f32.mrb[206].mxu1  ;;  %v6708_v52 = vpop.f32.mrb[170].mxu0 }
 0x51f   : > { %v5699_v11 = vld [vmem:[#allocation3 + $0x28] sm:$0xff]  ;;  %v4738_v62 = vsel %vm4726_vm7, %v4736_v26, %v4737_v30  ;;  %v4814_v55 = vadd.f32 %v4737_v30, %v4669_v45  ;;  %v14314_v56 = vadd.f32 %v6708_v52, %v6515_v3  ;;  %v6527_v34 = vpop.f32.mrb[207].mxu1  ;;  %v4487_v8 = vpop.permute.xlu0 %4486  ;;  %6857 = vrot.lane.b32.xlu0 %v14308_v16, %s12136_s21  ;;  %v5952_v52 = vsel %vm4726_vm7, %v5950_v5, %v5951_v46 }
 0x520   : > { %v5731_v40 = vadd.f32 %v5699_v11, %v14079_v47  ;;  %v4813_v25 = vadd.f32 %v4738_v62, %v4668_v49  ;;  %v14320_v2 = vpop.permute.xlu1 %5640  ;;  %v6710_v48 = vpop.f32.mrb[171].mxu0 }
 0x521   : > { %v5792_v15 = vld [vmem:[#allocation3 + $0x11] sm:$0xff]  ;;  %v5793_v61 = vld [vmem:[#allocation3 + $0x19] sm:$0x7f]  ;;  %4846 = vst [vmem:[#allocation3 + $0x38] sm:$0x7f] %v4814_v55  ;;  %v14324_v30 = vadd.f32 %v6710_v48, %v6517_v42  ;;  %6859 = vrot.lane.b32.xlu1 %v14314_v56, %s12136_s21  ;;  %v4739_v55 = vrot.slane %v4487_v8, 1 }
 0x522   : > { %v5824_v26 = vadd.f32 %v5792_v15, %v14051_v36  ;;  %v5825_v3 = vadd.f32 %v5793_v61, %v14058_v12  ;;  %5763 = vst [vmem:[#allocation3 + $0x28] sm:$0xff] %v5731_v40  ;;  %v5732_v47 = vadd.f32 %v14093_v53, %v4813_v25  ;;  %v5954_v53 = vrot.slane %v14297_v24, 1  ;;  %v4671_v25 = vld [vmem:[#allocation3 + $0x48] sm:$0x7f] }
 0x523   : > { %v5886_v45 = vld [vmem:[#allocation3] sm:$0xff]  ;;  %v5887_v63 = vld [vmem:[#allocation3 + $0x8] sm:$0x7f]  ;;  %v14330_v36 = vpop.permute.xlu0 %5642  ;;  %v6531_v12 = vpop.f32.mrb[208].mxu1 }
 0x524   : > { %5856 = vst [vmem:[#allocation3 + $0x11] sm:$0xff] %v5824_v26  ;;  %5857 = vst [vmem:[#allocation3 + $0x19] sm:$0x7f] %v5825_v3  ;;  %v6030_v11 = vadd.f32 %v5952_v52, %v5886_v45  ;;  %v6031_v49 = vadd.f32 %v5951_v46, %v5887_v63  ;;  %v4489_v48 = vpop.permute.xlu1 %4488  ;;  %v6714_v42 = vpop.f32.mrb[172].mxu0  ;;  %v4670_v45 = vld [vmem:[#allocation3 + $0x40] sm:$0xff] }
 0x525   : > { %5764 = vst [vmem:[#allocation3 + $0x30] sm:$0xff] %v5732_v47  ;;  %v4740_v15 = vrot.slane %v4489_v48, 1  ;;  %v14333_v61 = vadd.f32 %v6714_v42, %v6521_v54  ;;  %v6533_v5 = vpop.f32.mrb[209].mxu1  ;;  %v6716_v40 = vpop.f32.mrb[173].mxu0  ;;  %v5953_v54 = vrot.slane %v14285_v14, 1 }
 0x526   : > { %6063 = vst [vmem:[#allocation3 + $0x8] sm:$0x7f] %v6031_v49  ;;  %v6949_v62 = vadd.f32 %v14290_v9, %v6030_v11  ;;  %v14336_v26 = vadd.f32 %v6716_v40, %v6523_v1  ;;  %v6535_v46 = vpop.f32.mrb[210].mxu1  ;;  %v6718_v3 = vpop.f32.mrb[174].mxu0 }
 0x527   : > { %v4741_v63 = vsel %vm4726_vm7, %v4739_v55, %v4740_v15  ;;  %v4816_v52 = vadd.f32 %v4740_v15, %v4671_v25  ;;  %v14339_v47 = vadd.f32 %v6718_v3, %v6525_v57  ;;  %v6537_v9 = vpop.f32.mrb[211].mxu1  ;;  %v4491_v8 = vpop.permute.xlu0 %4490  ;;  %6861 = vrot.lane.b32.xlu0 %v14333_v61, %s12136_s21  ;;  %v5955_v25 = vsel %vm4726_vm7, %v5953_v54, %v5954_v53 }
 0x528   : > { %6981 = vst [vmem:[#allocation3] sm:$0xff] %v6949_v62  ;;  %v5701_v24 = vld [vmem:[#allocation3 + $0x38] sm:$0xff]  ;;  %v4815_v11 = vadd.f32 %v4741_v63, %v4670_v45  ;;  %v14344_v1 = vpop.permute.xlu1 %5644  ;;  %v6720_v49 = vpop.f32.mrb[175].mxu0 }
 0x529   : > { %v5794_v48 = vld [vmem:[#allocation3 + $0x21] sm:$0xff]  ;;  %v5795_v42 = vld [vmem:[#allocation3 + $0x29] sm:$0x7f]  ;;  %v5733_v62 = vadd.f32 %v5701_v24, %v14098_v6  ;;  %4848 = vst [vmem:[#allocation3 + $0x48] sm:$0x7f] %v4816_v52  ;;  %v14347_v55 = vadd.f32 %v6720_v49, %v6527_v34  ;;  %6863 = vrot.lane.b32.xlu1 %v14339_v47, %s12136_s21  ;;  %v4742_v24 = vrot.slane %v4491_v8, 1 }
 0x52a   : > { %v5826_v57 = vadd.f32 %v5794_v48, %v14070_v43  ;;  %v5827_v15 = vadd.f32 %v5795_v42, %v14077_v10  ;;  %v5734_v3 = vadd.f32 %v14111_v39, %v4815_v11  ;;  %v4673_v42 = vld [vmem:[#allocation3 + $0x58] sm:$0x7f]  ;;  %v5957_v8 = vrot.slane %v14320_v2, 1 }
 0x52b   : > { %v5888_v14 = vld [vmem:[#allocation3 + $0x10] sm:$0xff]  ;;  %v5889_v40 = vld [vmem:[#allocation3 + $0x18] sm:$0x7f]  ;;  %5765 = vst [vmem:[#allocation3 + $0x38] sm:$0xff] %v5733_v62  ;;  %v14355_v6 = vpop.permute.xlu0 %5646  ;;  %v6541_v34 = vpop.f32.mrb[212].mxu1 }
 0x52c   : > { %v6032_v45 = vadd.f32 %v5955_v25, %v5888_v14  ;;  %v6033_v63 = vadd.f32 %v5954_v53, %v5889_v40  ;;  %5858 = vst [vmem:[#allocation3 + $0x21] sm:$0xff] %v5826_v57  ;;  %5859 = vst [vmem:[#allocation3 + $0x29] sm:$0x7f] %v5827_v15  ;;  %v4493_v43 = vpop.permute.xlu1 %4492  ;;  %v6724_v49 = vpop.f32.mrb[176].mxu0  ;;  %v4672_v14 = vld [vmem:[#allocation3 + $0x50] sm:$0xff] }
 0x52d   : > { %v6918_v52 = vld [vmem:[#allocation3 + $0x8] sm:$0xff]  ;;  %5766 = vst [vmem:[#allocation3 + $0x40] sm:$0xff] %v5734_v3  ;;  %v4743_v48 = vrot.slane %v4493_v43, 1  ;;  %v14359_v39 = vadd.f32 %v6724_v49, %v6531_v12  ;;  %v6543_v53 = vpop.f32.mrb[213].mxu1  ;;  %v6726_v11 = vpop.f32.mrb[177].mxu0 }
 0x52e   : > { %6065 = vst [vmem:[#allocation3 + $0x18] sm:$0x7f] %v6033_v63  ;;  %v6950_v10 = vadd.f32 %v6918_v52, %v14304_v35  ;;  %v6951_v54 = vadd.f32 %v14311_v60, %v6032_v45  ;;  %v14361_v62 = vadd.f32 %v6726_v11, %v6533_v5  ;;  %v6545_v57 = vpop.f32.mrb[214].mxu1  ;;  %v6728_v15 = vpop.f32.mrb[178].mxu0  ;;  %v5956_v52 = vrot.slane %v14306_v7, 1 }
 0x52f   : > { %v4744_v40 = vsel %vm4726_vm7, %v4742_v24, %v4743_v48  ;;  %v4818_v35 = vadd.f32 %v4743_v48, %v4673_v42  ;;  %v14365_v25 = vadd.f32 %v6728_v15, %v6535_v46  ;;  %v14367_v60 = vpop.f32.mrb[215].mxu1  ;;  %v4495_v12 = vpop.permute.xlu0 %4494  ;;  %6865 = vrot.lane.b32.xlu0 %v14359_v39, %s12136_s21 }
 0x530   : > { %6982 = vst [vmem:[#allocation3 + $0x8] sm:$0xff] %v6950_v10  ;;  %6983 = vst [vmem:[#allocation3 + $0x10] sm:$0xff] %v6951_v54  ;;  %v5703_v5 = vld [vmem:[#allocation3 + $0x48] sm:$0xff]  ;;  %v4817_v3 = vadd.f32 %v4744_v40, %v4672_v14  ;;  %v14371_v45 = vpop.permute.xlu1 %5648  ;;  %v6730_v63 = vpop.f32.mrb[179].mxu0  ;;  %v5958_v7 = vsel %vm4726_vm7, %v5956_v52, %v5957_v8 }
 0x531   : > { %v5735_v2 = vadd.f32 %v5703_v5, %v14116_v41  ;;  %4850 = vst [vmem:[#allocation3 + $0x58] sm:$0x7f] %v4818_v35  ;;  %v14375_v24 = vadd.f32 %v6730_v63, %v6537_v9  ;;  %6867 = vrot.lane.b32.xlu1 %v14365_v25, %s12136_s21 }
 0x532   : > { %v5796_v46 = vld [vmem:[#allocation3 + $0x31] sm:$0xff]  ;;  %v5797_v43 = vld [vmem:[#allocation3 + $0x39] sm:$0x7f]  ;;  %v5736_v49 = vadd.f32 %v14126_v18, %v4817_v3  ;;  %v4675_v18 = vld [vmem:[#allocation3 + $0x68] sm:$0x7f] }
 0x533   : > { %v5828_v10 = vadd.f32 %v5796_v46, %v14089_v58  ;;  %v5829_v54 = vadd.f32 %v5797_v43, %v14096_v23  ;;  %v5890_v48 = vld [vmem:[#allocation3 + $0x20] sm:$0xff]  ;;  %v5891_v11 = vld [vmem:[#allocation3 + $0x28] sm:$0x7f]  ;;  %5767 = vst [vmem:[#allocation3 + $0x48] sm:$0xff] %v5735_v2  ;;  %v14383_v41 = vpop.permute.xlu0 %5650  ;;  %v14385_v9 = vpop.f32.mrb[216].mxu1  ;;  %v4745_v23 = vrot.slane %v4495_v12, 1 }
 0x534   : > { %v6034_v42 = vadd.f32 %v5958_v7, %v5890_v48  ;;  %v6035_v15 = vadd.f32 %v5957_v8, %v5891_v11  ;;  %5768 = vst [vmem:[#allocation3 + $0x50] sm:$0xff] %v5736_v49  ;;  %v4497_v40 = vpop.permute.xlu1 %4496  ;;  %v6734_v35 = vpop.f32.mrb[180].mxu0 }
 0x535   : > { %v6920_v14 = vld [vmem:[#allocation3 + $0x18] sm:$0xff]  ;;  %5860 = vst [vmem:[#allocation3 + $0x31] sm:$0xff] %v5828_v10  ;;  %5861 = vst [vmem:[#allocation3 + $0x39] sm:$0x7f] %v5829_v54  ;;  %v4746_v5 = vrot.slane %v4497_v40, 1  ;;  %v14388_v3 = vadd.f32 %v6734_v35, %v6541_v34  ;;  %v6553_v63 = vpop.f32.mrb[217].mxu1 }
 0x536   : > { %v6952_v58 = vadd.f32 %v6920_v14, %v14324_v30  ;;  %v6736_v52 = vpop.f32.mrb[181].mxu0  ;;  %6067 = vst [vmem:[#allocation3 + $0x28] sm:$0x7f] %v6035_v15  ;;  %v6953_v46 = vadd.f32 %v14336_v26, %v6034_v42  ;;  %v14393_v43 = vpop.f32.mrb[218].mxu1  ;;  %v4674_v30 = vld [vmem:[#allocation3 + $0x60] sm:$0xff]  ;;  %v5960_v26 = vrot.slane %v14344_v1, 1 }
 0x537   : > { %v7014_v2 = vld [vmem:[#allocation3 + $0x9] sm:$0x7f]  ;;  %v14391_v8 = vadd.f32 %v6736_v52, %v6543_v53  ;;  %v6738_v49 = vpop.f32.mrb[182].mxu0  ;;  %v7013_v10 = vld [vmem:[#allocation3 + $0x1] sm:$0xff]  ;;  %v4747_v12 = vsel %vm4726_vm7, %v4745_v23, %v4746_v5  ;;  %v4820_v34 = vadd.f32 %v4746_v5, %v4675_v18  ;;  %v14399_v11 = vpop.f32.mrb[219].mxu1  ;;  %6869 = vrot.lane.b32.xlu0 %v14388_v3, %s12136_s21  ;;  %v5959_v1 = vrot.slane %v14330_v36, 1 }
 0x538   : > { %v7046_v54 = vadd.f32 %v7014_v2, %v14293_v33  ;;  %6984 = vst [vmem:[#allocation3 + $0x18] sm:$0xff] %v6952_v58  ;;  %v14397_v48 = vadd.f32 %v6738_v49, %v6545_v57  ;;  %v4499_v7 = vpop.permute.xlu0 %4498  ;;  %6985 = vst [vmem:[#allocation3 + $0x20] sm:$0xff] %v6953_v46  ;;  %v5705_v53 = vld [vmem:[#allocation3 + $0x58] sm:$0xff]  ;;  %v4819_v42 = vadd.f32 %v4747_v12, %v4674_v30  ;;  %v14404_v15 = vpop.permute.xlu1 %5652 }
 0x539   : > { %v6740_v33 = vpop.f32.mrb[183].mxu0  ;;  %v7045_v14 = vadd.f32 %v7013_v10, %v14287_v0  ;;  %v5737_v57 = vadd.f32 %v5705_v53, %v14131_v59  ;;  %4852 = vst [vmem:[#allocation3 + $0x68] sm:$0x7f] %v4820_v34  ;;  %v5961_v2 = vsel %vm4726_vm7, %v5959_v1, %v5960_v26  ;;  %v4748_v46 = vrot.slane %v4499_v7, 1 }
 0x53a   : > { %7078 = vst [vmem:[#allocation3 + $0x9] sm:$0x7f] %v7046_v54  ;;  %v14409_v40 = vadd.f32 %v6740_v33, %v14367_v60  ;;  %6871 = vrot.lane.b32.xlu1 %v14397_v48, %s12136_s21  ;;  %v5798_v35 = vld [vmem:[#allocation3 + $0x41] sm:$0xff]  ;;  %v5799_v58 = vld [vmem:[#allocation3 + $0x49] sm:$0x7f]  ;;  %v5738_v23 = vadd.f32 %v14140_v22, %v4819_v42 }
 0x53b   : > { %7077 = vst [vmem:[#allocation3 + $0x1] sm:$0xff] %v7045_v14  ;;  %v5830_v18 = vadd.f32 %v5798_v35, %v14107_v31  ;;  %v5831_v0 = vadd.f32 %v5799_v58, %v14114_v20  ;;  %5769 = vst [vmem:[#allocation3 + $0x58] sm:$0xff] %v5737_v57  ;;  %v14419_v5 = vpop.f32.mrb[220].mxu1  ;;  %v4677_v54 = vld [vmem:[#allocation3 + $0x78] sm:$0x7f]  ;;  %v4676_v58 = vld [vmem:[#allocation3 + $0x70] sm:$0xff] }
 0x53c   : > { %v14417_v59 = vpop.permute.xlu0 %5654  ;;  %v5892_v60 = vld [vmem:[#allocation3 + $0x30] sm:$0xff]  ;;  %v5893_v52 = vld [vmem:[#allocation3 + $0x38] sm:$0x7f]  ;;  %5770 = vst [vmem:[#allocation3 + $0x60] sm:$0xff] %v5738_v23  ;;  %v4501_v49 = vpop.permute.xlu1 %4500 }
 0x53d   : > { %v6744_v36 = vpop.f32.mrb[184].mxu0  ;;  %5862 = vst [vmem:[#allocation3 + $0x41] sm:$0xff] %v5830_v18  ;;  %5863 = vst [vmem:[#allocation3 + $0x49] sm:$0x7f] %v5831_v0  ;;  %v6036_v22 = vadd.f32 %v5961_v2, %v5892_v60  ;;  %v6037_v10 = vadd.f32 %v5960_v26, %v5893_v52  ;;  %v6922_v31 = vld [vmem:[#allocation3 + $0x28] sm:$0xff]  ;;  %v4749_v20 = vrot.slane %v4501_v49, 1 }
 0x53e   : > { %v14423_v30 = vadd.f32 %v6744_v36, %v14385_v9  ;;  %v6563_v12 = vpop.f32.mrb[221].mxu1  ;;  %v6746_v34 = vpop.f32.mrb[185].mxu0  ;;  %v6954_v42 = vadd.f32 %v6922_v31, %v14347_v55  ;;  %v5963_v55 = vrot.slane %v14371_v45, 1  ;;  %v5962_v36 = vrot.slane %v14355_v6, 1 }
 0x53f   : > { %v7016_v53 = vld [vmem:[#allocation3 + $0x19] sm:$0x7f]  ;;  %v14426_v33 = vadd.f32 %v6746_v34, %v6553_v63  ;;  %v14428_v7 = vpop.f32.mrb[222].mxu1  ;;  %v6748_v14 = vpop.f32.mrb[186].mxu0  ;;  %v7015_v57 = vld [vmem:[#allocation3 + $0x11] sm:$0xff]  ;;  %v6955_v26 = vadd.f32 %v14361_v62, %v6036_v22  ;;  %v4750_v9 = vsel %vm4726_vm7, %v4748_v46, %v4749_v20  ;;  %v4822_v1 = vadd.f32 %v4749_v20, %v4677_v54 }
 0x540   : > { %v7048_v35 = vadd.f32 %v7016_v53, %v14314_v56  ;;  %6069 = vst [vmem:[#allocation3 + $0x38] sm:$0x7f] %v6037_v10  ;;  %v14433_v23 = vpop.f32.mrb[223].mxu1  ;;  %v4503_v18 = vpop.permute.xlu0 %4502  ;;  %6873 = vrot.lane.b32.xlu0 %v14423_v30, %s12136_s21  ;;  %6986 = vst [vmem:[#allocation3 + $0x28] sm:$0xff] %v6954_v42  ;;  %v5707_v63 = vld [vmem:[#allocation3 + $0x68] sm:$0xff]  ;;  %v4821_v0 = vadd.f32 %v4750_v9, %v4676_v58  ;;  %v14439_v56 = vadd.f32 %v6748_v14, %v14393_v43 }
 0x541   : > { %v14441_v60 = vpop.permute.xlu1 %5656  ;;  %v6750_v62 = vpop.f32.mrb[187].mxu0  ;;  %v7047_v52 = vadd.f32 %v7015_v57, %v14308_v16  ;;  %6987 = vst [vmem:[#allocation3 + $0x30] sm:$0xff] %v6955_v26  ;;  %v5739_v2 = vadd.f32 %v5707_v63, %v14145_v27  ;;  %4854 = vst [vmem:[#allocation3 + $0x78] sm:$0x7f] %v4822_v1  ;;  %v5964_v54 = vsel %vm4726_vm7, %v5962_v36, %v5963_v55  ;;  %v4751_v6 = vrot.slane %v4503_v18, 1 }
 0x542   : > { %7080 = vst [vmem:[#allocation3 + $0x19] sm:$0x7f] %v7048_v35  ;;  %v14446_v46 = vadd.f32 %v6750_v62, %v14399_v11  ;;  %v5800_v49 = vld [vmem:[#allocation3 + $0x51] sm:$0xff]  ;;  %v5801_v45 = vld [vmem:[#allocation3 + $0x59] sm:$0x7f]  ;;  %v5740_v43 = vadd.f32 %v14154_v28, %v4821_v0  ;;  %6875 = vrot.lane.b32.xlu1 %v14439_v56, %s12136_s21 }
 0x543   : > { %7079 = vst [vmem:[#allocation3 + $0x11] sm:$0xff] %v7047_v52  ;;  %v5832_v16 = vadd.f32 %v5800_v49, %v14121_v13  ;;  %v5833_v22 = vadd.f32 %v5801_v45, %v14129_v38  ;;  %5771 = vst [vmem:[#allocation3 + $0x68] sm:$0xff] %v5739_v2  ;;  %v14456_v10 = vpop.f32.mrb[224].mxu1  ;;  %v4679_v35 = vld [vmem:[#allocation3 + $0x88] sm:$0x7f]  ;;  %v5966_v49 = vrot.slane %v14404_v15, 1 }
 0x544   : > { %v14454_v27 = vpop.permute.xlu0 %5658  ;;  %v5894_v11 = vld [vmem:[#allocation3 + $0x40] sm:$0xff]  ;;  %v5895_v31 = vld [vmem:[#allocation3 + $0x48] sm:$0x7f]  ;;  %5772 = vst [vmem:[#allocation3 + $0x70] sm:$0xff] %v5740_v43  ;;  %v6754_v20 = vpop.f32.mrb[188].mxu0 }
 0x545   : > { %v4505_v28 = vpop.permute.xlu1 %4504  ;;  %5864 = vst [vmem:[#allocation3 + $0x51] sm:$0xff] %v5832_v16  ;;  %5865 = vst [vmem:[#allocation3 + $0x59] sm:$0x7f] %v5833_v22  ;;  %v6038_v34 = vadd.f32 %v5964_v54, %v5894_v11  ;;  %v6039_v53 = vadd.f32 %v5963_v55, %v5895_v31  ;;  %v14460_v38 = vadd.f32 %v6754_v20, %v14419_v5  ;;  %v6573_v42 = vpop.f32.mrb[225].mxu1  ;;  %v4678_v55 = vld [vmem:[#allocation3 + $0x80] sm:$0xff]  ;;  %v5965_v31 = vrot.slane %v14383_v41, 1 }
 0x546   : > { %v4752_v13 = vrot.slane %v4505_v28, 1  ;;  %v6756_v14 = vpop.f32.mrb[189].mxu0  ;;  %v14464_v58 = vpop.f32.mrb[226].mxu1 }
 0x547   : > { %v6924_v57 = vld [vmem:[#allocation3 + $0x38] sm:$0xff]  ;;  %v14462_v26 = vadd.f32 %v6756_v14, %v6563_v12  ;;  %v6758_v9 = vpop.f32.mrb[190].mxu0  ;;  %v7018_v1 = vld [vmem:[#allocation3 + $0x29] sm:$0x7f]  ;;  %6071 = vst [vmem:[#allocation3 + $0x48] sm:$0x7f] %v6039_v53  ;;  %v6957_v63 = vadd.f32 %v14391_v8, %v6038_v34  ;;  %6877 = vrot.lane.b32.xlu0 %v14460_v38, %s12136_s21  ;;  %v5967_v20 = vsel %vm4726_vm7, %v5965_v31, %v5966_v49 }
 0x548   : > { %v6956_v18 = vadd.f32 %v6924_v57, %v14375_v24  ;;  %v4753_v0 = vsel %vm4726_vm7, %v4751_v6, %v4752_v13  ;;  %v4824_v5 = vadd.f32 %v4752_v13, %v4679_v35  ;;  %v14469_v62 = vpop.f32.mrb[227].mxu1  ;;  %v4507_v52 = vpop.permute.xlu0 %4506  ;;  %v7017_v12 = vld [vmem:[#allocation3 + $0x21] sm:$0xff]  ;;  %v7050_v2 = vadd.f32 %v7018_v1, %v14339_v47  ;;  %v5709_v45 = vld [vmem:[#allocation3 + $0x78] sm:$0xff] }
 0x549   : > { %v4823_v36 = vadd.f32 %v4753_v0, %v4678_v55  ;;  %v14476_v24 = vadd.f32 %v6758_v9, %v14428_v7  ;;  %v14478_v8 = vpop.permute.xlu1 %5660  ;;  %v6760_v43 = vpop.f32.mrb[191].mxu0  ;;  %6989 = vst [vmem:[#allocation3 + $0x40] sm:$0xff] %v6957_v63  ;;  %v5741_v16 = vadd.f32 %v5709_v45, %v14159_v44  ;;  %v7049_v47 = vadd.f32 %v7017_v12, %v14333_v61  ;;  %v4681_v9 = vld [vmem:[#allocation3 + $0x98] sm:$0x7f] }
 0x54a   : > { %6988 = vst [vmem:[#allocation3 + $0x38] sm:$0xff] %v6956_v18  ;;  %4856 = vst [vmem:[#allocation3 + $0x88] sm:$0x7f] %v4824_v5  ;;  %v14482_v22 = vadd.f32 %v6760_v43, %v14433_v23  ;;  %v5802_v15 = vld [vmem:[#allocation3 + $0x61] sm:$0xff]  ;;  %v5803_v11 = vld [vmem:[#allocation3 + $0x69] sm:$0x7f] }
 0x54b   : > { %7082 = vst [vmem:[#allocation3 + $0x29] sm:$0x7f] %v7050_v2  ;;  %v5742_v7 = vadd.f32 %v14168_v21, %v4823_v36  ;;  %6879 = vrot.lane.b32.xlu1 %v14476_v24, %s12136_s21  ;;  %v5834_v54 = vadd.f32 %v5802_v15, %v14136_v17  ;;  %v5835_v44 = vadd.f32 %v5803_v11, %v14143_v50  ;;  %5773 = vst [vmem:[#allocation3 + $0x78] sm:$0xff] %v5741_v16  ;;  %v14493_v23 = vpop.f32.mrb[228].mxu1  ;;  %v4680_v5 = vld [vmem:[#allocation3 + $0x90] sm:$0xff] }
 0x54c   : > { %v14491_v6 = vpop.permute.xlu0 %5662  ;;  %7081 = vst [vmem:[#allocation3 + $0x21] sm:$0xff] %v7049_v47  ;;  %v5896_v61 = vld [vmem:[#allocation3 + $0x50] sm:$0xff]  ;;  %v5897_v28 = vld [vmem:[#allocation3 + $0x58] sm:$0x7f]  ;;  %v4754_v41 = vrot.slane %v4507_v52, 1  ;;  %v6764_v34 = vpop.f32.mrb[192].mxu0 }
 0x54d   : > { %5774 = vst [vmem:[#allocation3 + $0x80] sm:$0xff] %v5742_v7  ;;  %v4509_v21 = vpop.permute.xlu1 %4508  ;;  %5866 = vst [vmem:[#allocation3 + $0x61] sm:$0xff] %v5834_v54  ;;  %v6040_v53 = vadd.f32 %v5967_v20, %v5896_v61  ;;  %v6041_v17 = vadd.f32 %v5966_v49, %v5897_v28  ;;  %v14497_v50 = vadd.f32 %v6764_v34, %v14456_v10  ;;  %v6583_v14 = vpop.f32.mrb[229].mxu1  ;;  %v5969_v49 = vrot.slane %v14441_v60, 1 }
 0x54e   : > { %5867 = vst [vmem:[#allocation3 + $0x69] sm:$0x7f] %v5835_v44  ;;  %v4755_v13 = vrot.slane %v4509_v21, 1  ;;  %v6766_v57 = vpop.f32.mrb[193].mxu0  ;;  %v6926_v35 = vld [vmem:[#allocation3 + $0x48] sm:$0xff]  ;;  %v14501_v18 = vpop.f32.mrb[230].mxu1 }
 0x54f   : > { %v14499_v1 = vadd.f32 %v6766_v57, %v6573_v42  ;;  %v6768_v63 = vpop.f32.mrb[194].mxu0  ;;  %6073 = vst [vmem:[#allocation3 + $0x58] sm:$0x7f] %v6041_v17  ;;  %v6958_v55 = vadd.f32 %v6926_v35, %v14409_v40  ;;  %v6959_v0 = vadd.f32 %v14426_v33, %v6040_v53  ;;  %v14506_v10 = vpop.f32.mrb[231].mxu1  ;;  %6881 = vrot.lane.b32.xlu0 %v14497_v50, %s12136_s21  ;;  %v5968_v7 = vrot.slane %v14417_v59, 1 }
 0x550   : > { %v4756_v52 = vsel %vm4726_vm7, %v4754_v41, %v4755_v13  ;;  %v4826_v12 = vadd.f32 %v4755_v13, %v4681_v9  ;;  %v4511_v2 = vpop.permute.xlu0 %4510  ;;  %v14512_v43 = vadd.f32 %v6768_v63, %v14464_v58  ;;  %v6770_v33 = vpop.f32.mrb[195].mxu0  ;;  %v4683_v13 = vld [vmem:[#allocation3 + $0xa8] sm:$0x7f] }
 0x551   : > { %v7020_v42 = vld [vmem:[#allocation3 + $0x39] sm:$0x7f]  ;;  %v5711_v45 = vld [vmem:[#allocation3 + $0x88] sm:$0xff]  ;;  %v4825_v36 = vadd.f32 %v4756_v52, %v4680_v5  ;;  %v14514_v40 = vpop.permute.xlu1 %5664  ;;  %v7019_v16 = vld [vmem:[#allocation3 + $0x31] sm:$0xff]  ;;  %6990 = vst [vmem:[#allocation3 + $0x48] sm:$0xff] %v6958_v55  ;;  %v14519_v11 = vadd.f32 %v6770_v33, %v14469_v62  ;;  %v5970_v59 = vsel %vm4726_vm7, %v5968_v7, %v5969_v49 }
 0x552   : > { %v7052_v47 = vadd.f32 %v7020_v42, %v14365_v25  ;;  %6991 = vst [vmem:[#allocation3 + $0x50] sm:$0xff] %v6959_v0  ;;  %v5743_v15 = vadd.f32 %v5711_v45, %v14173_v32  ;;  %4858 = vst [vmem:[#allocation3 + $0x98] sm:$0x7f] %v4826_v12  ;;  %v5804_v60 = vld [vmem:[#allocation3 + $0x71] sm:$0xff]  ;;  %v5805_v31 = vld [vmem:[#allocation3 + $0x79] sm:$0x7f]  ;;  %6883 = vrot.lane.b32.xlu1 %v14512_v43, %s12136_s21  ;;  %v7051_v54 = vadd.f32 %v7019_v16, %v14359_v39 }
 0x553   : > { %v5744_v58 = vadd.f32 %v14182_v19, %v4825_v36  ;;  %v5836_v25 = vadd.f32 %v5804_v60, %v14150_v29  ;;  %v5837_v32 = vadd.f32 %v5805_v31, %v14157_v37  ;;  %v14530_v62 = vpop.f32.mrb[232].mxu1  ;;  %v4757_v19 = vrot.slane %v4511_v2, 1  ;;  %v4682_v0 = vld [vmem:[#allocation3 + $0xa0] sm:$0xff] }
 0x554   : > { %7084 = vst [vmem:[#allocation3 + $0x39] sm:$0x7f] %v7052_v47  ;;  %5775 = vst [vmem:[#allocation3 + $0x88] sm:$0xff] %v5743_v15  ;;  %v14528_v44 = vpop.permute.xlu0 %5666  ;;  %v5898_v61 = vld [vmem:[#allocation3 + $0x60] sm:$0xff]  ;;  %v6774_v41 = vpop.f32.mrb[196].mxu0  ;;  %v5972_v2 = vrot.slane %v14478_v8, 1 }
 0x555   : > { %v5899_v28 = vld [vmem:[#allocation3 + $0x68] sm:$0x7f]  ;;  %5776 = vst [vmem:[#allocation3 + $0x90] sm:$0xff] %v5744_v58  ;;  %v4513_v20 = vpop.permute.xlu1 %4512  ;;  %7083 = vst [vmem:[#allocation3 + $0x31] sm:$0xff] %v7051_v54  ;;  %v6042_v39 = vadd.f32 %v5970_v59, %v5898_v61  ;;  %v14534_v37 = vadd.f32 %v6774_v41, %v14493_v23  ;;  %v6593_v34 = vpop.f32.mrb[233].mxu1  ;;  %v5971_v60 = vrot.slane %v14454_v27, 1 }
 0x556   : > { %5868 = vst [vmem:[#allocation3 + $0x71] sm:$0xff] %v5836_v25  ;;  %5869 = vst [vmem:[#allocation3 + $0x79] sm:$0x7f] %v5837_v32  ;;  %v6043_v29 = vadd.f32 %v5969_v49, %v5899_v28  ;;  %v4758_v21 = vrot.slane %v4513_v20, 1  ;;  %v6776_v53 = vpop.f32.mrb[197].mxu0  ;;  %v6928_v17 = vld [vmem:[#allocation3 + $0x58] sm:$0xff] }
 0x557   : > { %v14536_v57 = vadd.f32 %v6776_v53, %v6583_v14  ;;  %v14538_v35 = vpop.f32.mrb[234].mxu1  ;;  %v6778_v9 = vpop.f32.mrb[198].mxu0  ;;  %v6960_v63 = vadd.f32 %v6928_v17, %v14446_v46  ;;  %v6961_v55 = vadd.f32 %v14462_v26, %v6042_v39  ;;  %6885 = vrot.lane.b32.xlu0 %v14534_v37, %s12136_s21  ;;  %v15718_v58 = vld [vmem:[#allocation49_spill] sm:$0xff]  ;;  %v5973_v27 = vsel %vm4726_vm7, %v5971_v60, %v5972_v2 }
 0x558   : > { %6075 = vst [vmem:[#allocation3 + $0x68] sm:$0x7f] %v6043_v29  ;;  %v4759_v5 = vsel %vm4726_vm7, %v4757_v19, %v4758_v21  ;;  %v4828_v52 = vadd.f32 %v4758_v21, %v4683_v13  ;;  %v14543_v23 = vpop.f32.mrb[235].mxu1  ;;  %v4515_v12 = vpop.permute.xlu0 %4514  ;;  %v7022_v14 = vld [vmem:[#allocation3 + $0x49] sm:$0x7f]  ;;  %v14549_v45 = vadd.f32 %v6778_v9, %v14501_v18  ;;  %v7021_v36 = vld [vmem:[#allocation3 + $0x41] sm:$0xff] }
 0x559   : > { %v5713_v42 = vld [vmem:[#allocation3 + $0x98] sm:$0xff]  ;;  %v4827_v49 = vadd.f32 %v4759_v5, %v4682_v0  ;;  %v14551_v46 = vpop.permute.xlu1 %5668  ;;  %v6780_v26 = vpop.f32.mrb[199].mxu0  ;;  %v7054_v33 = vadd.f32 %v7022_v14, %v14397_v48  ;;  %6992 = vst [vmem:[#allocation3 + $0x58] sm:$0xff] %v6960_v63  ;;  %6993 = vst [vmem:[#allocation3 + $0x60] sm:$0xff] %v6961_v55  ;;  %v7053_v31 = vadd.f32 %v7021_v36, %v14388_v3  ;;  %v15717_v48 = vld [vmem:[#allocation48_spill] sm:$0xff] }
 0x55a   : > { %v5745_v16 = vadd.f32 %v5713_v42, %v14187_v51  ;;  %4860 = vst [vmem:[#allocation3 + $0xa8] sm:$0x7f] %v4828_v52  ;;  %v14556_v47 = vadd.f32 %v6780_v26, %v14506_v10  ;;  %6887 = vrot.lane.b32.xlu1 %v14549_v45, %s12136_s21  ;;  %v4685_v21 = vld [vmem:[#allocation3 + $0xb8] sm:$0x7f]  ;;  %v4684_v55 = vld [vmem:[#allocation3 + $0xb0] sm:$0xff] }
 0x55b   : > { %v5806_v8 = vld [vmem:[#allocation3 + $0x81] sm:$0xff]  ;;  %v5807_v15 = vld [vmem:[#allocation3 + $0x89] sm:$0x7f]  ;;  %v5746_v18 = vadd.f32 %v14196_v4, %v4827_v49  ;;  %7086 = vst [vmem:[#allocation3 + $0x49] sm:$0x7f] %v7054_v33  ;;  %v14567_v10 = vpop.f32.mrb[236].mxu1 }
 0x55c   : > { %v5838_v7 = vadd.f32 %v5806_v8, %v15717_v48  ;;  %v5839_v51 = vadd.f32 %v5807_v15, %v15718_v58  ;;  %5777 = vst [vmem:[#allocation3 + $0x98] sm:$0xff] %v5745_v16  ;;  %v14565_v54 = vpop.permute.xlu0 %5670  ;;  %v4760_v4 = vrot.slane %v4515_v12, 1  ;;  %v6784_v28 = vpop.f32.mrb[200].mxu0  ;;  %7085 = vst [vmem:[#allocation3 + $0x41] sm:$0xff] %v7053_v31  ;;  %v5975_v12 = vrot.slane %v14514_v40, 1  ;;  %v15719_v36 = vld [vmem:[#allocation54_spill] sm:$0xff] }
 0x55d   : > { %v5900_v25 = vld [vmem:[#allocation3 + $0x70] sm:$0xff]  ;;  %v5901_v32 = vld [vmem:[#allocation3 + $0x78] sm:$0x7f]  ;;  %5778 = vst [vmem:[#allocation3 + $0xa0] sm:$0xff] %v5746_v18  ;;  %v4517_v61 = vpop.permute.xlu1 %4516  ;;  %v14571_v20 = vadd.f32 %v6784_v28, %v14530_v62  ;;  %v6603_v41 = vpop.f32.mrb[237].mxu1  ;;  %v5974_v15 = vrot.slane %v14491_v6, 1 }
 0x55e   : > { %5870 = vst [vmem:[#allocation3 + $0x81] sm:$0xff] %v5838_v7  ;;  %5871 = vst [vmem:[#allocation3 + $0x89] sm:$0x7f] %v5839_v51  ;;  %v6044_v3 = vadd.f32 %v5973_v27, %v5900_v25  ;;  %v6045_v59 = vadd.f32 %v5972_v2, %v5901_v32  ;;  %v4761_v19 = vrot.slane %v4517_v61, 1  ;;  %v6786_v39 = vpop.f32.mrb[201].mxu0  ;;  %v14575_v17 = vpop.f32.mrb[238].mxu1 }
 0x55f   : > { %v6930_v29 = vld [vmem:[#allocation3 + $0x68] sm:$0xff]  ;;  %v14573_v53 = vadd.f32 %v6786_v39, %v6593_v34  ;;  %v6788_v13 = vpop.f32.mrb[202].mxu0  ;;  %v14580_v62 = vpop.f32.mrb[239].mxu1  ;;  %6889 = vrot.lane.b32.xlu0 %v14571_v20, %s12136_s21  ;;  %v15722_v48 = vld [vmem:[#allocation51_spill] sm:$0xff]  ;;  %v5976_v6 = vsel %vm4726_vm7, %v5974_v15, %v5975_v12  ;;  %v5977_v15 = vrot.slane %v14528_v44, 1 }
 0x560   : > { %6077 = vst [vmem:[#allocation3 + $0x78] sm:$0x7f] %v6045_v59  ;;  %v6962_v9 = vadd.f32 %v6930_v29, %v14482_v22  ;;  %v6963_v63 = vadd.f32 %v14499_v1, %v6044_v3  ;;  %v4762_v0 = vsel %vm4726_vm7, %v4760_v4, %v4761_v19  ;;  %v4830_v5 = vadd.f32 %v4761_v19, %v4685_v21  ;;  %v4519_v52 = vpop.permute.xlu0 %4518  ;;  %v7024_v34 = vld [vmem:[#allocation3 + $0x59] sm:$0x7f]  ;;  %v6790_v1 = vpop.f32.mrb[203].mxu0  ;;  %v7023_v49 = vld [vmem:[#allocation3 + $0x51] sm:$0xff] }
 0x561   : > { %v5715_v14 = vld [vmem:[#allocation3 + $0xa8] sm:$0xff]  ;;  %v4829_v2 = vadd.f32 %v4762_v0, %v4684_v55  ;;  %v14586_v42 = vadd.f32 %v6788_v13, %v14538_v35  ;;  %v14588_v22 = vpop.permute.xlu1 %5672  ;;  %v7056_v26 = vadd.f32 %v7024_v34, %v14439_v56  ;;  %v14593_v16 = vadd.f32 %v6790_v1, %v14543_v23  ;;  %v15720_v35 = vld [vmem:[#allocation56_spill] sm:$0xff]  ;;  %v15721_v56 = vld [vmem:[#allocation50_spill] sm:$0xff] }
 0x562   : > { %6994 = vst [vmem:[#allocation3 + $0x68] sm:$0xff] %v6962_v9  ;;  %6995 = vst [vmem:[#allocation3 + $0x70] sm:$0xff] %v6963_v63  ;;  %v5747_v33 = vadd.f32 %v5715_v14, %v15719_v36  ;;  %v7055_v18 = vadd.f32 %v7023_v49, %v14423_v30  ;;  %v4763_v32 = vrot.slane %v4519_v52, 1  ;;  %v4687_v29 = vld [vmem:[#allocation3 + $0xc8] sm:$0x7f]  ;;  %v4686_v0 = vld [vmem:[#allocation3 + $0xc0] sm:$0xff] }
 0x563   : > { %4862 = vst [vmem:[#allocation3 + $0xb8] sm:$0x7f] %v4830_v5  ;;  %v5808_v40 = vld [vmem:[#allocation3 + $0x91] sm:$0xff]  ;;  %v5809_v8 = vld [vmem:[#allocation3 + $0x99] sm:$0x7f]  ;;  %v5748_v60 = vadd.f32 %v15720_v35, %v4829_v2  ;;  %6891 = vrot.lane.b32.xlu1 %v14586_v42, %s12136_s21  ;;  %v14604_v23 = vpop.f32.mrb[240].mxu1 }
 0x564   : > { %7088 = vst [vmem:[#allocation3 + $0x59] sm:$0x7f] %v7056_v26  ;;  %v5840_v31 = vadd.f32 %v5808_v40, %v15721_v56  ;;  %v5841_v7 = vadd.f32 %v5809_v8, %v15722_v48  ;;  %5779 = vst [vmem:[#allocation3 + $0xa8] sm:$0xff] %v5747_v33  ;;  %v14602_v58 = vpop.permute.xlu0 %5674  ;;  %v6794_v4 = vpop.f32.mrb[204].mxu0  ;;  %v15723_v36 = vld [vmem:[#allocation22_spill] sm:$0xff]  ;;  %v15726_v56 = vld [vmem:[#allocation53_spill] sm:$0xff] }
 0x565   : > { %v5902_v51 = vld [vmem:[#allocation3 + $0x80] sm:$0xff]  ;;  %v5903_v25 = vld [vmem:[#allocation3 + $0x88] sm:$0x7f]  ;;  %5780 = vst [vmem:[#allocation3 + $0xb0] sm:$0xff] %v5748_v60  ;;  %v4521_v27 = vpop.permute.xlu1 %4520  ;;  %7087 = vst [vmem:[#allocation3 + $0x51] sm:$0xff] %v7055_v18  ;;  %v14608_v3 = vadd.f32 %v6794_v4, %v14567_v10  ;;  %v6613_v59 = vpop.f32.mrb[241].mxu1 }
 0x566   : > { %5872 = vst [vmem:[#allocation3 + $0x91] sm:$0xff] %v5840_v31  ;;  %5873 = vst [vmem:[#allocation3 + $0x99] sm:$0x7f] %v5841_v7  ;;  %v6046_v30 = vadd.f32 %v5976_v6, %v5902_v51  ;;  %v6047_v61 = vadd.f32 %v5975_v12, %v5903_v25  ;;  %v4764_v28 = vrot.slane %v4521_v27, 1  ;;  %v6796_v19 = vpop.f32.mrb[205].mxu0  ;;  %v14612_v13 = vpop.f32.mrb[242].mxu1 }
 0x567   : > { %v6932_v39 = vld [vmem:[#allocation3 + $0x78] sm:$0xff]  ;;  %v14610_v21 = vadd.f32 %v6796_v19, %v6603_v41  ;;  %v6798_v9 = vpop.f32.mrb[206].mxu0  ;;  %v14617_v10 = vpop.f32.mrb[243].mxu1  ;;  %6893 = vrot.lane.b32.xlu0 %v14608_v3, %s12136_s21  ;;  %v5978_v12 = vrot.slane %v14551_v46, 1 }
 0x568   : > { %6079 = vst [vmem:[#allocation3 + $0x88] sm:$0x7f] %v6047_v61  ;;  %v6964_v63 = vadd.f32 %v6932_v39, %v14519_v11  ;;  %v6965_v55 = vadd.f32 %v14536_v57, %v6046_v30  ;;  %v4765_v5 = vsel %vm4726_vm7, %v4763_v32, %v4764_v28  ;;  %v4832_v52 = vadd.f32 %v4764_v28, %v4687_v29  ;;  %v4523_v34 = vpop.permute.xlu0 %4522  ;;  %v6800_v57 = vpop.f32.mrb[207].mxu0  ;;  %v4689_v39 = vld [vmem:[#allocation3 + $0xd8] sm:$0x7f] }
 0x569   : > { %v7026_v41 = vld [vmem:[#allocation3 + $0x69] sm:$0x7f]  ;;  %v4831_v2 = vadd.f32 %v4765_v5, %v4686_v0  ;;  %v14623_v1 = vadd.f32 %v6798_v9, %v14575_v17  ;;  %v14625_v11 = vpop.permute.xlu1 %5676  ;;  %v7025_v49 = vld [vmem:[#allocation3 + $0x61] sm:$0xff]  ;;  %v14630_v40 = vadd.f32 %v6800_v57, %v14580_v62  ;;  %v15724_v17 = vld [vmem:[#allocation26_spill] sm:$0xff]  ;;  %v5979_v44 = vsel %vm4726_vm7, %v5977_v15, %v5978_v12 }
 0x56a   : > { %v5717_v14 = vld [vmem:[#allocation3 + $0xb8] sm:$0xff]  ;;  %v7058_v26 = vadd.f32 %v7026_v41, %v14476_v24  ;;  %6996 = vst [vmem:[#allocation3 + $0x78] sm:$0xff] %v6964_v63  ;;  %6997 = vst [vmem:[#allocation3 + $0x80] sm:$0xff] %v6965_v55  ;;  %v7057_v60 = vadd.f32 %v7025_v49, %v14460_v38  ;;  %v15725_v24 = vld [vmem:[#allocation52_spill] sm:$0xff]  ;;  %v4766_v25 = vrot.slane %v4523_v34, 1  ;;  %v5980_v15 = vrot.slane %v14565_v54, 1 }
 0x56b   : > { %v5749_v33 = vadd.f32 %v5717_v14, %v15723_v36  ;;  %4864 = vst [vmem:[#allocation3 + $0xc8] sm:$0x7f] %v4832_v52  ;;  %v5810_v46 = vld [vmem:[#allocation3 + $0xa1] sm:$0xff]  ;;  %v5811_v8 = vld [vmem:[#allocation3 + $0xa9] sm:$0x7f]  ;;  %v5750_v35 = vadd.f32 %v15724_v17, %v4831_v2  ;;  %6895 = vrot.lane.b32.xlu1 %v14623_v1, %s12136_s21  ;;  %v14641_v62 = vpop.f32.mrb[244].mxu1 }
 0x56c   : > { %7090 = vst [vmem:[#allocation3 + $0x69] sm:$0x7f] %v7058_v26  ;;  %v5842_v18 = vadd.f32 %v5810_v46, %v15725_v24  ;;  %v5843_v31 = vadd.f32 %v5811_v8, %v15726_v56  ;;  %v14639_v48 = vpop.permute.xlu0 %5678  ;;  %v6804_v32 = vpop.f32.mrb[208].mxu0  ;;  %7089 = vst [vmem:[#allocation3 + $0x61] sm:$0xff] %v7057_v60  ;;  %v4688_v5 = vld [vmem:[#allocation3 + $0xd0] sm:$0xff]  ;;  %v15727_v36 = vld [vmem:[#allocation23_spill] sm:$0xff] }
 0x56d   : > { %5781 = vst [vmem:[#allocation3 + $0xb8] sm:$0xff] %v5749_v33  ;;  %v5904_v7 = vld [vmem:[#allocation3 + $0x90] sm:$0xff]  ;;  %v5905_v51 = vld [vmem:[#allocation3 + $0x98] sm:$0x7f]  ;;  %5782 = vst [vmem:[#allocation3 + $0xc0] sm:$0xff] %v5750_v35  ;;  %v4525_v6 = vpop.permute.xlu1 %4524  ;;  %v14645_v30 = vadd.f32 %v6804_v32, %v14604_v23  ;;  %v6623_v61 = vpop.f32.mrb[245].mxu1 }
 0x56e   : > { %5874 = vst [vmem:[#allocation3 + $0xa1] sm:$0xff] %v5842_v18  ;;  %5875 = vst [vmem:[#allocation3 + $0xa9] sm:$0x7f] %v5843_v31  ;;  %v6048_v38 = vadd.f32 %v5979_v44, %v5904_v7  ;;  %v6049_v27 = vadd.f32 %v5978_v12, %v5905_v51  ;;  %v4767_v4 = vrot.slane %v4525_v6, 1  ;;  %v6806_v28 = vpop.f32.mrb[209].mxu0  ;;  %v14649_v9 = vpop.f32.mrb[246].mxu1 }
 0x56f   : > { %v6934_v19 = vld [vmem:[#allocation3 + $0x88] sm:$0xff]  ;;  %v14647_v29 = vadd.f32 %v6806_v28, %v6613_v59  ;;  %v6808_v63 = vpop.f32.mrb[210].mxu0  ;;  %v14654_v23 = vpop.f32.mrb[247].mxu1  ;;  %6897 = vrot.lane.b32.xlu0 %v14645_v30, %s12136_s21  ;;  %v5981_v12 = vrot.slane %v14588_v22, 1  ;;  %v15730_v24 = vld [vmem:[#allocation20_spill] sm:$0xff] }
 0x570   : > { %6081 = vst [vmem:[#allocation3 + $0x98] sm:$0x7f] %v6049_v27  ;;  %v6966_v55 = vadd.f32 %v6934_v19, %v14556_v47  ;;  %v6967_v0 = vadd.f32 %v14573_v53, %v6048_v38  ;;  %v4768_v52 = vsel %vm4726_vm7, %v4766_v25, %v4767_v4  ;;  %v4834_v34 = vadd.f32 %v4767_v4, %v4689_v39  ;;  %v4527_v41 = vpop.permute.xlu0 %4526  ;;  %v6810_v53 = vpop.f32.mrb[211].mxu0  ;;  %v4691_v19 = vld [vmem:[#allocation3 + $0xe8] sm:$0x7f] }
 0x571   : > { %v7028_v59 = vld [vmem:[#allocation3 + $0x79] sm:$0x7f]  ;;  %v4833_v2 = vadd.f32 %v4768_v52, %v4688_v5  ;;  %v14660_v57 = vadd.f32 %v6808_v63, %v14612_v13  ;;  %v14662_v47 = vpop.permute.xlu1 %5680  ;;  %v7027_v49 = vld [vmem:[#allocation3 + $0x71] sm:$0xff]  ;;  %v14667_v46 = vadd.f32 %v6810_v53, %v14617_v10  ;;  %v5982_v54 = vsel %vm4726_vm7, %v5980_v15, %v5981_v12  ;;  %v4690_v52 = vld [vmem:[#allocation3 + $0xe0] sm:$0xff] }
 0x572   : > { %v5719_v14 = vld [vmem:[#allocation3 + $0xc8] sm:$0xff]  ;;  %v7060_v26 = vadd.f32 %v7028_v59, %v14512_v43  ;;  %6998 = vst [vmem:[#allocation3 + $0x88] sm:$0xff] %v6966_v55  ;;  %6999 = vst [vmem:[#allocation3 + $0x90] sm:$0xff] %v6967_v0  ;;  %v15728_v13 = vld [vmem:[#allocation27_spill] sm:$0xff]  ;;  %v7059_v35 = vadd.f32 %v7027_v49, %v14497_v50  ;;  %v4769_v51 = vrot.slane %v4527_v41, 1 }
 0x573   : > { %v5751_v33 = vadd.f32 %v5719_v14, %v15727_v36  ;;  %4866 = vst [vmem:[#allocation3 + $0xd8] sm:$0x7f] %v4834_v34  ;;  %v5752_v17 = vadd.f32 %v15728_v13, %v4833_v2  ;;  %6899 = vrot.lane.b32.xlu1 %v14660_v57, %s12136_s21  ;;  %v15729_v43 = vld [vmem:[#allocation55_spill] sm:$0xff]  ;;  %v14678_v10 = vpop.f32.mrb[248].mxu1  ;;  %v15732_v15 = vld [vmem:[#allocation10_spill] sm:$0xff] }
 0x574   : > { %v5812_v22 = vld [vmem:[#allocation3 + $0xb1] sm:$0xff]  ;;  %v5813_v8 = vld [vmem:[#allocation3 + $0xb9] sm:$0x7f]  ;;  %7092 = vst [vmem:[#allocation3 + $0x79] sm:$0x7f] %v7060_v26  ;;  %v14676_v56 = vpop.permute.xlu0 %5682  ;;  %v6814_v25 = vpop.f32.mrb[212].mxu0 }
 0x575   : > { %v5844_v60 = vadd.f32 %v5812_v22, %v15729_v43  ;;  %v5845_v18 = vadd.f32 %v5813_v8, %v15730_v24  ;;  %5783 = vst [vmem:[#allocation3 + $0xc8] sm:$0xff] %v5751_v33  ;;  %v5906_v31 = vld [vmem:[#allocation3 + $0xa0] sm:$0xff]  ;;  %v5907_v7 = vld [vmem:[#allocation3 + $0xa8] sm:$0x7f]  ;;  %5784 = vst [vmem:[#allocation3 + $0xd0] sm:$0xff] %v5752_v17  ;;  %v4529_v44 = vpop.permute.xlu1 %4528  ;;  %v14682_v38 = vadd.f32 %v6814_v25, %v14641_v62  ;;  %v6633_v27 = vpop.f32.mrb[249].mxu1 }
 0x576   : > { %7091 = vst [vmem:[#allocation3 + $0x71] sm:$0xff] %v7059_v35  ;;  %v6050_v50 = vadd.f32 %v5982_v54, %v5906_v31  ;;  %v6051_v6 = vadd.f32 %v5981_v12, %v5907_v7  ;;  %v4770_v32 = vrot.slane %v4529_v44, 1  ;;  %v6816_v4 = vpop.f32.mrb[213].mxu0  ;;  %v14686_v63 = vpop.f32.mrb[250].mxu1  ;;  %v15731_v26 = vld [vmem:[#allocation6_spill] sm:$0xff]  ;;  %v15733_v17 = vld [vmem:[#allocation24_spill] sm:$0xff] }
 0x577   : > { %5876 = vst [vmem:[#allocation3 + $0xb1] sm:$0xff] %v5844_v60  ;;  %5877 = vst [vmem:[#allocation3 + $0xb9] sm:$0x7f] %v5845_v18  ;;  %v6936_v28 = vld [vmem:[#allocation3 + $0x98] sm:$0xff]  ;;  %v14684_v39 = vadd.f32 %v6816_v4, %v6623_v61  ;;  %v6818_v55 = vpop.f32.mrb[214].mxu0  ;;  %v14691_v62 = vpop.f32.mrb[251].mxu1  ;;  %6901 = vrot.lane.b32.xlu0 %v14682_v38, %s12136_s21 }
 0x578   : > { %6083 = vst [vmem:[#allocation3 + $0xa8] sm:$0x7f] %v6051_v6  ;;  %v6968_v0 = vadd.f32 %v6936_v28, %v14593_v16  ;;  %v6969_v5 = vadd.f32 %v14610_v21, %v6050_v50  ;;  %v4771_v34 = vsel %vm4726_vm7, %v4769_v51, %v4770_v32  ;;  %v4836_v41 = vadd.f32 %v4770_v32, %v4691_v19  ;;  %v6820_v21 = vpop.f32.mrb[215].mxu0  ;;  %v4531_v33 = vpop.permute.xlu0 %4530  ;;  %v15734_v43 = vld [vmem:[#allocation21_spill] sm:$0xff]  ;;  %v4693_v4 = vld [vmem:[#allocation3 + $0xf8] sm:$0x7f] }
 0x579   : > { %v7030_v59 = vld [vmem:[#allocation3 + $0x89] sm:$0x7f]  ;;  %v5984_v61 = vrot.slane %v14625_v11, 1  ;;  %v4835_v14 = vadd.f32 %v4771_v34, %v4690_v52  ;;  %v14697_v2 = vadd.f32 %v6818_v55, %v14649_v9  ;;  %v14699_v16 = vpop.permute.xlu1 %5684  ;;  %v7029_v53 = vld [vmem:[#allocation3 + $0x81] sm:$0xff]  ;;  %v14704_v22 = vadd.f32 %v6820_v21, %v14654_v23  ;;  %v4692_v52 = vld [vmem:[#allocation3 + $0xf0] sm:$0xff] }
 0x57a   : > { %v5721_v12 = vld [vmem:[#allocation3 + $0xd8] sm:$0xff]  ;;  %v7062_v49 = vadd.f32 %v7030_v59, %v14549_v45  ;;  %7000 = vst [vmem:[#allocation3 + $0x98] sm:$0xff] %v6968_v0  ;;  %7001 = vst [vmem:[#allocation3 + $0xa0] sm:$0xff] %v6969_v5  ;;  %v5983_v9 = vrot.slane %v14602_v58, 1  ;;  %v7061_v45 = vadd.f32 %v7029_v53, %v14534_v37  ;;  %v4772_v58 = vrot.slane %v4531_v33, 1 }
 0x57b   : > { %v5753_v36 = vadd.f32 %v5721_v12, %v15731_v26  ;;  %4868 = vst [vmem:[#allocation3 + $0xe8] sm:$0x7f] %v4836_v41  ;;  %v5754_v13 = vadd.f32 %v15732_v15, %v4835_v14  ;;  %6903 = vrot.lane.b32.xlu1 %v14697_v2, %s12136_s21  ;;  %v14713_v24 = vpop.f32.mrb[252].mxu1  ;;  %v15737_v15 = vld [vmem:[#allocation25_spill] sm:$0xff] }
 0x57c   : > { %v5814_v11 = vld [vmem:[#allocation3 + $0xc1] sm:$0xff]  ;;  %v5815_v8 = vld [vmem:[#allocation3 + $0xc9] sm:$0x7f]  ;;  %7094 = vst [vmem:[#allocation3 + $0x89] sm:$0x7f] %v7062_v49  ;;  %v5985_v31 = vsel %vm4726_vm7, %v5983_v9, %v5984_v61  ;;  %v6824_v54 = vpop.f32.mrb[216].mxu0  ;;  %v14724_v59 = vpop.permute.xlu0 %5686 }
 0x57d   : > { %v5846_v35 = vadd.f32 %v5814_v11, %v15733_v17  ;;  %v5847_v60 = vadd.f32 %v5815_v8, %v15734_v43  ;;  %5785 = vst [vmem:[#allocation3 + $0xd8] sm:$0xff] %v5753_v36  ;;  %5786 = vst [vmem:[#allocation3 + $0xe0] sm:$0xff] %v5754_v13  ;;  %v4533_v7 = vpop.permute.xlu1 %4532  ;;  %v14717_v25 = vadd.f32 %v6824_v54, %v14678_v10  ;;  %v6643_v50 = vpop.f32.mrb[253].mxu1  ;;  %v15735_v49 = vld [vmem:[#allocation7_spill] sm:$0xff]  ;;  %v5986_v8 = vrot.slane %v14639_v48, 1 }
 0x57e   : > { %v5908_v23 = vld [vmem:[#allocation3 + $0xb0] sm:$0xff]  ;;  %v5909_v18 = vld [vmem:[#allocation3 + $0xb8] sm:$0x7f]  ;;  %7093 = vst [vmem:[#allocation3 + $0x81] sm:$0xff] %v7061_v45  ;;  %v4773_v44 = vrot.slane %v4533_v7, 1  ;;  %v6826_v6 = vpop.f32.mrb[217].mxu0 }
 0x57f   : > { %5878 = vst [vmem:[#allocation3 + $0xc1] sm:$0xff] %v5846_v35  ;;  %5879 = vst [vmem:[#allocation3 + $0xc9] sm:$0x7f] %v5847_v60  ;;  %v6052_v37 = vadd.f32 %v5985_v31, %v5908_v23  ;;  %v6053_v51 = vadd.f32 %v5984_v61, %v5909_v18  ;;  %v6938_v32 = vld [vmem:[#allocation3 + $0xa8] sm:$0xff]  ;;  %v14719_v28 = vadd.f32 %v6826_v6, %v6633_v27  ;;  %v6645_v19 = vpop.f32.mrb[254].mxu1  ;;  %v6828_v55 = vpop.f32.mrb[218].mxu0  ;;  %6905 = vrot.lane.b32.xlu0 %v14717_v25, %s12136_s21 }
 0x580   : > { %v6970_v0 = vadd.f32 %v6938_v32, %v14630_v40  ;;  %v4774_v34 = vsel %vm4726_vm7, %v4772_v58, %v4773_v44  ;;  %v4838_v41 = vadd.f32 %v4773_v44, %v4693_v4  ;;  %v6647_v10 = vpop.f32.mrb[255].mxu1  ;;  %v5987_v27 = vrot.slane %v14662_v47, 1  ;;  %v6830_v40 = vpop.f32.mrb[219].mxu0  ;;  %v15738_v45 = vld [vmem:[#allocation4_spill] sm:$0xff] }
 0x581   : > { %6085 = vst [vmem:[#allocation3 + $0xb8] sm:$0x7f] %v6053_v51  ;;  %v6971_v5 = vadd.f32 %v14647_v29, %v6052_v37  ;;  %v7032_v61 = vld [vmem:[#allocation3 + $0x99] sm:$0x7f]  ;;  %v4837_v14 = vadd.f32 %v4774_v34, %v4692_v52  ;;  %v14730_v21 = vadd.f32 %v6828_v55, %v14686_v63  ;;  %v7031_v29 = vld [vmem:[#allocation3 + $0x91] sm:$0xff]  ;;  %v14734_v36 = vpop.permute.xlu1 %5688  ;;  %v14737_v33 = vadd.f32 %v6830_v40, %v14691_v62  ;;  %v14747_v18 = vpop.permute.xlu0 %5690 }
 0x582   : > { %v5723_v12 = vld [vmem:[#allocation3 + $0xe8] sm:$0xff]  ;;  %v7064_v53 = vadd.f32 %v7032_v61, %v14586_v42  ;;  %7002 = vst [vmem:[#allocation3 + $0xa8] sm:$0xff] %v6970_v0  ;;  %4870 = vst [vmem:[#allocation3 + $0xf8] sm:$0x7f] %v4838_v41  ;;  %v15736_v63 = vld [vmem:[#allocation11_spill] sm:$0xff]  ;;  %v7063_v42 = vadd.f32 %v7031_v29, %v14571_v20  ;;  %v5988_v43 = vsel %vm4726_vm7, %v5986_v8, %v5987_v27  ;;  %v5990_v4 = vrot.slane %v14699_v16, 1 }
 0x583   : > { %7003 = vst [vmem:[#allocation3 + $0xb0] sm:$0xff] %v6971_v5  ;;  %v5755_v26 = vadd.f32 %v5723_v12, %v15735_v49  ;;  %v5756_v9 = vadd.f32 %v15736_v63, %v4837_v14  ;;  %6907 = vrot.lane.b32.xlu1 %v14730_v21, %s12136_s21  ;;  %v5989_v16 = vrot.slane %v14676_v56, 1 }
 0x584   : > { %v5816_v47 = vld [vmem:[#allocation3 + $0xd1] sm:$0xff]  ;;  %v5817_v11 = vld [vmem:[#allocation3 + $0xd9] sm:$0x7f]  ;;  %7096 = vst [vmem:[#allocation3 + $0x99] sm:$0x7f] %v7064_v53  ;;  %v6834_v60 = vpop.f32.mrb[220].mxu0 }
 0x585   : > { %v5848_v13 = vadd.f32 %v5816_v47, %v15737_v15  ;;  %v5849_v17 = vadd.f32 %v5817_v11, %v15738_v45  ;;  %5787 = vst [vmem:[#allocation3 + $0xe8] sm:$0xff] %v5755_v26  ;;  %5788 = vst [vmem:[#allocation3 + $0xf0] sm:$0xff] %v5756_v9  ;;  %v14750_v20 = vadd.f32 %v6834_v60, %v14713_v24  ;;  %v6836_v31 = vpop.f32.mrb[221].mxu0  ;;  %v14756_v44 = vpop.permute.xlu1 %5692  ;;  %v7110_v47 = vld [vmem:[#allocation3 + $0x8] sm:$0x7f]  ;;  %v7109_v11 = vld [vmem:[#allocation3] sm:$0xff] }
 0x586   : > { %v5910_v35 = vld [vmem:[#allocation3 + $0xc0] sm:$0xff]  ;;  %v5911_v62 = vld [vmem:[#allocation3 + $0xc8] sm:$0x7f]  ;;  %7095 = vst [vmem:[#allocation3 + $0x91] sm:$0xff] %v7063_v42  ;;  %v14752_v7 = vadd.f32 %v6836_v31, %v6643_v50  ;;  %v6838_v54 = vpop.f32.mrb[222].mxu0  ;;  %v5991_v29 = vsel %vm4726_vm7, %v5989_v16, %v5990_v4 }
 0x587   : > { %5880 = vst [vmem:[#allocation3 + $0xd1] sm:$0xff] %v5848_v13  ;;  %5881 = vst [vmem:[#allocation3 + $0xd9] sm:$0x7f] %v5849_v17  ;;  %v6054_v48 = vadd.f32 %v5988_v43, %v5910_v35  ;;  %v6055_v23 = vadd.f32 %v5987_v27, %v5911_v62  ;;  %v14758_v6 = vadd.f32 %v6838_v54, %v6645_v19  ;;  %v6840_v32 = vpop.f32.mrb[223].mxu0  ;;  %6909 = vrot.lane.b32.xlu0 %v14750_v20, %s12136_s21  ;;  %v15741_v27 = vld [vmem:[#allocation5_spill] sm:$0xff]  ;;  %v15743_v54 = vld [vmem:[#allocation12_spill] sm:$0xff] }
 0x588   : > { %v6940_v58 = vld [vmem:[#allocation3 + $0xb8] sm:$0xff]  ;;  %v14763_v50 = vadd.f32 %v6840_v32, %v6647_v10  ;;  %v15740_v10 = vld [vmem:[#allocation8_spill] sm:$0xff]  ;;  %v5993_v17 = vrot.slane %v14734_v36, 1 }
 0x589   : > { %6087 = vst [vmem:[#allocation3 + $0xc8] sm:$0x7f] %v6055_v23  ;;  %v6972_v37 = vadd.f32 %v6940_v58, %v14667_v46  ;;  %v6973_v51 = vadd.f32 %v14684_v39, %v6054_v48  ;;  %v7034_v24 = vld [vmem:[#allocation3 + $0xa9] sm:$0x7f]  ;;  %v5725_v55 = vld [vmem:[#allocation3 + $0xf8] sm:$0xff]  ;;  %v7033_v0 = vld [vmem:[#allocation3 + $0xa1] sm:$0xff]  ;;  %6911 = vrot.lane.b32.xlu1 %v14758_v6, %s12136_s21  ;;  %v6854_v19 = vpop.permute.xlu0 %6853 }
 0x58a   : > { %v7066_v5 = vadd.f32 %v7034_v24, %v14623_v1  ;;  %v15739_v46 = vld [vmem:[#allocation14_spill] sm:$0xff]  ;;  %v7065_v52 = vadd.f32 %v7033_v0, %v14608_v3  ;;  %v7173_v53 = vrot.slane %v6854_v19, 1  ;;  %v5992_v23 = vrot.slane %v14724_v59, 1 }
 0x58b   : > { %7004 = vst [vmem:[#allocation3 + $0xb8] sm:$0xff] %v6972_v37  ;;  %7005 = vst [vmem:[#allocation3 + $0xc0] sm:$0xff] %v6973_v51  ;;  %v5757_v39 = vadd.f32 %v5725_v55, %v15739_v46  ;;  %v6856_v1 = vpop.permute.xlu1 %6855 }
 0x58c   : > { %v5818_v34 = vld [vmem:[#allocation3 + $0xe1] sm:$0xff]  ;;  %v5819_v41 = vld [vmem:[#allocation3 + $0xe9] sm:$0x7f]  ;;  %7098 = vst [vmem:[#allocation3 + $0xa9] sm:$0x7f] %v7066_v5  ;;  %7097 = vst [vmem:[#allocation3 + $0xa1] sm:$0xff] %v7065_v52 }
 0x58d   : > { %v5850_v61 = vadd.f32 %v5818_v34, %v15740_v10  ;;  %v5851_v12 = vadd.f32 %v5819_v41, %v15741_v27  ;;  %5789 = vst [vmem:[#allocation3 + $0xf8] sm:$0xff] %v5757_v39  ;;  %v7174_v49 = vrot.slane %v6856_v1, 1  ;;  %v7112_v5 = vld [vmem:[#allocation3 + $0x18] sm:$0x7f]  ;;  %v7111_v39 = vld [vmem:[#allocation3 + $0x10] sm:$0xff] }
 0x58e   : > { %v5912_v14 = vld [vmem:[#allocation3 + $0xd0] sm:$0xff]  ;;  %v5913_v40 = vld [vmem:[#allocation3 + $0xd8] sm:$0x7f] }
 0x58f   : > { %5882 = vst [vmem:[#allocation3 + $0xe1] sm:$0xff] %v5850_v61  ;;  %5883 = vst [vmem:[#allocation3 + $0xe9] sm:$0x7f] %v5851_v12  ;;  %v6056_v3 = vadd.f32 %v5991_v29, %v5912_v14  ;;  %v6057_v26 = vadd.f32 %v5990_v4, %v5913_v40  ;;  %v7175_v8 = vsel %vm4726_vm7, %v7173_v53, %v7174_v49  ;;  %v14779_v13 = vpop.f32.mrb[0].mxu1  ;;  %v5996_v61 = vrot.slane %v14756_v44, 1 }
 0x590   : > { %v6942_v56 = vld [vmem:[#allocation3 + $0xc8] sm:$0xff]  ;;  %v7254_v63 = vadd.f32 %v7174_v49, %v7110_v47  ;;  %v14777_v15 = vadd.f32 %v7175_v8, %v7109_v11  ;;  %v14782_v35 = vpop.f32.mrb[1].mxu1  ;;  %6913 = vrot.lane.b32.xlu0 %v14779_v13, %s12136_s21 }
 0x591   : > { %6089 = vst [vmem:[#allocation3 + $0xd8] sm:$0x7f] %v6057_v26  ;;  %v6974_v9 = vadd.f32 %v6942_v56, %v14704_v22  ;;  %v6975_v42 = vadd.f32 %v14719_v28, %v6056_v3  ;;  %v6858_v22 = vpop.permute.xlu0 %6857  ;;  %v14788_v28 = vpop.f32.mrb[2].mxu1  ;;  %v7114_v26 = vld [vmem:[#allocation3 + $0x28] sm:$0x7f]  ;;  %v7113_v56 = vld [vmem:[#allocation3 + $0x20] sm:$0xff] }
 0x592   : > { %v7036_v45 = vld [vmem:[#allocation3 + $0xb9] sm:$0x7f]  ;;  %7286 = vst [vmem:[#allocation3 + $0x8] sm:$0x7f] %v7254_v63  ;;  %v7035_v62 = vld [vmem:[#allocation3 + $0xb1] sm:$0xff]  ;;  %7285 = vst [vmem:[#allocation3] sm:$0xff] %v14777_v15  ;;  %6915 = vrot.lane.b32.xlu1 %v14788_v28, %s12136_s21 }
 0x593   : > { %v7068_v43 = vadd.f32 %v7036_v45, %v14660_v57  ;;  %7006 = vst [vmem:[#allocation3 + $0xc8] sm:$0xff] %v6974_v9  ;;  %7007 = vst [vmem:[#allocation3 + $0xd0] sm:$0xff] %v6975_v42  ;;  %v7067_v60 = vadd.f32 %v7035_v62, %v14645_v30  ;;  %v14794_v31 = vpop.f32.mrb[3].mxu1  ;;  %v15742_v57 = vld [vmem:[#allocation9_spill] sm:$0xff]  ;;  %v6860_v51 = vpop.permute.xlu1 %6859  ;;  %v5994_v30 = vsel %vm4726_vm7, %v5992_v23, %v5993_v17  ;;  %v7176_v4 = vrot.slane %v6858_v22, 1 }
 0x594   : > { %v5820_v48 = vld [vmem:[#allocation3 + $0xf1] sm:$0xff]  ;;  %v5821_v36 = vld [vmem:[#allocation3 + $0xf9] sm:$0x7f]  ;;  %v7177_v55 = vrot.slane %v6860_v51, 1 }
 0x595   : > { %7100 = vst [vmem:[#allocation3 + $0xb9] sm:$0x7f] %v7068_v43  ;;  %v5852_v58 = vadd.f32 %v5820_v48, %v15742_v57  ;;  %v5853_v37 = vadd.f32 %v5821_v36, %v15743_v54  ;;  %7099 = vst [vmem:[#allocation3 + $0xb1] sm:$0xff] %v7067_v60  ;;  %v14818_v43 = vld [vmem:[%s15560_s7] ss:$0 sm:$0xff] }
 0x596   : > { %v5914_v32 = vld [vmem:[#allocation3 + $0xe0] sm:$0xff]  ;;  %v5915_v24 = vld [vmem:[#allocation3 + $0xe8] sm:$0x7f]  ;;  %v7178_v19 = vsel %vm4726_vm7, %v7176_v4, %v7177_v55  ;;  %v7256_v52 = vadd.f32 %v7177_v55, %v7112_v5  ;;  %v7116_v60 = vld [vmem:[#allocation3 + $0x38] sm:$0x7f] }
 0x597   : > { %5884 = vst [vmem:[#allocation3 + $0xf1] sm:$0xff] %v5852_v58  ;;  %5885 = vst [vmem:[#allocation3 + $0xf9] sm:$0x7f] %v5853_v37  ;;  %v6058_v59 = vadd.f32 %v5994_v30, %v5914_v32  ;;  %v6059_v0 = vadd.f32 %v5993_v17, %v5915_v24  ;;  %v14802_v16 = vadd.f32 %v7178_v19, %v7111_v39  ;;  %v7115_v36 = vld [vmem:[#allocation3 + $0x30] sm:$0xff]  ;;  %v7118_v39 = vld [vmem:[#allocation3 + $0x48] sm:$0x7f] }
 0x598   : > { %v6944_v46 = vld [vmem:[#allocation3 + $0xd8] sm:$0xff]  ;;  %7288 = vst [vmem:[#allocation3 + $0x18] sm:$0x7f] %v7256_v52 }
 0x599   : > { %6091 = vst [vmem:[#allocation3 + $0xe8] sm:$0x7f] %v6059_v0  ;;  %v6976_v34 = vadd.f32 %v6944_v46, %v14737_v33  ;;  %v6977_v41 = vadd.f32 %v14752_v7, %v6058_v59  ;;  %7287 = vst [vmem:[#allocation3 + $0x10] sm:$0xff] %v14802_v16  ;;  %v6862_v1 = vpop.permute.xlu0 %6861  ;;  %v5995_v33 = vrot.slane %v14747_v18, 1  ;;  %v7318_v4 = vld [vmem:[#allocation3 + $0x8] sm:$0xff]  ;;  %v7358_v46 = vadd.f32 %v14818_v43, %v14802_v16 }
 0x59a   : > { %v7038_v10 = vld [vmem:[#allocation3 + $0xc9] sm:$0x7f]  ;;  %v7037_v27 = vld [vmem:[#allocation3 + $0xc1] sm:$0xff]  ;;  %v7179_v53 = vrot.slane %v6862_v1, 1  ;;  %v14830_v59 = vld [vmem:[%s15561_s8] ss:$0 sm:$0xff] }
 0x59b   : > { %v7070_v12 = vadd.f32 %v7038_v10, %v14697_v2  ;;  %7008 = vst [vmem:[#allocation3 + $0xd8] sm:$0xff] %v6976_v34  ;;  %7009 = vst [vmem:[#allocation3 + $0xe0] sm:$0xff] %v6977_v41  ;;  %v7069_v14 = vadd.f32 %v7037_v27, %v14682_v38  ;;  %v6864_v7 = vpop.permute.xlu1 %6863  ;;  %v5997_v44 = vsel %vm4726_vm7, %v5995_v33, %v5996_v61 }
 0x59c   : > { %v7180_v49 = vrot.slane %v6864_v7, 1 }
 0x59d   : > { %7102 = vst [vmem:[#allocation3 + $0xc9] sm:$0x7f] %v7070_v12  ;;  %7101 = vst [vmem:[#allocation3 + $0xc1] sm:$0xff] %v7069_v14  ;;  %v7390_v14 = vmax.f32 %v7358_v46, 0.0 }
 0x59e   : > { %v5916_v40 = vld [vmem:[#allocation3 + $0xf0] sm:$0xff]  ;;  %v5917_v29 = vld [vmem:[#allocation3 + $0xf8] sm:$0x7f]  ;;  %v7181_v11 = vsel %vm4726_vm7, %v7179_v53, %v7180_v49  ;;  %v7258_v8 = vadd.f32 %v7180_v49, %v7114_v26 }
 0x59f   : > { %v6060_v3 = vadd.f32 %v5997_v44, %v5916_v40  ;;  %v6061_v2 = vadd.f32 %v5996_v61, %v5917_v29  ;;  %v7257_v63 = vadd.f32 %v7181_v11, %v7113_v56 }
 0x5a0   : > { %v6946_v47 = vld [vmem:[#allocation3 + $0xe8] sm:$0xff]  ;;  %7290 = vst [vmem:[#allocation3 + $0x28] sm:$0x7f] %v7258_v8  ;;  %v7120_v8 = vld [vmem:[#allocation3 + $0x58] sm:$0x7f] }
 0x5a1   : > { %6093 = vst [vmem:[#allocation3 + $0xf8] sm:$0x7f] %v6061_v2  ;;  %v6978_v38 = vadd.f32 %v6946_v47, %v14763_v50  ;;  %v6979_v18 = vadd.f32 %v14782_v35, %v6060_v3  ;;  %7289 = vst [vmem:[#allocation3 + $0x20] sm:$0xff] %v7257_v63  ;;  %v6866_v17 = vpop.permute.xlu0 %6865  ;;  %v7360_v33 = vadd.f32 %v14818_v43, %v7257_v63 }
 0x5a2   : > { %v7040_v9 = vld [vmem:[#allocation3 + $0xd9] sm:$0x7f]  ;;  %v7039_v42 = vld [vmem:[#allocation3 + $0xd1] sm:$0xff]  ;;  %v7182_v35 = vrot.slane %v6866_v17, 1  ;;  %v7429_v2 = vmul.f32 %v14830_v59, %v7390_v14 }
 0x5a3   : > { %v7072_v45 = vadd.f32 %v7040_v9, %v14730_v21  ;;  %7010 = vst [vmem:[#allocation3 + $0xe8] sm:$0xff] %v6978_v38  ;;  %7011 = vst [vmem:[#allocation3 + $0xf0] sm:$0xff] %v6979_v18  ;;  %v7071_v62 = vadd.f32 %v7039_v42, %v14717_v25  ;;  %v6868_v50 = vpop.permute.xlu1 %6867  ;;  %v7356_v21 = vadd.f32 %v14818_v43, %v14777_v15  ;;  %v7320_v25 = vld [vmem:[#allocation3 + $0x18] sm:$0xff]  ;;  %v7392_v26 = vmax.f32 %v7360_v33, 0.0  ;;  %v7119_v38 = vld [vmem:[#allocation3 + $0x50] sm:$0xff] }
 0x5a4   : > { %v7183_v22 = vrot.slane %v6868_v50, 1  ;;  %v7359_v15 = vadd.f32 %v14818_v43, %v7320_v25 }
 0x5a5   : > { %7104 = vst [vmem:[#allocation3 + $0xd9] sm:$0x7f] %v7072_v45  ;;  %7103 = vst [vmem:[#allocation3 + $0xd1] sm:$0xff] %v7071_v62  ;;  %v7388_v30 = vmax.f32 %v7356_v21, 0.0  ;;  %v7431_v45 = vmul.f32 %v14830_v59, %v7392_v26  ;;  %v7126_v26 = vld [vmem:[#allocation3 + $0x88] sm:$0x7f] }
 0x5a6   : > { %v7184_v23 = vsel %vm4726_vm7, %v7182_v35, %v7183_v22  ;;  %v7260_v57 = vadd.f32 %v7183_v22, %v7116_v60  ;;  %v7391_v52 = vmax.f32 %v7359_v15, 0.0 }
 0x5a7   : > { %v7259_v54 = vadd.f32 %v7184_v23, %v7115_v36  ;;  %v7427_v19 = vmul.f32 %v14830_v59, %v7388_v30  ;;  %v7322_v10 = vld [vmem:[#allocation3 + $0x28] sm:$0xff] }
 0x5a8   : > { %v6948_v48 = vld [vmem:[#allocation3 + $0xf8] sm:$0xff]  ;;  %7292 = vst [vmem:[#allocation3 + $0x38] sm:$0x7f] %v7260_v57  ;;  %v7430_v40 = vmul.f32 %v14830_v59, %v7391_v52  ;;  %v7361_v29 = vadd.f32 %v14818_v43, %v7322_v10 }
 0x5a9   : > { %v6980_v58 = vadd.f32 %v6948_v48, %v14794_v31  ;;  %7291 = vst [vmem:[#allocation3 + $0x30] sm:$0xff] %v7259_v54  ;;  %v6870_v24 = vpop.permute.xlu0 %6869  ;;  %v7124_v10 = vld [vmem:[#allocation3 + $0x78] sm:$0x7f] }
 0x5aa   : > { %v7042_v37 = vld [vmem:[#allocation3 + $0xe9] sm:$0x7f]  ;;  %v7041_v51 = vld [vmem:[#allocation3 + $0xe1] sm:$0xff]  ;;  %v7185_v0 = vrot.slane %v6870_v24, 1  ;;  %v7393_v56 = vmax.f32 %v7361_v29, 0.0 }
 0x5ab   : > { %v7074_v32 = vadd.f32 %v7042_v37, %v14758_v6  ;;  %7012 = vst [vmem:[#allocation3 + $0xf8] sm:$0xff] %v6980_v58  ;;  %v7073_v55 = vadd.f32 %v7041_v51, %v14750_v20  ;;  %v7357_v6 = vadd.f32 %v14818_v43, %v7318_v4  ;;  %v7117_v20 = vld [vmem:[#allocation3 + $0x40] sm:$0xff]  ;;  %v7122_v37 = vld [vmem:[#allocation3 + $0x68] sm:$0x7f] }
 0x5ac   : > { %v6872_v31 = vpop.permute.xlu1 %6871  ;;  %v7432_v50 = vmul.f32 %v14830_v59, %v7393_v56  ;;  %v7121_v51 = vld [vmem:[#allocation3 + $0x60] sm:$0xff] }
 0x5ad   : > { %7106 = vst [vmem:[#allocation3 + $0xe9] sm:$0x7f] %v7074_v32  ;;  %7105 = vst [vmem:[#allocation3 + $0xe1] sm:$0xff] %v7073_v55  ;;  %v7186_v5 = vrot.slane %v6872_v31, 1  ;;  %v7389_v1 = vmax.f32 %v7357_v6, 0.0 }
 0x5af   : > { %v7187_v34 = vsel %vm4726_vm7, %v7185_v0, %v7186_v5  ;;  %v7262_v41 = vadd.f32 %v7186_v5, %v7118_v39  ;;  %7459 = vadd.xlane.f32.xlu0 %v7427_v19  ;;  %v7324_v53 = vld [vmem:[#allocation3 + $0x38] sm:$0xff]  ;;  %v7428_v3 = vmul.f32 %v14830_v59, %v7389_v1 }
 0x5b0   : > { %v7261_v61 = vadd.f32 %v7187_v34, %v7117_v20  ;;  %v7363_v11 = vadd.f32 %v14818_v43, %v7324_v53 }
 0x5b1   : > { %7294 = vst [vmem:[#allocation3 + $0x48] sm:$0x7f] %v7262_v41 }
 0x5b2   : > { %v7043_v27 = vld [vmem:[#allocation3 + $0xf1] sm:$0xff]  ;;  %v7044_v12 = vld [vmem:[#allocation3 + $0xf9] sm:$0x7f]  ;;  %7293 = vst [vmem:[#allocation3 + $0x40] sm:$0xff] %v7261_v61  ;;  %v6874_v44 = vpop.permute.xlu0 %6873  ;;  %v7364_v62 = vadd.f32 %v14818_v43, %v7261_v61  ;;  %v7395_v35 = vmax.f32 %v7363_v11, 0.0 }
 0x5b3   : > { %v7075_v16 = vadd.f32 %v7043_v27, %v14779_v13  ;;  %v7076_v7 = vadd.f32 %v7044_v12, %v14788_v28  ;;  %7465 = vadd.xlane.f32.xlu0 %v7430_v40  ;;  %v7362_v13 = vadd.f32 %v14818_v43, %v7259_v54  ;;  %v7188_v47 = vrot.slane %v6874_v44, 1  ;;  %v7123_v61 = vld [vmem:[#allocation3 + $0x70] sm:$0xff] }
 0x5b4   : > { %v6876_v49 = vpop.permute.xlu1 %6875  ;;  %v7396_v36 = vmax.f32 %v7364_v62, 0.0  ;;  %v7434_v58 = vmul.f32 %v14830_v59, %v7395_v35  ;;  %v7128_v35 = vld [vmem:[#allocation3 + $0x98] sm:$0x7f] }
 0x5b5   : > { %7107 = vst [vmem:[#allocation3 + $0xf1] sm:$0xff] %v7075_v16  ;;  %7108 = vst [vmem:[#allocation3 + $0xf9] sm:$0x7f] %v7076_v7  ;;  %v7189_v28 = vrot.slane %v6876_v49, 1  ;;  %v7394_v17 = vmax.f32 %v7362_v13, 0.0 }
 0x5b6   : > { %7461 = vadd.xlane.f32.xlu1 %v7428_v3  ;;  %v7435_v15 = vmul.f32 %v14830_v59, %v7396_v36 }
 0x5b7   : > { %v7190_v18 = vsel %vm4726_vm7, %v7188_v47, %v7189_v28  ;;  %v7264_v63 = vadd.f32 %v7189_v28, %v7120_v8  ;;  %7463 = vadd.xlane.f32.xlu0 %v7429_v2  ;;  %v7433_v48 = vmul.f32 %v14830_v59, %v7394_v17  ;;  %v7125_v47 = vld [vmem:[#allocation3 + $0x80] sm:$0xff] }
 0x5b8   : > { %v7326_v9 = vld [vmem:[#allocation3 + $0x48] sm:$0xff]  ;;  %v7263_v42 = vadd.f32 %v7190_v18, %v7119_v38 }
 0x5b9   : > { %7296 = vst [vmem:[#allocation3 + $0x58] sm:$0x7f] %v7264_v63  ;;  %v7365_v22 = vadd.f32 %v14818_v43, %v7326_v9  ;;  %v6878_v60 = vpop.permute.xlu0 %6877 }
 0x5ba   : > { %7295 = vst [vmem:[#allocation3 + $0x50] sm:$0xff] %v7263_v42  ;;  %7467 = vadd.xlane.f32.xlu1 %v7431_v45  ;;  %v7366_v23 = vadd.f32 %v14818_v43, %v7263_v42  ;;  %v7191_v57 = vrot.slane %v6878_v60, 1  ;;  %v7127_v60 = vld [vmem:[#allocation3 + $0x90] sm:$0xff] }
 0x5bb   : > { %7469 = vadd.xlane.f32.xlu0 %v7432_v50  ;;  %v7397_v54 = vmax.f32 %v7365_v22, 0.0 }
 0x5bc   : > { %v7398_v4 = vmax.f32 %v7366_v23, 0.0 }
 0x5bd   : > { %v6880_v21 = vpop.permute.xlu1 %6879  ;;  %v7436_v31 = vmul.f32 %v14830_v59, %v7397_v54 }
 0x5be   : > { %v7192_v25 = vrot.slane %v6880_v21, 1  ;;  %7471 = vadd.xlane.f32.xlu1 %v7433_v48  ;;  %v7437_v19 = vmul.f32 %v14830_v59, %v7398_v4 }
 0x5bf   : > { %7473 = vadd.xlane.f32.xlu0 %v7434_v58 }
 0x5c0   : > { %v7193_v32 = vsel %vm4726_vm7, %v7191_v57, %v7192_v25  ;;  %v7266_v24 = vadd.f32 %v7192_v25, %v7122_v37  ;;  %v7328_v55 = vld [vmem:[#allocation3 + $0x58] sm:$0xff] }
 0x5c1   : > { %v7265_v30 = vadd.f32 %v7193_v32, %v7121_v51  ;;  %v7367_v0 = vadd.f32 %v14818_v43, %v7328_v55  ;;  %v6882_v5 = vpop.permute.xlu0 %6881  ;;  %v7129_v55 = vld [vmem:[#allocation3 + $0xa0] sm:$0xff] }
 0x5c2   : > { %7298 = vst [vmem:[#allocation3 + $0x68] sm:$0x7f] %v7266_v24  ;;  %7475 = vadd.xlane.f32.xlu1 %v7435_v15  ;;  %v7194_v20 = vrot.slane %v6882_v5, 1  ;;  %v7130_v15 = vld [vmem:[#allocation3 + $0xa8] sm:$0x7f] }
 0x5c3   : > { %7297 = vst [vmem:[#allocation3 + $0x60] sm:$0xff] %v7265_v30  ;;  %v7368_v6 = vadd.f32 %v14818_v43, %v7265_v30  ;;  %7477 = vadd.xlane.f32.xlu0 %v7436_v31  ;;  %v7399_v46 = vmax.f32 %v7367_v0, 0.0 }
 0x5c4   : > { %v6884_v39 = vpop.permute.xlu1 %6883 }
 0x5c5   : > { %v7400_v52 = vmax.f32 %v7368_v6, 0.0  ;;  %v7195_v34 = vrot.slane %v6884_v39, 1  ;;  %v7438_v41 = vmul.f32 %v14830_v59, %v7399_v46 }
 0x5c6   : > { %7479 = vadd.xlane.f32.xlu1 %v7437_v19 }
 0x5c7   : > { %v7196_v27 = vsel %vm4726_vm7, %v7194_v20, %v7195_v34  ;;  %v7268_v12 = vadd.f32 %v7195_v34, %v7124_v10  ;;  %7481 = vadd.xlane.f32.xlu0 %v7438_v41  ;;  %v7439_v33 = vmul.f32 %v14830_v59, %v7400_v52 }
 0x5c8   : > { %v7267_v1 = vadd.f32 %v7196_v27, %v7123_v61  ;;  %v7132_v27 = vld [vmem:[#allocation3 + $0xb8] sm:$0x7f] }
 0x5c9   : > { %v7330_v14 = vld [vmem:[#allocation3 + $0x68] sm:$0xff]  ;;  %7300 = vst [vmem:[#allocation3 + $0x78] sm:$0x7f] %v7268_v12  ;;  %v6886_v7 = vpop.permute.xlu0 %6885 }
 0x5ca   : > { %v7369_v16 = vadd.f32 %v14818_v43, %v7330_v14  ;;  %7299 = vst [vmem:[#allocation3 + $0x70] sm:$0xff] %v7267_v1  ;;  %7483 = vadd.xlane.f32.xlu1 %v7439_v33  ;;  %v7370_v40 = vadd.f32 %v14818_v43, %v7267_v1  ;;  %v7197_v49 = vrot.slane %v6886_v7, 1  ;;  %v7131_v1 = vld [vmem:[#allocation3 + $0xb0] sm:$0xff] }
 0x5cc   : > { %v7401_v29 = vmax.f32 %v7369_v16, 0.0  ;;  %v6888_v44 = vpop.permute.xlu1 %6887  ;;  %v7402_v53 = vmax.f32 %v7370_v40, 0.0 }
 0x5cd   : > { %v7198_v3 = vrot.slane %v6888_v44, 1 }
 0x5ce   : > { %v7440_v2 = vmul.f32 %v14830_v59, %v7401_v29  ;;  %v7441_v13 = vmul.f32 %v14830_v59, %v7402_v53 }
 0x5cf   : > { %v7199_v28 = vsel %vm4726_vm7, %v7197_v49, %v7198_v3  ;;  %v7270_v56 = vadd.f32 %v7198_v3, %v7126_v26 }
 0x5d0   : > { %7485 = vadd.xlane.f32.xlu0 %v7440_v2  ;;  %v7269_v11 = vadd.f32 %v7199_v28, %v7125_v47  ;;  %v7332_v8 = vld [vmem:[#allocation3 + $0x78] sm:$0xff]  ;;  %7487 = vadd.xlane.f32.xlu1 %v7441_v13  ;;  %v7134_v47 = vld [vmem:[#allocation3 + $0xc8] sm:$0x7f] }
 0x5d1   : > { %7302 = vst [vmem:[#allocation3 + $0x88] sm:$0x7f] %v7270_v56  ;;  %v7371_v38 = vadd.f32 %v14818_v43, %v7332_v8  ;;  %v6890_v18 = vpop.permute.xlu0 %6889  ;;  %v7133_v56 = vld [vmem:[#allocation3 + $0xc0] sm:$0xff] }
 0x5d2   : > { %7301 = vst [vmem:[#allocation3 + $0x80] sm:$0xff] %v7269_v11  ;;  %v7372_v63 = vadd.f32 %v14818_v43, %v7269_v11  ;;  %v7200_v17 = vrot.slane %v6890_v18, 1 }
 0x5d3   : > { %v7403_v9 = vmax.f32 %v7371_v38, 0.0 }
 0x5d4   : > { %v7404_v45 = vmax.f32 %v7372_v63, 0.0 }
 0x5d5   : > { %v6892_v42 = vpop.permute.xlu1 %6891  ;;  %v7442_v50 = vmul.f32 %v14830_v59, %v7403_v9 }
 0x5d6   : > { %v7201_v62 = vrot.slane %v6892_v42, 1  ;;  %v7443_v22 = vmul.f32 %v14830_v59, %v7404_v45 }
 0x5d7   : > { %7489 = vadd.xlane.f32.xlu0 %v7442_v50 }
 0x5d8   : > { %v7202_v21 = vsel %vm4726_vm7, %v7200_v17, %v7201_v62  ;;  %v7272_v48 = vadd.f32 %v7201_v62, %v7128_v35  ;;  %v7334_v23 = vld [vmem:[#allocation3 + $0x88] sm:$0xff]  ;;  %7491 = vadd.xlane.f32.xlu1 %v7443_v22 }
 0x5d9   : > { %v7271_v36 = vadd.f32 %v7202_v21, %v7127_v60  ;;  %v7373_v57 = vadd.f32 %v14818_v43, %v7334_v23  ;;  %v6894_v25 = vpop.permute.xlu0 %6893  ;;  %v7136_v60 = vld [vmem:[#allocation3 + $0xd8] sm:$0x7f] }
 0x5da   : > { %7304 = vst [vmem:[#allocation3 + $0x98] sm:$0x7f] %v7272_v48  ;;  %v7203_v32 = vrot.slane %v6894_v25, 1  ;;  %v7135_v48 = vld [vmem:[#allocation3 + $0xd0] sm:$0xff] }
 0x5db   : > { %7303 = vst [vmem:[#allocation3 + $0x90] sm:$0xff] %v7271_v36  ;;  %v7374_v58 = vadd.f32 %v14818_v43, %v7271_v36  ;;  %v7405_v54 = vmax.f32 %v7373_v57, 0.0 }
 0x5dd   : > { %v6896_v37 = vpop.permute.xlu1 %6895  ;;  %v7406_v51 = vmax.f32 %v7374_v58, 0.0  ;;  %v7444_v30 = vmul.f32 %v14830_v59, %v7405_v54 }
 0x5de   : > { %v7204_v24 = vrot.slane %v6896_v37, 1 }
 0x5df   : > { %v7445_v4 = vmul.f32 %v14830_v59, %v7406_v51  ;;  %7493 = vadd.xlane.f32.xlu0 %v7444_v30 }
 0x5e0   : > { %v7205_v31 = vsel %vm4726_vm7, %v7203_v32, %v7204_v24  ;;  %v7274_v0 = vadd.f32 %v7204_v24, %v7130_v15 }
 0x5e1   : > { %v7273_v5 = vadd.f32 %v7205_v31, %v7129_v55  ;;  %v7336_v6 = vld [vmem:[#allocation3 + $0x98] sm:$0xff]  ;;  %7495 = vadd.xlane.f32.xlu1 %v7445_v4  ;;  %v6898_v39 = vpop.permute.xlu0 %6897  ;;  %v7138_v4 = vld [vmem:[#allocation3 + $0xe8] sm:$0x7f]  ;;  %v7137_v31 = vld [vmem:[#allocation3 + $0xe0] sm:$0xff] }
 0x5e2   : > { %7306 = vst [vmem:[#allocation3 + $0xa8] sm:$0x7f] %v7274_v0  ;;  %v7375_v46 = vadd.f32 %v14818_v43, %v7336_v6  ;;  %v7206_v41 = vrot.slane %v6898_v39, 1 }
 0x5e3   : > { %7305 = vst [vmem:[#allocation3 + $0xa0] sm:$0xff] %v7273_v5  ;;  %v7376_v19 = vadd.f32 %v14818_v43, %v7273_v5 }
 0x5e4   : > { %v7407_v52 = vmax.f32 %v7375_v46, 0.0 }
 0x5e5   : > { %v6900_v20 = vpop.permute.xlu1 %6899  ;;  %v7408_v34 = vmax.f32 %v7376_v19, 0.0 }
 0x5e6   : > { %v7207_v10 = vrot.slane %v6900_v20, 1  ;;  %v7446_v61 = vmul.f32 %v14830_v59, %v7407_v52 }
 0x5e7   : > { %v7447_v12 = vmul.f32 %v14830_v59, %v7408_v34 }
 0x5e8   : > { %v7208_v14 = vsel %vm4726_vm7, %v7206_v41, %v7207_v10  ;;  %v7276_v33 = vadd.f32 %v7207_v10, %v7132_v27  ;;  %7497 = vadd.xlane.f32.xlu0 %v7446_v61 }
 0x5e9   : > { %v7275_v16 = vadd.f32 %v7208_v14, %v7131_v1  ;;  %v7338_v7 = vld [vmem:[#allocation3 + $0xa8] sm:$0xff]  ;;  %7499 = vadd.xlane.f32.xlu1 %v7447_v12  ;;  %v6902_v29 = vpop.permute.xlu0 %6901  ;;  %v7140_v14 = vld [vmem:[#allocation3 + $0xf8] sm:$0x7f] }
 0x5ea   : > { %7308 = vst [vmem:[#allocation3 + $0xb8] sm:$0x7f] %v7276_v33  ;;  %v7377_v40 = vadd.f32 %v14818_v43, %v7338_v7  ;;  %v7209_v2 = vrot.slane %v6902_v29, 1 }
 0x5eb   : > { %7307 = vst [vmem:[#allocation3 + $0xb0] sm:$0xff] %v7275_v16  ;;  %v7378_v44 = vadd.f32 %v14818_v43, %v7275_v16  ;;  %v7139_v16 = vld [vmem:[#allocation3 + $0xf0] sm:$0xff] }
 0x5ec   : > { %v7409_v53 = vmax.f32 %v7377_v40, 0.0 }
 0x5ed   : > { %v6904_v49 = vpop.permute.xlu1 %6903  ;;  %v7410_v3 = vmax.f32 %v7378_v44, 0.0 }
 0x5ee   : > { %v7210_v26 = vrot.slane %v6904_v49, 1  ;;  %v7448_v13 = vmul.f32 %v14830_v59, %v7409_v53 }
 0x5ef   : > { %v7449_v28 = vmul.f32 %v14830_v59, %v7410_v3 }
 0x5f0   : > { %v7211_v11 = vsel %vm4726_vm7, %v7209_v2, %v7210_v26  ;;  %v7278_v8 = vadd.f32 %v7210_v26, %v7134_v47  ;;  %7501 = vadd.xlane.f32.xlu0 %v7448_v13 }
 0x5f1   : > { %v7277_v38 = vadd.f32 %v7211_v11, %v7133_v56  ;;  %v7340_v18 = vld [vmem:[#allocation3 + $0xb8] sm:$0xff]  ;;  %7503 = vadd.xlane.f32.xlu1 %v7449_v28  ;;  %v6906_v9 = vpop.permute.xlu0 %6905  ;;  %v7555_v11 = vlaneseq }
 0x5f2   : > { %7310 = vst [vmem:[#allocation3 + $0xc8] sm:$0x7f] %v7278_v8  ;;  %v7379_v63 = vadd.f32 %v14818_v43, %v7340_v18  ;;  %v7212_v50 = vrot.slane %v6906_v9, 1  ;;  %v12137_v8 = vmov 1966171168  }
 0x5f3   : > { %7309 = vst [vmem:[#allocation3 + $0xc0] sm:$0xff] %v7277_v38  ;;  %v7380_v42 = vadd.f32 %v14818_v43, %v7277_v38  ;;  %v8584_v38 = vunpack.c.l.s4 %v12137_v8  ;;  %v14910_v18 = vshrl.u32 %v7555_v11, 7 }
 0x5f4   : > { %v7411_v45 = vmax.f32 %v7379_v63, 0.0 }
 0x5f5   : > { %v6908_v17 = vpop.permute.xlu1 %6907  ;;  %v7412_v62 = vmax.f32 %v7380_v42, 0.0  ;;  %v8585_v63 = vunpack.c.0.s8 %v8584_v38  ;;  %v14913_v9 = vsub.s32 0, %v14910_v18  ;;  %v14916_v42 = vsub.s32 1, %v14910_v18 }
 0x5f6   : > { %v7213_v35 = vrot.slane %v6908_v17, 1  ;;  %v7450_v22 = vmul.f32 %v14830_v59, %v7411_v45  ;;  %v14919_v45 = vsub.s32 2, %v14910_v18  ;;  %v14928_v17 = vsub.s32 5, %v14910_v18 }
 0x5f7   : > { %v7451_v21 = vmul.f32 %v14830_v59, %v7412_v62  ;;  %v14931_v62 = vsub.s32 6, %v14910_v18 }
 0x5f8   : > { %v7214_v36 = vsel %vm4726_vm7, %v7212_v50, %v7213_v35  ;;  %v7280_v23 = vadd.f32 %v7213_v35, %v7136_v60  ;;  %7505 = vadd.xlane.f32.xlu0 %v7450_v22  ;;  %v14934_v50 = vsub.s32 7, %v14910_v18  ;;  %v14937_v22 = vsub.s32 %v8585_v63, %v14910_v18 }
 0x5f9   : > { %v7279_v57 = vadd.f32 %v7214_v36, %v7135_v48  ;;  %v7342_v25 = vld [vmem:[#allocation3 + $0xc8] sm:$0xff]  ;;  %7507 = vadd.xlane.f32.xlu1 %v7451_v21  ;;  %v6910_v58 = vpop.permute.xlu0 %6909 }
 0x5fa   : > { %7312 = vst [vmem:[#allocation3 + $0xd8] sm:$0x7f] %v7280_v23  ;;  %v7381_v54 = vadd.f32 %v14818_v43, %v7342_v25  ;;  %v7215_v24 = vrot.slane %v6910_v58, 1 }
 0x5fb   : > { %7311 = vst [vmem:[#allocation3 + $0xd0] sm:$0xff] %v7279_v57  ;;  %v7382_v37 = vadd.f32 %v14818_v43, %v7279_v57  ;;  %v6912_v51 = vpop.permute.xlu1 %6911 }
 0x5fc   : > { %v7413_v32 = vmax.f32 %v7381_v54, 0.0  ;;  %v7216_v30 = vrot.slane %v6912_v51, 1 }
 0x5fd   : > { %v7414_v15 = vmax.f32 %v7382_v37, 0.0 }
 0x5fe   : > { %v7452_v55 = vmul.f32 %v14830_v59, %v7413_v32  ;;  %v7217_v0 = vsel %vm4726_vm7, %v7215_v24, %v7216_v30  ;;  %v7282_v5 = vadd.f32 %v7216_v30, %v7138_v4 }
 0x5ff   : > { %v7453_v6 = vmul.f32 %v14830_v59, %v7414_v15  ;;  %v7281_v46 = vadd.f32 %v7217_v0, %v7137_v31 }
 0x600   : > { %7509 = vadd.xlane.f32.xlu0 %v7452_v55  ;;  %7314 = vst [vmem:[#allocation3 + $0xe8] sm:$0x7f] %v7282_v5 }
 0x601   : > { %v7344_v39 = vld [vmem:[#allocation3 + $0xd8] sm:$0xff]  ;;  %7511 = vadd.xlane.f32.xlu1 %v7453_v6  ;;  %7313 = vst [vmem:[#allocation3 + $0xe0] sm:$0xff] %v7281_v46  ;;  %v7384_v52 = vadd.f32 %v14818_v43, %v7281_v46 }
 0x602   : > { %v7383_v19 = vadd.f32 %v14818_v43, %v7344_v39  ;;  %v6914_v20 = vpop.permute.xlu0 %6913 }
 0x603   : > { %v7416_v41 = vmax.f32 %v7384_v52, 0.0  ;;  %v7218_v27 = vrot.slane %v6914_v20, 1 }
 0x604   : > { %v7415_v34 = vmax.f32 %v7383_v19, 0.0  ;;  %v6916_v10 = vpop.permute.xlu1 %6915 }
 0x605   : > { %v7219_v61 = vrot.slane %v6916_v10, 1  ;;  %v7455_v1 = vmul.f32 %v14830_v59, %v7416_v41 }
 0x606   : > { %v7454_v12 = vmul.f32 %v14830_v59, %v7415_v34 }
 0x607   : > { %v7284_v33 = vadd.f32 %v7219_v61, %v7140_v14  ;;  %v7220_v7 = vsel %vm4726_vm7, %v7218_v27, %v7219_v61  ;;  %v7346_v40 = vld [vmem:[#allocation3 + $0xe8] sm:$0xff]  ;;  %7515 = vadd.xlane.f32.xlu1 %v7455_v1  ;;  %vm10451_vm7 = vcmp.lt.s32.totalorder %v7555_v11, 256 }
 0x608   : > { %7513 = vadd.xlane.f32.xlu0 %v7454_v12  ;;  %v7283_v29 = vadd.f32 %v7220_v7, %v7139_v16  ;;  %v7385_v44 = vadd.f32 %v14818_v43, %v7346_v40 }
 0x609   : > { %7316 = vst [vmem:[#allocation3 + $0xf8] sm:$0x7f] %v7284_v33 }
 0x60a   : > { %7315 = vst [vmem:[#allocation3 + $0xf0] sm:$0xff] %v7283_v29  ;;  %v7417_v53 = vmax.f32 %v7385_v44, 0.0  ;;  %v7386_v49 = vadd.f32 %v14818_v43, %v7283_v29 }
 0x60c   : > { %v7456_v3 = vmul.f32 %v14830_v59, %v7417_v53  ;;  %v7418_v2 = vmax.f32 %v7386_v49, 0.0 }
 0x60e   : > { %7517 = vadd.xlane.f32.xlu0 %v7456_v3  ;;  %v7457_v26 = vmul.f32 %v14830_v59, %v7418_v2 }
 0x610   : > { %v7348_v13 = vld [vmem:[#allocation3 + $0xf8] sm:$0xff]  ;;  %7519 = vadd.xlane.f32.xlu1 %v7457_v26 }
 0x611   : > { %v7387_v47 = vadd.f32 %v14818_v43, %v7348_v13  ;;  %v14922_v43 = vsub.s32 3, %v14910_v18 }
 0x613   : > { %v7419_v28 = vmax.f32 %v7387_v47, 0.0 }
 0x615   : > { %v7458_v56 = vmul.f32 %v14830_v59, %v7419_v28  ;;  %v14925_v59 = vsub.s32 4, %v14910_v18 }
 0x617   : > { %7521 = vadd.xlane.f32.xlu0 %v7458_v56 }
 0x63c   : > { %v7460_v35 = vpop.xlane.xlu0 %7459 }
 0x63d   : > { %v7558_v60 = vrot.slane %v7460_v35, %v14913_v9  ;;  %v7562_v21 = vrot.slane %v7460_v35, %v14916_v42  ;;  %v7566_v48 = vrot.slane %v7460_v35, %v14919_v45  ;;  %v7570_v36 = vrot.slane %v7460_v35, %v14922_v43 }
 0x63e   : > { %v7574_v23 = vrot.slane %v7460_v35, %v14925_v59  ;;  %v7578_v57 = vrot.slane %v7460_v35, %v14928_v17  ;;  %v7582_v25 = vrot.slane %v7460_v35, %v14931_v62  ;;  %v7586_v58 = vrot.slane %v7460_v35, %v14934_v50 }
 0x63f   : > { %v8579_v54 = vcombine.low %v7558_v60, %v7562_v21  ;;  %v8580_v37 = vcombine.low %v7566_v48, %v7570_v36 }
 0x640   : > { %v7466_v51 = vpop.xlane.xlu0 %7465  ;;  %v8581_v32 = vcombine.low %v7574_v23, %v7578_v57  ;;  %v8582_v24 = vcombine.low %v7582_v25, %v7586_v58 }
 0x641   : > { %v8589_v30 = vrot.slane %v8579_v54, %v14937_v22  ;;  %v8596_v15 = vrot.slane %v8580_v37, %v14937_v22  ;;  %v7654_v4 = vrot.slane %v7466_v51, %v14913_v9  ;;  %v7658_v55 = vrot.slane %v7466_v51, %v14916_v42 }
 0x642   : > { %v8603_v31 = vrot.slane %v8581_v32, %v14937_v22  ;;  %v8610_v0 = vrot.slane %v8582_v24, %v14937_v22  ;;  %v7662_v5 = vrot.slane %v7466_v51, %v14919_v45  ;;  %v7666_v6 = vrot.slane %v7466_v51, %v14922_v43 }
 0x643   : > { %v7462_v46 = vpop.xlane.xlu1 %7461  ;;  %v8611_v39 = vcombine.low %v8589_v30, %v8596_v15  ;;  %v7670_v19 = vrot.slane %v7466_v51, %v14925_v59  ;;  %v7674_v52 = vrot.slane %v7466_v51, %v14928_v17  ;;  %v7678_v20 = vrot.slane %v7466_v51, %v14931_v62 }
 0x644   : > { %v7464_v34 = vpop.xlane.xlu0 %7463  ;;  %v8612_v41 = vcombine.low %v8603_v31, %v8610_v0  ;;  %v7682_v10 = vrot.slane %v7466_v51, %v14934_v50  ;;  %v8726_v61 = vcombine.low %v7654_v4, %v7658_v55  ;;  %v8727_v27 = vcombine.low %v7662_v5, %v7666_v6 }
 0x645   : > { %v8619_v12 = vrot.slane %v8611_v39, %v14937_v22  ;;  %v8728_v1 = vcombine.low %v7670_v19, %v7674_v52  ;;  %v7590_v14 = vrot.slane %v7462_v46, %v14913_v9  ;;  %v7594_v33 = vrot.slane %v7462_v46, %v14916_v42 }
 0x646   : > { %v8626_v16 = vrot.slane %v8612_v41, %v14937_v22  ;;  %v8729_v7 = vcombine.low %v7678_v20, %v7682_v10  ;;  %v8736_v40 = vrot.slane %v8726_v61, %v14937_v22  ;;  %v8743_v29 = vrot.slane %v8727_v27, %v14937_v22 }
 0x647   : > { %v8750_v44 = vrot.slane %v8728_v1, %v14937_v22  ;;  %v7598_v53 = vrot.slane %v7462_v46, %v14919_v45  ;;  %v7602_v49 = vrot.slane %v7462_v46, %v14922_v43  ;;  %v7606_v3 = vrot.slane %v7462_v46, %v14925_v59  ;;  %v7468_v1 = vpop.xlane.xlu1 %7467 }
 0x648   : > { %v8627_v2 = vcombine.low %v8619_v12, %v8626_v16  ;;  %v8757_v26 = vrot.slane %v8729_v7, %v14937_v22  ;;  %v8758_v13 = vcombine.low %v8736_v40, %v8743_v29  ;;  %v7610_v47 = vrot.slane %v7462_v46, %v14928_v17  ;;  %v7470_v63 = vpop.xlane.xlu0 %7469 }
 0x649   : > { %v7614_v28 = vrot.slane %v7462_v46, %v14931_v62  ;;  %v7618_v56 = vrot.slane %v7462_v46, %v14934_v50  ;;  %v8628_v8 = vcombine.low %v7590_v14, %v7594_v33  ;;  %v8629_v38 = vcombine.low %v7598_v53, %v7602_v49 }
 0x64a   : > { %10148 = vperm.xlu1 %11775, %v8627_v2   ;;  %v8759_v35 = vcombine.low %v8750_v44, %v8757_v26  ;;  %v8766_v60 = vrot.slane %v8758_v13, %v14937_v22  ;;  %v8630_v21 = vcombine.low %v7606_v3, %v7610_v47  ;;  %v7622_v48 = vrot.slane %v7464_v34, %v14913_v9 }
 0x64b   : > { %v8631_v36 = vcombine.low %v7614_v28, %v7618_v56  ;;  %v8638_v23 = vrot.slane %v8628_v8, %v14937_v22  ;;  %v8645_v57 = vrot.slane %v8629_v38, %v14937_v22  ;;  %v7626_v25 = vrot.slane %v7464_v34, %v14916_v42 }
 0x64c   : > { %v8773_v58 = vrot.slane %v8759_v35, %v14937_v22  ;;  %v8652_v54 = vrot.slane %v8630_v21, %v14937_v22  ;;  %v7630_v37 = vrot.slane %v7464_v34, %v14919_v45  ;;  %v7634_v51 = vrot.slane %v7464_v34, %v14922_v43  ;;  %v14988_v19 = vpop.xlane.xlu0 %7473 }
 0x64d   : > { %v8659_v32 = vrot.slane %v8631_v36, %v14937_v22  ;;  %v8660_v24 = vcombine.low %v8638_v23, %v8645_v57  ;;  %v7638_v30 = vrot.slane %v7464_v34, %v14925_v59  ;;  %v7642_v15 = vrot.slane %v7464_v34, %v14928_v17 }
 0x64e   : > { %v8774_v4 = vcombine.low %v8766_v60, %v8773_v58  ;;  %v7646_v55 = vrot.slane %v7464_v34, %v14931_v62  ;;  %v7650_v31 = vrot.slane %v7464_v34, %v14934_v50  ;;  %v8677_v0 = vcombine.low %v7622_v48, %v7626_v25 }
 0x64f   : > { %v8661_v5 = vcombine.low %v8652_v54, %v8659_v32  ;;  %v8668_v6 = vrot.slane %v8660_v24, %v14937_v22  ;;  %v8678_v46 = vcombine.low %v7630_v37, %v7634_v51  ;;  %v8679_v39 = vcombine.low %v7638_v30, %v7642_v15 }
 0x650   : > { %10157 = vperm.xlu1 %11775, %v8774_v4   ;;  %v8680_v52 = vcombine.low %v7646_v55, %v7650_v31  ;;  %v8687_v20 = vrot.slane %v8677_v0, %v14937_v22  ;;  %v7718_v41 = vrot.slane %v7470_v63, %v14913_v9  ;;  %v7722_v10 = vrot.slane %v7470_v63, %v14916_v42  ;;  %v15006_v8 = vpop.xlane.xlu0 %7477  ;;  %v15024_v31 = vpop.xlane.xlu1 %7471 }
 0x651   : > { %v8675_v61 = vrot.slane %v8661_v5, %v14937_v22  ;;  %v8694_v34 = vrot.slane %v8678_v46, %v14937_v22  ;;  %v8701_v27 = vrot.slane %v8679_v39, %v14937_v22  ;;  %v7726_v12 = vrot.slane %v7470_v63, %v14919_v45 }
 0x652   : > { %v8708_v14 = vrot.slane %v8680_v52, %v14937_v22  ;;  %v7730_v33 = vrot.slane %v7470_v63, %v14922_v43  ;;  %v7734_v16 = vrot.slane %v7470_v63, %v14925_v59  ;;  %v7738_v7 = vrot.slane %v7470_v63, %v14928_v17 }
 0x653   : > { %v8676_v40 = vcombine.low %v8668_v6, %v8675_v61  ;;  %v8709_v29 = vcombine.low %v8687_v20, %v8694_v34  ;;  %v7742_v44 = vrot.slane %v7470_v63, %v14931_v62  ;;  %v7746_v53 = vrot.slane %v7470_v63, %v14934_v50 }
 0x654   : > { %v8710_v49 = vcombine.low %v8701_v27, %v8708_v14  ;;  %v8824_v3 = vcombine.low %v7718_v41, %v7722_v10  ;;  %v8825_v2 = vcombine.low %v7726_v12, %v7730_v33  ;;  %v8826_v26 = vcombine.low %v7734_v16, %v7738_v7  ;;  %v7482_v39 = vpop.xlane.xlu0 %7481 }
 0x655   : > { %10151 = vperm.xlu0 %11774, %v8676_v40   ;;  %v8717_v13 = vrot.slane %v8709_v29, %v14937_v22  ;;  %v8827_v47 = vcombine.low %v7742_v44, %v7746_v53  ;;  %v7686_v28 = vrot.slane %v7468_v1, %v14913_v9  ;;  %v7690_v56 = vrot.slane %v7468_v1, %v14916_v42 }
 0x656   : > { %v8724_v38 = vrot.slane %v8710_v49, %v14937_v22  ;;  %v8834_v35 = vrot.slane %v8824_v3, %v14937_v22  ;;  %v8841_v63 = vrot.slane %v8825_v2, %v14937_v22  ;;  %v8848_v60 = vrot.slane %v8826_v26, %v14937_v22  ;;  %v15048_v26 = vpop.xlane.xlu1 %7475 }
 0x657   : > { %v8855_v21 = vrot.slane %v8827_v47, %v14937_v22  ;;  %v7694_v48 = vrot.slane %v7468_v1, %v14919_v45  ;;  %v7698_v36 = vrot.slane %v7468_v1, %v14922_v43  ;;  %v7702_v23 = vrot.slane %v7468_v1, %v14925_v59 }
 0x658   : > { %v8725_v57 = vcombine.low %v8717_v13, %v8724_v38  ;;  %v8856_v25 = vcombine.low %v8834_v35, %v8841_v63  ;;  %v7706_v58 = vrot.slane %v7468_v1, %v14928_v17  ;;  %v7710_v54 = vrot.slane %v7468_v1, %v14931_v62 }
 0x659   : > { %v8857_v37 = vcombine.low %v8848_v60, %v8855_v21  ;;  %v7714_v51 = vrot.slane %v7468_v1, %v14934_v50  ;;  %v8775_v32 = vcombine.low %v7686_v28, %v7690_v56  ;;  %v8776_v24 = vcombine.low %v7694_v48, %v7698_v36 }
 0x65a   : > { %10154 = vperm.xlu1 %11775, %v8725_v57   ;;  %v8864_v30 = vrot.slane %v8856_v25, %v14937_v22  ;;  %v8777_v15 = vcombine.low %v7702_v23, %v7706_v58  ;;  %v7782_v4 = vrot.slane %v14988_v19, %v14913_v9  ;;  %v7786_v55 = vrot.slane %v14988_v19, %v14916_v42 }
 0x65b   : > { %v8871_v0 = vrot.slane %v8857_v37, %v14937_v22  ;;  %v8778_v5 = vcombine.low %v7710_v54, %v7714_v51  ;;  %v8785_v6 = vrot.slane %v8775_v32, %v14937_v22  ;;  %v8792_v46 = vrot.slane %v8776_v24, %v14937_v22 }
 0x65c   : > { %v8799_v52 = vrot.slane %v8777_v15, %v14937_v22  ;;  %v7790_v20 = vrot.slane %v14988_v19, %v14919_v45  ;;  %v7794_v41 = vrot.slane %v14988_v19, %v14922_v43  ;;  %v7798_v10 = vrot.slane %v14988_v19, %v14925_v59 }
 0x65d   : > { %v8872_v61 = vcombine.low %v8864_v30, %v8871_v0  ;;  %v8806_v34 = vrot.slane %v8778_v5, %v14937_v22  ;;  %v8807_v27 = vcombine.low %v8785_v6, %v8792_v46  ;;  %v7802_v12 = vrot.slane %v14988_v19, %v14928_v17 }
 0x65e   : > { %v7806_v1 = vrot.slane %v14988_v19, %v14931_v62  ;;  %v7810_v14 = vrot.slane %v14988_v19, %v14934_v50  ;;  %v8922_v33 = vcombine.low %v7782_v4, %v7786_v55  ;;  %v8923_v16 = vcombine.low %v7790_v20, %v7794_v41  ;;  %v7480_v55 = vpop.xlane.xlu1 %7479 }
 0x65f   : > { %10163 = vperm.xlu1 %11775, %v8872_v61   ;;  %v8808_v7 = vcombine.low %v8799_v52, %v8806_v34  ;;  %v8815_v40 = vrot.slane %v8807_v27, %v14937_v22  ;;  %v8924_v29 = vcombine.low %v7798_v10, %v7802_v12  ;;  %v7910_v44 = vrot.slane %v7482_v39, %v14913_v9 }
 0x660   : > { %v8925_v53 = vcombine.low %v7806_v1, %v7810_v14  ;;  %v8932_v49 = vrot.slane %v8922_v33, %v14937_v22  ;;  %v8939_v3 = vrot.slane %v8923_v16, %v14937_v22  ;;  %v7914_v2 = vrot.slane %v7482_v39, %v14916_v42 }
 0x661   : > { %v8822_v19 = vrot.slane %v8808_v7, %v14937_v22  ;;  %v8946_v13 = vrot.slane %v8924_v29, %v14937_v22  ;;  %v7918_v47 = vrot.slane %v7482_v39, %v14919_v45  ;;  %v7922_v28 = vrot.slane %v7482_v39, %v14922_v43 }
 0x662   : > { %v8953_v56 = vrot.slane %v8925_v53, %v14937_v22  ;;  %v8954_v38 = vcombine.low %v8932_v49, %v8939_v3  ;;  %v7926_v35 = vrot.slane %v7482_v39, %v14925_v59  ;;  %v7930_v63 = vrot.slane %v7482_v39, %v14928_v17 }
 0x663   : > { %v8823_v60 = vcombine.low %v8815_v40, %v8822_v19  ;;  %v7934_v21 = vrot.slane %v7482_v39, %v14931_v62  ;;  %v7938_v48 = vrot.slane %v7482_v39, %v14934_v50  ;;  %v9118_v36 = vcombine.low %v7910_v44, %v7914_v2 }
 0x664   : > { %v8955_v23 = vcombine.low %v8946_v13, %v8953_v56  ;;  %v8962_v57 = vrot.slane %v8954_v38, %v14937_v22  ;;  %v9119_v25 = vcombine.low %v7918_v47, %v7922_v28  ;;  %v9120_v58 = vcombine.low %v7926_v35, %v7930_v63 }
 0x665   : > { %10160 = vperm.xlu1 %11775, %v8823_v60   ;;  %v9121_v54 = vcombine.low %v7934_v21, %v7938_v48  ;;  %v9128_v37 = vrot.slane %v9118_v36, %v14937_v22  ;;  %v7750_v51 = vrot.slane %v15024_v31, %v14913_v9  ;;  %v7754_v32 = vrot.slane %v15024_v31, %v14916_v42 }
 0x666   : > { %v8969_v24 = vrot.slane %v8955_v23, %v14937_v22  ;;  %v9135_v30 = vrot.slane %v9119_v25, %v14937_v22  ;;  %v9142_v15 = vrot.slane %v9120_v58, %v14937_v22  ;;  %v7758_v4 = vrot.slane %v15024_v31, %v14919_v45  ;;  %v7486_v25 = vpop.xlane.xlu0 %7485 }
 0x667   : > { %v9149_v0 = vrot.slane %v9121_v54, %v14937_v22  ;;  %v7762_v5 = vrot.slane %v15024_v31, %v14922_v43  ;;  %v7766_v6 = vrot.slane %v15024_v31, %v14925_v59  ;;  %v7770_v46 = vrot.slane %v15024_v31, %v14928_v17 }
 0x668   : > { %v8970_v39 = vcombine.low %v8962_v57, %v8969_v24  ;;  %v9150_v52 = vcombine.low %v9128_v37, %v9135_v30  ;;  %v7774_v20 = vrot.slane %v15024_v31, %v14931_v62  ;;  %v7778_v41 = vrot.slane %v15024_v31, %v14934_v50 }
 0x669   : > { %v9151_v10 = vcombine.low %v9142_v15, %v9149_v0  ;;  %v8873_v61 = vcombine.low %v7750_v51, %v7754_v32  ;;  %v8874_v34 = vcombine.low %v7758_v4, %v7762_v5  ;;  %v8875_v27 = vcombine.low %v7766_v6, %v7770_v46 }
 0x66a   : > { %10169 = vperm.xlu1 %11775, %v8970_v39   ;;  %v9158_v12 = vrot.slane %v9150_v52, %v14937_v22  ;;  %v8876_v1 = vcombine.low %v7774_v20, %v7778_v41  ;;  %v7878_v14 = vrot.slane %v7480_v55, %v14913_v9  ;;  %v7882_v33 = vrot.slane %v7480_v55, %v14916_v42 }
 0x66b   : > { %v9165_v16 = vrot.slane %v9151_v10, %v14937_v22  ;;  %v8883_v7 = vrot.slane %v8873_v61, %v14937_v22  ;;  %v8890_v40 = vrot.slane %v8874_v34, %v14937_v22  ;;  %v8897_v31 = vrot.slane %v8875_v27, %v14937_v22 }
 0x66c   : > { %v8904_v29 = vrot.slane %v8876_v1, %v14937_v22  ;;  %v7886_v44 = vrot.slane %v7480_v55, %v14919_v45  ;;  %v7890_v53 = vrot.slane %v7480_v55, %v14922_v43  ;;  %v7894_v49 = vrot.slane %v7480_v55, %v14925_v59 }
 0x66d   : > { %v9166_v3 = vcombine.low %v9158_v12, %v9165_v16  ;;  %v8905_v2 = vcombine.low %v8883_v7, %v8890_v40  ;;  %v7898_v19 = vrot.slane %v7480_v55, %v14928_v17  ;;  %v7902_v13 = vrot.slane %v7480_v55, %v14931_v62 }
 0x66e   : > { %v8906_v47 = vcombine.low %v8897_v31, %v8904_v29  ;;  %v7906_v28 = vrot.slane %v7480_v55, %v14934_v50  ;;  %v9069_v56 = vcombine.low %v7878_v14, %v7882_v33  ;;  %v9070_v38 = vcombine.low %v7886_v44, %v7890_v53 }
 0x66f   : > { %10181 = vperm.xlu0 %11774, %v9166_v3   ;;  %v8913_v35 = vrot.slane %v8905_v2, %v14937_v22  ;;  %v9071_v63 = vcombine.low %v7894_v49, %v7898_v19  ;;  %v7846_v60 = vrot.slane %v15006_v8, %v14913_v9  ;;  %v7850_v21 = vrot.slane %v15006_v8, %v14916_v42 }
 0x670   : > { %v8920_v48 = vrot.slane %v8906_v47, %v14937_v22  ;;  %v9072_v36 = vcombine.low %v7902_v13, %v7906_v28  ;;  %v9079_v23 = vrot.slane %v9069_v56, %v14937_v22  ;;  %v9086_v57 = vrot.slane %v9070_v38, %v14937_v22 }
 0x671   : > { %v9093_v58 = vrot.slane %v9071_v63, %v14937_v22  ;;  %v7854_v54 = vrot.slane %v15006_v8, %v14919_v45  ;;  %v7858_v37 = vrot.slane %v15006_v8, %v14922_v43  ;;  %v7862_v51 = vrot.slane %v15006_v8, %v14925_v59  ;;  %v7484_v63 = vpop.xlane.xlu1 %7483 }
 0x672   : > { %v8921_v32 = vcombine.low %v8913_v35, %v8920_v48  ;;  %v9100_v24 = vrot.slane %v9072_v36, %v14937_v22  ;;  %v9101_v30 = vcombine.low %v9079_v23, %v9086_v57  ;;  %v7866_v15 = vrot.slane %v15006_v8, %v14928_v17  ;;  %v15149_v23 = vpop.xlane.xlu0 %7489 }
 0x673   : > { %v7870_v4 = vrot.slane %v15006_v8, %v14931_v62  ;;  %v7874_v55 = vrot.slane %v15006_v8, %v14934_v50  ;;  %v9020_v0 = vcombine.low %v7846_v60, %v7850_v21  ;;  %v9021_v5 = vcombine.low %v7854_v54, %v7858_v37 }
 0x674   : > { %10166 = vperm.xlu1 %11775, %v8921_v32   ;;  %v9102_v6 = vcombine.low %v9093_v58, %v9100_v24  ;;  %v9109_v46 = vrot.slane %v9101_v30, %v14937_v22  ;;  %v9022_v39 = vcombine.low %v7862_v51, %v7866_v15  ;;  %v7974_v52 = vrot.slane %v7486_v25, %v14913_v9 }
 0x675   : > { %v9023_v20 = vcombine.low %v7870_v4, %v7874_v55  ;;  %v9030_v41 = vrot.slane %v9020_v0, %v14937_v22  ;;  %v9037_v10 = vrot.slane %v9021_v5, %v14937_v22  ;;  %v7978_v61 = vrot.slane %v7486_v25, %v14916_v42 }
 0x676   : > { %v9116_v34 = vrot.slane %v9102_v6, %v14937_v22  ;;  %v9044_v8 = vrot.slane %v9022_v39, %v14937_v22  ;;  %v7982_v27 = vrot.slane %v7486_v25, %v14919_v45  ;;  %v7986_v12 = vrot.slane %v7486_v25, %v14922_v43  ;;  %v7494_v39 = vpop.xlane.xlu0 %7493 }
 0x677   : > { %v9051_v1 = vrot.slane %v9023_v20, %v14937_v22  ;;  %v9052_v14 = vcombine.low %v9030_v41, %v9037_v10  ;;  %v7990_v33 = vrot.slane %v7486_v25, %v14925_v59  ;;  %v7994_v16 = vrot.slane %v7486_v25, %v14928_v17  ;;  %v15166_v10 = vpop.xlane.xlu1 %7487 }
 0x678   : > { %v9117_v7 = vcombine.low %v9109_v46, %v9116_v34  ;;  %v7998_v40 = vrot.slane %v7486_v25, %v14931_v62  ;;  %v8002_v31 = vrot.slane %v7486_v25, %v14934_v50  ;;  %v9216_v29 = vcombine.low %v7974_v52, %v7978_v61 }
 0x679   : > { %v9053_v44 = vcombine.low %v9044_v8, %v9051_v1  ;;  %v9060_v53 = vrot.slane %v9052_v14, %v14937_v22  ;;  %v9217_v49 = vcombine.low %v7982_v27, %v7986_v12  ;;  %v9218_v3 = vcombine.low %v7990_v33, %v7994_v16 }
 0x67a   : > { %10178 = vperm.xlu0 %11774, %v9117_v7   ;;  %v9219_v2 = vcombine.low %v7998_v40, %v8002_v31  ;;  %v9226_v19 = vrot.slane %v9216_v29, %v14937_v22  ;;  %v7814_v13 = vrot.slane %v15048_v26, %v14913_v9  ;;  %v7818_v47 = vrot.slane %v15048_v26, %v14916_v42 }
 0x67b   : > { %v9067_v28 = vrot.slane %v9053_v44, %v14937_v22  ;;  %v9233_v56 = vrot.slane %v9217_v49, %v14937_v22  ;;  %v9240_v38 = vrot.slane %v9218_v3, %v14937_v22  ;;  %v7822_v35 = vrot.slane %v15048_v26, %v14919_v45  ;;  %v7492_v3 = vpop.xlane.xlu1 %7491 }
 0x67c   : > { %v9247_v60 = vrot.slane %v9219_v2, %v14937_v22  ;;  %v7826_v21 = vrot.slane %v15048_v26, %v14922_v43  ;;  %v7830_v48 = vrot.slane %v15048_v26, %v14925_v59  ;;  %v7834_v36 = vrot.slane %v15048_v26, %v14928_v17 }
 0x67d   : > { %v9068_v57 = vcombine.low %v9060_v53, %v9067_v28  ;;  %v9248_v25 = vcombine.low %v9226_v19, %v9233_v56  ;;  %v7838_v58 = vrot.slane %v15048_v26, %v14931_v62  ;;  %v7842_v54 = vrot.slane %v15048_v26, %v14934_v50 }
 0x67e   : > { %v9249_v37 = vcombine.low %v9240_v38, %v9247_v60  ;;  %v8971_v51 = vcombine.low %v7814_v13, %v7818_v47  ;;  %v8972_v32 = vcombine.low %v7822_v35, %v7826_v21  ;;  %v8973_v24 = vcombine.low %v7830_v48, %v7834_v36 }
 0x67f   : > { %10175 = vperm.xlu1 %11775, %v9068_v57   ;;  %v9256_v30 = vrot.slane %v9248_v25, %v14937_v22  ;;  %v8974_v15 = vcombine.low %v7838_v58, %v7842_v54  ;;  %v7942_v4 = vrot.slane %v7484_v63, %v14913_v9  ;;  %v7946_v55 = vrot.slane %v7484_v63, %v14916_v42 }
 0x680   : > { %v9263_v0 = vrot.slane %v9249_v37, %v14937_v22  ;;  %v8981_v5 = vrot.slane %v8971_v51, %v14937_v22  ;;  %v8988_v6 = vrot.slane %v8972_v32, %v14937_v22  ;;  %v8995_v26 = vrot.slane %v8973_v24, %v14937_v22 }
 0x681   : > { %v9002_v46 = vrot.slane %v8974_v15, %v14937_v22  ;;  %v7950_v52 = vrot.slane %v7484_v63, %v14919_v45  ;;  %v7954_v20 = vrot.slane %v7484_v63, %v14922_v43  ;;  %v7958_v41 = vrot.slane %v7484_v63, %v14925_v59 }
 0x682   : > { %v9264_v61 = vcombine.low %v9256_v30, %v9263_v0  ;;  %v9003_v34 = vcombine.low %v8981_v5, %v8988_v6  ;;  %v7962_v8 = vrot.slane %v7484_v63, %v14928_v17  ;;  %v7966_v27 = vrot.slane %v7484_v63, %v14931_v62 }
 0x683   : > { %v9004_v12 = vcombine.low %v8995_v26, %v9002_v46  ;;  %v7970_v1 = vrot.slane %v7484_v63, %v14934_v50  ;;  %v9167_v14 = vcombine.low %v7942_v4, %v7946_v55  ;;  %v9168_v33 = vcombine.low %v7950_v52, %v7954_v20  ;;  %v7498_v55 = vpop.xlane.xlu0 %7497 }
 0x684   : > { %10187 = vperm.xlu0 %11774, %v9264_v61   ;;  %v9011_v16 = vrot.slane %v9003_v34, %v14937_v22  ;;  %v9169_v7 = vcombine.low %v7958_v41, %v7962_v8  ;;  %v8102_v40 = vrot.slane %v7494_v39, %v14913_v9  ;;  %v8106_v31 = vrot.slane %v7494_v39, %v14916_v42 }
 0x685   : > { %v9018_v29 = vrot.slane %v9004_v12, %v14937_v22  ;;  %v9170_v44 = vcombine.low %v7966_v27, %v7970_v1  ;;  %v9177_v53 = vrot.slane %v9167_v14, %v14937_v22  ;;  %v9184_v49 = vrot.slane %v9168_v33, %v14937_v22 }
 0x686   : > { %v9191_v2 = vrot.slane %v9169_v7, %v14937_v22  ;;  %v8110_v19 = vrot.slane %v7494_v39, %v14919_v45  ;;  %v8114_v13 = vrot.slane %v7494_v39, %v14922_v43  ;;  %v8118_v47 = vrot.slane %v7494_v39, %v14925_v59 }
 0x687   : > { %v9019_v28 = vcombine.low %v9011_v16, %v9018_v29  ;;  %v9198_v56 = vrot.slane %v9170_v44, %v14937_v22  ;;  %v9199_v38 = vcombine.low %v9177_v53, %v9184_v49  ;;  %v8122_v35 = vrot.slane %v7494_v39, %v14928_v17 }
 0x688   : > { %v8126_v63 = vrot.slane %v7494_v39, %v14931_v62  ;;  %v8130_v60 = vrot.slane %v7494_v39, %v14934_v50  ;;  %v9412_v21 = vcombine.low %v8102_v40, %v8106_v31  ;;  %v9413_v48 = vcombine.low %v8110_v19, %v8114_v13  ;;  %v7496_v31 = vpop.xlane.xlu1 %7495 }
 0x689   : > { %10172 = vperm.xlu1 %11775, %v9019_v28   ;;  %v9200_v36 = vcombine.low %v9191_v2, %v9198_v56  ;;  %v9207_v57 = vrot.slane %v9199_v38, %v14937_v22  ;;  %v9414_v25 = vcombine.low %v8118_v47, %v8122_v35  ;;  %v8070_v58 = vrot.slane %v7492_v3, %v14913_v9 }
 0x68a   : > { %v9415_v54 = vcombine.low %v8126_v63, %v8130_v60  ;;  %v9422_v37 = vrot.slane %v9412_v21, %v14937_v22  ;;  %v9429_v51 = vrot.slane %v9413_v48, %v14937_v22  ;;  %v8074_v32 = vrot.slane %v7492_v3, %v14916_v42 }
 0x68b   : > { %v9214_v24 = vrot.slane %v9200_v36, %v14937_v22  ;;  %v9436_v30 = vrot.slane %v9414_v25, %v14937_v22  ;;  %v8078_v15 = vrot.slane %v7492_v3, %v14919_v45  ;;  %v8082_v4 = vrot.slane %v7492_v3, %v14922_v43 }
 0x68c   : > { %v9443_v0 = vrot.slane %v9415_v54, %v14937_v22  ;;  %v9444_v5 = vcombine.low %v9422_v37, %v9429_v51  ;;  %v8086_v6 = vrot.slane %v7492_v3, %v14925_v59  ;;  %v8090_v26 = vrot.slane %v7492_v3, %v14928_v17 }
 0x68d   : > { %v9215_v46 = vcombine.low %v9207_v57, %v9214_v24  ;;  %v8094_v39 = vrot.slane %v7492_v3, %v14931_v62  ;;  %v8098_v52 = vrot.slane %v7492_v3, %v14934_v50  ;;  %v9363_v20 = vcombine.low %v8070_v58, %v8074_v32  ;;  %v7502_v58 = vpop.xlane.xlu0 %7501 }
 0x68e   : > { %v9445_v41 = vcombine.low %v9436_v30, %v9443_v0  ;;  %v9452_v61 = vrot.slane %v9444_v5, %v14937_v22  ;;  %v9364_v34 = vcombine.low %v8078_v15, %v8082_v4  ;;  %v9365_v8 = vcombine.low %v8086_v6, %v8090_v26 }
 0x68f   : > { %10184 = vperm.xlu0 %11774, %v9215_v46   ;;  %v9366_v27 = vcombine.low %v8094_v39, %v8098_v52  ;;  %v9373_v12 = vrot.slane %v9363_v20, %v14937_v22  ;;  %v8166_v1 = vrot.slane %v7498_v55, %v14913_v9  ;;  %v8170_v14 = vrot.slane %v7498_v55, %v14916_v42 }
 0x690   : > { %v9459_v33 = vrot.slane %v9445_v41, %v14937_v22  ;;  %v9380_v16 = vrot.slane %v9364_v34, %v14937_v22  ;;  %v9387_v7 = vrot.slane %v9365_v8, %v14937_v22  ;;  %v8174_v40 = vrot.slane %v7498_v55, %v14919_v45  ;;  %v7500_v8 = vpop.xlane.xlu1 %7499 }
 0x691   : > { %v9394_v29 = vrot.slane %v9366_v27, %v14937_v22  ;;  %v8178_v44 = vrot.slane %v7498_v55, %v14922_v43  ;;  %v8182_v53 = vrot.slane %v7498_v55, %v14925_v59  ;;  %v8186_v49 = vrot.slane %v7498_v55, %v14928_v17 }
 0x692   : > { %v9460_v3 = vcombine.low %v9452_v61, %v9459_v33  ;;  %v9395_v2 = vcombine.low %v9373_v12, %v9380_v16  ;;  %v8190_v19 = vrot.slane %v7498_v55, %v14931_v62  ;;  %v8194_v13 = vrot.slane %v7498_v55, %v14934_v50 }
 0x693   : > { %v9396_v47 = vcombine.low %v9387_v7, %v9394_v29  ;;  %v9510_v28 = vcombine.low %v8166_v1, %v8170_v14  ;;  %v9511_v56 = vcombine.low %v8174_v40, %v8178_v44  ;;  %v9512_v38 = vcombine.low %v8182_v53, %v8186_v49 }
 0x694   : > { %10199 = vperm.xlu1 %11775, %v9460_v3   ;;  %v9403_v35 = vrot.slane %v9395_v2, %v14937_v22  ;;  %v9513_v63 = vcombine.low %v8190_v19, %v8194_v13  ;;  %v8134_v60 = vrot.slane %v7496_v31, %v14913_v9  ;;  %v8138_v21 = vrot.slane %v7496_v31, %v14916_v42 }
 0x695   : > { %v9410_v48 = vrot.slane %v9396_v47, %v14937_v22  ;;  %v9520_v36 = vrot.slane %v9510_v28, %v14937_v22  ;;  %v9527_v57 = vrot.slane %v9511_v56, %v14937_v22  ;;  %v9534_v25 = vrot.slane %v9512_v38, %v14937_v22 }
 0x696   : > { %v9541_v54 = vrot.slane %v9513_v63, %v14937_v22  ;;  %v8142_v37 = vrot.slane %v7496_v31, %v14919_v45  ;;  %v8146_v51 = vrot.slane %v7496_v31, %v14922_v43  ;;  %v8150_v32 = vrot.slane %v7496_v31, %v14925_v59 }
 0x697   : > { %v9411_v24 = vcombine.low %v9403_v35, %v9410_v48  ;;  %v9542_v30 = vcombine.low %v9520_v36, %v9527_v57  ;;  %v8154_v15 = vrot.slane %v7496_v31, %v14928_v17  ;;  %v8158_v4 = vrot.slane %v7496_v31, %v14931_v62 }
 0x698   : > { %v9543_v55 = vcombine.low %v9534_v25, %v9541_v54  ;;  %v8162_v0 = vrot.slane %v7496_v31, %v14934_v50  ;;  %v9461_v5 = vcombine.low %v8134_v60, %v8138_v21  ;;  %v9462_v6 = vcombine.low %v8142_v37, %v8146_v51  ;;  %v7506_v21 = vpop.xlane.xlu0 %7505 }
 0x699   : > { %10196 = vperm.xlu0 %11774, %v9411_v24   ;;  %v9550_v26 = vrot.slane %v9542_v30, %v14937_v22  ;;  %v9463_v46 = vcombine.low %v8150_v32, %v8154_v15  ;;  %v8230_v39 = vrot.slane %v7502_v58, %v14913_v9  ;;  %v8234_v52 = vrot.slane %v7502_v58, %v14916_v42 }
 0x69a   : > { %v9557_v20 = vrot.slane %v9543_v55, %v14937_v22  ;;  %v9464_v41 = vcombine.low %v8158_v4, %v8162_v0  ;;  %v9471_v61 = vrot.slane %v9461_v5, %v14937_v22  ;;  %v9478_v34 = vrot.slane %v9462_v6, %v14937_v22 }
 0x69b   : > { %v9485_v27 = vrot.slane %v9463_v46, %v14937_v22  ;;  %v8238_v12 = vrot.slane %v7502_v58, %v14919_v45  ;;  %v8242_v1 = vrot.slane %v7502_v58, %v14922_v43  ;;  %v8246_v14 = vrot.slane %v7502_v58, %v14925_v59 }
 0x69c   : > { %v9558_v33 = vcombine.low %v9550_v26, %v9557_v20  ;;  %v9492_v16 = vrot.slane %v9464_v41, %v14937_v22  ;;  %v9493_v7 = vcombine.low %v9471_v61, %v9478_v34  ;;  %v8250_v40 = vrot.slane %v7502_v58, %v14928_v17 }
 0x69d   : > { %v8254_v31 = vrot.slane %v7502_v58, %v14931_v62  ;;  %v8258_v29 = vrot.slane %v7502_v58, %v14934_v50  ;;  %v9608_v44 = vcombine.low %v8230_v39, %v8234_v52  ;;  %v9609_v53 = vcombine.low %v8238_v12, %v8242_v1  ;;  %v7504_v52 = vpop.xlane.xlu1 %7503 }
 0x69e   : > { %10205 = vperm.xlu1 %11775, %v9558_v33   ;;  %v9494_v49 = vcombine.low %v9485_v27, %v9492_v16  ;;  %v9501_v3 = vrot.slane %v9493_v7, %v14937_v22  ;;  %v9610_v2 = vcombine.low %v8246_v14, %v8250_v40  ;;  %v8198_v19 = vrot.slane %v7500_v8, %v14913_v9 }
 0x69f   : > { %v9611_v13 = vcombine.low %v8254_v31, %v8258_v29  ;;  %v9618_v47 = vrot.slane %v9608_v44, %v14937_v22  ;;  %v9625_v28 = vrot.slane %v9609_v53, %v14937_v22  ;;  %v8202_v56 = vrot.slane %v7500_v8, %v14916_v42 }
 0x6a0   : > { %v9508_v38 = vrot.slane %v9494_v49, %v14937_v22  ;;  %v9632_v35 = vrot.slane %v9610_v2, %v14937_v22  ;;  %v8206_v63 = vrot.slane %v7500_v8, %v14919_v45  ;;  %v8210_v60 = vrot.slane %v7500_v8, %v14922_v43 }
 0x6a1   : > { %v9639_v48 = vrot.slane %v9611_v13, %v14937_v22  ;;  %v9640_v36 = vcombine.low %v9618_v47, %v9625_v28  ;;  %v8214_v57 = vrot.slane %v7500_v8, %v14925_v59  ;;  %v8218_v25 = vrot.slane %v7500_v8, %v14928_v17 }
 0x6a2   : > { %v9509_v58 = vcombine.low %v9501_v3, %v9508_v38  ;;  %v8222_v54 = vrot.slane %v7500_v8, %v14931_v62  ;;  %v8226_v37 = vrot.slane %v7500_v8, %v14934_v50  ;;  %v9559_v51 = vcombine.low %v8198_v19, %v8202_v56  ;;  %v7510_v19 = vpop.xlane.xlu0 %7509 }
 0x6a3   : > { %v9641_v32 = vcombine.low %v9632_v35, %v9639_v48  ;;  %v9648_v24 = vrot.slane %v9640_v36, %v14937_v22  ;;  %v9560_v30 = vcombine.low %v8206_v63, %v8210_v60  ;;  %v9561_v15 = vcombine.low %v8214_v57, %v8218_v25 }
 0x6a4   : > { %10202 = vperm.xlu0 %11774, %v9509_v58   ;;  %v9562_v4 = vcombine.low %v8222_v54, %v8226_v37  ;;  %v9569_v55 = vrot.slane %v9559_v51, %v14937_v22  ;;  %v8294_v0 = vrot.slane %v7506_v21, %v14913_v9  ;;  %v8298_v5 = vrot.slane %v7506_v21, %v14916_v42 }
 0x6a5   : > { %v9655_v6 = vrot.slane %v9641_v32, %v14937_v22  ;;  %v9576_v26 = vrot.slane %v9560_v30, %v14937_v22  ;;  %v9583_v46 = vrot.slane %v9561_v15, %v14937_v22  ;;  %v8302_v39 = vrot.slane %v7506_v21, %v14919_v45  ;;  %v7508_v15 = vpop.xlane.xlu1 %7507 }
 0x6a6   : > { %v9590_v20 = vrot.slane %v9562_v4, %v14937_v22  ;;  %v8306_v41 = vrot.slane %v7506_v21, %v14922_v43  ;;  %v8310_v61 = vrot.slane %v7506_v21, %v14925_v59  ;;  %v8314_v34 = vrot.slane %v7506_v21, %v14928_v17 }
 0x6a7   : > { %v9656_v8 = vcombine.low %v9648_v24, %v9655_v6  ;;  %v9591_v27 = vcombine.low %v9569_v55, %v9576_v26  ;;  %v8318_v12 = vrot.slane %v7506_v21, %v14931_v62  ;;  %v8322_v1 = vrot.slane %v7506_v21, %v14934_v50 }
 0x6a8   : > { %v9592_v14 = vcombine.low %v9583_v46, %v9590_v20  ;;  %v9706_v33 = vcombine.low %v8294_v0, %v8298_v5  ;;  %v9707_v16 = vcombine.low %v8302_v39, %v8306_v41  ;;  %v9708_v7 = vcombine.low %v8310_v61, %v8314_v34 }
 0x6a9   : > { %10211 = vperm.xlu1 %11775, %v9656_v8   ;;  %v9599_v40 = vrot.slane %v9591_v27, %v14937_v22  ;;  %v9709_v31 = vcombine.low %v8318_v12, %v8322_v1  ;;  %v8262_v29 = vrot.slane %v7504_v52, %v14913_v9  ;;  %v8266_v44 = vrot.slane %v7504_v52, %v14916_v42 }
 0x6aa   : > { %v9606_v53 = vrot.slane %v9592_v14, %v14937_v22  ;;  %v9716_v49 = vrot.slane %v9706_v33, %v14937_v22  ;;  %v9723_v3 = vrot.slane %v9707_v16, %v14937_v22  ;;  %v9730_v2 = vrot.slane %v9708_v7, %v14937_v22 }
 0x6ab   : > { %v9737_v13 = vrot.slane %v9709_v31, %v14937_v22  ;;  %v8270_v47 = vrot.slane %v7504_v52, %v14919_v45  ;;  %v8274_v28 = vrot.slane %v7504_v52, %v14922_v43  ;;  %v8278_v56 = vrot.slane %v7504_v52, %v14925_v59 }
 0x6ac   : > { %v9607_v38 = vcombine.low %v9599_v40, %v9606_v53  ;;  %v9738_v35 = vcombine.low %v9716_v49, %v9723_v3  ;;  %v8282_v63 = vrot.slane %v7504_v52, %v14928_v17  ;;  %v8286_v60 = vrot.slane %v7504_v52, %v14931_v62 }
 0x6ad   : > { %v9739_v21 = vcombine.low %v9730_v2, %v9737_v13  ;;  %v8290_v48 = vrot.slane %v7504_v52, %v14934_v50  ;;  %v9657_v36 = vcombine.low %v8262_v29, %v8266_v44  ;;  %v9658_v57 = vcombine.low %v8270_v47, %v8274_v28 }
 0x6ae   : > { %10208 = vperm.xlu0 %11774, %v9607_v38   ;;  %v9746_v25 = vrot.slane %v9738_v35, %v14937_v22  ;;  %v9659_v58 = vcombine.low %v8278_v56, %v8282_v63  ;;  %v8358_v54 = vrot.slane %v7510_v19, %v14913_v9  ;;  %v8362_v37 = vrot.slane %v7510_v19, %v14916_v42 }
 0x6af   : > { %v9753_v51 = vrot.slane %v9739_v21, %v14937_v22  ;;  %v9660_v32 = vcombine.low %v8286_v60, %v8290_v48  ;;  %v9667_v24 = vrot.slane %v9657_v36, %v14937_v22  ;;  %v9674_v30 = vrot.slane %v9658_v57, %v14937_v22 }
 0x6b0   : > { %v9681_v4 = vrot.slane %v9659_v58, %v14937_v22  ;;  %v8366_v55 = vrot.slane %v7510_v19, %v14919_v45  ;;  %v8370_v0 = vrot.slane %v7510_v19, %v14922_v43  ;;  %v8374_v5 = vrot.slane %v7510_v19, %v14925_v59 }
 0x6b1   : > { %v9754_v6 = vcombine.low %v9746_v25, %v9753_v51  ;;  %v9688_v26 = vrot.slane %v9660_v32, %v14937_v22  ;;  %v9689_v46 = vcombine.low %v9667_v24, %v9674_v30  ;;  %v8378_v39 = vrot.slane %v7510_v19, %v14928_v17 }
 0x6b2   : > { %v8382_v52 = vrot.slane %v7510_v19, %v14931_v62  ;;  %v8386_v20 = vrot.slane %v7510_v19, %v14934_v50  ;;  %v9804_v41 = vcombine.low %v8358_v54, %v8362_v37  ;;  %v9805_v61 = vcombine.low %v8366_v55, %v8370_v0  ;;  %v7514_v54 = vpop.xlane.xlu0 %7513 }
 0x6b3   : > { %10217 = vperm.xlu1 %11775, %v9754_v6   ;;  %v9690_v34 = vcombine.low %v9681_v4, %v9688_v26  ;;  %v9697_v8 = vrot.slane %v9689_v46, %v14937_v22  ;;  %v9806_v27 = vcombine.low %v8374_v5, %v8378_v39  ;;  %v8326_v12 = vrot.slane %v7508_v15, %v14913_v9 }
 0x6b4   : > { %v9807_v1 = vcombine.low %v8382_v52, %v8386_v20  ;;  %v9814_v14 = vrot.slane %v9804_v41, %v14937_v22  ;;  %v9821_v33 = vrot.slane %v9805_v61, %v14937_v22  ;;  %v8330_v16 = vrot.slane %v7508_v15, %v14916_v42 }
 0x6b5   : > { %v9704_v7 = vrot.slane %v9690_v34, %v14937_v22  ;;  %v9828_v40 = vrot.slane %v9806_v27, %v14937_v22  ;;  %v8334_v31 = vrot.slane %v7508_v15, %v14919_v45  ;;  %v8338_v29 = vrot.slane %v7508_v15, %v14922_v43 }
 0x6b6   : > { %v9835_v44 = vrot.slane %v9807_v1, %v14937_v22  ;;  %v9836_v53 = vcombine.low %v9814_v14, %v9821_v33  ;;  %v8342_v49 = vrot.slane %v7508_v15, %v14925_v59  ;;  %v8346_v3 = vrot.slane %v7508_v15, %v14928_v17 }
 0x6b7   : > { %v9705_v2 = vcombine.low %v9697_v8, %v9704_v7  ;;  %v8350_v19 = vrot.slane %v7508_v15, %v14931_v62  ;;  %v8354_v13 = vrot.slane %v7508_v15, %v14934_v50  ;;  %v9755_v47 = vcombine.low %v8326_v12, %v8330_v16 }
 0x6b8   : > { %v9837_v28 = vcombine.low %v9828_v40, %v9835_v44  ;;  %v9844_v56 = vrot.slane %v9836_v53, %v14937_v22  ;;  %v9756_v38 = vcombine.low %v8334_v31, %v8338_v29  ;;  %v9757_v35 = vcombine.low %v8342_v49, %v8346_v3 }
 0x6b9   : > { %10214 = vperm.xlu0 %11774, %v9705_v2   ;;  %v9758_v63 = vcombine.low %v8350_v19, %v8354_v13  ;;  %v9765_v60 = vrot.slane %v9755_v47, %v14937_v22  ;;  %v8006_v21 = vrot.slane %v15166_v10, %v14913_v9  ;;  %v8010_v48 = vrot.slane %v15166_v10, %v14916_v42 }
 0x6ba   : > { %v9851_v36 = vrot.slane %v9837_v28, %v14937_v22  ;;  %v9772_v57 = vrot.slane %v9756_v38, %v14937_v22  ;;  %v9779_v25 = vrot.slane %v9757_v35, %v14937_v22  ;;  %v8014_v58 = vrot.slane %v15166_v10, %v14919_v45 }
 0x6bb   : > { %v9786_v37 = vrot.slane %v9758_v63, %v14937_v22  ;;  %v8018_v51 = vrot.slane %v15166_v10, %v14922_v43  ;;  %v8022_v32 = vrot.slane %v15166_v10, %v14925_v59  ;;  %v8026_v24 = vrot.slane %v15166_v10, %v14928_v17 }
 0x6bc   : > { %v9852_v30 = vcombine.low %v9844_v56, %v9851_v36  ;;  %v9787_v15 = vcombine.low %v9765_v60, %v9772_v57  ;;  %v8030_v4 = vrot.slane %v15166_v10, %v14931_v62  ;;  %v8034_v55 = vrot.slane %v15166_v10, %v14934_v50  ;;  %v7512_v56 = vpop.xlane.xlu1 %7511 }
 0x6bd   : > { %v9788_v0 = vcombine.low %v9779_v25, %v9786_v37  ;;  %v9265_v5 = vcombine.low %v8006_v21, %v8010_v48  ;;  %v9266_v6 = vcombine.low %v8014_v58, %v8018_v51  ;;  %v9267_v26 = vcombine.low %v8022_v32, %v8026_v24 }
 0x6be   : > { %10223 = vperm.xlu1 %11775, %v9852_v30   ;;  %v9795_v46 = vrot.slane %v9787_v15, %v14937_v22  ;;  %v9268_v39 = vcombine.low %v8030_v4, %v8034_v55  ;;  %v8422_v52 = vrot.slane %v7514_v54, %v14913_v9  ;;  %v8426_v20 = vrot.slane %v7514_v54, %v14916_v42 }
 0x6bf   : > { %v9802_v41 = vrot.slane %v9788_v0, %v14937_v22  ;;  %v9275_v61 = vrot.slane %v9265_v5, %v14937_v22  ;;  %v9282_v34 = vrot.slane %v9266_v6, %v14937_v22  ;;  %v9289_v10 = vrot.slane %v9267_v26, %v14937_v22 }
 0x6c0   : > { %v9296_v8 = vrot.slane %v9268_v39, %v14937_v22  ;;  %v8430_v27 = vrot.slane %v7514_v54, %v14919_v45  ;;  %v8434_v12 = vrot.slane %v7514_v54, %v14922_v43  ;;  %v8438_v1 = vrot.slane %v7514_v54, %v14925_v59 }
 0x6c1   : > { %v9803_v14 = vcombine.low %v9795_v46, %v9802_v41  ;;  %v9297_v33 = vcombine.low %v9275_v61, %v9282_v34  ;;  %v8442_v16 = vrot.slane %v7514_v54, %v14928_v17  ;;  %v8446_v7 = vrot.slane %v7514_v54, %v14931_v62  ;;  %v7518_v46 = vpop.xlane.xlu0 %7517 }
 0x6c2   : > { %v9298_v40 = vcombine.low %v9289_v10, %v9296_v8  ;;  %v8450_v31 = vrot.slane %v7514_v54, %v14934_v50  ;;  %v9902_v29 = vcombine.low %v8422_v52, %v8426_v20  ;;  %v9903_v44 = vcombine.low %v8430_v27, %v8434_v12 }
 0x6c3   : > { %10220 = vperm.xlu0 %11774, %v9803_v14   ;;  %v9305_v53 = vrot.slane %v9297_v33, %v14937_v22  ;;  %v9904_v49 = vcombine.low %v8438_v1, %v8442_v16  ;;  %v8038_v3 = vrot.slane %v15149_v23, %v14913_v9  ;;  %v8042_v2 = vrot.slane %v15149_v23, %v14916_v42 }
 0x6c4   : > { %v9312_v19 = vrot.slane %v9298_v40, %v14937_v22  ;;  %v9905_v13 = vcombine.low %v8446_v7, %v8450_v31  ;;  %v9912_v47 = vrot.slane %v9902_v29, %v14937_v22  ;;  %v9919_v28 = vrot.slane %v9903_v44, %v14937_v22 }
 0x6c5   : > { %v9926_v38 = vrot.slane %v9904_v49, %v14937_v22  ;;  %v8046_v35 = vrot.slane %v15149_v23, %v14919_v45  ;;  %v8050_v63 = vrot.slane %v15149_v23, %v14922_v43  ;;  %v8054_v60 = vrot.slane %v15149_v23, %v14925_v59  ;;  %v7516_v49 = vpop.xlane.xlu1 %7515 }
 0x6c6   : > { %v9313_v21 = vcombine.low %v9305_v53, %v9312_v19  ;;  %v9933_v48 = vrot.slane %v9905_v13, %v14937_v22  ;;  %v9934_v36 = vcombine.low %v9912_v47, %v9919_v28  ;;  %v8058_v57 = vrot.slane %v15149_v23, %v14928_v17 }
 0x6c7   : > { %v8062_v25 = vrot.slane %v15149_v23, %v14931_v62  ;;  %v8066_v58 = vrot.slane %v15149_v23, %v14934_v50  ;;  %v9314_v54 = vcombine.low %v8038_v3, %v8042_v2  ;;  %v9315_v37 = vcombine.low %v8046_v35, %v8050_v63 }
 0x6c8   : > { %10190 = vperm.xlu0 %11774, %v9313_v21   ;;  %v9935_v51 = vcombine.low %v9926_v38, %v9933_v48  ;;  %v9942_v32 = vrot.slane %v9934_v36, %v14937_v22  ;;  %v9316_v24 = vcombine.low %v8054_v60, %v8058_v57  ;;  %v8390_v30 = vrot.slane %v7512_v56, %v14913_v9 }
 0x6c9   : > { %v9317_v15 = vcombine.low %v8062_v25, %v8066_v58  ;;  %v9324_v4 = vrot.slane %v9314_v54, %v14937_v22  ;;  %v9331_v55 = vrot.slane %v9315_v37, %v14937_v22  ;;  %v8394_v0 = vrot.slane %v7512_v56, %v14916_v42 }
 0x6ca   : > { %v9949_v5 = vrot.slane %v9935_v51, %v14937_v22  ;;  %v9338_v23 = vrot.slane %v9316_v24, %v14937_v22  ;;  %v8398_v6 = vrot.slane %v7512_v56, %v14919_v45  ;;  %v8402_v26 = vrot.slane %v7512_v56, %v14922_v43 }
 0x6cb   : > { %v9345_v39 = vrot.slane %v9317_v15, %v14937_v22  ;;  %v9346_v52 = vcombine.low %v9324_v4, %v9331_v55  ;;  %v8406_v20 = vrot.slane %v7512_v56, %v14925_v59  ;;  %v8410_v41 = vrot.slane %v7512_v56, %v14928_v17 }
 0x6cc   : > { %v9950_v61 = vcombine.low %v9942_v32, %v9949_v5  ;;  %v8414_v34 = vrot.slane %v7512_v56, %v14931_v62  ;;  %v8418_v10 = vrot.slane %v7512_v56, %v14934_v50  ;;  %v9853_v8 = vcombine.low %v8390_v30, %v8394_v0  ;;  %v7520_v32 = vpop.xlane.xlu1 %7519 }
 0x6cd   : > { %v9347_v27 = vcombine.low %v9338_v23, %v9345_v39  ;;  %v9354_v12 = vrot.slane %v9346_v52, %v14937_v22  ;;  %v9854_v1 = vcombine.low %v8398_v6, %v8402_v26  ;;  %v9855_v14 = vcombine.low %v8406_v20, %v8410_v41 }
 0x6ce   : > { %10229 = vperm.xlu1 %11775, %v9950_v61   ;;  %v9856_v33 = vcombine.low %v8414_v34, %v8418_v10  ;;  %v9863_v16 = vrot.slane %v9853_v8, %v14937_v22  ;;  %v8486_v7 = vrot.slane %v7518_v46, %v14913_v9  ;;  %v8490_v40 = vrot.slane %v7518_v46, %v14916_v42 }
 0x6cf   : > { %v9361_v31 = vrot.slane %v9347_v27, %v14937_v22  ;;  %v9870_v29 = vrot.slane %v9854_v1, %v14937_v22  ;;  %v9877_v44 = vrot.slane %v9855_v14, %v14937_v22  ;;  %v8494_v53 = vrot.slane %v7518_v46, %v14919_v45 }
 0x6d0   : > { %v9884_v3 = vrot.slane %v9856_v33, %v14937_v22  ;;  %v8498_v2 = vrot.slane %v7518_v46, %v14922_v43  ;;  %v8502_v19 = vrot.slane %v7518_v46, %v14925_v59  ;;  %v8506_v13 = vrot.slane %v7518_v46, %v14928_v17 }
 0x6d1   : > { %v9362_v47 = vcombine.low %v9354_v12, %v9361_v31  ;;  %v9885_v28 = vcombine.low %v9863_v16, %v9870_v29  ;;  %v8510_v56 = vrot.slane %v7518_v46, %v14931_v62  ;;  %v8514_v38 = vrot.slane %v7518_v46, %v14934_v50  ;;  %v7522_v12 = vpop.xlane.xlu0 %7521 }
 0x6d2   : > { %v9886_v35 = vcombine.low %v9877_v44, %v9884_v3  ;;  %v10000_v63 = vcombine.low %v8486_v7, %v8490_v40  ;;  %v10001_v60 = vcombine.low %v8494_v53, %v8498_v2  ;;  %v10002_v21 = vcombine.low %v8502_v19, %v8506_v13 }
 0x6d3   : > { %10193 = vperm.xlu0 %11774, %v9362_v47   ;;  %v9893_v48 = vrot.slane %v9885_v28, %v14937_v22  ;;  %v10003_v36 = vcombine.low %v8510_v56, %v8514_v38  ;;  %v8454_v57 = vrot.slane %v7516_v49, %v14913_v9  ;;  %v8458_v25 = vrot.slane %v7516_v49, %v14916_v42 }
 0x6d4   : > { %v9900_v58 = vrot.slane %v9886_v35, %v14937_v22  ;;  %v10010_v54 = vrot.slane %v10000_v63, %v14937_v22  ;;  %v10017_v37 = vrot.slane %v10001_v60, %v14937_v22  ;;  %v10024_v51 = vrot.slane %v10002_v21, %v14937_v22 }
 0x6d5   : > { %v10031_v24 = vrot.slane %v10003_v36, %v14937_v22  ;;  %v8462_v30 = vrot.slane %v7516_v49, %v14919_v45  ;;  %v8466_v15 = vrot.slane %v7516_v49, %v14922_v43  ;;  %v8470_v4 = vrot.slane %v7516_v49, %v14925_v59 }
 0x6d6   : > { %v9901_v55 = vcombine.low %v9893_v48, %v9900_v58  ;;  %v10032_v0 = vcombine.low %v10010_v54, %v10017_v37  ;;  %v8474_v5 = vrot.slane %v7516_v49, %v14928_v17  ;;  %v8478_v23 = vrot.slane %v7516_v49, %v14931_v62 }
 0x6d7   : > { %v10033_v6 = vcombine.low %v10024_v51, %v10031_v24  ;;  %v8482_v26 = vrot.slane %v7516_v49, %v14934_v50  ;;  %v9951_v46 = vcombine.low %v8454_v57, %v8458_v25  ;;  %v9952_v39 = vcombine.low %v8462_v30, %v8466_v15 }
 0x6d8   : > { %10226 = vperm.xlu1 %11775, %v9901_v55   ;;  %v10040_v52 = vrot.slane %v10032_v0, %v14937_v22  ;;  %v9953_v20 = vcombine.low %v8470_v4, %v8474_v5  ;;  %v8518_v41 = vrot.slane %v7520_v32, %v14913_v9  ;;  %v8522_v61 = vrot.slane %v7520_v32, %v14916_v42 }
 0x6d9   : > { %v10047_v34 = vrot.slane %v10033_v6, %v14937_v22  ;;  %v9954_v10 = vcombine.low %v8478_v23, %v8482_v26  ;;  %v9961_v8 = vrot.slane %v9951_v46, %v14937_v22  ;;  %v9968_v27 = vrot.slane %v9952_v39, %v14937_v22  ;;  %v10149_v6 = vpop.permute.xlu1 %10148 }
 0x6da   : > { %v9975_v1 = vrot.slane %v9953_v20, %v14937_v22  ;;  %v8526_v14 = vrot.slane %v7520_v32, %v14919_v45  ;;  %v8530_v33 = vrot.slane %v7520_v32, %v14922_v43  ;;  %v8534_v16 = vrot.slane %v7520_v32, %v14925_v59 }
 0x6db   : > { %v10048_v7 = vcombine.low %v10040_v52, %v10047_v34  ;;  %v9982_v40 = vrot.slane %v9954_v10, %v14937_v22  ;;  %v9983_v31 = vcombine.low %v9961_v8, %v9968_v27  ;;  %v8538_v29 = vrot.slane %v7520_v32, %v14928_v17 }
 0x6dc   : > { %v8542_v44 = vrot.slane %v7520_v32, %v14931_v62  ;;  %v8546_v53 = vrot.slane %v7520_v32, %v14934_v50  ;;  %v10049_v49 = vcombine.low %v8518_v41, %v8522_v61  ;;  %v10050_v3 = vcombine.low %v8526_v14, %v8530_v33  ;;  %v10152_v61 = vpop.permute.xlu0 %10151 }
 0x6dd   : > { %10235 = vperm.xlu1 %11775, %v10048_v7   ;;  %v9984_v2 = vcombine.low %v9975_v1, %v9982_v40  ;;  %v9991_v19 = vrot.slane %v9983_v31, %v14937_v22  ;;  %v10051_v13 = vcombine.low %v8534_v16, %v8538_v29  ;;  %v8550_v47 = vrot.slane %v7522_v12, %v14913_v9  ;;  %v10158_v26 = vpop.permute.xlu1 %10157 }
 0x6de   : > { %v10052_v28 = vcombine.low %v8542_v44, %v8546_v53  ;;  %v10059_v56 = vrot.slane %v10049_v49, %v14937_v22  ;;  %v10066_v38 = vrot.slane %v10050_v3, %v14937_v22  ;;  %v8554_v35 = vrot.slane %v7522_v12, %v14916_v42 }
 0x6df   : > { %v9998_v63 = vrot.slane %v9984_v2, %v14937_v22  ;;  %v10073_v60 = vrot.slane %v10051_v13, %v14937_v22  ;;  %v8558_v21 = vrot.slane %v7522_v12, %v14919_v45  ;;  %v8562_v48 = vrot.slane %v7522_v12, %v14922_v43 }
 0x6e0   : > { %v10080_v36 = vrot.slane %v10052_v28, %v14937_v22  ;;  %v10081_v57 = vcombine.low %v10059_v56, %v10066_v38  ;;  %v8566_v9 = vrot.slane %v7522_v12, %v14925_v59  ;;  %v8570_v25 = vrot.slane %v7522_v12, %v14928_v17 }
 0x6e1   : > { %v9999_v58 = vcombine.low %v9991_v19, %v9998_v63  ;;  %v8574_v54 = vrot.slane %v7522_v12, %v14931_v62  ;;  %v8578_v42 = vrot.slane %v7522_v12, %v14934_v50  ;;  %v10098_v37 = vcombine.low %v8550_v47, %v8554_v35  ;;  %v10155_v46 = vpop.permute.xlu1 %10154 }
 0x6e2   : > { %v10082_v51 = vcombine.low %v10073_v60, %v10080_v36  ;;  %v10089_v32 = vrot.slane %v10081_v57, %v14937_v22  ;;  %v10099_v24 = vcombine.low %v8558_v21, %v8562_v48  ;;  %v10100_v45 = vcombine.low %v8566_v9, %v8570_v25 }
 0x6e3   : > { %10232 = vperm.xlu1 %11775, %v9999_v58   ;;  %v10101_v43 = vcombine.low %v8574_v54, %v8578_v42  ;;  %v10108_v30 = vrot.slane %v10098_v37, %v14937_v22  ;;  %v15464_v14 = vand.u32 127, %v7555_v11 }
 0x6e4   : > { %v10096_v15 = vrot.slane %v10082_v51, %v14937_v22  ;;  %v10115_v59 = vrot.slane %v10099_v24, %v14937_v22  ;;  %v10122_v17 = vrot.slane %v10100_v45, %v14937_v22 }
 0x6e5   : > { %v10129_v62 = vrot.slane %v10101_v43, %v14937_v22  ;;  %v15447_v39 = vpop.permute.xlu1 %10163  ;;  %v10249_v16 = vadd.s32 4294967288, %v15464_v14  ;;  %v10256_v40 = vadd.s32 4294967280, %v15464_v14  ;;  %v10247_v44 = vsub.s32 %v15464_v14, %v14910_v18 }
 0x6e6   : > { %v10097_v4 = vcombine.low %v10089_v32, %v10096_v15  ;;  %v10130_v50 = vcombine.low %v10108_v30, %v10115_v59  ;;  %v10270_v3 = vadd.s32 4294967264, %v15464_v14  ;;  %v10263_v2 = vadd.s32 4294967272, %v15464_v14 }
 0x6e7   : > { %v10131_v55 = vcombine.low %v10122_v17, %v10129_v62  ;;  %v10252_v29 = vsub.s32 %v10249_v16, %v14910_v18  ;;  %v10259_v49 = vsub.s32 %v10256_v40, %v14910_v18  ;;  %v10248_v47 = vrot.slane %v10149_v6, %v10247_v44 }
 0x6e8   : > { %10238 = vperm.xlu1 %11775, %v10097_v4   ;;  %v10138_v0 = vrot.slane %v10130_v50, %v14937_v22  ;;  %v10277_v28 = vadd.s32 4294967256, %v15464_v14  ;;  %v10273_v35 = vsub.s32 %v10270_v3, %v14910_v18  ;;  %v10284_v63 = vadd.s32 4294967248, %v15464_v14 }
 0x6e9   : > { %v10145_v5 = vrot.slane %v10131_v55, %v14937_v22  ;;  %v10161_v52 = vpop.permute.xlu1 %10160  ;;  %v10253_v19 = vrot.slane %v10152_v61, %v10252_v29  ;;  %v10260_v38 = vrot.slane %v10155_v46, %v10259_v49  ;;  %v10266_v60 = vsub.s32 %v10263_v2, %v14910_v18 }
 0x6ea   : > { %v10280_v36 = vsub.s32 %v10277_v28, %v14910_v18  ;;  %v10274_v58 = vrot.slane %v10161_v52, %v10273_v35  ;;  %v10287_v54 = vsub.s32 %v10284_v63, %v14910_v18  ;;  %v10298_v42 = vadd.s32 4294967232, %v15464_v14 }
 0x6eb   : > { %v10146_v23 = vcombine.low %v10138_v0, %v10145_v5  ;;  %v10255_v21 = vsel %vm10254_vm8, %v10253_v19, %v10248_v47  ;;  %v10267_v37 = vrot.slane %v10158_v26, %v10266_v60  ;;  %v10291_v51 = vadd.s32 4294967240, %v15464_v14 }
 0x6ec   : > { %v10262_v25 = vsel %vm10261_vm9, %v10260_v38, %v10255_v21  ;;  %v10301_v62 = vsub.s32 %v10298_v42, %v14910_v18  ;;  %v10281_v4 = vrot.slane %v15447_v39, %v10280_v36  ;;  %v10305_v55 = vadd.s32 4294967224, %v15464_v14 }
 0x6ed   : > { %10241 = vperm.xlu1 %11775, %v10146_v23   ;;  %v15449_v20 = vpop.permute.xlu1 %10169  ;;  %v10269_v43 = vsel %vm10268_vm10, %v10267_v37, %v10262_v25  ;;  %v10294_v50 = vsub.s32 %v10291_v51, %v14910_v18  ;;  %v10312_v39 = vadd.s32 4294967216, %v15464_v14  ;;  %v10319_v16 = vadd.s32 4294967208, %v15464_v14 }
 0x6ee   : > { %v15455_v10 = vpop.permute.xlu0 %10181  ;;  %v10276_v59 = vsel %vm10275_vm11, %v10274_v58, %v10269_v43  ;;  %v10326_v19 = vadd.s32 4294967200, %v15464_v14  ;;  %v10333_v28 = vadd.s32 4294967192, %v15464_v14  ;;  %v10347_v58 = vadd.s32 4294967176, %v15464_v14 }
 0x6ef   : > { %v10283_v26 = vsel %vm10282_vm12, %v10281_v4, %v10276_v59  ;;  %v10322_v47 = vsub.s32 %v10319_v16, %v14910_v18 }
 0x6f0   : > { %v10336_v37 = vsub.s32 %v10333_v28, %v14910_v18 }
 0x6f3   : > { %v15451_v41 = vpop.permute.xlu1 %10166 }
 0x6f4   : > { %v10288_v17 = vrot.slane %v15451_v41, %v10287_v54 }
 0x6f6   : > { %v10290_v41 = vsel %vm10289_vm13, %v10288_v17, %v10283_v26 }
 0x6f9   : > { %v15459_v27 = vpop.permute.xlu0 %10178 }
 0x6fe   : > { %v15453_v34 = vpop.permute.xlu1 %10175 }
 0x703   : > { %v15461_v1 = vpop.permute.xlu0 %10187 }
 0x708   : > { %v15457_v8 = vpop.permute.xlu1 %10172 }
 0x709   : > { %v10302_v61 = vrot.slane %v15457_v8, %v10301_v62  ;;  %v10315_v8 = vsub.s32 %v10312_v39, %v14910_v18 }
 0x70b   : > { %v10316_v21 = vrot.slane %v15459_v27, %v10315_v8 }
 0x70e   : > { %v15470_v31 = vpop.permute.xlu0 %10184 }
 0x713   : > { %v10200_v12 = vpop.permute.xlu1 %10199 }
 0x714   : > { %v10361_v57 = vrot.slane %v10200_v12, %v10252_v29  ;;  %v10295_v12 = vrot.slane %v15449_v20, %v10294_v50 }
 0x718   : > { %v10197_v13 = vpop.permute.xlu0 %10196 }
 0x719   : > { %v10357_v32 = vrot.slane %v10197_v13, %v10247_v44 }
 0x71b   : > { %v10362_v30 = vsel %vm10254_vm8, %v10361_v57, %v10357_v32 }
 0x71d   : > { %v10206_v33 = vpop.permute.xlu1 %10205 }
 0x71e   : > { %v10371_v15 = vrot.slane %v10206_v33, %v10266_v60  ;;  %v10308_v33 = vsub.s32 %v10305_v55, %v14910_v18 }
 0x720   : > { %v10309_v13 = vrot.slane %v15453_v34, %v10308_v33  ;;  %v10340_v34 = vadd.s32 4294967184, %v15464_v14 }
 0x722   : > { %v10343_v32 = vsub.s32 %v10340_v34, %v14910_v18 }
 0x723   : > { %v10203_v48 = vpop.permute.xlu0 %10202 }
 0x724   : > { %v10366_v24 = vrot.slane %v10203_v48, %v10259_v49  ;;  %v10297_v49 = vsel %vm10296_vm14, %v10295_v12, %v10290_v41  ;;  %v10329_v48 = vsub.s32 %v10326_v19, %v14910_v18 }
 0x725   : > { %v10304_v20 = vsel %vm10303_vm15, %v10302_v61, %v10297_v49 }
 0x726   : > { %v10367_v5 = vsel %vm10261_vm9, %v10366_v24, %v10362_v30  ;;  %v10330_v51 = vrot.slane %v15470_v31, %v10329_v48  ;;  %v10350_v30 = vsub.s32 %v10347_v58, %v14910_v18 }
 0x727   : > { %v10372_v52 = vsel %vm10268_vm10, %v10371_v15, %v10367_v5 }
 0x728   : > { %v15467_v7 = vpop.permute.xlu1 %10211 }
 0x729   : > { %v10381_v46 = vrot.slane %v15467_v7, %v10280_v36 }
 0x72d   : > { %v10209_v45 = vpop.permute.xlu0 %10208 }
 0x72e   : > { %v10376_v23 = vrot.slane %v10209_v45, %v10273_v35 }
 0x730   : > { %v10377_v40 = vsel %vm10275_vm11, %v10376_v23, %v10372_v52 }
 0x731   : > { %v10382_v2 = vsel %vm10282_vm12, %v10381_v46, %v10377_v40 }
 0x732   : > { %v15475_v53 = vpop.permute.xlu1 %10217 }
 0x733   : > { %v10391_v3 = vrot.slane %v15475_v53, %v10294_v50  ;;  %v10311_v53 = vsel %vm10310_vm0, %v10309_v13, %v10304_v20  ;;  %v10337_v50 = vrot.slane %v15461_v1, %v10336_v37 }
 0x738   : > { %v10215_v6 = vpop.permute.xlu0 %10214 }
 0x739   : > { %v10386_v29 = vrot.slane %v10215_v6, %v10287_v54  ;;  %v10318_v54 = vsel %vm10317_vm1, %v10316_v21, %v10311_v53 }
 0x73b   : > { %v10387_v38 = vsel %vm10289_vm13, %v10386_v29, %v10382_v2 }
 0x73c   : > { %v10392_v60 = vsel %vm10296_vm14, %v10391_v3, %v10387_v38 }
 0x73d   : > { %v15481_v56 = vpop.permute.xlu1 %10223 }
 0x73e   : > { %v10401_v63 = vrot.slane %v15481_v56, %v10308_v33  ;;  %v10323_v56 = vrot.slane %v15455_v10, %v10322_v47 }
 0x740   : > { %v10325_v14 = vsel %vm10324_vm2, %v10323_v56, %v10318_v54 }
 0x741   : > { %v10332_v17 = vsel %vm10331_vm3, %v10330_v51, %v10325_v14 }
 0x742   : > { %v10221_v7 = vpop.permute.xlu0 %10220 }
 0x743   : > { %v10396_v35 = vrot.slane %v10221_v7, %v10301_v62 }
 0x745   : > { %v10397_v42 = vsel %vm10303_vm15, %v10396_v35, %v10392_v60 }
 0x746   : > { %v10402_v27 = vsel %vm10310_vm0, %v10401_v63, %v10397_v42 }
 0x747   : > { %v10191_v36 = vpop.permute.xlu0 %10190 }
 0x748   : > { %v10344_v62 = vrot.slane %v10191_v36, %v10343_v32 }
 0x74d   : > { %v15488_v9 = vpop.permute.xlu1 %10229 }
 0x74e   : > { %v10411_v43 = vrot.slane %v15488_v9, %v10322_v47  ;;  %v10339_v9 = vsel %vm10338_vm4, %v10337_v50, %v10332_v17 }
 0x74f   : > { %v10346_v6 = vsel %vm10345_vm5, %v10344_v62, %v10339_v9 }
 0x752   : > { %v10194_v10 = vpop.permute.xlu0 %10193 }
 0x753   : > { %v10351_v55 = vrot.slane %v10194_v10, %v10350_v30 }
 0x755   : > { %v10353_v46 = vsel %vm10352_vm6, %v10351_v55, %v10346_v6 }
 0x757   : > { %v10227_v0 = vpop.permute.xlu1 %10226 }
 0x758   : > { %v10406_v57 = vrot.slane %v10227_v0, %v10315_v8 }
 0x75a   : > { %v10407_v24 = vsel %vm10317_vm1, %v10406_v57, %v10402_v27 }
 0x75b   : > { %v10412_v59 = vsel %vm10324_vm2, %v10411_v43, %v10407_v24 }
 0x75c   : > { %v10236_v44 = vpop.permute.xlu1 %10235 }
 0x75d   : > { %v10421_v0 = vrot.slane %v10236_v44, %v10336_v37 }
 0x762   : > { %v10233_v25 = vpop.permute.xlu1 %10232 }
 0x763   : > { %v10416_v45 = vrot.slane %v10233_v25, %v10329_v48 }
 0x765   : > { %v10417_v31 = vsel %vm10331_vm3, %v10416_v45, %v10412_v59 }
 0x766   : > { %v10422_v23 = vsel %vm10338_vm4, %v10421_v0, %v10417_v31 }
 0x767   : > { %v10239_v15 = vpop.permute.xlu1 %10238 }
 0x768   : > { %v10426_v4 = vrot.slane %v10239_v15, %v10343_v32 }
 0x76a   : > { %v10427_v26 = vsel %vm10345_vm5, %v10426_v4, %v10422_v23 }
 0x76c   : > { %v10242_v5 = vpop.permute.xlu1 %10241 }
 0x76d   : > { %v10431_v18 = vrot.slane %v10242_v5, %v10350_v30 }
 0x76f   : > { %v10432_v52 = vsel %vm10352_vm6, %v10431_v18, %v10427_v26 }
 0x770   : > { %v10433_v41 = vcombine.low %v10353_v46, %v10432_v52 }
 0x772   : > { %v10440_v39 = vrot.slane %v10433_v41, %v14937_v22 }
 0x774   : > { %v10447_v1 = vrot.slane %v10440_v39, %v14937_v22 }
 0x776   : > { %10453 = vst.msk [vmem:[%s385_s27] sm:$0x3] %vm10451_vm7, %v10447_v1 }
 0x777 PF: > { %s21_s13 = sadd.s32 1, %s12131_s13  }
 0x778   : > { %p18_p4 = scmp.ge.s32.totalorder %s21_s13, 4  }
 0x77a   :  { %20 = sbr.rel (!%p18_p4) target bundleno = 1 (0x1), region = 135 }

</bundles_post_ra>
